<compile_context>
chip_gen: v5e
topology: v5e:2x2
jax: 0.10.0
libtpu: 0.0.40
codegen_flags: <defaults>
</compile_context>

<pallas_src>
import functools
import math

import jax
import jax.numpy as jnp
import numpy as np
from jax import lax
from jax.experimental import pallas as pl
from jax.experimental.pallas import tpu as pltpu

NEG_SLOPE = 0.2
BN_EPS = 0.8

_VMEM = pl.BlockSpec(memory_space=pltpu.MemorySpace.VMEM)


def _leaky_relu(y):
    return jnp.where(y > 0, y, NEG_SLOPE * y)


# ---------------------------------------------------------------------------
# Fused kernel: the whole MLP in one body. All refs are whole-array VMEM
# blocks (weights ~5.5 MB bf16 + tiny activations fit every generation's
# VMEM, including v7x's 64 MiB).
# ---------------------------------------------------------------------------
def _generator_mlp_kernel(z_ref,
                          w1, b1,
                          w2, b2, g2, bt2,
                          w3, b3, g3, bt3,
                          w4, b4, g4, bt4,
                          w5, b5,
                          o_ref, *, n_real):
    b_pad = z_ref.shape[0]
    inv_n = 1.0 / float(n_real)
    # Mask selecting the real (non-padded) batch rows; hoisted once, reused
    # by all three BN layers.
    row = lax.broadcasted_iota(jnp.int32, (b_pad, 1), 0)
    mask = (row < n_real).astype(jnp.float32)

    def dense(x_f32, w_ref, b_ref):
        # bf16 x bf16 matmul on the MXU, f32 accumulation; weights already
        # stored (in, out) so there is no in-kernel transpose.
        y = jnp.dot(x_f32.astype(jnp.bfloat16), w_ref[...],
                    preferred_element_type=jnp.float32)
        return y + b_ref[...]

    def bn_lrelu(y, g_ref, bt_ref):
        # Training-mode BatchNorm1d over the real rows only (biased variance),
        # single pass: var = E[y^2] - mu^2. Folded into one scale/shift FMA.
        ym = y * mask
        mu = jnp.sum(ym, axis=0, keepdims=True) * inv_n
        ex2 = jnp.sum(ym * y, axis=0, keepdims=True) * inv_n
        var = ex2 - mu * mu
        scale = g_ref[...] * lax.rsqrt(var + BN_EPS)       # EUP rsqrt
        shift = bt_ref[...] - mu * scale
        return _leaky_relu(y * scale + shift)

    h = _leaky_relu(dense(z_ref[...], w1, b1))          # block(latent,128)
    h = bn_lrelu(dense(h, w2, b2), g2, bt2)             # block(128,256)
    h = bn_lrelu(dense(h, w3, b3), g3, bt3)             # block(256,512)
    h = bn_lrelu(dense(h, w4, b4), g4, bt4)             # block(512,1024)
    o_ref[...] = dense(h, w5, b5).astype(o_ref.dtype)   # Linear(1024, out_pad)


# ---------------------------------------------------------------------------
# Parameter init (deterministic; mimics PyTorch Linear default init range).
# Weights are generated PyTorch-style (out, in) then transposed once to
# (in, out) and cast to bf16; the final layer is zero-padded to a multiple of
# 128 output features for lane-dense stores.
# ---------------------------------------------------------------------------
def init_params(key, input_size, output_shape):
    out_f = int(np.prod(output_shape))
    out_f_pad = ((out_f + 127) // 128) * 128
    dims_in = [input_size, 128, 256, 512, 1024]
    dims_out = [128, 256, 512, 1024, out_f]
    params = {}
    for i, (fi, fo) in enumerate(zip(dims_in, dims_out), start=1):
        key, kw, kb = jax.random.split(key, 3)
        bound = 1.0 / math.sqrt(fi)
        w = jax.random.uniform(kw, (fo, fi), jnp.float32, -bound, bound)
        b = jax.random.uniform(kb, (fo,), jnp.float32, -bound, bound)
        if i == 5 and fo != out_f_pad:
            w = jnp.pad(w, ((0, out_f_pad - fo), (0, 0)))
            b = jnp.pad(b, ((0, out_f_pad - fo),))
            fo = out_f_pad
        params[f"w{i}"] = w.T.astype(jnp.bfloat16)        # (in, out), bf16
        params[f"b{i}"] = b.reshape(1, fo).astype(jnp.float32)
        if i in (2, 3, 4):                                # BN layers
            params[f"g{i}"] = jnp.ones((1, fo), jnp.float32)
            params[f"bt{i}"] = jnp.zeros((1, fo), jnp.float32)
    return params


def linear_net_forward(params, z, output_shape):
    B, _ = z.shape
    b_pad = ((B + 7) // 8) * 8                            # sublane-align batch
    z_pad = jnp.pad(z.astype(jnp.float32), ((0, b_pad - B), (0, 0)))
    out_f = int(np.prod(output_shape))
    out_f_pad = params["w5"].shape[1]

    out = pl.pallas_call(
        functools.partial(_generator_mlp_kernel, n_real=B),
        out_shape=jax.ShapeDtypeStruct((b_pad, out_f_pad), jnp.float32),
        in_specs=[_VMEM] * 17,
        out_specs=_VMEM,
        compiler_params=pltpu.CompilerParams(vmem_limit_bytes=32 * 1024 * 1024),
    )(z_pad,
      params["w1"], params["b1"],
      params["w2"], params["b2"], params["g2"], params["bt2"],
      params["w3"], params["b3"], params["g3"], params["bt3"],
      params["w4"], params["b4"], params["g4"], params["bt4"],
      params["w5"], params["b5"])

    return out[:B, :out_f].reshape(B, *output_shape)


if __name__ == "__main__":
    latent_size = 128                 # Generator default latent_size
    output_shape = (642, 3)           # ico_sphere(3).verts_packed().shape
    batch = 2

    key = jax.random.PRNGKey(0)
    key, kz = jax.random.split(key)
    params = init_params(key, latent_size, output_shape)
    z = jax.random.normal(kz, (batch, latent_size), jnp.float32)

    deform_verts = linear_net_forward(params, z, output_shape)
    deform_verts = jax.block_until_ready(deform_verts)
    assert deform_verts.shape == (batch, *output_shape), deform_verts.shape
    assert bool(jnp.all(jnp.isfinite(deform_verts)))
    print("KERNEL_OK")
</pallas_src>

<mosaic_0001>
module attributes {stable_mosaic.version = 11 : i64} {
  func.func @_generator_mlp_kernel(%arg0: memref<8x128xf32, #tpu.memory_space<vmem>>, %arg1: memref<128x128xbf16, #tpu.memory_space<vmem>>, %arg2: memref<1x128xf32, #tpu.memory_space<vmem>>, %arg3: memref<128x256xbf16, #tpu.memory_space<vmem>>, %arg4: memref<1x256xf32, #tpu.memory_space<vmem>>, %arg5: memref<1x256xf32, #tpu.memory_space<vmem>>, %arg6: memref<1x256xf32, #tpu.memory_space<vmem>>, %arg7: memref<256x512xbf16, #tpu.memory_space<vmem>>, %arg8: memref<1x512xf32, #tpu.memory_space<vmem>>, %arg9: memref<1x512xf32, #tpu.memory_space<vmem>>, %arg10: memref<1x512xf32, #tpu.memory_space<vmem>>, %arg11: memref<512x1024xbf16, #tpu.memory_space<vmem>>, %arg12: memref<1x1024xf32, #tpu.memory_space<vmem>>, %arg13: memref<1x1024xf32, #tpu.memory_space<vmem>>, %arg14: memref<1x1024xf32, #tpu.memory_space<vmem>>, %arg15: memref<1024x2048xbf16, #tpu.memory_space<vmem>>, %arg16: memref<1x2048xf32, #tpu.memory_space<vmem>>, %arg17: memref<8x2048xf32, #tpu.memory_space<vmem>>) attributes {dimension_semantics = [], scalar_prefetch = 0 : i64, scratch_operands = 0 : i64, tpu.core_type = #tpu.core_type<tc>} {
    %0 = tpu.iota {dimensions = array<i32: 0>} : vector<8x1xi32>
    %c2_i32 = arith.constant 2 : i32
    %1 = vector.broadcast %c2_i32 : i32 to vector<8x1xi32>
    %2 = arith.cmpi slt, %0, %1 : vector<8x1xi32>
    %3 = arith.extui %2 : vector<8x1xi1> to vector<8x1xi32>
    %4 = arith.sitofp %3 : vector<8x1xi32> to vector<8x1xf32>
    %c0 = arith.constant 0 : index
    %c0_0 = arith.constant 0 : index
    %5 = vector.load %arg0[%c0, %c0_0] : memref<8x128xf32, #tpu.memory_space<vmem>>, vector<8x128xf32>
    %6 = arith.truncf %5 : vector<8x128xf32> to vector<8x128xbf16>
    %c0_1 = arith.constant 0 : index
    %c0_2 = arith.constant 0 : index
    %7 = vector.load %arg1[%c0_1, %c0_2] : memref<128x128xbf16, #tpu.memory_space<vmem>>, vector<128x128xbf16>
    %cst = arith.constant dense<0.000000e+00> : vector<8x128xf32>
    %8 = tpu.matmul %6, %7, %cst {dimension_numbers = #tpu.dot_dimension_numbers<[1], [0], [0], [1], [0, 0, 1, 1], [], []>} : vector<8x128xbf16>, vector<128x128xbf16>, vector<8x128xf32> -> vector<8x128xf32>
    %c0_3 = arith.constant 0 : index
    %c0_4 = arith.constant 0 : index
    %9 = vector.load %arg2[%c0_3, %c0_4] : memref<1x128xf32, #tpu.memory_space<vmem>>, vector<1x128xf32>
    %10 = vector.broadcast %9 : vector<1x128xf32> to vector<8x128xf32>
    %11 = arith.addf %8, %10 : vector<8x128xf32>
    %cst_5 = arith.constant 0.000000e+00 : f32
    %12 = vector.broadcast %cst_5 : f32 to vector<8x128xf32>
    %13 = arith.cmpf ogt, %11, %12 : vector<8x128xf32>
    %cst_6 = arith.constant 2.000000e-01 : f32
    %14 = vector.broadcast %cst_6 : f32 to vector<8x128xf32>
    %15 = arith.mulf %14, %11 : vector<8x128xf32>
    %16 = arith.select %13, %11, %15 : vector<8x128xi1>, vector<8x128xf32>
    %17 = arith.truncf %16 : vector<8x128xf32> to vector<8x128xbf16>
    %c0_7 = arith.constant 0 : index
    %c0_8 = arith.constant 0 : index
    %18 = vector.load %arg3[%c0_7, %c0_8] : memref<128x256xbf16, #tpu.memory_space<vmem>>, vector<128x256xbf16>
    %cst_9 = arith.constant dense<0.000000e+00> : vector<8x256xf32>
    %19 = tpu.matmul %17, %18, %cst_9 {dimension_numbers = #tpu.dot_dimension_numbers<[1], [0], [0], [1], [0, 0, 1, 1], [], []>} : vector<8x128xbf16>, vector<128x256xbf16>, vector<8x256xf32> -> vector<8x256xf32>
    %c0_10 = arith.constant 0 : index
    %c0_11 = arith.constant 0 : index
    %20 = vector.load %arg4[%c0_10, %c0_11] : memref<1x256xf32, #tpu.memory_space<vmem>>, vector<1x256xf32>
    %21 = vector.broadcast %20 : vector<1x256xf32> to vector<8x256xf32>
    %22 = arith.addf %19, %21 : vector<8x256xf32>
    %23 = vector.broadcast %4 : vector<8x1xf32> to vector<8x256xf32>
    %24 = arith.mulf %22, %23 : vector<8x256xf32>
    %cst_12 = arith.constant dense<0.000000e+00> : vector<256xf32>
    %25 = vector.multi_reduction <add>, %24, %cst_12 [0] : vector<8x256xf32> to vector<256xf32>
    %26 = vector.shape_cast %25 : vector<256xf32> to vector<1x256xf32>
    %cst_13 = arith.constant 5.000000e-01 : f32
    %27 = vector.broadcast %cst_13 : f32 to vector<1x256xf32>
    %28 = arith.mulf %26, %27 : vector<1x256xf32>
    %29 = arith.mulf %24, %22 : vector<8x256xf32>
    %cst_14 = arith.constant dense<0.000000e+00> : vector<256xf32>
    %30 = vector.multi_reduction <add>, %29, %cst_14 [0] : vector<8x256xf32> to vector<256xf32>
    %31 = vector.shape_cast %30 : vector<256xf32> to vector<1x256xf32>
    %cst_15 = arith.constant 5.000000e-01 : f32
    %32 = vector.broadcast %cst_15 : f32 to vector<1x256xf32>
    %33 = arith.mulf %31, %32 : vector<1x256xf32>
    %34 = arith.mulf %28, %28 : vector<1x256xf32>
    %35 = arith.subf %33, %34 : vector<1x256xf32>
    %c0_16 = arith.constant 0 : index
    %c0_17 = arith.constant 0 : index
    %36 = vector.load %arg5[%c0_16, %c0_17] : memref<1x256xf32, #tpu.memory_space<vmem>>, vector<1x256xf32>
    %cst_18 = arith.constant 8.000000e-01 : f32
    %37 = vector.broadcast %cst_18 : f32 to vector<1x256xf32>
    %38 = arith.addf %35, %37 : vector<1x256xf32>
    %39 = math.rsqrt %38 : vector<1x256xf32>
    %40 = arith.mulf %36, %39 : vector<1x256xf32>
    %c0_19 = arith.constant 0 : index
    %c0_20 = arith.constant 0 : index
    %41 = vector.load %arg6[%c0_19, %c0_20] : memref<1x256xf32, #tpu.memory_space<vmem>>, vector<1x256xf32>
    %42 = arith.mulf %28, %40 : vector<1x256xf32>
    %43 = arith.subf %41, %42 : vector<1x256xf32>
    %44 = vector.broadcast %40 : vector<1x256xf32> to vector<8x256xf32>
    %45 = arith.mulf %22, %44 : vector<8x256xf32>
    %46 = vector.broadcast %43 : vector<1x256xf32> to vector<8x256xf32>
    %47 = arith.addf %45, %46 : vector<8x256xf32>
    %cst_21 = arith.constant 0.000000e+00 : f32
    %48 = vector.broadcast %cst_21 : f32 to vector<8x256xf32>
    %49 = arith.cmpf ogt, %47, %48 : vector<8x256xf32>
    %cst_22 = arith.constant 2.000000e-01 : f32
    %50 = vector.broadcast %cst_22 : f32 to vector<8x256xf32>
    %51 = arith.mulf %50, %47 : vector<8x256xf32>
    %52 = arith.select %49, %47, %51 : vector<8x256xi1>, vector<8x256xf32>
    %53 = arith.truncf %52 : vector<8x256xf32> to vector<8x256xbf16>
    %c0_23 = arith.constant 0 : index
    %c0_24 = arith.constant 0 : index
    %54 = vector.load %arg7[%c0_23, %c0_24] : memref<256x512xbf16, #tpu.memory_space<vmem>>, vector<256x512xbf16>
    %cst_25 = arith.constant dense<0.000000e+00> : vector<8x512xf32>
    %55 = tpu.matmul %53, %54, %cst_25 {dimension_numbers = #tpu.dot_dimension_numbers<[1], [0], [0], [1], [0, 0, 1, 1], [], []>} : vector<8x256xbf16>, vector<256x512xbf16>, vector<8x512xf32> -> vector<8x512xf32>
    %c0_26 = arith.constant 0 : index
    %c0_27 = arith.constant 0 : index
    %56 = vector.load %arg8[%c0_26, %c0_27] : memref<1x512xf32, #tpu.memory_space<vmem>>, vector<1x512xf32>
    %57 = vector.broadcast %56 : vector<1x512xf32> to vector<8x512xf32>
    %58 = arith.addf %55, %57 : vector<8x512xf32>
    %59 = vector.broadcast %4 : vector<8x1xf32> to vector<8x512xf32>
    %60 = arith.mulf %58, %59 : vector<8x512xf32>
    %cst_28 = arith.constant dense<0.000000e+00> : vector<512xf32>
    %61 = vector.multi_reduction <add>, %60, %cst_28 [0] : vector<8x512xf32> to vector<512xf32>
    %62 = vector.shape_cast %61 : vector<512xf32> to vector<1x512xf32>
    %cst_29 = arith.constant 5.000000e-01 : f32
    %63 = vector.broadcast %cst_29 : f32 to vector<1x512xf32>
    %64 = arith.mulf %62, %63 : vector<1x512xf32>
    %65 = arith.mulf %60, %58 : vector<8x512xf32>
    %cst_30 = arith.constant dense<0.000000e+00> : vector<512xf32>
    %66 = vector.multi_reduction <add>, %65, %cst_30 [0] : vector<8x512xf32> to vector<512xf32>
    %67 = vector.shape_cast %66 : vector<512xf32> to vector<1x512xf32>
    %cst_31 = arith.constant 5.000000e-01 : f32
    %68 = vector.broadcast %cst_31 : f32 to vector<1x512xf32>
    %69 = arith.mulf %67, %68 : vector<1x512xf32>
    %70 = arith.mulf %64, %64 : vector<1x512xf32>
    %71 = arith.subf %69, %70 : vector<1x512xf32>
    %c0_32 = arith.constant 0 : index
    %c0_33 = arith.constant 0 : index
    %72 = vector.load %arg9[%c0_32, %c0_33] : memref<1x512xf32, #tpu.memory_space<vmem>>, vector<1x512xf32>
    %cst_34 = arith.constant 8.000000e-01 : f32
    %73 = vector.broadcast %cst_34 : f32 to vector<1x512xf32>
    %74 = arith.addf %71, %73 : vector<1x512xf32>
    %75 = math.rsqrt %74 : vector<1x512xf32>
    %76 = arith.mulf %72, %75 : vector<1x512xf32>
    %c0_35 = arith.constant 0 : index
    %c0_36 = arith.constant 0 : index
    %77 = vector.load %arg10[%c0_35, %c0_36] : memref<1x512xf32, #tpu.memory_space<vmem>>, vector<1x512xf32>
    %78 = arith.mulf %64, %76 : vector<1x512xf32>
    %79 = arith.subf %77, %78 : vector<1x512xf32>
    %80 = vector.broadcast %76 : vector<1x512xf32> to vector<8x512xf32>
    %81 = arith.mulf %58, %80 : vector<8x512xf32>
    %82 = vector.broadcast %79 : vector<1x512xf32> to vector<8x512xf32>
    %83 = arith.addf %81, %82 : vector<8x512xf32>
    %cst_37 = arith.constant 0.000000e+00 : f32
    %84 = vector.broadcast %cst_37 : f32 to vector<8x512xf32>
    %85 = arith.cmpf ogt, %83, %84 : vector<8x512xf32>
    %cst_38 = arith.constant 2.000000e-01 : f32
    %86 = vector.broadcast %cst_38 : f32 to vector<8x512xf32>
    %87 = arith.mulf %86, %83 : vector<8x512xf32>
    %88 = arith.select %85, %83, %87 : vector<8x512xi1>, vector<8x512xf32>
    %89 = arith.truncf %88 : vector<8x512xf32> to vector<8x512xbf16>
    %c0_39 = arith.constant 0 : index
    %c0_40 = arith.constant 0 : index
    %90 = vector.load %arg11[%c0_39, %c0_40] : memref<512x1024xbf16, #tpu.memory_space<vmem>>, vector<512x1024xbf16>
    %cst_41 = arith.constant dense<0.000000e+00> : vector<8x1024xf32>
    %91 = tpu.matmul %89, %90, %cst_41 {dimension_numbers = #tpu.dot_dimension_numbers<[1], [0], [0], [1], [0, 0, 1, 1], [], []>} : vector<8x512xbf16>, vector<512x1024xbf16>, vector<8x1024xf32> -> vector<8x1024xf32>
    %c0_42 = arith.constant 0 : index
    %c0_43 = arith.constant 0 : index
    %92 = vector.load %arg12[%c0_42, %c0_43] : memref<1x1024xf32, #tpu.memory_space<vmem>>, vector<1x1024xf32>
    %93 = vector.broadcast %92 : vector<1x1024xf32> to vector<8x1024xf32>
    %94 = arith.addf %91, %93 : vector<8x1024xf32>
    %95 = vector.broadcast %4 : vector<8x1xf32> to vector<8x1024xf32>
    %96 = arith.mulf %94, %95 : vector<8x1024xf32>
    %cst_44 = arith.constant dense<0.000000e+00> : vector<1024xf32>
    %97 = vector.multi_reduction <add>, %96, %cst_44 [0] : vector<8x1024xf32> to vector<1024xf32>
    %98 = vector.shape_cast %97 : vector<1024xf32> to vector<1x1024xf32>
    %cst_45 = arith.constant 5.000000e-01 : f32
    %99 = vector.broadcast %cst_45 : f32 to vector<1x1024xf32>
    %100 = arith.mulf %98, %99 : vector<1x1024xf32>
    %101 = arith.mulf %96, %94 : vector<8x1024xf32>
    %cst_46 = arith.constant dense<0.000000e+00> : vector<1024xf32>
    %102 = vector.multi_reduction <add>, %101, %cst_46 [0] : vector<8x1024xf32> to vector<1024xf32>
    %103 = vector.shape_cast %102 : vector<1024xf32> to vector<1x1024xf32>
    %cst_47 = arith.constant 5.000000e-01 : f32
    %104 = vector.broadcast %cst_47 : f32 to vector<1x1024xf32>
    %105 = arith.mulf %103, %104 : vector<1x1024xf32>
    %106 = arith.mulf %100, %100 : vector<1x1024xf32>
    %107 = arith.subf %105, %106 : vector<1x1024xf32>
    %c0_48 = arith.constant 0 : index
    %c0_49 = arith.constant 0 : index
    %108 = vector.load %arg13[%c0_48, %c0_49] : memref<1x1024xf32, #tpu.memory_space<vmem>>, vector<1x1024xf32>
    %cst_50 = arith.constant 8.000000e-01 : f32
    %109 = vector.broadcast %cst_50 : f32 to vector<1x1024xf32>
    %110 = arith.addf %107, %109 : vector<1x1024xf32>
    %111 = math.rsqrt %110 : vector<1x1024xf32>
    %112 = arith.mulf %108, %111 : vector<1x1024xf32>
    %c0_51 = arith.constant 0 : index
    %c0_52 = arith.constant 0 : index
    %113 = vector.load %arg14[%c0_51, %c0_52] : memref<1x1024xf32, #tpu.memory_space<vmem>>, vector<1x1024xf32>
    %114 = arith.mulf %100, %112 : vector<1x1024xf32>
    %115 = arith.subf %113, %114 : vector<1x1024xf32>
    %116 = vector.broadcast %112 : vector<1x1024xf32> to vector<8x1024xf32>
    %117 = arith.mulf %94, %116 : vector<8x1024xf32>
    %118 = vector.broadcast %115 : vector<1x1024xf32> to vector<8x1024xf32>
    %119 = arith.addf %117, %118 : vector<8x1024xf32>
    %cst_53 = arith.constant 0.000000e+00 : f32
    %120 = vector.broadcast %cst_53 : f32 to vector<8x1024xf32>
    %121 = arith.cmpf ogt, %119, %120 : vector<8x1024xf32>
    %cst_54 = arith.constant 2.000000e-01 : f32
    %122 = vector.broadcast %cst_54 : f32 to vector<8x1024xf32>
    %123 = arith.mulf %122, %119 : vector<8x1024xf32>
    %124 = arith.select %121, %119, %123 : vector<8x1024xi1>, vector<8x1024xf32>
    %125 = arith.truncf %124 : vector<8x1024xf32> to vector<8x1024xbf16>
    %c0_55 = arith.constant 0 : index
    %c0_56 = arith.constant 0 : index
    %126 = vector.load %arg15[%c0_55, %c0_56] : memref<1024x2048xbf16, #tpu.memory_space<vmem>>, vector<1024x2048xbf16>
    %cst_57 = arith.constant dense<0.000000e+00> : vector<8x2048xf32>
    %127 = tpu.matmul %125, %126, %cst_57 {dimension_numbers = #tpu.dot_dimension_numbers<[1], [0], [0], [1], [0, 0, 1, 1], [], []>} : vector<8x1024xbf16>, vector<1024x2048xbf16>, vector<8x2048xf32> -> vector<8x2048xf32>
    %c0_58 = arith.constant 0 : index
    %c0_59 = arith.constant 0 : index
    %128 = vector.load %arg16[%c0_58, %c0_59] : memref<1x2048xf32, #tpu.memory_space<vmem>>, vector<1x2048xf32>
    %129 = vector.broadcast %128 : vector<1x2048xf32> to vector<8x2048xf32>
    %130 = arith.addf %127, %129 : vector<8x2048xf32>
    %c0_60 = arith.constant 0 : index
    %c0_61 = arith.constant 0 : index
    %131 = vector.load %arg17[%c0_60, %c0_61] : memref<8x2048xf32, #tpu.memory_space<vmem>>, vector<8x2048xf32>
    tpu.vector_store %arg17[%c0_60, %c0_61], %130 {strides = array<i32>} : memref<8x2048xf32, #tpu.memory_space<vmem>>, vector<8x2048xf32>,
    return
  }
}

</mosaic_0001>

<bundles_post_ra>
// kernel: tpu_custom_call.1
= control target key start
LH: loop header
LB: loop body
LE: loop exit
PB: predicated region body
PF: predicated region fallthrough
CT: control target
= control target key end

     0   :  { %s19881_s0 = inlined_call_operand.hbm [shape: f32[8,128], index: 0, kind: input, shape index: {}]   ;;  %s19882_s1 = inlined_call_operand.hbm [shape: bf16[128,128], index: 1, kind: input, shape index: {}]   ;;  %s19883_s2 = inlined_call_operand.hbm [shape: f32[1,128], index: 2, kind: input, shape index: {}]   ;;  %s19884_s3 = inlined_call_operand.hbm [shape: bf16[128,256], index: 3, kind: input, shape index: {}]   ;;  %s19885_s4 = inlined_call_operand.hbm [shape: f32[1,256], index: 4, kind: input, shape index: {}]   ;;  %s19886_s5 = inlined_call_operand.hbm [shape: f32[1,256], index: 5, kind: input, shape index: {}]   ;;  %s19887_s6 = inlined_call_operand.hbm [shape: f32[1,256], index: 6, kind: input, shape index: {}]   ;;  %s19888_s7 = inlined_call_operand.hbm [shape: bf16[256,512], index: 7, kind: input, shape index: {}]   ;;  %s19889_s8 = inlined_call_operand.hbm [shape: f32[1,512], index: 8, kind: input, shape index: {}]   ;;  %s19890_s9 = inlined_call_operand.hbm [shape: f32[1,512], index: 9, kind: input, shape index: {}]   ;;  %s19891_s10 = inlined_call_operand.hbm [shape: f32[1,512], index: 10, kind: input, shape index: {}]   ;;  %s19892_s11 = inlined_call_operand.hbm [shape: bf16[512,1024], index: 11, kind: input, shape index: {}]   ;;  %s19893_s12 = inlined_call_operand.hbm [shape: f32[1,1024], index: 12, kind: input, shape index: {}]   ;;  %s19894_s13 = inlined_call_operand.hbm [shape: f32[1,1024], index: 13, kind: input, shape index: {}]   ;;  %s19895_s14 = inlined_call_operand.hbm [shape: f32[1,1024], index: 14, kind: input, shape index: {}]   ;;  %s19896_s15 = inlined_call_operand.hbm [shape: bf16[1024,2048], index: 15, kind: input, shape index: {}]   ;;  %s19897_s16 = inlined_call_operand.hbm [shape: f32[1,2048], index: 16, kind: input, shape index: {}]   ;;  %s19898_s17 = inlined_call_operand.hbm [shape: f32[8,2048], index: 17, kind: output, shape index: {}]  }
   0x1   :  { %19899 = sst [smem:[#allocation40_spill]] %s19881_s0 }
   0x2   :  { %19900 = sst [smem:[#allocation41_spill]] %s19882_s1 }
   0x3   :  { %19901 = sst [smem:[#allocation42_spill]] %s19898_s17 }
   0x4   :  { %22 = vsyncpa [#allocation3], 0 }
   0x5   :  { %23 = vsyncpa [#allocation6], 0 }
   0x6   :  { %24 = vsyncpa [#allocation9], 0 }
   0x7   :  { %25 = vsyncpa [#allocation12], 0 }
   0x8   :  { %26 = vsyncpa [#allocation15], 0 }
   0x9   :  { %27 = vsyncpa [#allocation18], 0 }
   0xa   :  { %28 = vsyncpa [#allocation21], 0 }
   0xb   :  { %29 = vsyncpa [#allocation24], 0 }
   0xc   :  { %30 = vsyncpa [#allocation27], 0  ;;  %s19902_s26 = sld [smem:[#allocation41_spill]] }
  0x12   :  { %s47_s27 = sshll.u32 %s19902_s26, 4  ;;  %s48_s27 = int_to_ptr.hbm [resolvable:$true] %s47_s27 }
  0x13   :  { %31 = vsyncpa [#allocation4], 0  ;;  %s18889_s28 = smov [#allocation5]   ;;  %s71_s18 = sshll.u32 %s19884_s3, 4  ;;  %s72_s18 = int_to_ptr.hbm [resolvable:$true] %s71_s18 }
  0x14   :  { %s49_s29 = sshll.u32 %s18889_s28, 4  ;;  %s18890_s19 = smov 64   ;;  %s50_s29 = int_to_ptr.vmem [resolvable:$true] %s49_s29 }
  0x15   :  { %s18891_s1 = smov 4   ;;  %s18892_s20 = smov [#allocation8]  }
  0x16   :  { %55 = dma.hbm_to_vmem [thread:$0]  %s48_s27, 1024, %s50_s29, [#allocation6], %s18890_s19, %s18890_s19, %s18891_s1  }
  0x17   :  { %s73_s21 = sshll.u32 %s18892_s20, 4  ;;  %s18893_s22 = smov 128   ;;  %s74_s21 = int_to_ptr.vmem [resolvable:$true] %s73_s21 }
  0x18   :  { %s18894_s23 = smov 8   ;;  %s96_s26 = sshll.u32 %s19886_s5, 4  ;;  %s97_s26 = int_to_ptr.hbm [resolvable:$true] %s96_s26 }
  0x19   :  { %79 = dma.hbm_to_vmem [thread:$0]  %s72_s18, 2048, %s74_s21, [#allocation9], %s18893_s22, %s18893_s22, %s18894_s23  }
  0x1a   :  { %s18895_s28 = smov [#allocation11]   ;;  %s117_s17 = sshll.u32 %s19888_s7, 4  ;;  %s118_s17 = int_to_ptr.hbm [resolvable:$true] %s117_s17 }
  0x1b   :  { %s98_s0 = sshll.u32 %s18895_s28, 4  ;;  %s18896_s27 = smov [#allocation14]   ;;  %s99_s0 = int_to_ptr.vmem [resolvable:$true] %s98_s0 }
  0x1c   :  { %101 = dma.hbm_to_vmem [thread:$0]  %s97_s26, 32, %s99_s0, [#allocation12]  }
  0x1d   :  { %s119_s29 = sshll.u32 %s18896_s27, 4  ;;  %s18897_s1 = smov 256   ;;  %s120_s29 = int_to_ptr.vmem [resolvable:$true] %s119_s29 }
  0x1e   :  { %s18898_s20 = smov 16   ;;  %s142_s5 = sshll.u32 %s19890_s9, 4  ;;  %s143_s5 = int_to_ptr.hbm [resolvable:$true] %s142_s5 }
  0x1f   :  { %125 = dma.hbm_to_vmem [thread:$0]  %s118_s17, 8192, %s120_s29, [#allocation15], %s18897_s1, %s18897_s1, %s18898_s20  }
  0x20   :  { %s18899_s22 = smov [#allocation17]   ;;  %s163_s7 = sshll.u32 %s19892_s11, 4  ;;  %s164_s7 = int_to_ptr.hbm [resolvable:$true] %s163_s7 }
  0x21   :  { %s144_s23 = sshll.u32 %s18899_s22, 4  ;;  %s18900_s26 = smov [#allocation20]   ;;  %s145_s23 = int_to_ptr.vmem [resolvable:$true] %s144_s23 }
  0x22   :  { %147 = dma.hbm_to_vmem [thread:$0]  %s143_s5, 64, %s145_s23, [#allocation18]  }
  0x23   :  { %s165_s28 = sshll.u32 %s18900_s26, 4  ;;  %s18901_s0 = smov 512   ;;  %s166_s28 = int_to_ptr.vmem [resolvable:$true] %s165_s28 }
  0x24   :  { %s18902_s3 = smov 32   ;;  %s188_s9 = sshll.u32 %s19894_s13, 4  ;;  %s189_s9 = int_to_ptr.hbm [resolvable:$true] %s188_s9 }
  0x25   :  { %171 = dma.hbm_to_vmem [thread:$0]  %s164_s7, 32768, %s166_s28, [#allocation21], %s18901_s0, %s18901_s0, %s18902_s3  }
  0x26   :  { %s18903_s27 = smov [#allocation23]   ;;  %s209_s11 = sshll.u32 %s19896_s15, 4  ;;  %s210_s11 = int_to_ptr.hbm [resolvable:$true] %s209_s11 }
  0x27   :  { %s190_s29 = sshll.u32 %s18903_s27, 4  ;;  %s18904_s18 = smov [#allocation26]   ;;  %s191_s29 = int_to_ptr.vmem [resolvable:$true] %s190_s29 }
  0x28   :  { %193 = dma.hbm_to_vmem [thread:$0]  %s189_s9, 128, %s191_s29, [#allocation24]  }
  0x29   :  { %s211_s21 = sshll.u32 %s18904_s18, 4  ;;  %s19903_s23 = sld [smem:[#allocation40_spill]]  ;;  %s212_s21 = int_to_ptr.vmem [resolvable:$true] %s211_s21 }
  0x2a   :  { %s18905_s25 = smov 1024   ;;  %s18906_s13 = smov [#allocation2]  }
  0x2b   :  { %217 = dma.hbm_to_vmem [thread:$0]  %s210_s11, 131072, %s212_s21, [#allocation27], %s18905_s25, %s18905_s25, %s18890_s19  }
  0x2c   :  { %s39_s7 = sshll.u32 %s18906_s13, 4  ;;  %s61_s0 = sshll.u32 %s19883_s2, 4  ;;  %s40_s7 = int_to_ptr.vmem [resolvable:$true] %s39_s7  ;;  %s62_s0 = int_to_ptr.hbm [resolvable:$true] %s61_s0 }
  0x2d   :  { %s85_s17 = sshll.u32 %s19885_s4, 4  ;;  %s18907_s30 = smov [#allocation7]   ;;  %s86_s17 = int_to_ptr.hbm [resolvable:$true] %s85_s17 }
  0x2e   :  { %s63_s9 = sshll.u32 %s18907_s30, 4  ;;  %s18908_s19 = smov [#allocation10]   ;;  %s64_s9 = int_to_ptr.vmem [resolvable:$true] %s63_s9 }
  0x2f   :  { %s37_s24 = sshll.u32 %s19903_s23, 4  ;;  %s87_s27 = sshll.u32 %s18908_s19, 4  ;;  %s38_s24 = int_to_ptr.hbm [resolvable:$true] %s37_s24  ;;  %s88_s27 = int_to_ptr.vmem [resolvable:$true] %s87_s27 }
  0x30   :  { %42 = dma.hbm_to_vmem [thread:$0]  %s38_s24, 128, %s40_s7, [#allocation3]  }
  0x31   :  { %66 = dma.hbm_to_vmem [thread:$0]  %s62_s0, 16, %s64_s9, [#allocation6]  }
  0x32   :  { %s107_s20 = sshll.u32 %s19887_s6, 4  ;;  %s131_s18 = sshll.u32 %s19889_s8, 4  ;;  %s108_s20 = int_to_ptr.hbm [resolvable:$true] %s107_s20  ;;  %s132_s18 = int_to_ptr.hbm [resolvable:$true] %s131_s18 }
  0x33   :  { %90 = dma.hbm_to_vmem [thread:$0]  %s86_s17, 32, %s88_s27, [#allocation9]  }
  0x34   :  { %s18909_s21 = smov [#allocation13]   ;;  %s18910_s5 = smov [#allocation16]  }
  0x35   :  { %s109_s4 = sshll.u32 %s18909_s21, 4  ;;  %s133_s22 = sshll.u32 %s18910_s5, 4  ;;  %s110_s4 = int_to_ptr.vmem [resolvable:$true] %s109_s4  ;;  %s134_s22 = int_to_ptr.vmem [resolvable:$true] %s133_s22 }
  0x36   :  { %112 = dma.hbm_to_vmem [thread:$0]  %s108_s20, 32, %s110_s4, [#allocation12]  }
  0x37   :  { %s153_s25 = sshll.u32 %s19891_s10, 4  ;;  %s177_s7 = sshll.u32 %s19893_s12, 4  ;;  %s154_s25 = int_to_ptr.hbm [resolvable:$true] %s153_s25  ;;  %s178_s7 = int_to_ptr.hbm [resolvable:$true] %s177_s7 }
  0x38   :  { %136 = dma.hbm_to_vmem [thread:$0]  %s132_s18, 64, %s134_s22, [#allocation15]  }
  0x39   :  { %s18911_s26 = smov [#allocation19]   ;;  %s18912_s28 = smov [#allocation22]  }
  0x3a   :  { %s155_s8 = sshll.u32 %s18911_s26, 4  ;;  %s179_s0 = sshll.u32 %s18912_s28, 4  ;;  %s156_s8 = int_to_ptr.vmem [resolvable:$true] %s155_s8  ;;  %s180_s0 = int_to_ptr.vmem [resolvable:$true] %s179_s0 }
  0x3b   :  { %158 = dma.hbm_to_vmem [thread:$0]  %s154_s25, 64, %s156_s8, [#allocation18]  }
  0x3c   :  { %s199_s17 = sshll.u32 %s19895_s14, 4  ;;  %s223_s9 = sshll.u32 %s19897_s16, 4  ;;  %s200_s17 = int_to_ptr.hbm [resolvable:$true] %s199_s17  ;;  %s224_s9 = int_to_ptr.hbm [resolvable:$true] %s223_s9 }
  0x3d   :  { %182 = dma.hbm_to_vmem [thread:$0]  %s178_s7, 128, %s180_s0, [#allocation21]  }
  0x3e   :  { %s18913_s19 = smov [#allocation25]   ;;  %s18914_s27 = smov [#allocation28]  }
  0x3f   :  { %s201_s12 = sshll.u32 %s18913_s19, 4  ;;  %s225_s29 = sshll.u32 %s18914_s27, 4  ;;  %s202_s12 = int_to_ptr.vmem [resolvable:$true] %s201_s12  ;;  %s226_s29 = int_to_ptr.vmem [resolvable:$true] %s225_s29 }
  0x40   :  { %204 = dma.hbm_to_vmem [thread:$0]  %s200_s17, 128, %s202_s12, [#allocation24]  }
  0x41   :  { %228 = dma.hbm_to_vmem [thread:$0]  %s224_s9, 256, %s226_s29, [#allocation27]  }
  0x42   :  { %18869 = dma.done.wait [#allocation3], 128  }
  0x43   :  { %18870 = vsyncadd [#allocation3], 4294967168 }
  0x44   :  { %18871 = dma.done.wait [#allocation6], 1040  }
  0x45   :  { %18872 = vsyncadd [#allocation6], 4294966256 }
  0x46   :  { %18873 = dma.done.wait [#allocation9], 2080  }
  0x47   :  { %18874 = vsyncadd [#allocation9], 4294965216 }
  0x48   :  { %18875 = dma.done.wait [#allocation12], 64  }
  0x49   :  { %18876 = vsyncadd [#allocation12], 4294967232 }
  0x4a   :  { %18877 = dma.done.wait [#allocation15], 8256  }
  0x4b   :  { %18878 = vsyncadd [#allocation15], 4294959040 }
  0x4c   :  { %18879 = dma.done.wait [#allocation18], 128  }
  0x4d   :  { %18880 = vsyncadd [#allocation18], 4294967168 }
  0x4e   :  { %18881 = dma.done.wait [#allocation21], 32896  }
  0x4f   :  { %18882 = vsyncadd [#allocation21], 4294934400 }
  0x50   :  { %18883 = dma.done.wait [#allocation24], 256  }
  0x51   :  { %18884 = vsyncadd [#allocation24], 4294967040 }
  0x52   :  { %18885 = dma.done.wait [#allocation27], 131328  }
  0x53   :  { %18886 = vsyncadd [#allocation27], 4294835968  ;;  %v17013_v0 = vld [vmem:[#allocation5 + $0x38] sm:$0xff]  ;;  %v17012_v1 = vld [vmem:[#allocation5 + $0x30] sm:$0xff]  ;;  %vm579_vm7 = vcmask 1040384   ;;  %s18916_s14 = smov [#allocation29]  }
  0x54   :  { %372 = vmatpush.bf16.msra.mxu0 %v17013_v0  ;;  %v11624_v2 = vld [vmem:[#allocation8 + $0x70] sm:$0xf]  ;;  %v17029_v3 = vld [vmem:[#allocation8 + $0x74] sm:$0xf0]  ;;  %v17028_v4 = vld [vmem:[#allocation8 + $0x74] sm:$0xf] }
  0x55   :  { %v11625_v5 = vor.u32 %v17029_v3, %v11624_v2  ;;  %v11626_v6 = vld [vmem:[#allocation8 + $0x78] sm:$0xf0]  ;;  %v11616_v7 = vld [vmem:[#allocation8 + $0x60] sm:$0xf]  ;;  %v17027_v8 = vld [vmem:[#allocation8 + $0x64] sm:$0xf0] }
  0x56   :  { %v11629_v9 = vor.u32 %v17028_v4, %v11626_v6  ;;  %v17026_v10 = vld [vmem:[#allocation8 + $0x64] sm:$0xf]  ;;  %v11618_v11 = vld [vmem:[#allocation8 + $0x68] sm:$0xf0]  ;;  %v11617_v13 = vor.u32 %v17027_v8, %v11616_v7  ;;  %v11608_v15 = vld [vmem:[#allocation8 + $0x50] sm:$0xf] }
  0x57   :  { %v17011_v12 = vld [vmem:[#allocation5 + $0x28] sm:$0xff]  ;;  %491 = vmatpush.bf16.msra.mxu1 %v11625_v5  ;;  %v11621_v14 = vor.u32 %v17026_v10, %v11618_v11  ;;  %v17025_v16 = vld [vmem:[#allocation8 + $0x54] sm:$0xf0]  ;;  %v17024_v17 = vld [vmem:[#allocation8 + $0x54] sm:$0xf]  ;;  %s11513_s16 = sshll.u32 %s18916_s14, 4  ;;  %s11514_s16 = int_to_ptr.vmem [resolvable:$true] %s11513_s16 }
  0x58   :  { %373 = vmatpush.bf16.msra.mxu0 %v17012_v1  ;;  %504 = vmatpush.bf16.msra.mxu2 %v11629_v9  ;;  %v11610_v18 = vld [vmem:[#allocation8 + $0x58] sm:$0xf0]  ;;  %v11609_v20 = vor.u32 %v17025_v16, %v11608_v15  ;;  %v11600_v22 = vld [vmem:[#allocation8 + $0x40] sm:$0xf]  ;;  %v17023_v23 = vld [vmem:[#allocation8 + $0x44] sm:$0xf0]  ;;  %v297_v1 = vlaneseq }
  0x59   :  { %v17010_v19 = vld [vmem:[#allocation5 + $0x20] sm:$0xff]  ;;  %v11613_v21 = vor.u32 %v17024_v17, %v11610_v18  ;;  %v11602_v25 = vld [vmem:[#allocation8 + $0x48] sm:$0xf0]  ;;  %v17009_v26 = vld [vmem:[#allocation5 + $0x18] sm:$0xff]  ;;  %v11601_v27 = vor.u32 %v17023_v23, %v11600_v22  ;;  %s19920_s2 = sld [smem:[#allocation42_spill]] }
  0x5a   :  { %v17022_v24 = vld [vmem:[#allocation8 + $0x44] sm:$0xf]  ;;  %v11592_v29 = vld [vmem:[#allocation8 + $0x30] sm:$0xf]  ;;  %v17021_v30 = vld [vmem:[#allocation8 + $0x34] sm:$0xf0] }
  0x5b   :  { %492 = vmatpush.bf16.msra.mxu1 %v11617_v13  ;;  %v11605_v28 = vor.u32 %v17022_v24, %v11602_v25  ;;  %v17020_v31 = vld [vmem:[#allocation8 + $0x34] sm:$0xf]  ;;  %v11594_v32 = vld [vmem:[#allocation8 + $0x38] sm:$0xf0]  ;;  %v11593_v34 = vor.u32 %v17021_v30, %v11592_v29  ;;  %v11584_v36 = vld [vmem:[#allocation8 + $0x20] sm:$0xf] }
  0x5c   :  { %374 = vmatpush.bf16.msra.mxu0 %v17011_v12  ;;  %505 = vmatpush.bf16.msra.mxu2 %v11621_v14  ;;  %v17008_v33 = vld [vmem:[#allocation5 + $0x10] sm:$0xff]  ;;  %v11597_v35 = vor.u32 %v17020_v31, %v11594_v32  ;;  %v17019_v37 = vld [vmem:[#allocation8 + $0x24] sm:$0xf0]  ;;  %v17018_v38 = vld [vmem:[#allocation8 + $0x24] sm:$0xf]  ;;  %v298_v2 = vshrl.u32 %v297_v1, 7 }
  0x5d   :  { %v11586_v39 = vld [vmem:[#allocation8 + $0x28] sm:$0xf0]  ;;  %v11585_v41 = vor.u32 %v17019_v37, %v11584_v36  ;;  %v17006_v43 = vld [vmem:[#allocation5] sm:$0xff]  ;;  %v302_v44 = vld [vmem:[#allocation2] sm:$0xff] }
  0x5e   :  { %v17007_v40 = vld [vmem:[#allocation5 + $0x8] sm:$0xff]  ;;  %v11589_v42 = vor.u32 %v17018_v38, %v11586_v39  ;;  %v303_v45 = vpack.c.bf16 %v302_v44, %v302_v44  ;;  %v11576_v46 = vld [vmem:[#allocation8 + $0x10] sm:$0xf]  ;;  %v17017_v47 = vld [vmem:[#allocation8 + $0x14] sm:$0xf0]  ;;  %vm299_vm1 = vcmp.lt.s32.totalorder %v298_v2, 2 }
  0x5f   :  { %493 = vmatpush.bf16.msra.mxu1 %v11609_v20  ;;  %v17016_v48 = vld [vmem:[#allocation8 + $0x14] sm:$0xf]  ;;  %v11577_v49 = vor.u32 %v17017_v47, %v11576_v46  ;;  %v11578_v50 = vld [vmem:[#allocation8 + $0x18] sm:$0xf0]  ;;  %v11568_v52 = vld [vmem:[#allocation8] sm:$0xf] }
  0x60   :  { %375 = vmatpush.bf16.msra.mxu0 %v17010_v19  ;;  %506 = vmatpush.bf16.msra.mxu2 %v11613_v21  ;;  %v11581_v51 = vor.u32 %v17016_v48, %v11578_v50  ;;  %v17015_v53 = vld [vmem:[#allocation8 + $0x4] sm:$0xf0]  ;;  %v17014_v54 = vld [vmem:[#allocation8 + $0x4] sm:$0xf]  ;;  %v11570_v56 = vld [vmem:[#allocation8 + $0x8] sm:$0xf0] }
  0x61   :  { %v11569_v55 = vor.u32 %v17015_v53, %v11568_v52  ;;  %v11573_v57 = vor.u32 %v17014_v54, %v11570_v56  ;;  %v18402_v58 = vld [vmem:[#allocation7] ss:$0 sm:$0xff]  ;;  %v19061_v3 = vld [vmem:[#allocation10] sm:$0x3]  ;;  %v11744_v4 = vld [vmem:[#allocation14 + $0xe0] sm:$0xf] }
  0x62   :  { %v17060_v5 = vld [vmem:[#allocation14 + $0xec] sm:$0xf0]  ;;  %v11872_v6 = vld [vmem:[#allocation14 + $0x1e0] sm:$0xf]  ;;  %v17058_v9 = vld [vmem:[#allocation14 + $0xe4] sm:$0xf] }
  0x63   :  { %494 = vmatpush.bf16.msra.mxu1 %v11601_v27  ;;  %v11745_v7 = vor.u32 %v17060_v5, %v11744_v4  ;;  %v17092_v8 = vld [vmem:[#allocation14 + $0x1ec] sm:$0xf0]  ;;  %v11746_v10 = vld [vmem:[#allocation14 + $0xf0] sm:$0xf0]  ;;  %v17090_v13 = vld [vmem:[#allocation14 + $0x1e4] sm:$0xf] }
  0x64   :  { %376 = vmatpush.bf16.msra.mxu0 %v17009_v26  ;;  %507 = vmatpush.bf16.msra.mxu2 %v11605_v28  ;;  %v11873_v11 = vor.u32 %v17092_v8, %v11872_v6  ;;  %v11749_v12 = vor.u32 %v17058_v9, %v11746_v10  ;;  %v11874_v14 = vld [vmem:[#allocation14 + $0x1f0] sm:$0xf0]  ;;  %v407_v15 = vperm.slane %v19061_v3, 0  ;;  %v11728_v17 = vld [vmem:[#allocation14 + $0xc0] sm:$0xf]  ;;  %v18915_v28 = vmov 0.0  }
  0x65   :  { %1008 = vmatpush.bf16.msra.mxu3 %v11745_v7  ;;  %v11877_v16 = vor.u32 %v17090_v13, %v11874_v14  ;;  %v17056_v18 = vld [vmem:[#allocation14 + $0xcc] sm:$0xf0]  ;;  %v11856_v19 = vld [vmem:[#allocation14 + $0x1c0] sm:$0xf]  ;;  %v17054_v22 = vld [vmem:[#allocation14 + $0xc4] sm:$0xf] }
  0x66   :  { %v11729_v20 = vor.u32 %v17056_v18, %v11728_v17  ;;  %v17088_v21 = vld [vmem:[#allocation14 + $0x1cc] sm:$0xf0]  ;;  %v11730_v23 = vld [vmem:[#allocation14 + $0xd0] sm:$0xf0]  ;;  %v17086_v26 = vld [vmem:[#allocation14 + $0x1c4] sm:$0xf] }
  0x67   :  { %495 = vmatpush.bf16.msra.mxu1 %v11593_v34  ;;  %v11857_v24 = vor.u32 %v17088_v21, %v11856_v19  ;;  %v11733_v25 = vor.u32 %v17054_v22, %v11730_v23  ;;  %v11858_v27 = vld [vmem:[#allocation14 + $0x1d0] sm:$0xf0]  ;;  %v19065_v29 = vsel %vm299_vm1, 1.0, %v18915_v28  ;;  %v17052_v34 = vld [vmem:[#allocation14 + $0xac] sm:$0xf0]  ;;  %s11515_s11 = sshll.u32 %s19920_s2, 4  ;;  %s11516_s11 = int_to_ptr.hbm [resolvable:$true] %s11515_s11 }
  0x68   :  { %377 = vmatpush.bf16.msra.mxu0 %v17008_v33  ;;  %508 = vmatpush.bf16.msra.mxu2 %v11597_v35  ;;  %v11861_v31 = vor.u32 %v17086_v26, %v11858_v27  ;;  %v11712_v33 = vld [vmem:[#allocation14 + $0xa0] sm:$0xf]  ;;  %v17084_v37 = vld [vmem:[#allocation14 + $0x1ac] sm:$0xf0]  ;;  %v17050_v38 = vld [vmem:[#allocation14 + $0xa4] sm:$0xf] }
  0x69   :  { %1009 = vmatpush.bf16.msra.mxu3 %v11729_v20  ;;  %v11840_v35 = vld [vmem:[#allocation14 + $0x1a0] sm:$0xf]  ;;  %v11713_v36 = vor.u32 %v17052_v34, %v11712_v33  ;;  %v11714_v39 = vld [vmem:[#allocation14 + $0xb0] sm:$0xf0]  ;;  %v17082_v44 = vld [vmem:[#allocation14 + $0x1a4] sm:$0xf] }
  0x6a   :  { %v17048_v50 = vld [vmem:[#allocation14 + $0x8c] sm:$0xf0]  ;;  %v11824_v53 = vld [vmem:[#allocation14 + $0x180] sm:$0xf]  ;;  %v17042_v10 = vld [vmem:[#allocation14 + $0x64] sm:$0xf] }
  0x6b   :  { %496 = vmatpush.bf16.msra.mxu1 %v11585_v41  ;;  %v408_v41 = vperm.slane %v19061_v3, 1  ;;  %v17080_v54 = vld [vmem:[#allocation14 + $0x18c] sm:$0xf0]  ;;  %v11680_v5 = vld [vmem:[#allocation14 + $0x60] sm:$0xf] }
  0x6c   :  { %378 = vmatpush.bf16.msra.mxu0 %v17007_v40  ;;  %509 = vmatpush.bf16.msra.mxu2 %v11589_v42  ;;  %v11841_v42 = vor.u32 %v17084_v37, %v11840_v35  ;;  %v17044_v6 = vld [vmem:[#allocation14 + $0x6c] sm:$0xf0]  ;;  %v11808_v8 = vld [vmem:[#allocation14 + $0x160] sm:$0xf]  ;;  %v11810_v19 = vld [vmem:[#allocation14 + $0x170] sm:$0xf0] }
  0x6d   :  { %1010 = vmatpush.bf16.msra.mxu3 %v11713_v36  ;;  %v11681_v7 = vor.u32 %v17044_v6, %v11680_v5  ;;  %v17076_v9 = vld [vmem:[#allocation14 + $0x16c] sm:$0xf0]  ;;  %v17038_v33 = vld [vmem:[#allocation14 + $0x44] sm:$0xf] }
  0x6e   :  { %v11809_v17 = vor.u32 %v17076_v9, %v11808_v8  ;;  %v17032_v5 = vld [vmem:[#allocation14 + $0xc] sm:$0xf0]  ;;  %v17030_v9 = vld [vmem:[#allocation14 + $0x4] sm:$0xf] }
  0x6f   :  { %497 = vmatpush.bf16.msra.mxu1 %v11577_v49  ;;  %v11696_v49 = vld [vmem:[#allocation14 + $0x80] sm:$0xf]  ;;  %v17064_v8 = vld [vmem:[#allocation14 + $0x10c] sm:$0xf0] }
  0x70   :  { %379 = vmatpush.bf16.msra.mxu0 %v17006_v43  ;;  %510 = vmatpush.bf16.msra.mxu2 %v11581_v51  ;;  %v11717_v43 = vor.u32 %v17050_v38, %v11714_v39  ;;  %v11697_v52 = vor.u32 %v17048_v50, %v11696_v49  ;;  %v11666_v38 = vld [vmem:[#allocation14 + $0x50] sm:$0xf0]  ;;  %v17070_v39 = vld [vmem:[#allocation14 + $0x144] sm:$0xf] }
  0x72   :  { %1011 = vmatpush.bf16.msra.mxu3 %v11697_v52  ;;  %v17068_v52 = vld [vmem:[#allocation14 + $0x12c] sm:$0xf0] }
  0x73   :  { %380 = vmatmul.bf16.vlgmr.msra.gmra.mxu0 %v303_v45  ;;  %498 = vmatpush.bf16.msra.mxu1 %v11569_v55  ;;  %v11842_v45 = vld [vmem:[#allocation14 + $0x1b0] sm:$0xf0]  ;;  %v17046_v55 = vld [vmem:[#allocation14 + $0x84] sm:$0xf] }
  0x74   :  { %511 = vmatpush.bf16.msra.mxu2 %v11573_v57  ;;  %1021 = vmatpush.bf16.msrb.mxu0 %v11873_v11  ;;  %v11845_v46 = vor.u32 %v17082_v44, %v11842_v45 }
  0x76   :  { %1012 = vmatpush.bf16.msra.mxu3 %v11681_v7  ;;  %v11760_v7 = vld [vmem:[#allocation14 + $0x100] sm:$0xf] }
  0x77   :  { %1034 = vmatpush.bf16.msrb.mxu1 %v11749_v12 }
  0x78   :  { %1047 = vmatpush.bf16.msrb.mxu2 %v11877_v16  ;;  %1022 = vmatpush.bf16.msrb.mxu0 %v11857_v24  ;;  %v17074_v16 = vld [vmem:[#allocation14 + $0x164] sm:$0xf]  ;;  %v11664_v24 = vld [vmem:[#allocation14 + $0x40] sm:$0xf] }
  0x79   :  { %v11813_v27 = vor.u32 %v17074_v16, %v11810_v19  ;;  %v17062_v16 = vld [vmem:[#allocation14 + $0x104] sm:$0xf] }
  0x7b   :  { %1035 = vmatpush.bf16.msrb.mxu1 %v11733_v25  ;;  %v17040_v25 = vld [vmem:[#allocation14 + $0x4c] sm:$0xf0] }
  0x7c   :  { %1048 = vmatpush.bf16.msrb.mxu2 %v11861_v31  ;;  %1023 = vmatpush.bf16.msrb.mxu0 %v11841_v42  ;;  %v11665_v28 = vor.u32 %v17040_v25, %v11664_v24  ;;  %v17072_v31 = vld [vmem:[#allocation14 + $0x14c] sm:$0xf0]  ;;  %v11794_v42 = vld [vmem:[#allocation14 + $0x150] sm:$0xf0]  ;;  %v17093_v25 = vld [vmem:[#allocation14 + $0x1f4] sm:$0xf0] }
  0x7d   :  { %v11797_v49 = vor.u32 %v17070_v39, %v11794_v42  ;;  %v17089_v39 = vld [vmem:[#allocation14 + $0x1d4] sm:$0xf0] }
  0x7e   :  { %1013 = vmatpush.bf16.msra.mxu3 %v11665_v28 }
  0x7f   :  { %1036 = vmatpush.bf16.msrb.mxu1 %v11717_v43 }
  0x80   :  { %1049 = vmatpush.bf16.msrb.mxu2 %v11845_v46 }
  0xf0   :  { %v381_v59 = vpop.f32.mrf.mxu0 }
  0xf1   :  { %v382_v60 = vadd.f32 %v18402_v58, %v381_v59  ;;  %v11825_v59 = vor.u32 %v17080_v54, %v11824_v53 }
  0xf3   :  { %v386_v61 = vmul.f32 0.2, %v382_v60  ;;  %vm385_vm0 = vcmp.gt.f32.partialorder %v382_v60, 0.0  ;;  %1024 = vmatpush.bf16.msrb.mxu0 %v11825_v59  ;;  %v11650_v59 = vld [vmem:[#allocation14 + $0x30] sm:$0xf0] }
  0xf5   :  { %v387_v62 = vsel %vm385_vm0, %v382_v60, %v386_v61  ;;  %v11698_v60 = vld [vmem:[#allocation14 + $0x90] sm:$0xf0]  ;;  %v17078_v61 = vld [vmem:[#allocation14 + $0x184] sm:$0xf] }
  0xf6   :  { %v388_v63 = vpack.c.bf16 %v387_v62, %v387_v62 }
  0xf7   :  { %1025 = vmatpush.bf16.msrb.mxu0 %v11809_v17  ;;  %v11762_v17 = vld [vmem:[#allocation14 + $0x110] sm:$0xf0] }
  0xf8   :  { %v383_v0 = vpop.f32.mrf.mxu0  ;;  %499 = vmatmul.bf16.vlgmr.msra.gmra.mxu1 %v388_v63  ;;  %512 = vmatmul.bf16.vlgmr.msra.gmra.mxu2 %v388_v63  ;;  %v11701_v63 = vor.u32 %v17046_v55, %v11698_v60 }
  0xf9   :  { %v11826_v0 = vld [vmem:[#allocation14 + $0x190] sm:$0xf0] }
  0xfa   :  { %v11829_v4 = vor.u32 %v17078_v61, %v11826_v0  ;;  %1037 = vmatpush.bf16.msrb.mxu1 %v11701_v63  ;;  %v11778_v63 = vld [vmem:[#allocation14 + $0x130] sm:$0xf0] }
  0xfc   :  { %1050 = vmatpush.bf16.msrb.mxu2 %v11829_v4  ;;  %v11632_v4 = vld [vmem:[#allocation14] sm:$0xf] }
  0xfd   :  { %v11633_v6 = vor.u32 %v17032_v5, %v11632_v4  ;;  %v11832_v4 = vld [vmem:[#allocation14 + $0x188] sm:$0xf]  ;;  %v17081_v5 = vld [vmem:[#allocation14 + $0x194] sm:$0xf0] }
 0x100   :  { %1051 = vmatpush.bf16.msrb.mxu2 %v11813_v27  ;;  %v11754_v27 = vld [vmem:[#allocation14 + $0xf8] sm:$0xf0] }
 0x104   :  { %1052 = vmatpush.bf16.msrb.mxu2 %v11797_v49  ;;  %v11720_v49 = vld [vmem:[#allocation14 + $0xa8] sm:$0xf] }
 0x175   :  { %v500_v30 = vpop.f32.mrf.mxu1 }
 0x176   :  { %v19067_v32 = vadd.f32 %v500_v30, %v407_v15  ;;  %v11682_v15 = vld [vmem:[#allocation14 + $0x70] sm:$0xf0]  ;;  %v11792_v30 = vld [vmem:[#allocation14 + $0x140] sm:$0xf] }
 0x177   :  { %v11685_v18 = vor.u32 %v17042_v10, %v11682_v15 }
 0x178   :  { %v517_v40 = vmul.f32 %v19065_v29, %v19067_v32 }
 0x179   :  { %1038 = vmatpush.bf16.msrb.mxu1 %v11685_v18  ;;  %v11752_v18 = vld [vmem:[#allocation14 + $0xe8] sm:$0xf] }
 0x17a   :  { %v519_v47 = vrot.slane %v517_v40, 4  ;;  %v533_v48 = vmul.f32 %v517_v40, %v19067_v32 }
 0x17b   :  { %v513_v51 = vpop.f32.mrf.mxu2 }
 0x17c   :  { %v520_v56 = vadd.f32 %v519_v47, %v517_v40  ;;  %v535_v57 = vrot.slane %v533_v48, 4  ;;  %v19073_v58 = vadd.f32 %v513_v51, %v408_v41  ;;  %v11793_v40 = vor.u32 %v17072_v31, %v11792_v30  ;;  %v11648_v47 = vld [vmem:[#allocation14 + $0x20] sm:$0xf] }
 0x17d   :  { %v502_v62 = vpop.f32.mrf.mxu1  ;;  %v11669_v41 = vor.u32 %v17038_v33, %v11666_v38  ;;  %v11776_v51 = vld [vmem:[#allocation14 + $0x120] sm:$0xf]  ;;  %v17091_v33 = vld [vmem:[#allocation14 + $0x1ec] sm:$0xf]  ;;  %v11864_v38 = vld [vmem:[#allocation14 + $0x1c8] sm:$0xf] }
 0x17e   :  { %v521_v1 = vrot.slane %v520_v56, 2  ;;  %v536_v2 = vadd.f32 %v535_v57, %v533_v48  ;;  %v518_v3 = vmul.f32 %v19065_v29, %v19073_v58  ;;  %v17036_v48 = vld [vmem:[#allocation14 + $0x2c] sm:$0xf0]  ;;  %1026 = vmatpush.bf16.msrb.mxu0 %v11793_v40  ;;  %v17034_v57 = vld [vmem:[#allocation14 + $0x24] sm:$0xf]  ;;  %v11777_v60 = vor.u32 %v17068_v52, %v11776_v51 }
 0x17f   :  { %1039 = vmatpush.bf16.msrb.mxu1 %v11669_v41  ;;  %v11649_v50 = vor.u32 %v17036_v48, %v11648_v47  ;;  %v11653_v61 = vor.u32 %v17034_v57, %v11650_v59  ;;  %v17066_v62 = vld [vmem:[#allocation14 + $0x124] sm:$0xf]  ;;  %v11865_v42 = vor.u32 %v17089_v39, %v11864_v38  ;;  %v17087_v47 = vld [vmem:[#allocation14 + $0x1cc] sm:$0xf]  ;;  %v11866_v48 = vld [vmem:[#allocation14 + $0x1d8] sm:$0xf0] }
 0x180   :  { %v522_v11 = vadd.f32 %v521_v1, %v520_v56  ;;  %v537_v12 = vrot.slane %v536_v2, 2  ;;  %v525_v13 = vrot.slane %v518_v3, 4  ;;  %v534_v14 = vmul.f32 %v518_v3, %v19073_v58  ;;  %v17053_v52 = vld [vmem:[#allocation14 + $0xb4] sm:$0xf0]  ;;  %v17051_v57 = vld [vmem:[#allocation14 + $0xac] sm:$0xf] }
 0x181   :  { %1014 = vmatpush.bf16.msra.mxu3 %v11649_v50  ;;  %v11869_v51 = vor.u32 %v17087_v47, %v11866_v48  ;;  %v11722_v59 = vld [vmem:[#allocation14 + $0xb8] sm:$0xf0]  ;;  %v11800_v38 = vld [vmem:[#allocation14 + $0x148] sm:$0xf]  ;;  %v17073_v39 = vld [vmem:[#allocation14 + $0x154] sm:$0xf0] }
 0x182   :  { %v523_v20 = vrot.slane %v522_v11, 1  ;;  %v538_v21 = vadd.f32 %v537_v12, %v536_v2  ;;  %v526_v22 = vadd.f32 %v525_v13, %v518_v3  ;;  %v541_v23 = vrot.slane %v534_v14, 4  ;;  %1027 = vmatpush.bf16.msrb.mxu0 %v11777_v60  ;;  %v17083_v60 = vld [vmem:[#allocation14 + $0x1ac] sm:$0xf] }
 0x183   :  { %v515_v26 = vpop.f32.mrf.mxu2  ;;  %v11781_v3 = vor.u32 %v17066_v62, %v11778_v63  ;;  %1040 = vmatpush.bf16.msrb.mxu1 %v11653_v61  ;;  %v11761_v13 = vor.u32 %v17064_v8, %v11760_v7  ;;  %v11725_v62 = vor.u32 %v17051_v57, %v11722_v59  ;;  %v11850_v63 = vld [vmem:[#allocation14 + $0x1b8] sm:$0xf0]  ;;  %v17071_v47 = vld [vmem:[#allocation14 + $0x14c] sm:$0xf]  ;;  %v11801_v48 = vor.u32 %v17073_v39, %v11800_v38  ;;  %v17069_v57 = vld [vmem:[#allocation14 + $0x134] sm:$0xf0] }
 0x184   :  { %v524_v34 = vadd.f32 %v523_v20, %v522_v11  ;;  %v539_v35 = vrot.slane %v538_v21, 1  ;;  %v527_v36 = vrot.slane %v526_v22, 2  ;;  %v542_v37 = vadd.f32 %v541_v23, %v534_v14  ;;  %v11634_v14 = vld [vmem:[#allocation14 + $0x10] sm:$0xf0]  ;;  %v17059_v26 = vld [vmem:[#allocation14 + $0xec] sm:$0xf] }
 0x185   :  { %1053 = vmatpush.bf16.msrb.mxu2 %v11781_v3  ;;  %1015 = vmatpush.bf16.msra.mxu3 %v11633_v6  ;;  %v11637_v15 = vor.u32 %v17030_v9, %v11634_v14  ;;  %v11765_v23 = vor.u32 %v17062_v16, %v11762_v17  ;;  %v11757_v31 = vor.u32 %v17059_v26, %v11754_v27  ;;  %v17049_v3 = vld [vmem:[#allocation14 + $0x94] sm:$0xf0]  ;;  %v17047_v6 = vld [vmem:[#allocation14 + $0x8c] sm:$0xf]  ;;  %v11706_v7 = vld [vmem:[#allocation14 + $0x98] sm:$0xf0] }
 0x186   :  { %v19078_v43 = vmul.f32 0.5, %v524_v34  ;;  %v540_v44 = vadd.f32 %v539_v35, %v538_v21  ;;  %v528_v45 = vadd.f32 %v527_v36, %v526_v22  ;;  %v543_v46 = vrot.slane %v542_v37, 2  ;;  %v17061_v21 = vld [vmem:[#allocation14 + $0xf4] sm:$0xf0]  ;;  %v11880_v22 = vld [vmem:[#allocation14 + $0x1e8] sm:$0xf]  ;;  %1028 = vmatpush.bf16.msrb.mxu0 %v11761_v13 }
 0x187   :  { %1041 = vmatpush.bf16.msrb.mxu1 %v11637_v15  ;;  %v11753_v24 = vor.u32 %v17061_v21, %v11752_v18  ;;  %v11881_v30 = vor.u32 %v17093_v25, %v11880_v22  ;;  %v11882_v34 = vld [vmem:[#allocation14 + $0x1f8] sm:$0xf0]  ;;  %v11736_v35 = vld [vmem:[#allocation14 + $0xc8] sm:$0xf]  ;;  %v17079_v9 = vld [vmem:[#allocation14 + $0x18c] sm:$0xf]  ;;  %v11833_v14 = vor.u32 %v17081_v5, %v11832_v4  ;;  %v11709_v15 = vor.u32 %v17047_v6, %v11706_v7 }
 0x188   :  { %v547_v53 = vmul.f32 0.5, %v540_v44  ;;  %v549_v54 = vmul.f32 %v19078_v43, %v19078_v43  ;;  %v529_v55 = vrot.slane %v528_v45, 1  ;;  %v544_v56 = vadd.f32 %v543_v46, %v542_v37  ;;  %v17057_v37 = vld [vmem:[#allocation14 + $0xd4] sm:$0xf0]  ;;  %v17055_v44 = vld [vmem:[#allocation14 + $0xcc] sm:$0xf] }
 0x189   :  { %1054 = vmatpush.bf16.msrb.mxu2 %v11765_v23  ;;  %1060 = vmatpush.bf16.msrb.mxu3 %v11753_v24  ;;  %v11885_v36 = vor.u32 %v17091_v33, %v11882_v34  ;;  %v11737_v41 = vor.u32 %v17057_v37, %v11736_v35  ;;  %v11816_v23 = vld [vmem:[#allocation14 + $0x168] sm:$0xf]  ;;  %v17077_v24 = vld [vmem:[#allocation14 + $0x174] sm:$0xf0]  ;;  %v17043_v25 = vld [vmem:[#allocation14 + $0x6c] sm:$0xf] }
 0x18a   :  { %v551_v0 = vsub.f32 %v547_v53, %v549_v54  ;;  %v530_v1 = vadd.f32 %v529_v55, %v528_v45  ;;  %v545_v2 = vrot.slane %v544_v56, 1  ;;  %1073 = vmatpush.bf16.msra.mxu0 %v11881_v30  ;;  %v11738_v45 = vld [vmem:[#allocation14 + $0xd8] sm:$0xf0]  ;;  %v11848_v53 = vld [vmem:[#allocation14 + $0x1a8] sm:$0xf]  ;;  %v11817_v26 = vor.u32 %v17077_v24, %v11816_v23 }
 0x18b   :  { %1086 = vmatpush.bf16.msra.mxu1 %v11757_v31  ;;  %v11741_v46 = vor.u32 %v17055_v44, %v11738_v45  ;;  %v17085_v54 = vld [vmem:[#allocation14 + $0x1b4] sm:$0xf0]  ;;  %v11690_v27 = vld [vmem:[#allocation14 + $0x78] sm:$0xf0]  ;;  %v17035_v59 = vld [vmem:[#allocation14 + $0x2c] sm:$0xf] }
 0x18c   :  { %v19082_v10 = vadd.f32 0.8, %v551_v0  ;;  %v19084_v11 = vmul.f32 0.5, %v530_v1  ;;  %v546_v12 = vadd.f32 %v545_v2, %v544_v56  ;;  %v11721_v56 = vor.u32 %v17053_v52, %v11720_v49  ;;  %v11704_v2 = vld [vmem:[#allocation14 + $0x88] sm:$0xf] }
 0x18d   :  { %1099 = vmatpush.bf16.msra.mxu2 %v11885_v36  ;;  %1061 = vmatpush.bf16.msrb.mxu3 %v11737_v41  ;;  %v11849_v61 = vor.u32 %v17085_v54, %v11848_v53  ;;  %v11853_v1 = vor.u32 %v17083_v60, %v11850_v63  ;;  %v11705_v8 = vor.u32 %v17049_v3, %v11704_v2  ;;  %v11818_v30 = vld [vmem:[#allocation14 + $0x178] sm:$0xf0]  ;;  %v11672_v36 = vld [vmem:[#allocation14 + $0x48] sm:$0xf]  ;;  %v17041_v37 = vld [vmem:[#allocation14 + $0x54] sm:$0xf0] }
 0x18e   :  { %18403 = vrsqrt.f32 %v19082_v10  ;;  %v548_v19 = vmul.f32 0.5, %v546_v12  ;;  %v550_v20 = vmul.f32 %v19084_v11, %v19084_v11  ;;  %1074 = vmatpush.bf16.msra.mxu0 %v11865_v42  ;;  %v11834_v12 = vld [vmem:[#allocation14 + $0x198] sm:$0xf0]  ;;  %v11693_v34 = vor.u32 %v17043_v25, %v11690_v27  ;;  %v17039_v41 = vld [vmem:[#allocation14 + $0x4c] sm:$0xf] }
 0x18f   :  { %1087 = vmatpush.bf16.msra.mxu1 %v11741_v46  ;;  %v11837_v18 = vor.u32 %v17079_v9, %v11834_v12  ;;  %v11673_v45 = vor.u32 %v17041_v37, %v11672_v36  ;;  %v11674_v46 = vld [vmem:[#allocation14 + $0x58] sm:$0xf0]  ;;  %v17037_v52 = vld [vmem:[#allocation14 + $0x34] sm:$0xf0]  ;;  %vm562_vm6 = vweird.f32 %v19082_v10  ;;  %v11640_v2 = vld [vmem:[#allocation14 + $0x8] sm:$0xf] }
 0x190   :  { %v552_v28 = vsub.f32 %v548_v19, %v550_v20  ;;  %v11688_v19 = vld [vmem:[#allocation14 + $0x68] sm:$0xf]  ;;  %v17045_v20 = vld [vmem:[#allocation14 + $0x74] sm:$0xf0]  ;;  %v11677_v49 = vor.u32 %v17039_v41, %v11674_v46  ;;  %v11658_v60 = vld [vmem:[#allocation14 + $0x38] sm:$0xf0] }
 0x191   :  { %1100 = vmatpush.bf16.msra.mxu2 %v11869_v51  ;;  %1062 = vmatpush.bf16.msrb.mxu3 %v11721_v56  ;;  %v11689_v22 = vor.u32 %v17045_v20, %v11688_v19  ;;  %v11802_v51 = vld [vmem:[#allocation14 + $0x158] sm:$0xf0]  ;;  %v11784_v56 = vld [vmem:[#allocation14 + $0x128] sm:$0xf]  ;;  %v11661_v5 = vor.u32 %v17035_v59, %v11658_v60  ;;  %v17033_v6 = vld [vmem:[#allocation14 + $0x14] sm:$0xf0] }
 0x192   :  { %v19089_v40 = vadd.f32 0.8, %v552_v28  ;;  %1075 = vmatpush.bf16.msra.mxu0 %v11849_v61  ;;  %v17075_v28 = vld [vmem:[#allocation14 + $0x16c] sm:$0xf]  ;;  %v553_v63 = vld [vmem:[#allocation11] sm:$0x3]  ;;  %v11785_v4 = vor.u32 %v17069_v57, %v11784_v56 }
 0x193   :  { %1088 = vmatpush.bf16.msra.mxu1 %v11725_v62  ;;  %v11821_v35 = vor.u32 %v17075_v28, %v11818_v30  ;;  %v17067_v61 = vld [vmem:[#allocation14 + $0x12c] sm:$0xf]  ;;  %v11786_v62 = vld [vmem:[#allocation14 + $0x138] sm:$0xf0]  ;;  %v11768_v7 = vld [vmem:[#allocation14 + $0x108] sm:$0xf] }
 0x194   :  { %v19091_v50 = vpop.eup %18403  ;;  %18405 = vrsqrt.f32 %v19089_v40  ;;  %vm572_vm3 = vweird.f32 %v19089_v40  ;;  %v17065_v9 = vld [vmem:[#allocation14 + $0x114] sm:$0xf0]  ;;  %v17031_v12 = vld [vmem:[#allocation14 + $0xc] sm:$0xf]  ;;  %v583_v24 = vld [vmem:[#allocation13] sm:$0x3] }
 0x195   :  { %v557_v55 = vmul.f32 %v19091_v50, %v19082_v10  ;;  %1101 = vmatpush.bf16.msra.mxu2 %v11853_v1  ;;  %1063 = vmatpush.bf16.msrb.mxu3 %v11705_v8  ;;  %vm563_vm5 = vweird.f32 %v19091_v50  ;;  %v11789_v8 = vor.u32 %v17067_v61, %v11786_v62  ;;  %v11769_v19 = vor.u32 %v17065_v9, %v11768_v7  ;;  %v17154_v46 = vld [vmem:[#allocation20 + $0x1dc] sm:$0xf0] }
 0x196   :  { %1076 = vmatpush.bf16.msra.mxu0 %v11833_v14  ;;  %vm564_vm8 = vmor %vm562_vm6, %vm563_vm5  ;;  %v17346_v56 = vld [vmem:[#allocation20 + $0x7dc] sm:$0xf0] }
 0x197   :  { %v558_v0 = vmul.f32 %v19091_v50, %v557_v55  ;;  %1089 = vmatpush.bf16.msra.mxu1 %v11709_v15  ;;  %v11805_v55 = vor.u32 %v17071_v47, %v11802_v51  ;;  %v17063_v15 = vld [vmem:[#allocation14 + $0x10c] sm:$0xf] }
 0x198   :  { %v12368_v47 = vld [vmem:[#allocation20 + $0x3c0] sm:$0xf] }
 0x199   :  { %v559_v16 = vmul.f32 0.5, %v558_v0  ;;  %1102 = vmatpush.bf16.msra.mxu2 %v11837_v18  ;;  %1064 = vmatpush.bf16.msrb.mxu3 %v11689_v22  ;;  %v11641_v18 = vor.u32 %v17033_v6, %v11640_v2  ;;  %v12624_v51 = vld [vmem:[#allocation20 + $0x5c0] sm:$0xf] }
 0x19a   :  { %v19097_v13 = vpop.eup %18405  ;;  %1077 = vmatpush.bf16.msra.mxu0 %v11817_v26  ;;  %v12080_v59 = vld [vmem:[#allocation20 + $0x180] sm:$0xf] }
 0x19b   :  { %v567_v17 = vmul.f32 %v19097_v13, %v19089_v40  ;;  %vm573_vm2 = vweird.f32 %v19097_v13  ;;  %v560_v31 = vsub.f32 1.5, %v559_v16  ;;  %1090 = vmatpush.bf16.msra.mxu1 %v11693_v34  ;;  %v11656_v40 = vld [vmem:[#allocation14 + $0x28] sm:$0xf]  ;;  %v11770_v16 = vld [vmem:[#allocation14 + $0x118] sm:$0xf0] }
 0x19c   :  { %vm19106_vm4 = vmor %vm572_vm3, %vm573_vm2  ;;  %v11657_v1 = vor.u32 %v17037_v52, %v11656_v40  ;;  %v17282_v40 = vld [vmem:[#allocation20 + $0x5dc] sm:$0xf0] }
 0x19d   :  { %v568_v21 = vmul.f32 %v19097_v13, %v567_v17  ;;  %v561_v53 = vmul.f32 %v19091_v50, %v560_v31  ;;  %1103 = vmatpush.bf16.msra.mxu2 %v11821_v35  ;;  %1065 = vmatpush.bf16.msrb.mxu3 %v11673_v45  ;;  %v12112_v45 = vld [vmem:[#allocation20 + $0x1c0] sm:$0xf] }
 0x19e   :  { %1078 = vmatpush.bf16.msra.mxu0 %v11801_v48  ;;  %v12113_v48 = vor.u32 %v17154_v46, %v12112_v45  ;;  %v17146_v60 = vld [vmem:[#allocation20 + $0x19c] sm:$0xf0] }
 0x19f   :  { %v569_v33 = vmul.f32 0.5, %v568_v21  ;;  %1091 = vmatpush.bf16.msra.mxu1 %v11677_v49  ;;  %v565_v10 = vsel %vm564_vm8, %v19091_v50, %v561_v53  ;;  %v11773_v50 = vor.u32 %v17063_v15, %v11770_v16  ;;  %v17218_v49 = vld [vmem:[#allocation20 + $0x3dc] sm:$0xf0]  ;;  %vm1237_vm8 = vcmask 1042434  }
 0x1a0   :  { %v12369_v53 = vor.u32 %v17218_v49, %v12368_v47  ;;  %v12336_v61 = vld [vmem:[#allocation20 + $0x380] sm:$0xf] }
 0x1a1   :  { %v570_v42 = vsub.f32 1.5, %v569_v33  ;;  %1104 = vmatpush.bf16.msra.mxu2 %v11805_v55  ;;  %1066 = vmatpush.bf16.msrb.mxu3 %v11657_v1  ;;  %v12880_v55 = vld [vmem:[#allocation20 + $0x7c0] sm:$0xf] }
 0x1a2   :  { %1079 = vmatpush.bf16.msra.mxu0 %v11785_v4  ;;  %v12881_v57 = vor.u32 %v17346_v56, %v12880_v55  ;;  %v17210_v1 = vld [vmem:[#allocation20 + $0x39c] sm:$0xf0] }
 0x1a3   :  { %v571_v54 = vmul.f32 %v19097_v13, %v570_v42  ;;  %1092 = vmatpush.bf16.msra.mxu1 %v11661_v5  ;;  %v12592_v2 = vld [vmem:[#allocation20 + $0x580] sm:$0xf]  ;;  %v12337_v6 = vor.u32 %v17210_v1, %v12336_v61 }
 0x1a4   :  { %v12048_v16 = vld [vmem:[#allocation20 + $0x140] sm:$0xf] }
 0x1a5   :  { %v575_v0 = vsel %vm19106_vm4, %v19097_v13, %v571_v54  ;;  %v11642_v13 = vld [vmem:[#allocation14 + $0x18] sm:$0xf0]  ;;  %1105 = vmatpush.bf16.msra.mxu2 %v11789_v8  ;;  %1067 = vmatpush.bf16.msrb.mxu3 %v11641_v18  ;;  %v12625_v54 = vor.u32 %v17282_v40, %v12624_v51  ;;  %v17338_v8 = vld [vmem:[#allocation20 + $0x79c] sm:$0xf0] }
 0x1a6   :  { %v578_v3 = vrot.slane %v575_v0, 7  ;;  %v11645_v20 = vor.u32 %v17031_v12, %v11642_v13  ;;  %1080 = vmatpush.bf16.msra.mxu0 %v11769_v19  ;;  %v12081_v0 = vor.u32 %v17146_v60, %v12080_v59  ;;  %v12304_v18 = vld [vmem:[#allocation20 + $0x340] sm:$0xf] }
 0x1a7   :  { %v12528_v46 = vld [vmem:[#allocation20 + $0x500] sm:$0xf] }
 0x1a8   :  { %v580_v14 = vsel %vm579_vm7, %v565_v10, %v578_v3  ;;  %1093 = vmatpush.bf16.msra.mxu1 %v11645_v20  ;;  %v17274_v3 = vld [vmem:[#allocation20 + $0x59c] sm:$0xf0] }
 0x1a9   :  { %v582_v17 = vmul.f32 %v580_v14, %v553_v63  ;;  %1106 = vmatpush.bf16.msra.mxu2 %v11773_v50  ;;  %v12593_v7 = vor.u32 %v17274_v3, %v12592_v2  ;;  %v12848_v10 = vld [vmem:[#allocation20 + $0x780] sm:$0xf] }
 0x1aa   :  { %v12849_v13 = vor.u32 %v17338_v8, %v12848_v10  ;;  %v17266_v50 = vld [vmem:[#allocation20 + $0x55c] sm:$0xf0] }
 0x1ab   :  { %v585_v21 = vperm.slane %v582_v17, 0  ;;  %v586_v22 = vperm.slane %v582_v17, 1  ;;  %v17138_v17 = vld [vmem:[#allocation20 + $0x15c] sm:$0xf0] }
 0x1ac   :  { %v12049_v20 = vor.u32 %v17138_v17, %v12048_v16  ;;  %v17258_v47 = vld [vmem:[#allocation20 + $0x51c] sm:$0xf0] }
 0x1ad   :  { %v590_v23 = vmul.f32 %v586_v22, %v19084_v11  ;;  %v589_v25 = vmul.f32 %v585_v21, %v19078_v43  ;;  %v597_v30 = vmul.f32 %v585_v21, %v19067_v32  ;;  %v598_v31 = vmul.f32 %v586_v22, %v19073_v58  ;;  %v19126_v32 = vld [vmem:[#allocation16] sm:$0xf]  ;;  %v17202_v21 = vld [vmem:[#allocation20 + $0x35c] sm:$0xf0] }
 0x1ae   :  { %v681_v42 = vperm.slane %v19126_v32, 1  ;;  %v680_v52 = vperm.slane %v19126_v32, 0  ;;  %v12560_v22 = vld [vmem:[#allocation20 + $0x540] sm:$0xf]  ;;  %v12529_v40 = vor.u32 %v17258_v47, %v12528_v46 }
 0x1af   :  { %v593_v26 = vrot.slane %v590_v23, 7  ;;  %v11984_v59 = vld [vmem:[#allocation20 + $0xc0] sm:$0xf] }
 0x1b0   :  { %v17122_v60 = vld [vmem:[#allocation20 + $0xdc] sm:$0xf0] }
 0x1b1   :  { %v594_v27 = vsel %vm579_vm7, %v589_v25, %v593_v26  ;;  %v12561_v25 = vor.u32 %v17266_v50, %v12560_v22  ;;  %v12816_v26 = vld [vmem:[#allocation20 + $0x740] sm:$0xf] }
 0x1b2   :  { %v596_v28 = vsub.f32 %v583_v24, %v594_v27  ;;  %v12305_v24 = vor.u32 %v17202_v21, %v12304_v18  ;;  %v17330_v27 = vld [vmem:[#allocation20 + $0x75c] sm:$0xf0] }
 0x1b3   :  { %v12240_v1 = vld [vmem:[#allocation20 + $0x2c0] sm:$0xf] }
 0x1b4   :  { %v600_v33 = vperm.slane %v596_v28, 0  ;;  %v601_v34 = vperm.slane %v596_v28, 1  ;;  %v17186_v2 = vld [vmem:[#allocation20 + $0x2dc] sm:$0xf0] }
 0x1b5   :  { %v17250_v10 = vld [vmem:[#allocation20 + $0x4dc] sm:$0xf0] }
 0x1b6   :  { %v605_v35 = vadd.f32 %v601_v34, %v598_v31  ;;  %v604_v36 = vadd.f32 %v600_v33, %v597_v30  ;;  %v12817_v31 = vor.u32 %v17330_v27, %v12816_v26  ;;  %v17314_v16 = vld [vmem:[#allocation20 + $0x6dc] sm:$0xf0] }
 0x1b7   :  { %v17114_v21 = vld [vmem:[#allocation20 + $0x9c] sm:$0xf0] }
 0x1b8   :  { %v609_v11 = vmul.f32 0.2, %v605_v35  ;;  %vm606_vm9 = vcmp.gt.f32.partialorder %v604_v36, 0.0  ;;  %v608_v37 = vmul.f32 0.2, %v604_v36  ;;  %vm607_vm10 = vcmp.gt.f32.partialorder %v605_v35, 0.0 }
 0x1b9   :  { %v17178_v26 = vld [vmem:[#allocation20 + $0x29c] sm:$0xf0] }
 0x1ba   :  { %v610_v38 = vsel %vm606_vm9, %v604_v36, %v608_v37  ;;  %v611_v39 = vsel %vm607_vm10, %v605_v35, %v609_v11  ;;  %v12016_v35 = vld [vmem:[#allocation20 + $0x100] sm:$0xf]  ;;  %vm1239_vm9 = vcmask 1041408  }
 0x1bb   :  { %v612_v43 = vpack.c.bf16 %v610_v38, %v610_v38  ;;  %v613_v41 = vpack.c.bf16 %v611_v39, %v611_v39  ;;  %v17130_v36 = vld [vmem:[#allocation20 + $0x11c] sm:$0xf0] }
 0x1bc   :  { %v12017_v39 = vor.u32 %v17130_v36, %v12016_v35  ;;  %v17242_v35 = vld [vmem:[#allocation20 + $0x49c] sm:$0xf0] }
 0x1bd   :  { %1016 = vmatmul.bf16.vlgmr.msra.gmra.mxu3 %v612_v43  ;;  %1029 = vmatmul.bf16.vlgmr.msrb.gmra.mxu0 %v613_v41  ;;  %v11920_v47 = vld [vmem:[#allocation20 + $0x40] sm:$0xf] }
 0x1be   :  { %1042 = vmatmul.bf16.vlgmr.msrb.gmra.mxu1 %v612_v43  ;;  %1055 = vmatmul.bf16.vlgmr.msrb.gmra.mxu2 %v613_v41 }
 0x1bf   :  { %2856 = vmatpush.bf16.msra.mxu3 %v12113_v48  ;;  %2869 = vmatpush.bf16.msrb.mxu0 %v12369_v53  ;;  %v17322_v53 = vld [vmem:[#allocation20 + $0x71c] sm:$0xf0] }
 0x1c0   :  { %2882 = vmatpush.bf16.msrb.mxu1 %v12625_v54  ;;  %2895 = vmatpush.bf16.msrb.mxu2 %v12881_v57 }
 0x1c3   :  { %2857 = vmatpush.bf16.msra.mxu3 %v12081_v0  ;;  %2870 = vmatpush.bf16.msrb.mxu0 %v12337_v6  ;;  %v11985_v0 = vor.u32 %v17122_v60, %v11984_v59  ;;  %v12241_v6 = vor.u32 %v17186_v2, %v12240_v1  ;;  %v12432_v60 = vld [vmem:[#allocation20 + $0x440] sm:$0xf] }
 0x1c4   :  { %2883 = vmatpush.bf16.msrb.mxu1 %v12593_v7  ;;  %2896 = vmatpush.bf16.msrb.mxu2 %v12849_v13  ;;  %v12496_v7 = vld [vmem:[#allocation20 + $0x4c0] sm:$0xf] }
 0x1c5   :  { %v12497_v13 = vor.u32 %v17250_v10, %v12496_v7  ;;  %v12688_v2 = vld [vmem:[#allocation20 + $0x640] sm:$0xf] }
 0x1c6   :  { %v11888_v10 = vld [vmem:[#allocation20] sm:$0xf] }
 0x1c7   :  { %2858 = vmatpush.bf16.msra.mxu3 %v12049_v20  ;;  %2871 = vmatpush.bf16.msrb.mxu0 %v12305_v24  ;;  %v11952_v20 = vld [vmem:[#allocation20 + $0x80] sm:$0xf] }
 0x1c8   :  { %2884 = vmatpush.bf16.msrb.mxu1 %v12561_v25  ;;  %2897 = vmatpush.bf16.msrb.mxu2 %v12817_v31  ;;  %v11953_v24 = vor.u32 %v17114_v21, %v11952_v20  ;;  %v12208_v25 = vld [vmem:[#allocation20 + $0x280] sm:$0xf] }
 0x1cb   :  { %2859 = vmatpush.bf16.msra.mxu3 %v12017_v39 }
 0x1cc   :  { %2885 = vmatpush.bf16.msrb.mxu1 %v12529_v40 }
 0x1cd   :  { %1068 = vmatmul.bf16.vlgmr.msrb.gmra.mxu3 %v612_v43  ;;  %1081 = vmatmul.bf16.vlgmr.msra.gmra.mxu0 %v613_v41 }
 0x1ce   :  { %1094 = vmatmul.bf16.vlgmr.msra.gmra.mxu1 %v612_v43  ;;  %1107 = vmatmul.bf16.vlgmr.msra.gmra.mxu2 %v613_v41  ;;  %v12272_v43 = vld [vmem:[#allocation20 + $0x300] sm:$0xf] }
 0x1cf   :  { %v17194_v41 = vld [vmem:[#allocation20 + $0x31c] sm:$0xf0]  ;;  %2860 = vmatpush.bf16.msra.mxu3 %v11985_v0 }
 0x1d0   :  { %v12273_v45 = vor.u32 %v17194_v41, %v12272_v43  ;;  %2886 = vmatpush.bf16.msrb.mxu1 %v12497_v13  ;;  %v12720_v43 = vld [vmem:[#allocation20 + $0x680] sm:$0xf] }
 0x1d1   :  { %v17306_v41 = vld [vmem:[#allocation20 + $0x69c] sm:$0xf0] }
 0x1d2   :  { %2872 = vmatpush.bf16.msrb.mxu0 %v12273_v45  ;;  %v12721_v46 = vor.u32 %v17306_v41, %v12720_v43  ;;  %v12114_v41 = vld [vmem:[#allocation20 + $0x1e0] sm:$0xf0] }
 0x1d3   :  { %2861 = vmatpush.bf16.msra.mxu3 %v11953_v24  ;;  %v12400_v24 = vld [vmem:[#allocation20 + $0x400] sm:$0xf] }
 0x1d6   :  { %2873 = vmatpush.bf16.msrb.mxu0 %v12241_v6 }
 0x23a   :  { %v1030_v58 = vpop.f32.mrf.mxu0 }
 0x23b   :  { %v1043_v44 = vpop.f32.mrf.mxu1 }
 0x23c   :  { %v1044_v62 = vadd.f32 %v1043_v44, %v681_v42 }
 0x240   :  { %v1017_v63 = vpop.f32.mrf.mxu3 }
 0x241   :  { %v1018_v4 = vadd.f32 %v1017_v63, %v680_v52  ;;  %v1056_v5 = vpop.f32.mrf.mxu2  ;;  %v12784_v52 = vld [vmem:[#allocation20 + $0x700] sm:$0xf]  ;;  %v683_v63 = vperm.slane %v19126_v32, 3 }
 0x242   :  { %v19130_v9 = vadd.f32 %v1056_v5, %v1044_v62  ;;  %v1032_v12 = vpop.f32.mrf.mxu0  ;;  %v12785_v57 = vor.u32 %v17322_v53, %v12784_v52  ;;  %v682_v5 = vperm.slane %v19126_v32, 2 }
 0x243   :  { %v19132_v14 = vadd.f32 %v1030_v58, %v1018_v4  ;;  %v1045_v15 = vpop.f32.mrf.mxu1 }
 0x244   :  { %v1113_v19 = vmul.f32 %v19065_v29, %v19130_v9  ;;  %2898 = vmatpush.bf16.msrb.mxu2 %v12785_v57  ;;  %v12752_v15 = vld [vmem:[#allocation20 + $0x6c0] sm:$0xf] }
 0x245   :  { %v1112_v23 = vmul.f32 %v19065_v29, %v19132_v14 }
 0x246   :  { %v1122_v28 = vrot.slane %v1113_v19, 4  ;;  %v1145_v30 = vmul.f32 %v1113_v19, %v19130_v9 }
 0x247   :  { %v1116_v33 = vrot.slane %v1112_v23, 4  ;;  %v1144_v34 = vmul.f32 %v1112_v23, %v19132_v14 }
 0x248   :  { %v1123_v11 = vadd.f32 %v1122_v28, %v1113_v19  ;;  %v1154_v37 = vrot.slane %v1145_v30, 4  ;;  %v1019_v38 = vpop.f32.mrf.mxu3  ;;  %v12753_v19 = vor.u32 %v17314_v16, %v12752_v15 }
 0x249   :  { %v1117_v58 = vadd.f32 %v1116_v33, %v1112_v23  ;;  %v1148_v42 = vrot.slane %v1144_v34, 4  ;;  %v1058_v44 = vpop.f32.mrf.mxu2  ;;  %v12209_v33 = vor.u32 %v17178_v26, %v12208_v25 }
 0x24a   :  { %v1124_v48 = vrot.slane %v1123_v11, 2  ;;  %v1155_v49 = vadd.f32 %v1154_v37, %v1145_v30  ;;  %v19140_v51 = vpop.f32.mrf.mxu0  ;;  %2899 = vmatpush.bf16.msrb.mxu2 %v12753_v19 }
 0x24b   :  { %v1118_v54 = vrot.slane %v1117_v58, 2  ;;  %v1149_v55 = vadd.f32 %v1148_v42, %v1144_v34  ;;  %v1095_v56 = vpop.f32.mrf.mxu1  ;;  %v12464_v34 = vld [vmem:[#allocation20 + $0x480] sm:$0xf]  ;;  %2874 = vmatpush.bf16.msrb.mxu0 %v12209_v33 }
 0x24c   :  { %v1125_v61 = vadd.f32 %v1124_v48, %v1123_v11  ;;  %v1156_v62 = vrot.slane %v1155_v49, 2  ;;  %v1096_v23 = vadd.f32 %v1095_v56, %v683_v63  ;;  %v12465_v39 = vor.u32 %v17242_v35, %v12464_v34  ;;  %v17106_v48 = vld [vmem:[#allocation20 + $0x5c] sm:$0xf0] }
 0x24d   :  { %v1119_v3 = vadd.f32 %v1118_v54, %v1117_v58  ;;  %v1150_v4 = vrot.slane %v1149_v55, 2  ;;  %v11921_v53 = vor.u32 %v17106_v48, %v11920_v47  ;;  %v12176_v54 = vld [vmem:[#allocation20 + $0x240] sm:$0xf]  ;;  %v12370_v48 = vld [vmem:[#allocation20 + $0x3e0] sm:$0xf0] }
 0x24e   :  { %v1126_v8 = vrot.slane %v1125_v61, 1  ;;  %v1157_v12 = vadd.f32 %v1156_v62, %v1155_v49  ;;  %2887 = vmatpush.bf16.msrb.mxu1 %v12465_v39  ;;  %2900 = vmatpush.bf16.msrb.mxu2 %v12721_v46  ;;  %v17290_v35 = vld [vmem:[#allocation20 + $0x61c] sm:$0xf0] }
 0x24f   :  { %v1120_v17 = vrot.slane %v1119_v3, 1  ;;  %v1151_v18 = vadd.f32 %v1150_v4, %v1149_v55  ;;  %v17170_v55 = vld [vmem:[#allocation20 + $0x25c] sm:$0xf0]  ;;  %2862 = vmatpush.bf16.msra.mxu3 %v11921_v53 }
 0x250   :  { %v1127_v22 = vadd.f32 %v1126_v8, %v1125_v61  ;;  %v1158_v50 = vrot.slane %v1157_v12, 1  ;;  %v1069_v32 = vpop.f32.mrf.mxu3  ;;  %v12177_v59 = vor.u32 %v17170_v55, %v12176_v54  ;;  %v17234_v61 = vld [vmem:[#allocation20 + $0x45c] sm:$0xf0]  ;;  %v12626_v54 = vld [vmem:[#allocation20 + $0x5e0] sm:$0xf0] }
 0x251   :  { %v1121_v27 = vadd.f32 %v1120_v17, %v1119_v3  ;;  %v1152_v28 = vrot.slane %v1151_v18, 1  ;;  %v1070_v30 = vadd.f32 %v1069_v32, %v682_v5  ;;  %v1108_v31 = vpop.f32.mrf.mxu2  ;;  %v12433_v1 = vor.u32 %v17234_v61, %v12432_v60  ;;  %v17298_v3 = vld [vmem:[#allocation20 + $0x65c] sm:$0xf0]  ;;  %v12882_v60 = vld [vmem:[#allocation20 + $0x7e0] sm:$0xf0] }
 0x252   :  { %v19144_v36 = vmul.f32 0.5, %v1127_v22  ;;  %v1159_v11 = vadd.f32 %v1158_v50, %v1157_v12  ;;  %v19146_v37 = vadd.f32 %v1108_v31, %v1096_v23  ;;  %v1084_v38 = vpop.f32.mrf.mxu0  ;;  %2875 = vmatpush.bf16.msrb.mxu0 %v12177_v59  ;;  %v12689_v7 = vor.u32 %v17298_v3, %v12688_v2  ;;  %v17098_v8 = vld [vmem:[#allocation20 + $0x1c] sm:$0xf0]  ;;  %v17342_v59 = vld [vmem:[#allocation20 + $0x7c4] sm:$0xf] }
 0x253   :  { %v19148_v58 = vmul.f32 0.5, %v1121_v27  ;;  %v1153_v42 = vadd.f32 %v1152_v28, %v1151_v18  ;;  %v19151_v44 = vadd.f32 %v19140_v51, %v1070_v30  ;;  %v1097_v45 = vpop.f32.mrf.mxu1  ;;  %2888 = vmatpush.bf16.msrb.mxu1 %v12433_v1  ;;  %v11889_v17 = vor.u32 %v17098_v8, %v11888_v10  ;;  %v12144_v18 = vld [vmem:[#allocation20 + $0x200] sm:$0xf]  ;;  %v12082_v1 = vld [vmem:[#allocation20 + $0x1a0] sm:$0xf0] }
 0x254   :  { %v1173_v49 = vmul.f32 0.5, %v1159_v11  ;;  %v1177_v40 = vmul.f32 %v19144_v36, %v19144_v36  ;;  %v1115_v52 = vmul.f32 %v19065_v29, %v19146_v37  ;;  %2901 = vmatpush.bf16.msrb.mxu2 %v12689_v7  ;;  %v17162_v50 = vld [vmem:[#allocation20 + $0x21c] sm:$0xf0]  ;;  %v17150_v11 = vld [vmem:[#allocation20 + $0x1c4] sm:$0xf]  ;;  %v12885_v8 = vor.u32 %v17342_v59, %v12882_v60 }
 0x255   :  { %v1172_v56 = vmul.f32 0.5, %v1153_v42  ;;  %v1176_v51 = vmul.f32 %v19148_v58, %v19148_v58  ;;  %v1114_v57 = vmul.f32 %v19065_v29, %v19151_v44  ;;  %2863 = vmatpush.bf16.msra.mxu3 %v11889_v17  ;;  %v17226_v27 = vld [vmem:[#allocation20 + $0x41c] sm:$0xf0]  ;;  %v12145_v33 = vor.u32 %v17162_v50, %v12144_v18  ;;  %v17214_v42 = vld [vmem:[#allocation20 + $0x3c4] sm:$0xf] }
 0x256   :  { %v1181_v62 = vsub.f32 %v1173_v49, %v1177_v40  ;;  %v1134_v63 = vrot.slane %v1115_v52, 4  ;;  %v1147_v0 = vmul.f32 %v1115_v52, %v19146_v37  ;;  %v12656_v28 = vld [vmem:[#allocation20 + $0x600] sm:$0xf]  ;;  %v12401_v34 = vor.u32 %v17226_v27, %v12400_v24  ;;  %v17278_v49 = vld [vmem:[#allocation20 + $0x5c4] sm:$0xf] }
 0x257   :  { %v1180_v4 = vsub.f32 %v1172_v56, %v1176_v51  ;;  %v1128_v5 = vrot.slane %v1114_v57, 4  ;;  %v1146_v6 = vmul.f32 %v1114_v57, %v19151_v44  ;;  %v12657_v43 = vor.u32 %v17290_v35, %v12656_v28  ;;  %2876 = vmatpush.bf16.msrb.mxu0 %v12145_v33  ;;  %v17134_v24 = vld [vmem:[#allocation20 + $0x144] sm:$0xf] }
 0x258   :  { %v19163_v12 = vadd.f32 0.8, %v1181_v62  ;;  %v1135_v13 = vadd.f32 %v1134_v63, %v1115_v52  ;;  %v1166_v15 = vrot.slane %v1147_v0, 4  ;;  %v1071_v16 = vpop.f32.mrf.mxu3  ;;  %2889 = vmatpush.bf16.msrb.mxu1 %v12401_v34  ;;  %v12117_v47 = vor.u32 %v17150_v11, %v12114_v41  ;;  %v17262_v11 = vld [vmem:[#allocation20 + $0x544] sm:$0xf] }
 0x259   :  { %v19165_v19 = vadd.f32 0.8, %v1180_v4  ;;  %v1129_v20 = vadd.f32 %v1128_v5, %v1114_v57  ;;  %v1160_v21 = vrot.slane %v1146_v6, 4  ;;  %v1110_v22 = vpop.f32.mrf.mxu2  ;;  %2902 = vmatpush.bf16.msrb.mxu2 %v12657_v43  ;;  %v12373_v53 = vor.u32 %v17214_v42, %v12370_v48  ;;  %v17206_v4 = vld [vmem:[#allocation20 + $0x384] sm:$0xf] }
 0x25a   :  { %18407 = vrsqrt.f32 %v19163_v12  ;;  %v1136_v23 = vrot.slane %v1135_v13, 2  ;;  %v1167_v32 = vadd.f32 %v1166_v15, %v1147_v0  ;;  %2908 = vmatpush.bf16.msrb.mxu3 %v12117_v47  ;;  %v12629_v57 = vor.u32 %v17278_v49, %v12626_v54  ;;  %v17142_v0 = vld [vmem:[#allocation20 + $0x184] sm:$0xf] }
 0x25b   :  { %18409 = vrsqrt.f32 %v19165_v19  ;;  %v1130_v25 = vrot.slane %v1129_v20, 2  ;;  %v1161_v26 = vadd.f32 %v1160_v21, %v1146_v6  ;;  %2921 = vmatpush.bf16.msra.mxu0 %v12373_v53  ;;  %v12338_v5 = vld [vmem:[#allocation20 + $0x3a0] sm:$0xf0]  ;;  %vm1205_vm12 = vweird.f32 %v19163_v12 }
 0x25c   :  { %v1137_v30 = vadd.f32 %v1136_v23, %v1135_v13  ;;  %v1168_v31 = vrot.slane %v1167_v32, 2  ;;  %2934 = vmatpush.bf16.msra.mxu1 %v12629_v57  ;;  %v17270_v13 = vld [vmem:[#allocation20 + $0x584] sm:$0xf]  ;;  %vm1195_vm13 = vweird.f32 %v19165_v19 }
 0x25d   :  { %v1131_v38 = vadd.f32 %v1130_v25, %v1129_v20  ;;  %v1162_v39 = vrot.slane %v1161_v26, 2  ;;  %v12594_v15 = vld [vmem:[#allocation20 + $0x5a0] sm:$0xf0]  ;;  %v12085_v20 = vor.u32 %v17142_v0, %v12082_v1  ;;  %2947 = vmatpush.bf16.msra.mxu2 %v12885_v8 }
 0x25e   :  { %v1138_v45 = vrot.slane %v1137_v30, 1  ;;  %v1169_v46 = vadd.f32 %v1168_v31, %v1167_v32  ;;  %v17334_v21 = vld [vmem:[#allocation20 + $0x784] sm:$0xf]  ;;  %v12341_v32 = vor.u32 %v17206_v4, %v12338_v5  ;;  %v12597_v27 = vor.u32 %v17270_v13, %v12594_v15 }
 0x25f   :  { %v1132_v40 = vrot.slane %v1131_v38, 1  ;;  %v1163_v52 = vadd.f32 %v1162_v39, %v1161_v26  ;;  %v12850_v22 = vld [vmem:[#allocation20 + $0x7a0] sm:$0xf0]  ;;  %2909 = vmatpush.bf16.msrb.mxu3 %v12085_v20 }
 0x260   :  { %v19169_v55 = vpop.eup %18407  ;;  %v1139_v56 = vadd.f32 %v1138_v45, %v1137_v30  ;;  %v1170_v51 = vrot.slane %v1169_v46, 1  ;;  %v12050_v25 = vld [vmem:[#allocation20 + $0x160] sm:$0xf0]  ;;  %v12853_v28 = vor.u32 %v17334_v21, %v12850_v22  ;;  %2922 = vmatpush.bf16.msra.mxu0 %v12341_v32  ;;  %2935 = vmatpush.bf16.msra.mxu1 %v12597_v27 }
 0x261   :  { %v19171_v61 = vpop.eup %18409  ;;  %v1133_v62 = vadd.f32 %v1132_v40, %v1131_v38  ;;  %v1164_v63 = vrot.slane %v1163_v52, 1  ;;  %v1200_v6 = vmul.f32 %v19169_v55, %v19163_v12  ;;  %v17198_v30 = vld [vmem:[#allocation20 + $0x344] sm:$0xf]  ;;  %v12053_v34 = vor.u32 %v17134_v24, %v12050_v25 }
 0x262   :  { %v19173_v2 = vmul.f32 0.5, %v1139_v56  ;;  %v1171_v3 = vadd.f32 %v1170_v51, %v1169_v46  ;;  %v1190_v16 = vmul.f32 %v19171_v61, %v19165_v19  ;;  %v12306_v31 = vld [vmem:[#allocation20 + $0x360] sm:$0xf0]  ;;  %2948 = vmatpush.bf16.msra.mxu2 %v12853_v28  ;;  %vm1206_vm11 = vweird.f32 %v19169_v55 }
 0x263   :  { %v19177_v7 = vmul.f32 0.5, %v1133_v62  ;;  %v1165_v10 = vadd.f32 %v1164_v63, %v1163_v52  ;;  %v12309_v35 = vor.u32 %v17198_v30, %v12306_v31  ;;  %v12562_v38 = vld [vmem:[#allocation20 + $0x560] sm:$0xf0]  ;;  %v1201_v43 = vmul.f32 %v19169_v55, %v1200_v6  ;;  %2910 = vmatpush.bf16.msrb.mxu3 %v12053_v34  ;;  %vm19213_vm15 = vmor %vm1205_vm12, %vm1206_vm11 }
 0x264   :  { %v1175_v17 = vmul.f32 0.5, %v1171_v3  ;;  %v1179_v18 = vmul.f32 %v19173_v2, %v19173_v2  ;;  %v1191_v39 = vmul.f32 %v19171_v61, %v1190_v16  ;;  %v12565_v42 = vor.u32 %v17262_v11, %v12562_v38  ;;  %v17326_v45 = vld [vmem:[#allocation20 + $0x744] sm:$0xf] }
 0x265   :  { %v1174_v50 = vmul.f32 0.5, %v1165_v10  ;;  %v1178_v23 = vmul.f32 %v19177_v7, %v19177_v7  ;;  %v12818_v47 = vld [vmem:[#allocation20 + $0x760] sm:$0xf0]  ;;  %2923 = vmatpush.bf16.msra.mxu0 %v12309_v35  ;;  %v1202_v60 = vmul.f32 0.5, %v1201_v43  ;;  %vm1196_vm14 = vweird.f32 %v19171_v61 }
 0x266   :  { %v1183_v26 = vsub.f32 %v1175_v17, %v1179_v18  ;;  %v17126_v48 = vld [vmem:[#allocation20 + $0x104] sm:$0xf]  ;;  %v12821_v49 = vor.u32 %v17326_v45, %v12818_v47  ;;  %v19193_v59 = vmul.f32 0.5, %v1191_v39  ;;  %2936 = vmatpush.bf16.msra.mxu1 %v12565_v42  ;;  %vm19227_vm2 = vmor %vm1195_vm13, %vm1196_vm14 }
 0x267   :  { %v1182_v33 = vsub.f32 %v1174_v50, %v1178_v23  ;;  %v12018_v40 = vld [vmem:[#allocation20 + $0x120] sm:$0xf0]  ;;  %v1203_v22 = vsub.f32 1.5, %v1202_v60 }
 0x268   :  { %v19187_v41 = vadd.f32 0.8, %v1183_v26  ;;  %v17190_v52 = vld [vmem:[#allocation20 + $0x304] sm:$0xf]  ;;  %v12021_v54 = vor.u32 %v17126_v48, %v12018_v40  ;;  %2949 = vmatpush.bf16.msra.mxu2 %v12821_v49  ;;  %v1193_v35 = vsub.f32 1.5, %v19193_v59 }
 0x269   :  { %v19189_v46 = vadd.f32 0.8, %v1182_v33  ;;  %v12274_v53 = vld [vmem:[#allocation20 + $0x320] sm:$0xf0]  ;;  %v1204_v42 = vmul.f32 %v19169_v55, %v1203_v22 }
 0x26a   :  { %18411 = vrsqrt.f32 %v19187_v41  ;;  %v17254_v56 = vld [vmem:[#allocation20 + $0x504] sm:$0xf]  ;;  %v12277_v62 = vor.u32 %v17190_v52, %v12274_v53  ;;  %2911 = vmatpush.bf16.msrb.mxu3 %v12021_v54  ;;  %v1194_v12 = vmul.f32 %v19171_v61, %v1193_v35  ;;  %vm1225_vm3 = vweird.f32 %v19187_v41 }
 0x26b   :  { %18413 = vrsqrt.f32 %v19189_v46  ;;  %v12530_v51 = vld [vmem:[#allocation20 + $0x520] sm:$0xf0]  ;;  %vm1215_vm4 = vweird.f32 %v19189_v46 }
 0x26c   :  { %v17318_v57 = vld [vmem:[#allocation20 + $0x704] sm:$0xf]  ;;  %v12533_v63 = vor.u32 %v17254_v56, %v12530_v51  ;;  %2924 = vmatpush.bf16.msra.mxu0 %v12277_v62 }
 0x26d   :  { %v12786_v0 = vld [vmem:[#allocation20 + $0x720] sm:$0xf0] }
 0x26e   :  { %v17118_v1 = vld [vmem:[#allocation20 + $0xc4] sm:$0xf]  ;;  %v12789_v3 = vor.u32 %v17318_v57, %v12786_v0  ;;  %2937 = vmatpush.bf16.msra.mxu1 %v12533_v63 }
 0x26f   :  { %v11986_v4 = vld [vmem:[#allocation20 + $0xe0] sm:$0xf0] }
 0x270   :  { %v17182_v5 = vld [vmem:[#allocation20 + $0x2c4] sm:$0xf]  ;;  %v11989_v10 = vor.u32 %v17118_v1, %v11986_v4  ;;  %v19195_v21 = vpop.eup %18411  ;;  %2950 = vmatpush.bf16.msra.mxu2 %v12789_v3  ;;  %v1208_v3 = vsel %vm19213_vm15, %v19169_v55, %v1204_v42 }
 0x271   :  { %v12242_v6 = vld [vmem:[#allocation20 + $0x2e0] sm:$0xf0]  ;;  %v19197_v24 = vpop.eup %18413  ;;  %v1220_v25 = vmul.f32 %v19195_v21, %v19187_v41  ;;  %vm1226_vm0 = vweird.f32 %v19195_v21 }
 0x272   :  { %v17246_v8 = vld [vmem:[#allocation20 + $0x4c4] sm:$0xf]  ;;  %v12245_v16 = vor.u32 %v17182_v5, %v12242_v6  ;;  %v1210_v30 = vmul.f32 %v19197_v24, %v19189_v46  ;;  %2912 = vmatpush.bf16.msrb.mxu3 %v11989_v10  ;;  %vm1216_vm1 = vweird.f32 %v19197_v24  ;;  %vm19237_vm5 = vmor %vm1225_vm3, %vm1226_vm0 }
 0x273   :  { %v12498_v13 = vld [vmem:[#allocation20 + $0x4e0] sm:$0xf0]  ;;  %v1221_v11 = vmul.f32 %v19195_v21, %v1220_v25  ;;  %vm1217_vm6 = vmor %vm1215_vm4, %vm1216_vm1 }
 0x274   :  { %v17310_v15 = vld [vmem:[#allocation20 + $0x6c4] sm:$0xf]  ;;  %v12501_v50 = vor.u32 %v17246_v8, %v12498_v13  ;;  %2925 = vmatpush.bf16.msra.mxu0 %v12245_v16  ;;  %v1211_v45 = vmul.f32 %v19197_v24, %v1210_v30  ;;  %v1184_v30 = vld [vmem:[#allocation17] sm:$0xf]  ;;  %v12888_v8 = vld [vmem:[#allocation20 + $0x7c8] sm:$0xf] }
 0x275   :  { %v12754_v17 = vld [vmem:[#allocation20 + $0x6e0] sm:$0xf0]  ;;  %v1222_v40 = vmul.f32 0.5, %v1221_v11 }
 0x276   :  { %v17110_v18 = vld [vmem:[#allocation20 + $0x84] sm:$0xf]  ;;  %v12757_v26 = vor.u32 %v17310_v15, %v12754_v17  ;;  %2938 = vmatpush.bf16.msra.mxu1 %v12501_v50  ;;  %v1212_v56 = vmul.f32 0.5, %v1211_v45  ;;  %v1233_v50 = vrot.slane %v1208_v3, 7  ;;  %v12376_v3 = vld [vmem:[#allocation20 + $0x3c8] sm:$0xf] }
 0x277   :  { %v11954_v20 = vld [vmem:[#allocation20 + $0xa0] sm:$0xf0]  ;;  %v1223_v62 = vsub.f32 1.5, %v1222_v40 }
 0x278   :  { %v17174_v23 = vld [vmem:[#allocation20 + $0x284] sm:$0xf]  ;;  %v11957_v31 = vor.u32 %v17110_v18, %v11954_v20  ;;  %2951 = vmatpush.bf16.msra.mxu2 %v12757_v26  ;;  %v1213_v4 = vsub.f32 1.5, %v1212_v56 }
 0x279   :  { %v12210_v32 = vld [vmem:[#allocation20 + $0x2a0] sm:$0xf0]  ;;  %v1224_v13 = vmul.f32 %v19195_v21, %v1223_v62 }
 0x27a   :  { %v17238_v27 = vld [vmem:[#allocation20 + $0x484] sm:$0xf]  ;;  %v12213_v38 = vor.u32 %v17174_v23, %v12210_v32  ;;  %2913 = vmatpush.bf16.msrb.mxu3 %v11957_v31  ;;  %v1214_v17 = vmul.f32 %v19197_v24, %v1213_v4  ;;  %v1198_v23 = vsel %vm19227_vm2, %v19171_v61, %v1194_v12  ;;  %v17219_v4 = vld [vmem:[#allocation20 + $0x3e4] sm:$0xf0] }
 0x27b   :  { %v12466_v28 = vld [vmem:[#allocation20 + $0x4a0] sm:$0xf0]  ;;  %v1228_v41 = vsel %vm19237_vm5, %v19195_v21, %v1224_v13  ;;  %v1236_v21 = vsel %vm579_vm7, %v1198_v23, %v1233_v50  ;;  %v17347_v13 = vld [vmem:[#allocation20 + $0x7e4] sm:$0xf0] }
 0x27c   :  { %v17302_v33 = vld [vmem:[#allocation20 + $0x684] sm:$0xf]  ;;  %v12469_v47 = vor.u32 %v17238_v27, %v12466_v28  ;;  %2926 = vmatpush.bf16.msra.mxu0 %v12213_v38  ;;  %v1218_v32 = vsel %vm1217_vm6, %v19197_v24, %v1214_v17  ;;  %v1235_v27 = vrot.slane %v1228_v41, 5  ;;  %v12377_v17 = vor.u32 %v17219_v4, %v12376_v3  ;;  %v12088_v50 = vld [vmem:[#allocation20 + $0x188] sm:$0xf] }
 0x27d   :  { %v12722_v34 = vld [vmem:[#allocation20 + $0x6a0] sm:$0xf0]  ;;  %v1234_v26 = vrot.slane %v1218_v32, 6  ;;  %v17147_v41 = vld [vmem:[#allocation20 + $0x1a4] sm:$0xf0]  ;;  %v12889_v32 = vor.u32 %v17347_v13, %v12888_v8 }
 0x27e   :  { %v17102_v39 = vld [vmem:[#allocation20 + $0x44] sm:$0xf]  ;;  %v12725_v52 = vor.u32 %v17302_v33, %v12722_v34  ;;  %2939 = vmatpush.bf16.msra.mxu1 %v12469_v47  ;;  %v17251_v3 = vld [vmem:[#allocation20 + $0x4e4] sm:$0xf0] }
 0x27f   :  { %v11922_v43 = vld [vmem:[#allocation20 + $0x60] sm:$0xf0]  ;;  %v1238_v31 = vsel %vm1237_vm8, %v1234_v26, %v1235_v27  ;;  %v17211_v26 = vld [vmem:[#allocation20 + $0x3a4] sm:$0xf0] }
 0x280   :  { %v17166_v48 = vld [vmem:[#allocation20 + $0x244] sm:$0xf]  ;;  %v11925_v51 = vor.u32 %v17102_v39, %v11922_v43  ;;  %2952 = vmatpush.bf16.msra.mxu2 %v12725_v52  ;;  %v1240_v33 = vsel %vm1239_vm9, %v1236_v21, %v1238_v31  ;;  %v12600_v27 = vld [vmem:[#allocation20 + $0x588] sm:$0xf]  ;;  %v12089_v31 = vor.u32 %v17147_v41, %v12088_v50 }
 0x281   :  { %v12178_v49 = vld [vmem:[#allocation20 + $0x260] sm:$0xf0]  ;;  %v1242_v61 = vmul.f32 %v1240_v33, %v1184_v30  ;;  %v12856_v30 = vld [vmem:[#allocation20 + $0x788] sm:$0xf] }
 0x282   :  { %v17230_v53 = vld [vmem:[#allocation20 + $0x444] sm:$0xf]  ;;  %v12181_v63 = vor.u32 %v17166_v48, %v12178_v49  ;;  %2914 = vmatpush.bf16.msrb.mxu3 %v11925_v51  ;;  %v1243_v49 = vld [vmem:[#allocation19] sm:$0xf]  ;;  %v17339_v21 = vld [vmem:[#allocation20 + $0x7a4] sm:$0xf0] }
 0x283   :  { %v12434_v54 = vld [vmem:[#allocation20 + $0x460] sm:$0xf0]  ;;  %v1245_v24 = vperm.slane %v1242_v61, 0  ;;  %v1246_v34 = vperm.slane %v1242_v61, 1  ;;  %v1247_v35 = vperm.slane %v1242_v61, 2  ;;  %v1248_v11 = vperm.slane %v1242_v61, 3 }
 0x284   :  { %v17294_v57 = vld [vmem:[#allocation20 + $0x644] sm:$0xf]  ;;  %v12437_v5 = vor.u32 %v17230_v53, %v12434_v54  ;;  %2927 = vmatpush.bf16.msra.mxu0 %v12181_v63  ;;  %v12056_v61 = vld [vmem:[#allocation20 + $0x148] sm:$0xf] }
 0x285   :  { %v12690_v59 = vld [vmem:[#allocation20 + $0x660] sm:$0xf0]  ;;  %v1254_v38 = vmul.f32 %v1246_v34, %v19144_v36  ;;  %v1255_v39 = vmul.f32 %v1247_v35, %v19177_v7  ;;  %v1256_v43 = vmul.f32 %v1248_v11, %v19173_v2  ;;  %v1253_v42 = vmul.f32 %v1245_v24, %v19148_v58  ;;  %v12760_v4 = vld [vmem:[#allocation20 + $0x6c8] sm:$0xf] }
 0x286   :  { %v17094_v0 = vld [vmem:[#allocation20 + $0x4] sm:$0xf]  ;;  %v12693_v55 = vor.u32 %v17294_v57, %v12690_v59  ;;  %2940 = vmatpush.bf16.msra.mxu1 %v12437_v5  ;;  %v1269_v56 = vmul.f32 %v1245_v24, %v19132_v14  ;;  %v1270_v36 = vmul.f32 %v1246_v34, %v19130_v9  ;;  %v1271_v7 = vmul.f32 %v1247_v35, %v19151_v44  ;;  %v12632_v9 = vld [vmem:[#allocation20 + $0x5c8] sm:$0xf] }
 0x287   :  { %v11890_v1 = vld [vmem:[#allocation20 + $0x20] sm:$0xf0]  ;;  %v1261_v45 = vrot.slane %v1254_v38, 7  ;;  %v1262_v47 = vrot.slane %v1255_v39, 6  ;;  %v1263_v48 = vrot.slane %v1256_v43, 5  ;;  %v1272_v2 = vmul.f32 %v1248_v11, %v19146_v37 }
 0x288   :  { %v17158_v6 = vld [vmem:[#allocation20 + $0x204] sm:$0xf]  ;;  %v11893_v18 = vor.u32 %v17094_v0, %v11890_v1  ;;  %2953 = vmatpush.bf16.msra.mxu2 %v12693_v55  ;;  %v12120_v0 = vld [vmem:[#allocation20 + $0x1c8] sm:$0xf]  ;;  %v12857_v35 = vor.u32 %v17339_v21, %v12856_v30 }
 0x289   :  { %v12146_v10 = vld [vmem:[#allocation20 + $0x220] sm:$0xf0]  ;;  %v1264_v40 = vsel %vm579_vm7, %v1253_v42, %v1261_v45  ;;  %v1265_v52 = vsel %vm1237_vm8, %v1262_v47, %v1263_v48  ;;  %v17155_v1 = vld [vmem:[#allocation20 + $0x1e4] sm:$0xf0] }
 0x28a   :  { %v17222_v15 = vld [vmem:[#allocation20 + $0x404] sm:$0xf]  ;;  %v12149_v46 = vor.u32 %v17158_v6, %v12146_v10  ;;  %2915 = vmatpush.bf16.msrb.mxu3 %v11893_v18  ;;  %v1266_v53 = vsel %vm1239_vm9, %v1264_v40, %v1265_v52  ;;  %v17283_v14 = vld [vmem:[#allocation20 + $0x5e4] sm:$0xf0]  ;;  %v12121_v10 = vor.u32 %v17155_v1, %v12120_v0 }
 0x28b   :  { %v12402_v16 = vld [vmem:[#allocation20 + $0x420] sm:$0xf0]  ;;  %v1268_v54 = vsub.f32 %v1243_v49, %v1266_v53  ;;  %v12633_v23 = vor.u32 %v17283_v14, %v12632_v9  ;;  %v17139_v24 = vld [vmem:[#allocation20 + $0x164] sm:$0xf0] }
 0x28c   :  { %v17286_v20 = vld [vmem:[#allocation20 + $0x604] sm:$0xf]  ;;  %v12405_v25 = vor.u32 %v17222_v15, %v12402_v16  ;;  %2928 = vmatpush.bf16.msra.mxu0 %v12149_v46  ;;  %v12312_v11 = vld [vmem:[#allocation20 + $0x348] sm:$0xf]  ;;  %v12057_v47 = vor.u32 %v17139_v24, %v12056_v61 }
 0x28d   :  { %v12658_v22 = vld [vmem:[#allocation20 + $0x620] sm:$0xf0]  ;;  %v1274_v58 = vperm.slane %v1268_v54, 0  ;;  %v1275_v51 = vperm.slane %v1268_v54, 1  ;;  %v1276_v57 = vperm.slane %v1268_v54, 2  ;;  %v1277_v59 = vperm.slane %v1268_v54, 3 }
 0x28e   :  { %v12661_v28 = vor.u32 %v17286_v20, %v12658_v22  ;;  %2941 = vmatpush.bf16.msra.mxu1 %v12405_v25  ;;  %v12344_v25 = vld [vmem:[#allocation20 + $0x388] sm:$0xf] }
 0x28f   :  { %v1282_v60 = vadd.f32 %v1274_v58, %v1269_v56  ;;  %v1283_v12 = vadd.f32 %v1275_v51, %v1270_v36  ;;  %v1284_v62 = vadd.f32 %v1276_v57, %v1271_v7  ;;  %v1285_v63 = vadd.f32 %v1277_v59, %v1272_v2  ;;  %v17203_v38 = vld [vmem:[#allocation20 + $0x364] sm:$0xf0] }
 0x290   :  { %2954 = vmatpush.bf16.msra.mxu2 %v12661_v28  ;;  %v17275_v28 = vld [vmem:[#allocation20 + $0x5a4] sm:$0xf0]  ;;  %v12345_v33 = vor.u32 %v17211_v26, %v12344_v25  ;;  %v12313_v48 = vor.u32 %v17203_v38, %v12312_v11 }
 0x291   :  { %vm1286_vm10 = vcmp.gt.f32.partialorder %v1282_v60, 0.0  ;;  %vm1287_vm11 = vcmp.gt.f32.partialorder %v1283_v12, 0.0  ;;  %vm1288_vm12 = vcmp.gt.f32.partialorder %v1284_v62, 0.0  ;;  %vm1289_vm13 = vcmp.gt.f32.partialorder %v1285_v63, 0.0  ;;  %v12568_v39 = vld [vmem:[#allocation20 + $0x548] sm:$0xf] }
 0x292   :  { %v1290_v44 = vmul.f32 0.2, %v1282_v60  ;;  %v1291_v37 = vmul.f32 0.2, %v1283_v12  ;;  %v1292_v5 = vmul.f32 0.2, %v1284_v62  ;;  %v12601_v34 = vor.u32 %v17275_v28, %v12600_v27 }
 0x293   :  { %v1293_v6 = vmul.f32 0.2, %v1285_v63  ;;  %v17267_v43 = vld [vmem:[#allocation20 + $0x564] sm:$0xf0] }
 0x294   :  { %v1294_v55 = vsel %vm1286_vm10, %v1282_v60, %v1290_v44  ;;  %v1295_v15 = vsel %vm1287_vm11, %v1283_v12, %v1291_v37  ;;  %v1296_v16 = vsel %vm1288_vm12, %v1284_v62, %v1292_v5  ;;  %v12824_v42 = vld [vmem:[#allocation20 + $0x748] sm:$0xf]  ;;  %v12569_v52 = vor.u32 %v17267_v43, %v12568_v39 }
 0x295   :  { %v1297_v19 = vsel %vm1289_vm13, %v1285_v63, %v1293_v6  ;;  %v19264_v18 = vpack.c.bf16 %v1296_v16, %v1296_v16  ;;  %v19266_v20 = vpack.c.bf16 %v1294_v55, %v1294_v55  ;;  %v19268_v22 = vpack.c.bf16 %v1295_v15, %v1295_v15  ;;  %v17331_v45 = vld [vmem:[#allocation20 + $0x764] sm:$0xf0] }
 0x296   :  { %v19270_v46 = vpack.c.bf16 %v1297_v19, %v1297_v19  ;;  %v12024_v49 = vld [vmem:[#allocation20 + $0x108] sm:$0xf]  ;;  %v12825_v53 = vor.u32 %v17331_v45, %v12824_v42 }
 0x297   :  { %2864 = vmatmul.bf16.vlgmr.msra.gmra.mxu3 %v19266_v20  ;;  %2877 = vmatmul.bf16.vlgmr.msrb.gmra.mxu0 %v19268_v22  ;;  %v17131_v40 = vld [vmem:[#allocation20 + $0x124] sm:$0xf0] }
 0x298   :  { %2890 = vmatmul.bf16.vlgmr.msrb.gmra.mxu1 %v19264_v18  ;;  %2903 = vmatmul.bf16.vlgmr.msrb.gmra.mxu2 %v19270_v46  ;;  %v12280_v54 = vld [vmem:[#allocation20 + $0x308] sm:$0xf]  ;;  %v12025_v51 = vor.u32 %v17131_v40, %v12024_v49  ;;  %v12122_v49 = vld [vmem:[#allocation20 + $0x1e8] sm:$0xf0] }
 0x299   :  { %2960 = vmatpush.bf16.msra.mxu3 %v12121_v10  ;;  %2973 = vmatpush.bf16.msrb.mxu0 %v12377_v17  ;;  %v17195_v56 = vld [vmem:[#allocation20 + $0x324] sm:$0xf0]  ;;  %v17215_v40 = vld [vmem:[#allocation20 + $0x3cc] sm:$0xf] }
 0x29a   :  { %2986 = vmatpush.bf16.msrb.mxu1 %v12633_v23  ;;  %2999 = vmatpush.bf16.msrb.mxu2 %v12889_v32  ;;  %v12536_v36 = vld [vmem:[#allocation20 + $0x508] sm:$0xf]  ;;  %v12281_v57 = vor.u32 %v17195_v56, %v12280_v54 }
 0x29b   :  { %v17259_v7 = vld [vmem:[#allocation20 + $0x524] sm:$0xf0] }
 0x29c   :  { %v12792_v2 = vld [vmem:[#allocation20 + $0x708] sm:$0xf]  ;;  %v12537_v12 = vor.u32 %v17259_v7, %v12536_v36  ;;  %v12634_v36 = vld [vmem:[#allocation20 + $0x5e8] sm:$0xf0] }
 0x29d   :  { %2961 = vmatpush.bf16.msra.mxu3 %v12089_v31  ;;  %2974 = vmatpush.bf16.msrb.mxu0 %v12345_v33  ;;  %v17323_v58 = vld [vmem:[#allocation20 + $0x724] sm:$0xf0]  ;;  %v17343_v7 = vld [vmem:[#allocation20 + $0x7cc] sm:$0xf] }
 0x29e   :  { %2987 = vmatpush.bf16.msrb.mxu1 %v12601_v34  ;;  %3000 = vmatpush.bf16.msrb.mxu2 %v12857_v35  ;;  %v11992_v59 = vld [vmem:[#allocation20 + $0xc8] sm:$0xf]  ;;  %v12793_v62 = vor.u32 %v17323_v58, %v12792_v2  ;;  %v12890_v2 = vld [vmem:[#allocation20 + $0x7e8] sm:$0xf0] }
 0x29f   :  { %v17123_v60 = vld [vmem:[#allocation20 + $0xe4] sm:$0xf0] }
 0x2a0   :  { %v12248_v63 = vld [vmem:[#allocation20 + $0x2c8] sm:$0xf]  ;;  %v11993_v14 = vor.u32 %v17123_v60, %v11992_v59  ;;  %v17143_v60 = vld [vmem:[#allocation20 + $0x18c] sm:$0xf] }
 0x2a1   :  { %2962 = vmatpush.bf16.msra.mxu3 %v12057_v47  ;;  %2975 = vmatpush.bf16.msrb.mxu0 %v12313_v48  ;;  %v17187_v0 = vld [vmem:[#allocation20 + $0x2e4] sm:$0xf0]  ;;  %v17151_v48 = vld [vmem:[#allocation20 + $0x1cc] sm:$0xf] }
 0x2a2   :  { %2988 = vmatpush.bf16.msrb.mxu1 %v12569_v52  ;;  %3001 = vmatpush.bf16.msrb.mxu2 %v12825_v53  ;;  %v12504_v1 = vld [vmem:[#allocation20 + $0x4c8] sm:$0xf]  ;;  %v12249_v44 = vor.u32 %v17187_v0, %v12248_v63  ;;  %v12378_v52 = vld [vmem:[#allocation20 + $0x3e8] sm:$0xf0]  ;;  %v12893_v63 = vor.u32 %v17343_v7, %v12890_v2 }
 0x2a3   :  { %v17315_v9 = vld [vmem:[#allocation20 + $0x6e4] sm:$0xf0]  ;;  %v12505_v6 = vor.u32 %v17251_v3, %v12504_v1  ;;  %v17279_v53 = vld [vmem:[#allocation20 + $0x5cc] sm:$0xf]  ;;  %v12381_v59 = vor.u32 %v17215_v40, %v12378_v52 }
 0x2a4   :  { %v11960_v37 = vld [vmem:[#allocation20 + $0x88] sm:$0xf]  ;;  %v12761_v10 = vor.u32 %v17315_v9, %v12760_v4  ;;  %v17207_v0 = vld [vmem:[#allocation20 + $0x38c] sm:$0xf] }
 0x2a5   :  { %2963 = vmatpush.bf16.msra.mxu3 %v12025_v51  ;;  %2976 = vmatpush.bf16.msrb.mxu0 %v12281_v57  ;;  %v17115_v5 = vld [vmem:[#allocation20 + $0xa4] sm:$0xf0]  ;;  %v12125_v57 = vor.u32 %v17151_v48, %v12122_v49  ;;  %v12346_v1 = vld [vmem:[#allocation20 + $0x3a8] sm:$0xf0] }
 0x2a6   :  { %2989 = vmatpush.bf16.msrb.mxu1 %v12537_v12  ;;  %3002 = vmatpush.bf16.msrb.mxu2 %v12793_v62  ;;  %v12216_v8 = vld [vmem:[#allocation20 + $0x288] sm:$0xf]  ;;  %v11961_v19 = vor.u32 %v17115_v5, %v11960_v37  ;;  %v12090_v12 = vld [vmem:[#allocation20 + $0x1a8] sm:$0xf0]  ;;  %v12637_v62 = vor.u32 %v17279_v53, %v12634_v36  ;;  %v12349_v37 = vor.u32 %v17207_v0, %v12346_v1 }
 0x2a7   :  { %v17179_v13 = vld [vmem:[#allocation20 + $0x2a4] sm:$0xf0]  ;;  %2916 = vmatmul.bf16.vlgmr.msrb.gmra.mxu3 %v19266_v20  ;;  %2929 = vmatmul.bf16.vlgmr.msra.gmra.mxu0 %v19268_v22  ;;  %v17271_v3 = vld [vmem:[#allocation20 + $0x58c] sm:$0xf] }
 0x2a8   :  { %v12472_v55 = vld [vmem:[#allocation20 + $0x488] sm:$0xf]  ;;  %2942 = vmatmul.bf16.vlgmr.msra.gmra.mxu1 %v19264_v18  ;;  %2955 = vmatmul.bf16.vlgmr.msra.gmra.mxu2 %v19270_v46  ;;  %v12217_v50 = vor.u32 %v17179_v13, %v12216_v8  ;;  %v12602_v4 = vld [vmem:[#allocation20 + $0x5a8] sm:$0xf0] }
 0x2a9   :  { %v17243_v15 = vld [vmem:[#allocation20 + $0x4a4] sm:$0xf0]  ;;  %2964 = vmatpush.bf16.msra.mxu3 %v11993_v14  ;;  %2977 = vmatpush.bf16.msrb.mxu0 %v12249_v44  ;;  %v17335_v9 = vld [vmem:[#allocation20 + $0x78c] sm:$0xf]  ;;  %v12093_v44 = vor.u32 %v17143_v60, %v12090_v12 }
 0x2aa   :  { %v12728_v16 = vld [vmem:[#allocation20 + $0x688] sm:$0xf]  ;;  %2990 = vmatpush.bf16.msrb.mxu1 %v12505_v6  ;;  %3003 = vmatpush.bf16.msrb.mxu2 %v12761_v10  ;;  %v12473_v32 = vor.u32 %v17243_v15, %v12472_v55  ;;  %v12858_v14 = vld [vmem:[#allocation20 + $0x7a8] sm:$0xf0]  ;;  %v12605_v10 = vor.u32 %v17271_v3, %v12602_v4 }
 0x2ab   :  { %v17307_v17 = vld [vmem:[#allocation20 + $0x6a4] sm:$0xf0]  ;;  %v17135_v5 = vld [vmem:[#allocation20 + $0x14c] sm:$0xf]  ;;  %v12861_v8 = vor.u32 %v17335_v9, %v12858_v14 }
 0x2ac   :  { %v11928_v41 = vld [vmem:[#allocation20 + $0x48] sm:$0xf]  ;;  %v12729_v25 = vor.u32 %v17307_v17, %v12728_v16  ;;  %v12058_v6 = vld [vmem:[#allocation20 + $0x168] sm:$0xf0] }
 0x2ad   :  { %v17107_v23 = vld [vmem:[#allocation20 + $0x64] sm:$0xf0]  ;;  %2965 = vmatpush.bf16.msra.mxu3 %v11961_v19  ;;  %2978 = vmatpush.bf16.msrb.mxu0 %v12217_v50  ;;  %v17199_v13 = vld [vmem:[#allocation20 + $0x34c] sm:$0xf]  ;;  %v12061_v50 = vor.u32 %v17135_v5, %v12058_v6 }
 0x2ae   :  { %v12184_v26 = vld [vmem:[#allocation20 + $0x248] sm:$0xf]  ;;  %v11929_v61 = vor.u32 %v17107_v23, %v11928_v41  ;;  %2991 = vmatpush.bf16.msrb.mxu1 %v12473_v32  ;;  %3004 = vmatpush.bf16.msrb.mxu2 %v12729_v25  ;;  %v12314_v55 = vld [vmem:[#allocation20 + $0x368] sm:$0xf0] }
 0x2af   :  { %v17171_v27 = vld [vmem:[#allocation20 + $0x264] sm:$0xf0]  ;;  %v17263_v15 = vld [vmem:[#allocation20 + $0x54c] sm:$0xf]  ;;  %v12317_v41 = vor.u32 %v17199_v13, %v12314_v55 }
 0x2b0   :  { %v12440_v28 = vld [vmem:[#allocation20 + $0x448] sm:$0xf]  ;;  %v12185_v24 = vor.u32 %v17171_v27, %v12184_v26  ;;  %v12570_v16 = vld [vmem:[#allocation20 + $0x568] sm:$0xf0] }
 0x2b1   :  { %v17235_v30 = vld [vmem:[#allocation20 + $0x464] sm:$0xf0]  ;;  %2966 = vmatpush.bf16.msra.mxu3 %v11929_v61  ;;  %v17327_v17 = vld [vmem:[#allocation20 + $0x74c] sm:$0xf]  ;;  %v12573_v25 = vor.u32 %v17263_v15, %v12570_v16 }
 0x2b2   :  { %v12696_v21 = vld [vmem:[#allocation20 + $0x648] sm:$0xf]  ;;  %v12441_v38 = vor.u32 %v17235_v30, %v12440_v28  ;;  %2979 = vmatpush.bf16.msrb.mxu0 %v12185_v24  ;;  %v12826_v19 = vld [vmem:[#allocation20 + $0x768] sm:$0xf0] }
 0x2b3   :  { %v17299_v31 = vld [vmem:[#allocation20 + $0x664] sm:$0xf0]  ;;  %v17127_v23 = vld [vmem:[#allocation20 + $0x10c] sm:$0xf]  ;;  %v12829_v26 = vor.u32 %v17327_v17, %v12826_v19 }
 0x2b4   :  { %v11896_v33 = vld [vmem:[#allocation20 + $0x8] sm:$0xf]  ;;  %v12697_v39 = vor.u32 %v17299_v31, %v12696_v21  ;;  %2992 = vmatpush.bf16.msrb.mxu1 %v12441_v38  ;;  %v12026_v32 = vld [vmem:[#allocation20 + $0x128] sm:$0xf0] }
 0x2b5   :  { %v17099_v34 = vld [vmem:[#allocation20 + $0x24] sm:$0xf0]  ;;  %v17191_v27 = vld [vmem:[#allocation20 + $0x30c] sm:$0xf]  ;;  %v12029_v61 = vor.u32 %v17127_v23, %v12026_v32  ;;  %v17156_v23 = vld [vmem:[#allocation20 + $0x1ec] sm:$0xf0] }
 0x2b6   :  { %v12152_v35 = vld [vmem:[#allocation20 + $0x208] sm:$0xf]  ;;  %v11897_v54 = vor.u32 %v17099_v34, %v11896_v33  ;;  %3005 = vmatpush.bf16.msrb.mxu2 %v12697_v39  ;;  %v12282_v28 = vld [vmem:[#allocation20 + $0x328] sm:$0xf0]  ;;  %v12384_v32 = vld [vmem:[#allocation20 + $0x3d0] sm:$0xf] }
 0x2b7   :  { %v17163_v11 = vld [vmem:[#allocation20 + $0x224] sm:$0xf0]  ;;  %v17255_v30 = vld [vmem:[#allocation20 + $0x50c] sm:$0xf]  ;;  %v12285_v24 = vor.u32 %v17191_v27, %v12282_v28 }
 0x2b8   :  { %v12408_v43 = vld [vmem:[#allocation20 + $0x408] sm:$0xf]  ;;  %v12153_v56 = vor.u32 %v17163_v11, %v12152_v35  ;;  %2967 = vmatpush.bf16.msra.mxu3 %v11897_v54  ;;  %v12538_v21 = vld [vmem:[#allocation20 + $0x528] sm:$0xf0] }
 0x2b9   :  { %v17227_v42 = vld [vmem:[#allocation20 + $0x424] sm:$0xf0]  ;;  %v17319_v31 = vld [vmem:[#allocation20 + $0x70c] sm:$0xf]  ;;  %v12541_v11 = vor.u32 %v17255_v30, %v12538_v21  ;;  %v17284_v30 = vld [vmem:[#allocation20 + $0x5ec] sm:$0xf0] }
 0x2ba   :  { %v12664_v45 = vld [vmem:[#allocation20 + $0x608] sm:$0xf]  ;;  %v12409_v58 = vor.u32 %v17227_v42, %v12408_v43  ;;  %2980 = vmatpush.bf16.msrb.mxu0 %v12153_v56  ;;  %v12794_v33 = vld [vmem:[#allocation20 + $0x728] sm:$0xf0]  ;;  %v12896_v21 = vld [vmem:[#allocation20 + $0x7d0] sm:$0xf] }
 0x2bb   :  { %v17291_v47 = vld [vmem:[#allocation20 + $0x624] sm:$0xf0]  ;;  %2968 = vmatmul.bf16.vlgmr.msra.gmra.mxu3 %v19266_v20  ;;  %v17119_v34 = vld [vmem:[#allocation20 + $0xcc] sm:$0xf]  ;;  %v12797_v38 = vor.u32 %v17319_v31, %v12794_v33  ;;  %v17348_v31 = vld [vmem:[#allocation20 + $0x7ec] sm:$0xf0] }
 0x2bc   :  { %v12665_v51 = vor.u32 %v17291_v47, %v12664_v45  ;;  %2993 = vmatpush.bf16.msrb.mxu1 %v12409_v58  ;;  %3012 = vmatpush.bf16.msrb.mxu3 %v12125_v57  ;;  %v11994_v35 = vld [vmem:[#allocation20 + $0xe8] sm:$0xf0] }
 0x2bd   :  { %2981 = vmatmul.bf16.vlgmr.msrb.gmra.mxu0 %v19268_v22  ;;  %v17183_v39 = vld [vmem:[#allocation20 + $0x2cc] sm:$0xf]  ;;  %v11997_v49 = vor.u32 %v17119_v34, %v11994_v35  ;;  %v12096_v35 = vld [vmem:[#allocation20 + $0x190] sm:$0xf] }
 0x2be   :  { %3006 = vmatpush.bf16.msrb.mxu2 %v12665_v51  ;;  %3025 = vmatpush.bf16.msra.mxu0 %v12381_v59  ;;  %v12250_v43 = vld [vmem:[#allocation20 + $0x2e8] sm:$0xf0] }
 0x2bf   :  { %2994 = vmatmul.bf16.vlgmr.msrb.gmra.mxu1 %v19264_v18  ;;  %v17247_v42 = vld [vmem:[#allocation20 + $0x4cc] sm:$0xf]  ;;  %v12253_v40 = vor.u32 %v17183_v39, %v12250_v43  ;;  %v12897_v39 = vor.u32 %v17348_v31, %v12896_v21  ;;  %v12352_v43 = vld [vmem:[#allocation20 + $0x390] sm:$0xf] }
 0x2c0   :  { %3038 = vmatpush.bf16.msra.mxu1 %v12637_v62  ;;  %3013 = vmatpush.bf16.msrb.mxu3 %v12093_v44  ;;  %v12506_v45 = vld [vmem:[#allocation20 + $0x4e8] sm:$0xf0]  ;;  %v17180_v21 = vld [vmem:[#allocation20 + $0x2ac] sm:$0xf0] }
 0x2c1   :  { %3007 = vmatmul.bf16.vlgmr.msrb.gmra.mxu2 %v19270_v46  ;;  %v17311_v47 = vld [vmem:[#allocation20 + $0x6cc] sm:$0xf]  ;;  %v12509_v54 = vor.u32 %v17247_v42, %v12506_v45  ;;  %v17212_v42 = vld [vmem:[#allocation20 + $0x3ac] sm:$0xf0] }
 0x2c2   :  { %3051 = vmatpush.bf16.msra.mxu2 %v12893_v63  ;;  %3026 = vmatpush.bf16.msra.mxu0 %v12349_v37  ;;  %v12762_v48 = vld [vmem:[#allocation20 + $0x6e8] sm:$0xf0]  ;;  %v12608_v45 = vld [vmem:[#allocation20 + $0x590] sm:$0xf] }
 0x2c3   :  { %v17111_v52 = vld [vmem:[#allocation20 + $0x8c] sm:$0xf]  ;;  %v12765_v56 = vor.u32 %v17311_v47, %v12762_v48  ;;  %v17276_v47 = vld [vmem:[#allocation20 + $0x5ac] sm:$0xf0] }
 0x2c4   :  { %3039 = vmatpush.bf16.msra.mxu1 %v12605_v10  ;;  %3014 = vmatpush.bf16.msrb.mxu3 %v12061_v50  ;;  %v11962_v53 = vld [vmem:[#allocation20 + $0xa8] sm:$0xf0]  ;;  %v12864_v48 = vld [vmem:[#allocation20 + $0x790] sm:$0xf] }
 0x2c5   :  { %v17175_v36 = vld [vmem:[#allocation20 + $0x28c] sm:$0xf]  ;;  %v11965_v59 = vor.u32 %v17111_v52, %v11962_v53  ;;  %v12353_v52 = vor.u32 %v17212_v42, %v12352_v43  ;;  %v12064_v53 = vld [vmem:[#allocation20 + $0x150] sm:$0xf] }
 0x2c6   :  { %3052 = vmatpush.bf16.msra.mxu2 %v12861_v8  ;;  %3027 = vmatpush.bf16.msra.mxu0 %v12317_v41  ;;  %v12218_v7 = vld [vmem:[#allocation20 + $0x2a8] sm:$0xf0]  ;;  %v12128_v41 = vld [vmem:[#allocation20 + $0x1d0] sm:$0xf] }
 0x2c7   :  { %v17239_v2 = vld [vmem:[#allocation20 + $0x48c] sm:$0xf]  ;;  %v12221_v60 = vor.u32 %v17175_v36, %v12218_v7  ;;  %v12320_v7 = vld [vmem:[#allocation20 + $0x350] sm:$0xf] }
 0x2c8   :  { %3040 = vmatpush.bf16.msra.mxu1 %v12573_v25  ;;  %3015 = vmatpush.bf16.msrb.mxu3 %v12029_v61  ;;  %v12474_v58 = vld [vmem:[#allocation20 + $0x4a8] sm:$0xf0]  ;;  %v17220_v25 = vld [vmem:[#allocation20 + $0x3ec] sm:$0xf0] }
 0x2c9   :  { %v17303_v51 = vld [vmem:[#allocation20 + $0x68c] sm:$0xf]  ;;  %v12477_v63 = vor.u32 %v17239_v2, %v12474_v58  ;;  %v12385_v34 = vor.u32 %v17220_v25, %v12384_v32  ;;  %v17204_v2 = vld [vmem:[#allocation20 + $0x36c] sm:$0xf0] }
 0x2ca   :  { %3053 = vmatpush.bf16.msra.mxu2 %v12829_v26  ;;  %3028 = vmatpush.bf16.msra.mxu0 %v12285_v24  ;;  %v12730_v57 = vld [vmem:[#allocation20 + $0x6a8] sm:$0xf0]  ;;  %v12640_v26 = vld [vmem:[#allocation20 + $0x5d0] sm:$0xf]  ;;  %v12129_v24 = vor.u32 %v17156_v23, %v12128_v41 }
 0x2cb   :  { %v17103_v12 = vld [vmem:[#allocation20 + $0x4c] sm:$0xf]  ;;  %v12733_v0 = vor.u32 %v17303_v51, %v12730_v57  ;;  %v12576_v58 = vld [vmem:[#allocation20 + $0x550] sm:$0xf] }
 0x2cc   :  { %3041 = vmatpush.bf16.msra.mxu1 %v12541_v11  ;;  %3016 = vmatpush.bf16.msrb.mxu3 %v11997_v49  ;;  %v11930_v62 = vld [vmem:[#allocation20 + $0x68] sm:$0xf0]  ;;  %v17148_v11 = vld [vmem:[#allocation20 + $0x1ac] sm:$0xf0] }
 0x2cd   :  { %v17167_v1 = vld [vmem:[#allocation20 + $0x24c] sm:$0xf]  ;;  %v11933_v5 = vor.u32 %v17103_v12, %v11930_v62  ;;  %v17340_v49 = vld [vmem:[#allocation20 + $0x7ac] sm:$0xf0]  ;;  %v12321_v12 = vor.u32 %v17204_v2, %v12320_v7 }
 0x2ce   :  { %3054 = vmatpush.bf16.msra.mxu2 %v12797_v38  ;;  %3029 = vmatpush.bf16.msra.mxu0 %v12253_v40  ;;  %v12186_v3 = vld [vmem:[#allocation20 + $0x268] sm:$0xf0]  ;;  %v12641_v38 = vor.u32 %v17284_v30, %v12640_v26  ;;  %v12097_v40 = vor.u32 %v17148_v11, %v12096_v35  ;;  %v12865_v36 = vor.u32 %v17340_v49, %v12864_v48  ;;  %v17268_v51 = vld [vmem:[#allocation20 + $0x56c] sm:$0xf0] }
 0x2cf   :  { %v17231_v4 = vld [vmem:[#allocation20 + $0x44c] sm:$0xf]  ;;  %v12189_v6 = vor.u32 %v17167_v1, %v12186_v3  ;;  %v12832_v57 = vld [vmem:[#allocation20 + $0x750] sm:$0xf] }
 0x2d0   :  { %3042 = vmatpush.bf16.msra.mxu1 %v12509_v54  ;;  %v12442_v9 = vld [vmem:[#allocation20 + $0x468] sm:$0xf0]  ;;  %3017 = vmatpush.bf16.msrb.mxu3 %v11965_v59  ;;  %v17140_v54 = vld [vmem:[#allocation20 + $0x16c] sm:$0xf0] }
 0x2d1   :  { %v17295_v14 = vld [vmem:[#allocation20 + $0x64c] sm:$0xf]  ;;  %v12445_v55 = vor.u32 %v17231_v4, %v12442_v9  ;;  %v17332_v59 = vld [vmem:[#allocation20 + $0x76c] sm:$0xf0] }
 0x2d2   :  { %3055 = vmatpush.bf16.msra.mxu2 %v12765_v56  ;;  %v12698_v44 = vld [vmem:[#allocation20 + $0x668] sm:$0xf0]  ;;  %3030 = vmatpush.bf16.msra.mxu0 %v12221_v60  ;;  %v12609_v56 = vor.u32 %v17276_v47, %v12608_v45  ;;  %v12065_v60 = vor.u32 %v17140_v54, %v12064_v53  ;;  %v12032_v62 = vld [vmem:[#allocation20 + $0x110] sm:$0xf]  ;;  %v12833_v1 = vor.u32 %v17332_v59, %v12832_v57 }
 0x2d3   :  { %v17095_v37 = vld [vmem:[#allocation20 + $0xc] sm:$0xf]  ;;  %v12701_v15 = vor.u32 %v17295_v14, %v12698_v44  ;;  %v12288_v3 = vld [vmem:[#allocation20 + $0x310] sm:$0xf] }
 0x2d4   :  { %v11898_v10 = vld [vmem:[#allocation20 + $0x28] sm:$0xf0]  ;;  %3043 = vmatpush.bf16.msra.mxu1 %v12477_v63  ;;  %3018 = vmatpush.bf16.msrb.mxu3 %v11933_v5  ;;  %v17132_v63 = vld [vmem:[#allocation20 + $0x12c] sm:$0xf0] }
 0x2d5   :  { %v17159_v8 = vld [vmem:[#allocation20 + $0x20c] sm:$0xf]  ;;  %v11901_v27 = vor.u32 %v17095_v37, %v11898_v10  ;;  %v17196_v4 = vld [vmem:[#allocation20 + $0x32c] sm:$0xf0]  ;;  %v12033_v5 = vor.u32 %v17132_v63, %v12032_v62  ;;  %v12130_v62 = vld [vmem:[#allocation20 + $0x1f0] sm:$0xf0] }
 0x2d6   :  { %v12154_v13 = vld [vmem:[#allocation20 + $0x228] sm:$0xf0]  ;;  %3056 = vmatpush.bf16.msra.mxu2 %v12733_v0  ;;  %3031 = vmatpush.bf16.msra.mxu0 %v12189_v6  ;;  %v12577_v0 = vor.u32 %v17268_v51, %v12576_v58  ;;  %v12544_v9 = vld [vmem:[#allocation20 + $0x510] sm:$0xf]  ;;  %v12289_v6 = vor.u32 %v17196_v4, %v12288_v3  ;;  %v17216_v63 = vld [vmem:[#allocation20 + $0x3d4] sm:$0xf] }
 0x2d7   :  { %v17223_v16 = vld [vmem:[#allocation20 + $0x40c] sm:$0xf]  ;;  %v12157_v28 = vor.u32 %v17159_v8, %v12154_v13  ;;  %v17260_v14 = vld [vmem:[#allocation20 + $0x52c] sm:$0xf0] }
 0x2d8   :  { %v12410_v17 = vld [vmem:[#allocation20 + $0x428] sm:$0xf0]  ;;  %3044 = vmatpush.bf16.msra.mxu1 %v12445_v55  ;;  %3019 = vmatpush.bf16.msrb.mxu3 %v11901_v27  ;;  %v12800_v44 = vld [vmem:[#allocation20 + $0x710] sm:$0xf]  ;;  %v12545_v13 = vor.u32 %v17260_v14, %v12544_v9  ;;  %v12642_v9 = vld [vmem:[#allocation20 + $0x5f0] sm:$0xf0] }
 0x2d9   :  { %v17287_v19 = vld [vmem:[#allocation20 + $0x60c] sm:$0xf]  ;;  %v12413_v33 = vor.u32 %v17223_v16, %v12410_v17  ;;  %v17324_v37 = vld [vmem:[#allocation20 + $0x72c] sm:$0xf0]  ;;  %v17344_v14 = vld [vmem:[#allocation20 + $0x7d4] sm:$0xf] }
 0x2da   :  { %v12666_v50 = vld [vmem:[#allocation20 + $0x628] sm:$0xf0]  ;;  %3057 = vmatpush.bf16.msra.mxu2 %v12701_v15  ;;  %3032 = vmatpush.bf16.msra.mxu0 %v12157_v28  ;;  %v12000_v10 = vld [vmem:[#allocation20 + $0xd0] sm:$0xf]  ;;  %v12801_v55 = vor.u32 %v17324_v37, %v12800_v44  ;;  %v12898_v44 = vld [vmem:[#allocation20 + $0x7f0] sm:$0xf0] }
 0x2db   :  { %v12669_v61 = vor.u32 %v17287_v19, %v12666_v50  ;;  %3020 = vmatmul.bf16.vlgmr.msrb.gmra.mxu3 %v19266_v20  ;;  %v17124_v8 = vld [vmem:[#allocation20 + $0xec] sm:$0xf0] }
 0x2dc   :  { %3045 = vmatpush.bf16.msra.mxu1 %v12413_v33  ;;  %3064 = vmatpush.bf16.msra.mxu3 %v12129_v24  ;;  %v12256_v15 = vld [vmem:[#allocation20 + $0x2d0] sm:$0xf]  ;;  %v12001_v23 = vor.u32 %v17124_v8, %v12000_v10  ;;  %v17144_v8 = vld [vmem:[#allocation20 + $0x194] sm:$0xf] }
 0x2dd   :  { %3033 = vmatmul.bf16.vlgmr.msra.gmra.mxu0 %v19268_v22  ;;  %v17188_v16 = vld [vmem:[#allocation20 + $0x2ec] sm:$0xf0] }
 0x2de   :  { %3058 = vmatpush.bf16.msra.mxu2 %v12669_v61  ;;  %3077 = vmatpush.bf16.msrb.mxu0 %v12385_v34  ;;  %v12512_v17 = vld [vmem:[#allocation20 + $0x4d0] sm:$0xf]  ;;  %v12257_v32 = vor.u32 %v17188_v16, %v12256_v15  ;;  %v12901_v15 = vor.u32 %v17344_v14, %v12898_v44  ;;  %v17208_v16 = vld [vmem:[#allocation20 + $0x394] sm:$0xf] }
 0x2df   :  { %3046 = vmatmul.bf16.vlgmr.msra.gmra.mxu1 %v19264_v18  ;;  %v17252_v19 = vld [vmem:[#allocation20 + $0x4ec] sm:$0xf0]  ;;  %v12226_v14 = vld [vmem:[#allocation20 + $0x2b0] sm:$0xf0] }
 0x2e0   :  { %3090 = vmatpush.bf16.msrb.mxu1 %v12641_v38  ;;  %3065 = vmatpush.bf16.msra.mxu3 %v12097_v40  ;;  %v12768_v50 = vld [vmem:[#allocation20 + $0x6d0] sm:$0xf]  ;;  %v12513_v27 = vor.u32 %v17252_v19, %v12512_v17  ;;  %v12354_v17 = vld [vmem:[#allocation20 + $0x3b0] sm:$0xf0] }
 0x2e1   :  { %3059 = vmatmul.bf16.vlgmr.msra.gmra.mxu2 %v19270_v46  ;;  %v17316_v41 = vld [vmem:[#allocation20 + $0x6ec] sm:$0xf0]  ;;  %v17272_v19 = vld [vmem:[#allocation20 + $0x594] sm:$0xf] }
 0x2e2   :  { %3103 = vmatpush.bf16.msrb.mxu2 %v12897_v39  ;;  %3078 = vmatpush.bf16.msrb.mxu0 %v12353_v52  ;;  %v11968_v25 = vld [vmem:[#allocation20 + $0x90] sm:$0xf]  ;;  %v12769_v28 = vor.u32 %v17316_v41, %v12768_v50  ;;  %v12610_v50 = vld [vmem:[#allocation20 + $0x5b0] sm:$0xf0] }
 0x2e3   :  { %v17116_v26 = vld [vmem:[#allocation20 + $0xac] sm:$0xf0]  ;;  %v17336_v41 = vld [vmem:[#allocation20 + $0x794] sm:$0xf] }
 0x2e4   :  { %3091 = vmatpush.bf16.msrb.mxu1 %v12609_v56  ;;  %3066 = vmatpush.bf16.msra.mxu3 %v12065_v60  ;;  %v12224_v30 = vld [vmem:[#allocation20 + $0x290] sm:$0xf]  ;;  %v11969_v34 = vor.u32 %v17116_v26, %v11968_v25  ;;  %v12357_v25 = vor.u32 %v17208_v16, %v12354_v17  ;;  %v17136_v26 = vld [vmem:[#allocation20 + $0x154] sm:$0xf] }
 0x2e5   :  { %v12480_v31 = vld [vmem:[#allocation20 + $0x490] sm:$0xf]  ;;  %v12225_v35 = vor.u32 %v17180_v21, %v12224_v30  ;;  %v17200_v21 = vld [vmem:[#allocation20 + $0x354] sm:$0xf] }
 0x2e6   :  { %3104 = vmatpush.bf16.msrb.mxu2 %v12865_v36  ;;  %3079 = vmatpush.bf16.msrb.mxu0 %v12321_v12  ;;  %v17244_v33 = vld [vmem:[#allocation20 + $0x4ac] sm:$0xf0]  ;;  %v17152_v12 = vld [vmem:[#allocation20 + $0x1d4] sm:$0xf] }
 0x2e7   :  { %v12736_v61 = vld [vmem:[#allocation20 + $0x690] sm:$0xf]  ;;  %v12481_v39 = vor.u32 %v17244_v33, %v12480_v31  ;;  %v12322_v31 = vld [vmem:[#allocation20 + $0x370] sm:$0xf0] }
 0x2e8   :  { %3092 = vmatpush.bf16.msrb.mxu1 %v12577_v0  ;;  %3067 = vmatpush.bf16.msra.mxu3 %v12033_v5  ;;  %v17308_v24 = vld [vmem:[#allocation20 + $0x6ac] sm:$0xf0]  ;;  %v12386_v0 = vld [vmem:[#allocation20 + $0x3f0] sm:$0xf0] }
 0x2e9   :  { %v11936_v11 = vld [vmem:[#allocation20 + $0x50] sm:$0xf]  ;;  %v12737_v43 = vor.u32 %v17308_v24, %v12736_v61  ;;  %v12389_v10 = vor.u32 %v17216_v63, %v12386_v0  ;;  %v17264_v33 = vld [vmem:[#allocation20 + $0x554] sm:$0xf] }
 0x2ea   :  { %3105 = vmatpush.bf16.msrb.mxu2 %v12833_v1  ;;  %3080 = vmatpush.bf16.msrb.mxu0 %v12289_v6  ;;  %v17108_v38 = vld [vmem:[#allocation20 + $0x6c] sm:$0xf0]  ;;  %v17280_v1 = vld [vmem:[#allocation20 + $0x5d4] sm:$0xf]  ;;  %v12133_v6 = vor.u32 %v17152_v12, %v12130_v62 }
 0x2eb   :  { %v12192_v42 = vld [vmem:[#allocation20 + $0x250] sm:$0xf]  ;;  %v11937_v53 = vor.u32 %v17108_v38, %v11936_v11  ;;  %v12578_v61 = vld [vmem:[#allocation20 + $0x570] sm:$0xf0]  ;;  %v12325_v11 = vor.u32 %v17200_v21, %v12322_v31 }
 0x2ec   :  { %3093 = vmatpush.bf16.msrb.mxu1 %v12545_v13  ;;  %3068 = vmatpush.bf16.msra.mxu3 %v12001_v23  ;;  %v17172_v45 = vld [vmem:[#allocation20 + $0x26c] sm:$0xf0]  ;;  %v12098_v13 = vld [vmem:[#allocation20 + $0x1b0] sm:$0xf0] }
 0x2ed   :  { %v12448_v47 = vld [vmem:[#allocation20 + $0x450] sm:$0xf]  ;;  %v12193_v54 = vor.u32 %v17172_v45, %v12192_v42  ;;  %v12866_v23 = vld [vmem:[#allocation20 + $0x7b0] sm:$0xf0] }
 0x2ee   :  { %3106 = vmatpush.bf16.msrb.mxu2 %v12801_v55  ;;  %3081 = vmatpush.bf16.msrb.mxu0 %v12257_v32  ;;  %v17236_v48 = vld [vmem:[#allocation20 + $0x46c] sm:$0xf0]  ;;  %v12645_v55 = vor.u32 %v17280_v1, %v12642_v9  ;;  %v12101_v32 = vor.u32 %v17144_v8, %v12098_v13  ;;  %v12869_v30 = vor.u32 %v17336_v41, %v12866_v23  ;;  %v17328_v24 = vld [vmem:[#allocation20 + $0x754] sm:$0xf] }
 0x2ef   :  { %v12704_v49 = vld [vmem:[#allocation20 + $0x650] sm:$0xf]  ;;  %v12449_v2 = vor.u32 %v17236_v48, %v12448_v47  ;;  %v17128_v38 = vld [vmem:[#allocation20 + $0x114] sm:$0xf] }
 0x2f0   :  { %3094 = vmatpush.bf16.msrb.mxu1 %v12513_v27  ;;  %v17300_v40 = vld [vmem:[#allocation20 + $0x66c] sm:$0xf0]  ;;  %3069 = vmatpush.bf16.msra.mxu3 %v11969_v34  ;;  %v12066_v27 = vld [vmem:[#allocation20 + $0x170] sm:$0xf0] }
 0x2f1   :  { %v11904_v52 = vld [vmem:[#allocation20 + $0x10] sm:$0xf]  ;;  %v12705_v58 = vor.u32 %v17300_v40, %v12704_v49  ;;  %v12834_v34 = vld [vmem:[#allocation20 + $0x770] sm:$0xf0] }
 0x2f2   :  { %3107 = vmatpush.bf16.msrb.mxu2 %v12769_v28  ;;  %3082 = vmatpush.bf16.msrb.mxu0 %v12225_v35  ;;  %v17100_v56 = vld [vmem:[#allocation20 + $0x2c] sm:$0xf0]  ;;  %v12613_v28 = vor.u32 %v17272_v19, %v12610_v50  ;;  %v12069_v35 = vor.u32 %v17136_v26, %v12066_v27  ;;  %v12837_v42 = vor.u32 %v17328_v24, %v12834_v34  ;;  %v17192_v45 = vld [vmem:[#allocation20 + $0x314] sm:$0xf] }
 0x2f3   :  { %v12160_v36 = vld [vmem:[#allocation20 + $0x210] sm:$0xf]  ;;  %v11905_v3 = vor.u32 %v17100_v56, %v11904_v52  ;;  %v12290_v47 = vld [vmem:[#allocation20 + $0x330] sm:$0xf0] }
 0x2f4   :  { %v17164_v7 = vld [vmem:[#allocation20 + $0x22c] sm:$0xf0]  ;;  %3095 = vmatpush.bf16.msrb.mxu1 %v12481_v39  ;;  %3070 = vmatpush.bf16.msra.mxu3 %v11937_v53  ;;  %v12034_v39 = vld [vmem:[#allocation20 + $0x130] sm:$0xf0] }
 0x2f5   :  { %v12416_v51 = vld [vmem:[#allocation20 + $0x410] sm:$0xf]  ;;  %v12161_v4 = vor.u32 %v17164_v7, %v12160_v36  ;;  %v17256_v48 = vld [vmem:[#allocation20 + $0x514] sm:$0xf]  ;;  %v12037_v53 = vor.u32 %v17128_v38, %v12034_v39  ;;  %v17157_v38 = vld [vmem:[#allocation20 + $0x1f4] sm:$0xf0] }
 0x2f6   :  { %3108 = vmatpush.bf16.msrb.mxu2 %v12737_v43  ;;  %v17228_v57 = vld [vmem:[#allocation20 + $0x42c] sm:$0xf0]  ;;  %3083 = vmatpush.bf16.msrb.mxu0 %v12193_v54  ;;  %v12581_v43 = vor.u32 %v17264_v33, %v12578_v61  ;;  %v12546_v49 = vld [vmem:[#allocation20 + $0x530] sm:$0xf0]  ;;  %v12293_v54 = vor.u32 %v17192_v45, %v12290_v47  ;;  %v12392_v39 = vld [vmem:[#allocation20 + $0x3d8] sm:$0xf] }
 0x2f7   :  { %v12672_v59 = vld [vmem:[#allocation20 + $0x610] sm:$0xf]  ;;  %v12417_v37 = vor.u32 %v17228_v57, %v12416_v51  ;;  %v17320_v40 = vld [vmem:[#allocation20 + $0x714] sm:$0xf]  ;;  %v12549_v7 = vor.u32 %v17256_v48, %v12546_v49  ;;  %v17285_v48 = vld [vmem:[#allocation20 + $0x5f4] sm:$0xf0] }
 0x2f8   :  { %v17292_v60 = vld [vmem:[#allocation20 + $0x62c] sm:$0xf0]  ;;  %3096 = vmatpush.bf16.msrb.mxu1 %v12449_v2  ;;  %3071 = vmatpush.bf16.msra.mxu3 %v11905_v3  ;;  %v12802_v52 = vld [vmem:[#allocation20 + $0x730] sm:$0xf0]  ;;  %v12904_v49 = vld [vmem:[#allocation20 + $0x7d8] sm:$0xf] }
 0x2f9   :  { %v12673_v5 = vor.u32 %v17292_v60, %v12672_v59  ;;  %v17120_v56 = vld [vmem:[#allocation20 + $0xd4] sm:$0xf]  ;;  %v12805_v2 = vor.u32 %v17320_v40, %v12802_v52  ;;  %v17349_v40 = vld [vmem:[#allocation20 + $0x7f4] sm:$0xf0] }
 0x2fa   :  { %3109 = vmatpush.bf16.msrb.mxu2 %v12705_v58  ;;  %3084 = vmatpush.bf16.msrb.mxu0 %v12161_v4  ;;  %v12002_v36 = vld [vmem:[#allocation20 + $0xf0] sm:$0xf0] }
 0x2fb   :  { %3072 = vmatmul.bf16.vlgmr.msra.gmra.mxu3 %v19266_v20  ;;  %v17184_v58 = vld [vmem:[#allocation20 + $0x2d4] sm:$0xf]  ;;  %v12005_v62 = vor.u32 %v17120_v56, %v12002_v36  ;;  %v12104_v36 = vld [vmem:[#allocation20 + $0x198] sm:$0xf] }
 0x2fc   :  { %3097 = vmatpush.bf16.msrb.mxu1 %v12417_v37  ;;  %3116 = vmatpush.bf16.msrb.mxu3 %v12133_v6  ;;  %v12258_v51 = vld [vmem:[#allocation20 + $0x2f0] sm:$0xf0] }
 0x2fd   :  { %3085 = vmatmul.bf16.vlgmr.msrb.gmra.mxu0 %v19268_v22  ;;  %v17248_v57 = vld [vmem:[#allocation20 + $0x4d4] sm:$0xf]  ;;  %v12261_v63 = vor.u32 %v17184_v58, %v12258_v51  ;;  %v12905_v58 = vor.u32 %v17349_v40, %v12904_v49  ;;  %v12360_v51 = vld [vmem:[#allocation20 + $0x398] sm:$0xf] }
 0x2fe   :  { %3110 = vmatpush.bf16.msrb.mxu2 %v12673_v5  ;;  %3129 = vmatpush.bf16.msra.mxu0 %v12389_v10  ;;  %v12514_v59 = vld [vmem:[#allocation20 + $0x4f0] sm:$0xf0] }
 0x2ff   :  { %3098 = vmatmul.bf16.vlgmr.msrb.gmra.mxu1 %v19264_v18  ;;  %v17312_v60 = vld [vmem:[#allocation20 + $0x6d4] sm:$0xf]  ;;  %v12517_v3 = vor.u32 %v17248_v57, %v12514_v59  ;;  %v17213_v57 = vld [vmem:[#allocation20 + $0x3b4] sm:$0xf0] }
 0x300   :  { %3142 = vmatpush.bf16.msra.mxu1 %v12645_v55  ;;  %3117 = vmatpush.bf16.msrb.mxu3 %v12101_v32  ;;  %v12770_v12 = vld [vmem:[#allocation20 + $0x6f0] sm:$0xf0]  ;;  %v12616_v59 = vld [vmem:[#allocation20 + $0x598] sm:$0xf] }
 0x301   :  { %3111 = vmatmul.bf16.vlgmr.msrb.gmra.mxu2 %v19270_v46  ;;  %v17112_v0 = vld [vmem:[#allocation20 + $0x94] sm:$0xf]  ;;  %v12773_v4 = vor.u32 %v17312_v60, %v12770_v12  ;;  %v17277_v60 = vld [vmem:[#allocation20 + $0x5b4] sm:$0xf0] }
 0x302   :  { %3155 = vmatpush.bf16.msra.mxu2 %v12901_v15  ;;  %3130 = vmatpush.bf16.msra.mxu0 %v12357_v25  ;;  %v11970_v1 = vld [vmem:[#allocation20 + $0xb0] sm:$0xf0]  ;;  %v12872_v12 = vld [vmem:[#allocation20 + $0x798] sm:$0xf] }
 0x303   :  { %v17176_v9 = vld [vmem:[#allocation20 + $0x294] sm:$0xf]  ;;  %v11973_v10 = vor.u32 %v17112_v0, %v11970_v1  ;;  %v12361_v0 = vor.u32 %v17213_v57, %v12360_v51  ;;  %v12072_v1 = vld [vmem:[#allocation20 + $0x158] sm:$0xf] }
 0x304   :  { %3143 = vmatpush.bf16.msra.mxu1 %v12613_v28  ;;  %3118 = vmatpush.bf16.msrb.mxu3 %v12069_v35  ;;  %v17240_v44 = vld [vmem:[#allocation20 + $0x494] sm:$0xf]  ;;  %v12229_v8 = vor.u32 %v17176_v9, %v12226_v14  ;;  %v12328_v14 = vld [vmem:[#allocation20 + $0x358] sm:$0xf] }
 0x305   :  { %v12482_v37 = vld [vmem:[#allocation20 + $0x4b0] sm:$0xf0]  ;;  %v17181_v51 = vld [vmem:[#allocation20 + $0x2b4] sm:$0xf0] }
 0x306   :  { %3156 = vmatpush.bf16.msra.mxu2 %v12869_v30  ;;  %3131 = vmatpush.bf16.msra.mxu0 %v12325_v11  ;;  %v17304_v5 = vld [vmem:[#allocation20 + $0x694] sm:$0xf]  ;;  %v12485_v15 = vor.u32 %v17240_v44, %v12482_v37  ;;  %v12136_v11 = vld [vmem:[#allocation20 + $0x1d8] sm:$0xf] }
 0x307   :  { %v12738_v6 = vld [vmem:[#allocation20 + $0x6b0] sm:$0xf0]  ;;  %v17205_v44 = vld [vmem:[#allocation20 + $0x374] sm:$0xf0] }
 0x308   :  { %3144 = vmatpush.bf16.msra.mxu1 %v12581_v43  ;;  %3119 = vmatpush.bf16.msrb.mxu3 %v12037_v53  ;;  %v17104_v13 = vld [vmem:[#allocation20 + $0x54] sm:$0xf]  ;;  %v12741_v16 = vor.u32 %v17304_v5, %v12738_v6  ;;  %v17221_v43 = vld [vmem:[#allocation20 + $0x3f4] sm:$0xf0] }
 0x309   :  { %v11938_v55 = vld [vmem:[#allocation20 + $0x70] sm:$0xf0]  ;;  %v12393_v56 = vor.u32 %v17221_v43, %v12392_v39  ;;  %v12584_v37 = vld [vmem:[#allocation20 + $0x558] sm:$0xf] }
 0x30a   :  { %3157 = vmatpush.bf16.msra.mxu2 %v12837_v42  ;;  %3132 = vmatpush.bf16.msra.mxu0 %v12293_v54  ;;  %v17168_v17 = vld [vmem:[#allocation20 + $0x254] sm:$0xf]  ;;  %v11941_v26 = vor.u32 %v17104_v13, %v11938_v55  ;;  %v12648_v42 = vld [vmem:[#allocation20 + $0x5d8] sm:$0xf]  ;;  %v12137_v54 = vor.u32 %v17157_v38, %v12136_v11  ;;  %v19296_v13 = vld [vmem:[#allocation22] sm:$0xff] }
 0x30b   :  { %v12194_v19 = vld [vmem:[#allocation20 + $0x270] sm:$0xf0]  ;;  %v17269_v5 = vld [vmem:[#allocation20 + $0x574] sm:$0xf0] }
 0x30c   :  { %3145 = vmatpush.bf16.msra.mxu1 %v12549_v7  ;;  %3120 = vmatpush.bf16.msrb.mxu3 %v12005_v62  ;;  %v17232_v50 = vld [vmem:[#allocation20 + $0x454] sm:$0xf]  ;;  %v12197_v27 = vor.u32 %v17168_v17, %v12194_v19  ;;  %v17149_v7 = vld [vmem:[#allocation20 + $0x1b4] sm:$0xf0] }
 0x30d   :  { %v12450_v41 = vld [vmem:[#allocation20 + $0x470] sm:$0xf0]  ;;  %v17341_v62 = vld [vmem:[#allocation20 + $0x7b4] sm:$0xf0] }
 0x30e   :  { %3158 = vmatpush.bf16.msra.mxu2 %v12805_v2  ;;  %3133 = vmatpush.bf16.msra.mxu0 %v12261_v63  ;;  %v17296_v23 = vld [vmem:[#allocation20 + $0x654] sm:$0xf]  ;;  %v12453_v31 = vor.u32 %v17232_v50, %v12450_v41  ;;  %v12649_v2 = vor.u32 %v17285_v48, %v12648_v42  ;;  %v12105_v63 = vor.u32 %v17149_v7, %v12104_v36  ;;  %v12840_v6 = vld [vmem:[#allocation20 + $0x758] sm:$0xf] }
 0x30f   :  { %v12706_v32 = vld [vmem:[#allocation20 + $0x670] sm:$0xf0]  ;;  %v12873_v9 = vor.u32 %v17341_v62, %v12872_v12  ;;  %v12040_v17 = vld [vmem:[#allocation20 + $0x118] sm:$0xf]  ;;  %v12585_v41 = vor.u32 %v17269_v5, %v12584_v37 }
 0x310   :  { %3146 = vmatpush.bf16.msra.mxu1 %v12517_v3  ;;  %v17096_v25 = vld [vmem:[#allocation20 + $0x14] sm:$0xf]  ;;  %3121 = vmatpush.bf16.msrb.mxu3 %v11973_v10  ;;  %v12709_v33 = vor.u32 %v17296_v23, %v12706_v32  ;;  %v17141_v3 = vld [vmem:[#allocation20 + $0x174] sm:$0xf0] }
 0x311   :  { %v11906_v28 = vld [vmem:[#allocation20 + $0x30] sm:$0xf0]  ;;  %v17333_v10 = vld [vmem:[#allocation20 + $0x774] sm:$0xf0]  ;;  %v12073_v55 = vor.u32 %v17141_v3, %v12072_v1 }
 0x312   :  { %3159 = vmatpush.bf16.msra.mxu2 %v12773_v4  ;;  %3134 = vmatpush.bf16.msra.mxu0 %v12229_v8  ;;  %v17160_v30 = vld [vmem:[#allocation20 + $0x214] sm:$0xf]  ;;  %v11909_v45 = vor.u32 %v17096_v25, %v11906_v28  ;;  %v12617_v4 = vor.u32 %v17277_v60, %v12616_v59  ;;  %v17133_v19 = vld [vmem:[#allocation20 + $0x134] sm:$0xf0]  ;;  %v12841_v23 = vor.u32 %v17333_v10, %v12840_v6 }
 0x313   :  { %v12162_v21 = vld [vmem:[#allocation20 + $0x230] sm:$0xf0]  ;;  %v12296_v50 = vld [vmem:[#allocation20 + $0x318] sm:$0xf] }
 0x314   :  { %3147 = vmatpush.bf16.msra.mxu1 %v12485_v15  ;;  %v17224_v61 = vld [vmem:[#allocation20 + $0x414] sm:$0xf]  ;;  %3122 = vmatpush.bf16.msrb.mxu3 %v11941_v26  ;;  %v12165_v47 = vor.u32 %v17160_v30, %v12162_v21  ;;  %v2878_v8 = vpop.f32.mrf.mxu0  ;;  %v12329_v15 = vor.u32 %v17205_v44, %v12328_v14  ;;  %v17197_v32 = vld [vmem:[#allocation20 + $0x334] sm:$0xf0]  ;;  %v1560_v30 = vperm.slane %v19296_v13, 0  ;;  %v12041_v21 = vor.u32 %v17133_v19, %v12040_v17 }
 0x315   :  { %v12418_v24 = vld [vmem:[#allocation20 + $0x430] sm:$0xf0]  ;;  %v12552_v25 = vld [vmem:[#allocation20 + $0x518] sm:$0xf] }
 0x316   :  { %3160 = vmatpush.bf16.msra.mxu2 %v12741_v16  ;;  %v17288_v34 = vld [vmem:[#allocation20 + $0x614] sm:$0xf]  ;;  %3135 = vmatpush.bf16.msra.mxu0 %v12197_v27  ;;  %v12421_v52 = vor.u32 %v17224_v61, %v12418_v24  ;;  %v2891_v16 = vpop.f32.mrf.mxu1  ;;  %v17261_v26 = vld [vmem:[#allocation20 + $0x534] sm:$0xf0] }
 0x317   :  { %v12674_v35 = vld [vmem:[#allocation20 + $0x630] sm:$0xf0]  ;;  %v12808_v27 = vld [vmem:[#allocation20 + $0x718] sm:$0xf]  ;;  %v12553_v24 = vor.u32 %v17261_v26, %v12552_v25 }
 0x318   :  { %3148 = vmatpush.bf16.msra.mxu1 %v12453_v31  ;;  %v12677_v53 = vor.u32 %v17288_v34, %v12674_v35  ;;  %3123 = vmatpush.bf16.msrb.mxu3 %v11909_v45  ;;  %v17325_v28 = vld [vmem:[#allocation20 + $0x734] sm:$0xf0]  ;;  %v12297_v31 = vor.u32 %v17197_v32, %v12296_v50 }
 0x319   :  { %v17125_v61 = vld [vmem:[#allocation20 + $0xf4] sm:$0xf0]  ;;  %v12809_v34 = vor.u32 %v17325_v28, %v12808_v27 }
 0x31a   :  { %3161 = vmatpush.bf16.msra.mxu2 %v12709_v33  ;;  %3136 = vmatpush.bf16.msra.mxu0 %v12165_v47  ;;  %v12008_v33 = vld [vmem:[#allocation20 + $0xd8] sm:$0xf]  ;;  %v2865_v35 = vpop.f32.mrf.mxu3 }
 0x31b   :  { %3124 = vmatmul.bf16.vlgmr.msrb.gmra.mxu3 %v19266_v20  ;;  %v12264_v11 = vld [vmem:[#allocation20 + $0x2d8] sm:$0xf]  ;;  %v2866_v43 = vadd.f32 %v2865_v35, %v1560_v30  ;;  %v2904_v42 = vpop.f32.mrf.mxu2 }
 0x31c   :  { %3149 = vmatpush.bf16.msra.mxu1 %v12421_v52  ;;  %3168 = vmatpush.bf16.msra.mxu3 %v12137_v54  ;;  %v17189_v38 = vld [vmem:[#allocation20 + $0x2f4] sm:$0xf0]  ;;  %v2880_v49 = vpop.f32.mrf.mxu0  ;;  %v12009_v52 = vor.u32 %v17125_v61, %v12008_v33 }
 0x31d   :  { %3137 = vmatmul.bf16.vlgmr.msra.gmra.mxu0 %v19268_v22  ;;  %v12520_v39 = vld [vmem:[#allocation20 + $0x4d8] sm:$0xf]  ;;  %v2879_v40 = vadd.f32 %v2878_v8, %v2866_v43  ;;  %v1561_v43 = vperm.slane %v19296_v13, 1 }
 0x31e   :  { %3162 = vmatpush.bf16.msra.mxu2 %v12677_v53  ;;  %3181 = vmatpush.bf16.msrb.mxu0 %v12393_v56  ;;  %v17253_v45 = vld [vmem:[#allocation20 + $0x4f4] sm:$0xf0]  ;;  %v12265_v53 = vor.u32 %v17189_v38, %v12264_v11  ;;  %v2893_v54 = vpop.f32.mrf.mxu1  ;;  %v12138_v38 = vld [vmem:[#allocation20 + $0x1f8] sm:$0xf0] }
 0x31f   :  { %3150 = vmatmul.bf16.vlgmr.msra.gmra.mxu1 %v19264_v18  ;;  %v12776_v47 = vld [vmem:[#allocation20 + $0x6d8] sm:$0xf]  ;;  %v12521_v7 = vor.u32 %v17253_v45, %v12520_v39  ;;  %v2892_v59 = vadd.f32 %v2891_v16, %v2879_v40  ;;  %v17217_v39 = vld [vmem:[#allocation20 + $0x3dc] sm:$0xf] }
 0x320   :  { %3194 = vmatpush.bf16.msrb.mxu1 %v12649_v2  ;;  %3169 = vmatpush.bf16.msra.mxu3 %v12105_v63  ;;  %v17317_v48 = vld [vmem:[#allocation20 + $0x6f4] sm:$0xf0]  ;;  %v17281_v45 = vld [vmem:[#allocation20 + $0x5dc] sm:$0xf] }
 0x321   :  { %3163 = vmatmul.bf16.vlgmr.msra.gmra.mxu2 %v19270_v46  ;;  %v11976_v56 = vld [vmem:[#allocation20 + $0x98] sm:$0xf]  ;;  %v12777_v2 = vor.u32 %v17317_v48, %v12776_v47  ;;  %v19299_v63 = vadd.f32 %v2904_v42, %v2892_v59  ;;  %v12394_v42 = vld [vmem:[#allocation20 + $0x3f8] sm:$0xf0] }
 0x322   :  { %3207 = vmatpush.bf16.msrb.mxu2 %v12905_v58  ;;  %3182 = vmatpush.bf16.msrb.mxu0 %v12361_v0  ;;  %v17117_v36 = vld [vmem:[#allocation20 + $0xb4] sm:$0xf0]  ;;  %v2867_v44 = vpop.f32.mrf.mxu3  ;;  %v12650_v47 = vld [vmem:[#allocation20 + $0x5f8] sm:$0xf0]  ;;  %v12397_v59 = vor.u32 %v17217_v39, %v12394_v42 }
 0x323   :  { %v12232_v58 = vld [vmem:[#allocation20 + $0x298] sm:$0xf]  ;;  %v11977_v0 = vor.u32 %v17117_v36, %v11976_v56  ;;  %v3272_v10 = vmul.f32 %v19065_v29, %v19299_v63  ;;  %v2906_v8 = vpop.f32.mrf.mxu2  ;;  %v12906_v54 = vld [vmem:[#allocation20 + $0x7f8] sm:$0xf0] }
 0x324   :  { %3195 = vmatpush.bf16.msrb.mxu1 %v12617_v4  ;;  %3170 = vmatpush.bf16.msra.mxu3 %v12073_v55  ;;  %v12488_v57 = vld [vmem:[#allocation20 + $0x498] sm:$0xf]  ;;  %v12233_v1 = vor.u32 %v17181_v51, %v12232_v58  ;;  %v2930_v17 = vpop.f32.mrf.mxu0  ;;  %v17145_v58 = vld [vmem:[#allocation20 + $0x19c] sm:$0xf] }
 0x325   :  { %v17245_v60 = vld [vmem:[#allocation20 + $0x4b4] sm:$0xf0]  ;;  %v3280_v32 = vrot.slane %v3272_v10, 4  ;;  %v3336_v25 = vmul.f32 %v3272_v10, %v19299_v63  ;;  %v12618_v44 = vld [vmem:[#allocation20 + $0x5b8] sm:$0xf0] }
 0x326   :  { %3208 = vmatpush.bf16.msrb.mxu2 %v12873_v9  ;;  %3183 = vmatpush.bf16.msrb.mxu0 %v12329_v15  ;;  %v12744_v12 = vld [vmem:[#allocation20 + $0x698] sm:$0xf]  ;;  %v12489_v9 = vor.u32 %v17245_v60, %v12488_v57  ;;  %v2943_v28 = vpop.f32.mrf.mxu1  ;;  %v17337_v8 = vld [vmem:[#allocation20 + $0x79c] sm:$0xf] }
 0x327   :  { %v17309_v62 = vld [vmem:[#allocation20 + $0x6b4] sm:$0xf0]  ;;  %v3281_v35 = vadd.f32 %v3280_v32, %v3272_v10  ;;  %v3344_v11 = vrot.slane %v3336_v25, 4  ;;  %v12074_v32 = vld [vmem:[#allocation20 + $0x178] sm:$0xf0] }
 0x328   :  { %3196 = vmatpush.bf16.msrb.mxu1 %v12585_v41  ;;  %3171 = vmatpush.bf16.msra.mxu3 %v12041_v21  ;;  %v11944_v3 = vld [vmem:[#allocation20 + $0x58] sm:$0xf]  ;;  %v12745_v14 = vor.u32 %v17309_v62, %v12744_v12  ;;  %v12106_v62 = vld [vmem:[#allocation20 + $0x1b8] sm:$0xf0] }
 0x329   :  { %v17109_v4 = vld [vmem:[#allocation20 + $0x74] sm:$0xf0]  ;;  %v3282_v48 = vrot.slane %v3281_v35, 2  ;;  %v3345_v49 = vadd.f32 %v3344_v11, %v3336_v25  ;;  %v17201_v25 = vld [vmem:[#allocation20 + $0x35c] sm:$0xf] }
 0x32a   :  { %3209 = vmatpush.bf16.msrb.mxu2 %v12841_v23  ;;  %3184 = vmatpush.bf16.msrb.mxu0 %v12297_v31  ;;  %v12200_v37 = vld [vmem:[#allocation20 + $0x258] sm:$0xf]  ;;  %v11945_v26 = vor.u32 %v17109_v4, %v11944_v3  ;;  %v17129_v11 = vld [vmem:[#allocation20 + $0x11c] sm:$0xf] }
 0x32b   :  { %v17173_v5 = vld [vmem:[#allocation20 + $0x274] sm:$0xf0]  ;;  %v3283_v51 = vadd.f32 %v3282_v48, %v3281_v35  ;;  %v3346_v57 = vrot.slane %v3345_v49, 2  ;;  %v2956_v12 = vpop.f32.mrf.mxu2  ;;  %v17193_v48 = vld [vmem:[#allocation20 + $0x31c] sm:$0xf] }
 0x32c   :  { %3197 = vmatpush.bf16.msrb.mxu1 %v12553_v24  ;;  %3172 = vmatpush.bf16.msra.mxu3 %v12009_v52  ;;  %v12456_v6 = vld [vmem:[#allocation20 + $0x458] sm:$0xf]  ;;  %v12201_v27 = vor.u32 %v17173_v5, %v12200_v37  ;;  %v2932_v4 = vpop.f32.mrf.mxu0 }
 0x32d   :  { %v17237_v55 = vld [vmem:[#allocation20 + $0x474] sm:$0xf0]  ;;  %v3284_v37 = vrot.slane %v3283_v51, 1  ;;  %v3347_v5 = vadd.f32 %v3346_v57, %v3345_v49  ;;  %v17121_v57 = vld [vmem:[#allocation20 + $0xdc] sm:$0xf] }
 0x32e   :  { %3210 = vmatpush.bf16.msrb.mxu2 %v12809_v34  ;;  %3185 = vmatpush.bf16.msrb.mxu0 %v12265_v53  ;;  %v12712_v15 = vld [vmem:[#allocation20 + $0x658] sm:$0xf]  ;;  %v12457_v31 = vor.u32 %v17237_v55, %v12456_v6  ;;  %v17153_v34 = vld [vmem:[#allocation20 + $0x1dc] sm:$0xf]  ;;  %v2945_v10 = vpop.f32.mrf.mxu1 }
 0x32f   :  { %v17301_v16 = vld [vmem:[#allocation20 + $0x674] sm:$0xf0]  ;;  %v17345_v53 = vld [vmem:[#allocation20 + $0x7dc] sm:$0xf] }
 0x330   :  { %3198 = vmatpush.bf16.msrb.mxu1 %v12521_v7  ;;  %v11912_v19 = vld [vmem:[#allocation20 + $0x18] sm:$0xf]  ;;  %3173 = vmatpush.bf16.msra.mxu3 %v11977_v0  ;;  %v12713_v33 = vor.u32 %v17301_v16, %v12712_v15  ;;  %v12141_v7 = vor.u32 %v17153_v34, %v12138_v38  ;;  %v17209_v0 = vld [vmem:[#allocation20 + $0x39c] sm:$0xf]  ;;  %v12909_v3 = vor.u32 %v17345_v53, %v12906_v54 }
 0x331   :  { %v17101_v50 = vld [vmem:[#allocation20 + $0x34] sm:$0xf0]  ;;  %v12874_v55 = vld [vmem:[#allocation20 + $0x7b8] sm:$0xf0]  ;;  %v12109_v15 = vor.u32 %v17145_v58, %v12106_v62 }
 0x332   :  { %3211 = vmatpush.bf16.msrb.mxu2 %v12777_v2  ;;  %v12168_v41 = vld [vmem:[#allocation20 + $0x218] sm:$0xf]  ;;  %3186 = vmatpush.bf16.msrb.mxu0 %v12233_v1  ;;  %v11913_v40 = vor.u32 %v17101_v50, %v11912_v19  ;;  %v2917_v2 = vpop.f32.mrf.mxu3  ;;  %v12653_v1 = vor.u32 %v17281_v45, %v12650_v47  ;;  %v17137_v16 = vld [vmem:[#allocation20 + $0x15c] sm:$0xf]  ;;  %v3285_v19 = vadd.f32 %v3284_v37, %v3283_v51  ;;  %v3348_v50 = vrot.slane %v3347_v5, 1 }
 0x333   :  { %v17165_v23 = vld [vmem:[#allocation20 + $0x234] sm:$0xf0]  ;;  %v2918_v60 = vadd.f32 %v2917_v2, %v1561_v43  ;;  %v12077_v34 = vor.u32 %v17137_v16, %v12074_v32  ;;  %v2958_v45 = vpop.f32.mrf.mxu2  ;;  %v12042_v47 = vld [vmem:[#allocation20 + $0x138] sm:$0xf0] }
 0x334   :  { %v12424_v30 = vld [vmem:[#allocation20 + $0x418] sm:$0xf]  ;;  %3199 = vmatpush.bf16.msrb.mxu1 %v12489_v9  ;;  %3174 = vmatpush.bf16.msra.mxu3 %v11945_v26  ;;  %v12169_v52 = vor.u32 %v17165_v23, %v12168_v41  ;;  %v12362_v9 = vld [vmem:[#allocation20 + $0x3b8] sm:$0xf0]  ;;  %v12045_v51 = vor.u32 %v17129_v11, %v12042_v47 }
 0x335   :  { %v17229_v21 = vld [vmem:[#allocation20 + $0x434] sm:$0xf0]  ;;  %v2931_v6 = vadd.f32 %v2930_v17, %v2918_v60  ;;  %v12365_v23 = vor.u32 %v17209_v0, %v12362_v9  ;;  %v12330_v17 = vld [vmem:[#allocation20 + $0x378] sm:$0xf0] }
 0x336   :  { %3212 = vmatpush.bf16.msrb.mxu2 %v12745_v14  ;;  %v12680_v61 = vld [vmem:[#allocation20 + $0x618] sm:$0xf]  ;;  %3187 = vmatpush.bf16.msrb.mxu0 %v12201_v27  ;;  %v12425_v56 = vor.u32 %v17229_v21, %v12424_v30  ;;  %v17273_v14 = vld [vmem:[#allocation20 + $0x59c] sm:$0xf]  ;;  %v12877_v27 = vor.u32 %v17337_v8, %v12874_v55  ;;  %v12333_v42 = vor.u32 %v17201_v25, %v12330_v17  ;;  %v1562_v55 = vperm.slane %v19296_v13, 2 }
 0x337   :  { %v17293_v24 = vld [vmem:[#allocation20 + $0x634] sm:$0xf0]  ;;  %v2944_v41 = vadd.f32 %v2943_v28, %v2931_v6  ;;  %v12621_v26 = vor.u32 %v17273_v14, %v12618_v44  ;;  %v17265_v30 = vld [vmem:[#allocation20 + $0x55c] sm:$0xf] }
 0x338   :  { %3200 = vmatpush.bf16.msrb.mxu1 %v12457_v31  ;;  %v12681_v36 = vor.u32 %v17293_v24, %v12680_v61  ;;  %3175 = vmatpush.bf16.msra.mxu3 %v11913_v40  ;;  %v12586_v21 = vld [vmem:[#allocation20 + $0x578] sm:$0xf0]  ;;  %v19305_v31 = vmul.f32 0.5, %v3285_v19 }
 0x339   :  { %v19307_v61 = vadd.f32 %v2956_v12, %v2944_v41  ;;  %v17329_v28 = vld [vmem:[#allocation20 + $0x75c] sm:$0xf]  ;;  %v12589_v49 = vor.u32 %v17265_v30, %v12586_v21 }
 0x33a   :  { %3213 = vmatpush.bf16.msrb.mxu2 %v12713_v33  ;;  %3188 = vmatpush.bf16.msrb.mxu0 %v12169_v52  ;;  %v3349_v33 = vadd.f32 %v3348_v50, %v3347_v5  ;;  %v12842_v24 = vld [vmem:[#allocation20 + $0x778] sm:$0xf0]  ;;  %v2919_v35 = vpop.f32.mrf.mxu3  ;;  %v3400_v39 = vmul.f32 %v19305_v31, %v19305_v31  ;;  %v2982_v58 = vpop.f32.mrf.mxu0 }
 0x33b   :  { %3176 = vmatmul.bf16.vlgmr.msra.gmra.mxu3 %v19266_v20  ;;  %v3273_v43 = vmul.f32 %v19065_v29, %v19307_v61  ;;  %v12845_v40 = vor.u32 %v17329_v28, %v12842_v24  ;;  %v12298_v52 = vld [vmem:[#allocation20 + $0x338] sm:$0xf0] }
 0x33c   :  { %3201 = vmatpush.bf16.msrb.mxu1 %v12425_v56  ;;  %3220 = vmatpush.bf16.msrb.mxu3 %v12141_v7  ;;  %v3392_v38 = vmul.f32 0.5, %v3349_v33  ;;  %v17257_v53 = vld [vmem:[#allocation20 + $0x51c] sm:$0xf]  ;;  %v2995_v62 = vpop.f32.mrf.mxu1  ;;  %v12301_v0 = vor.u32 %v17193_v48, %v12298_v52 }
 0x33d   :  { %3189 = vmatmul.bf16.vlgmr.msrb.gmra.mxu0 %v19268_v22  ;;  %v12554_v54 = vld [vmem:[#allocation20 + $0x538] sm:$0xf0]  ;;  %v3286_v56 = vrot.slane %v3273_v43, 4 }
 0x33e   :  { %3214 = vmatpush.bf16.msrb.mxu2 %v12681_v36  ;;  %3233 = vmatpush.bf16.msra.mxu0 %v12397_v59  ;;  %v3337_v36 = vmul.f32 %v3273_v43, %v19307_v61  ;;  %v17321_v7 = vld [vmem:[#allocation20 + $0x71c] sm:$0xf]  ;;  %v3408_v59 = vsub.f32 %v3392_v38, %v3400_v39  ;;  %v12557_v4 = vor.u32 %v17257_v53, %v12554_v54 }
 0x33f   :  { %3202 = vmatmul.bf16.vlgmr.msrb.gmra.mxu1 %v19264_v18  ;;  %v12810_v2 = vld [vmem:[#allocation20 + $0x738] sm:$0xf0]  ;;  %v3287_v60 = vadd.f32 %v3286_v56, %v3273_v43 }
 0x340   :  { %3246 = vmatpush.bf16.msra.mxu1 %v12653_v1  ;;  %3221 = vmatpush.bf16.msrb.mxu3 %v12109_v15  ;;  %v3350_v12 = vrot.slane %v3337_v36, 4  ;;  %v12010_v1 = vld [vmem:[#allocation20 + $0xf8] sm:$0xf0]  ;;  %v12813_v9 = vor.u32 %v17321_v7, %v12810_v2  ;;  %v19319_v41 = vadd.f32 0.8, %v3408_v59 }
 0x341   :  { %3215 = vmatmul.bf16.vlgmr.msrb.gmra.mxu2 %v19270_v46  ;;  %v12266_v14 = vld [vmem:[#allocation20 + $0x2f8] sm:$0xf0]  ;;  %v3288_v5 = vrot.slane %v3287_v60, 2  ;;  %v12013_v15 = vor.u32 %v17121_v57, %v12010_v1 }
 0x342   :  { %3259 = vmatpush.bf16.msra.mxu2 %v12909_v3  ;;  %3234 = vmatpush.bf16.msra.mxu0 %v12365_v23  ;;  %v17185_v3 = vld [vmem:[#allocation20 + $0x2dc] sm:$0xf]  ;;  %v3351_v6 = vadd.f32 %v3350_v12, %v3337_v36  ;;  %v2969_v30 = vpop.f32.mrf.mxu3  ;;  %v2984_v39 = vpop.f32.mrf.mxu0  ;;  %18415 = vrsqrt.f32 %v19319_v41  ;;  %vm3431_vm2 = vweird.f32 %v19319_v41 }
 0x343   :  { %v17249_v44 = vld [vmem:[#allocation20 + $0x4dc] sm:$0xf]  ;;  %v3289_v23 = vadd.f32 %v3288_v5, %v3287_v60  ;;  %v12269_v25 = vor.u32 %v17185_v3, %v12266_v14 }
 0x344   :  { %3247 = vmatpush.bf16.msra.mxu1 %v12621_v26  ;;  %3222 = vmatpush.bf16.msrb.mxu3 %v12077_v34  ;;  %v12522_v37 = vld [vmem:[#allocation20 + $0x4f8] sm:$0xf0]  ;;  %v3352_v32 = vrot.slane %v3351_v6, 2  ;;  %v2970_v34 = vadd.f32 %v2969_v30, %v1562_v55  ;;  %v3008_v35 = vpop.f32.mrf.mxu2 }
 0x345   :  { %v17313_v10 = vld [vmem:[#allocation20 + $0x6dc] sm:$0xf]  ;;  %v3290_v28 = vrot.slane %v3289_v23, 1 }
 0x346   :  { %3260 = vmatpush.bf16.msra.mxu2 %v12877_v27  ;;  %3235 = vmatpush.bf16.msra.mxu0 %v12333_v42  ;;  %v12778_v8 = vld [vmem:[#allocation20 + $0x6f8] sm:$0xf0]  ;;  %v12525_v27 = vor.u32 %v17249_v44, %v12522_v37  ;;  %v3353_v24 = vadd.f32 %v3352_v32, %v3351_v6 }
 0x347   :  { %v17113_v16 = vld [vmem:[#allocation20 + $0x9c] sm:$0xf]  ;;  %v12781_v17 = vor.u32 %v17313_v10, %v12778_v8  ;;  %v3291_v47 = vadd.f32 %v3290_v28, %v3289_v23 }
 0x348   :  { %3248 = vmatpush.bf16.msra.mxu1 %v12589_v49  ;;  %v11978_v19 = vld [vmem:[#allocation20 + $0xb8] sm:$0xf0]  ;;  %3223 = vmatpush.bf16.msrb.mxu3 %v12045_v51  ;;  %v3354_v48 = vrot.slane %v3353_v24, 1  ;;  %v2983_v49 = vadd.f32 %v2982_v58, %v2970_v34  ;;  %v19328_v8 = vpop.eup %18415 }
 0x349   :  { %v17177_v50 = vld [vmem:[#allocation20 + $0x29c] sm:$0xf]  ;;  %v11981_v43 = vor.u32 %v17113_v16, %v11978_v19  ;;  %v19322_v51 = vmul.f32 0.5, %v3291_v47  ;;  %v3426_v30 = vmul.f32 %v19328_v8, %v19319_v41  ;;  %vm3432_vm15 = vweird.f32 %v19328_v8 }
 0x34a   :  { %3261 = vmatpush.bf16.msra.mxu2 %v12845_v40  ;;  %3236 = vmatpush.bf16.msra.mxu0 %v12301_v0  ;;  %v12234_v26 = vld [vmem:[#allocation20 + $0x2b8] sm:$0xf0]  ;;  %v2997_v40 = vpop.f32.mrf.mxu1  ;;  %v3355_v57 = vadd.f32 %v3354_v48, %v3353_v24  ;;  %v2996_v59 = vadd.f32 %v2995_v62, %v2983_v49  ;;  %v2971_v5 = vpop.f32.mrf.mxu3  ;;  %vm3433_vm3 = vmor %vm3431_vm2, %vm3432_vm15 }
 0x34b   :  { %v17241_v21 = vld [vmem:[#allocation20 + $0x49c] sm:$0xf]  ;;  %v12237_v42 = vor.u32 %v17177_v50, %v12234_v26  ;;  %v3401_v58 = vmul.f32 %v19322_v51, %v19322_v51 }
 0x34c   :  { %3249 = vmatpush.bf16.msra.mxu1 %v12557_v4  ;;  %v12490_v33 = vld [vmem:[#allocation20 + $0x4b8] sm:$0xf0]  ;;  %3224 = vmatpush.bf16.msrb.mxu3 %v12013_v15  ;;  %v3393_v1 = vmul.f32 0.5, %v3355_v57  ;;  %v19326_v3 = vadd.f32 %v3008_v35, %v2996_v59  ;;  %v3010_v16 = vpop.f32.mrf.mxu2 }
 0x34d   :  { %v17305_v11 = vld [vmem:[#allocation20 + $0x69c] sm:$0xf]  ;;  %v12493_v54 = vor.u32 %v17241_v21, %v12490_v33 }
 0x34e   :  { %3262 = vmatpush.bf16.msra.mxu2 %v12813_v9  ;;  %v12746_v38 = vld [vmem:[#allocation20 + $0x6b8] sm:$0xf0]  ;;  %3237 = vmatpush.bf16.msra.mxu0 %v12269_v25  ;;  %v3409_v55 = vsub.f32 %v3393_v1, %v3401_v58  ;;  %v3274_v15 = vmul.f32 %v19065_v29, %v19326_v3 }
 0x34f   :  { %v17105_v45 = vld [vmem:[#allocation20 + $0x5c] sm:$0xf]  ;;  %v12749_v56 = vor.u32 %v17305_v11, %v12746_v38  ;;  %v3427_v11 = vmul.f32 %v19328_v8, %v3426_v30 }
 0x350   :  { %v11946_v52 = vld [vmem:[#allocation20 + $0x78] sm:$0xf0]  ;;  %3250 = vmatpush.bf16.msra.mxu1 %v12525_v27  ;;  %3225 = vmatpush.bf16.msrb.mxu3 %v11981_v43  ;;  %v3418_v25 = vadd.f32 0.8, %v3409_v55  ;;  %v3292_v26 = vrot.slane %v3274_v15, 4  ;;  %v3338_v27 = vmul.f32 %v3274_v15, %v19326_v3 }
 0x351   :  { %v17169_v53 = vld [vmem:[#allocation20 + $0x25c] sm:$0xf]  ;;  %v11949_v0 = vor.u32 %v17105_v45, %v11946_v52 }
 0x352   :  { %3263 = vmatpush.bf16.msra.mxu2 %v12781_v17  ;;  %v12202_v36 = vld [vmem:[#allocation20 + $0x278] sm:$0xf0]  ;;  %3238 = vmatpush.bf16.msra.mxu0 %v12237_v42  ;;  %18417 = vrsqrt.f32 %v3418_v25  ;;  %v3293_v28 = vadd.f32 %v3292_v26, %v3274_v15  ;;  %v3356_v24 = vrot.slane %v3338_v27, 4  ;;  %v3428_v42 = vmul.f32 0.5, %v3427_v11 }
 0x353   :  { %v17233_v7 = vld [vmem:[#allocation20 + $0x45c] sm:$0xf]  ;;  %v12205_v4 = vor.u32 %v17169_v53, %v12202_v36  ;;  %v1563_v36 = vperm.slane %v19296_v13, 3  ;;  %vm3441_vm0 = vweird.f32 %v3418_v25 }
 0x354   :  { %v12458_v2 = vld [vmem:[#allocation20 + $0x478] sm:$0xf0]  ;;  %3251 = vmatpush.bf16.msra.mxu1 %v12493_v54  ;;  %3226 = vmatpush.bf16.msrb.mxu3 %v11949_v0  ;;  %v3294_v34 = vrot.slane %v3293_v28, 2  ;;  %v3357_v35 = vadd.f32 %v3356_v24, %v3338_v27  ;;  %v3429_v40 = vsub.f32 1.5, %v3428_v42  ;;  %v1564_v42 = vperm.slane %v19296_v13, 4 }
 0x355   :  { %v17297_v60 = vld [vmem:[#allocation20 + $0x65c] sm:$0xf]  ;;  %v12461_v44 = vor.u32 %v17233_v7, %v12458_v2 }
 0x356   :  { %v12714_v12 = vld [vmem:[#allocation20 + $0x678] sm:$0xf0]  ;;  %3264 = vmatpush.bf16.msra.mxu2 %v12749_v56  ;;  %3239 = vmatpush.bf16.msra.mxu0 %v12205_v4  ;;  %v3295_v39 = vadd.f32 %v3294_v34, %v3293_v28  ;;  %v3358_v43 = vrot.slane %v3357_v35, 2  ;;  %v3430_v7 = vmul.f32 %v19328_v8, %v3429_v40 }
 0x357   :  { %v17097_v9 = vld [vmem:[#allocation20 + $0x1c] sm:$0xf]  ;;  %v12717_v37 = vor.u32 %v17297_v60, %v12714_v12 }
 0x358   :  { %v11914_v14 = vld [vmem:[#allocation20 + $0x38] sm:$0xf0]  ;;  %3252 = vmatpush.bf16.msra.mxu1 %v12461_v44  ;;  %v18418_v38 = vpop.eup %18417  ;;  %v3296_v48 = vrot.slane %v3295_v39, 1  ;;  %v3359_v49 = vadd.f32 %v3358_v43, %v3357_v35  ;;  %v3434_v1 = vsel %vm3433_vm3, %v19328_v8, %v3430_v7  ;;  %vm3523_vm3 = vcmask 1044484  }
 0x359   :  { %v17161_v62 = vld [vmem:[#allocation20 + $0x21c] sm:$0xf]  ;;  %v11917_v32 = vor.u32 %v17097_v9, %v11914_v14  ;;  %v3436_v45 = vmul.f32 %v18418_v38, %v3418_v25  ;;  %vm3442_vm14 = vweird.f32 %v18418_v38 }
 0x35a   :  { %v12170_v6 = vld [vmem:[#allocation20 + $0x238] sm:$0xf0]  ;;  %3265 = vmatpush.bf16.msra.mxu2 %v12717_v37  ;;  %v3034_v53 = vpop.f32.mrf.mxu0  ;;  %vm3443_vm1 = vmor %vm3441_vm0, %vm3442_vm14 }
 0x35b   :  { %v17225_v10 = vld [vmem:[#allocation20 + $0x41c] sm:$0xf]  ;;  %v12173_v17 = vor.u32 %v17161_v62, %v12170_v6  ;;  %3227 = vmatpush.bf16.msrb.mxu3 %v11917_v32  ;;  %v3437_v47 = vmul.f32 %v18418_v38, %v3436_v45 }
 0x35c   :  { %v12426_v19 = vld [vmem:[#allocation20 + $0x438] sm:$0xf0]  ;;  %v3047_v54 = vpop.f32.mrf.mxu1 }
 0x35d   :  { %v17289_v50 = vld [vmem:[#allocation20 + $0x61c] sm:$0xf]  ;;  %v12429_v21 = vor.u32 %v17225_v10, %v12426_v19  ;;  %3240 = vmatpush.bf16.msra.mxu0 %v12173_v17  ;;  %v3438_v52 = vmul.f32 0.5, %v3437_v47 }
 0x35e   :  { %v12682_v23 = vld [vmem:[#allocation20 + $0x638] sm:$0xf0]  ;;  %3228 = vmatmul.bf16.vlgmr.msrb.gmra.mxu3 %v19266_v20  ;;  %v3297_v20 = vadd.f32 %v3296_v48, %v3295_v39  ;;  %v3021_v2 = vpop.f32.mrf.mxu3 }
 0x35f   :  { %v12685_v33 = vor.u32 %v17289_v50, %v12682_v23  ;;  %3253 = vmatpush.bf16.msra.mxu1 %v12429_v21  ;;  %v3439_v56 = vsub.f32 1.5, %v3438_v52  ;;  %v3022_v12 = vadd.f32 %v3021_v2, %v1563_v36 }
 0x360   :  { %3241 = vmatmul.bf16.vlgmr.msra.gmra.mxu0 %v19268_v22  ;;  %v3360_v22 = vrot.slane %v3359_v49, 1  ;;  %v19344_v59 = vmul.f32 0.5, %v3297_v20 }
 0x361   :  { %3266 = vmatpush.bf16.msra.mxu2 %v12685_v33  ;;  %v3035_v9 = vadd.f32 %v3034_v53, %v3022_v12 }
 0x362   :  { %3254 = vmatmul.bf16.vlgmr.msra.gmra.mxu1 %v19264_v18  ;;  %v3440_v18 = vmul.f32 %v18418_v38, %v3439_v56  ;;  %v3361_v60 = vadd.f32 %v3360_v22, %v3359_v49  ;;  %v3036_v58 = vpop.f32.mrf.mxu0  ;;  %v3402_v41 = vmul.f32 %v19344_v59, %v19344_v59 }
 0x363   :  { %v3048_v37 = vadd.f32 %v3047_v54, %v3035_v9 }
 0x364   :  { %3267 = vmatmul.bf16.vlgmr.msra.gmra.mxu2 %v19270_v46  ;;  %v3444_v46 = vsel %vm3443_vm1, %v18418_v38, %v3440_v18  ;;  %v3060_v0 = vpop.f32.mrf.mxu2  ;;  %v3049_v14 = vpop.f32.mrf.mxu1  ;;  %v3394_v44 = vmul.f32 0.5, %v3361_v60 }
 0x365   :  { %v3513_v57 = vrot.slane %v3444_v46, 7  ;;  %v19352_v5 = vadd.f32 %v3060_v0, %v3048_v37 }
 0x366   :  { %v3023_v62 = vpop.f32.mrf.mxu3  ;;  %v3410_v6 = vsub.f32 %v3394_v44, %v3402_v41 }
 0x367   :  { %v19348_v4 = vsel %vm579_vm7, %v3434_v1, %v3513_v57  ;;  %v3275_v10 = vmul.f32 %v19065_v29, %v19352_v5 }
 0x368   :  { %v3419_v16 = vadd.f32 0.8, %v3410_v6 }
 0x369   :  { %v3298_v8 = vrot.slane %v3275_v10, 4  ;;  %v3339_v15 = vmul.f32 %v3275_v10, %v19352_v5 }
 0x36a   :  { %18419 = vrsqrt.f32 %v3419_v16  ;;  %vm3451_vm5 = vweird.f32 %v3419_v16 }
 0x36b   :  { %v3299_v19 = vadd.f32 %v3298_v8, %v3275_v10  ;;  %v3362_v50 = vrot.slane %v3339_v15, 4  ;;  %v1565_v10 = vperm.slane %v19296_v13, 5 }
 0x36c   :  { %v3062_v55 = vpop.f32.mrf.mxu2 }
 0x36d   :  { %v3300_v23 = vrot.slane %v3299_v19, 2  ;;  %v3363_v32 = vadd.f32 %v3362_v50, %v3339_v15 }
 0x36f   :  { %v3301_v25 = vadd.f32 %v3300_v23, %v3299_v19  ;;  %v3364_v26 = vrot.slane %v3363_v32, 2 }
 0x370   :  { %v18420_v33 = vpop.eup %18419 }
 0x371   :  { %v3302_v27 = vrot.slane %v3301_v25, 1  ;;  %v3365_v17 = vadd.f32 %v3364_v26, %v3363_v32  ;;  %v3446_v39 = vmul.f32 %v18420_v33, %v3419_v16  ;;  %vm3452_vm4 = vweird.f32 %v18420_v33 }
 0x372   :  { %vm3453_vm10 = vmor %vm3451_vm5, %vm3452_vm4 }
 0x373   :  { %v3303_v30 = vadd.f32 %v3302_v27, %v3301_v25  ;;  %v3366_v21 = vrot.slane %v3365_v17, 1  ;;  %v3447_v47 = vmul.f32 %v18420_v33, %v3446_v39 }
 0x375   :  { %v19357_v28 = vmul.f32 0.5, %v3303_v30  ;;  %v3367_v24 = vadd.f32 %v3366_v21, %v3365_v17  ;;  %v3448_v56 = vmul.f32 0.5, %v3447_v47 }
 0x377   :  { %v3395_v35 = vmul.f32 0.5, %v3367_v24  ;;  %v3403_v11 = vmul.f32 %v19357_v28, %v19357_v28  ;;  %v3449_v7 = vsub.f32 1.5, %v3448_v56 }
 0x379   :  { %v3411_v43 = vsub.f32 %v3395_v35, %v3403_v11  ;;  %v3450_v60 = vmul.f32 %v18420_v33, %v3449_v7 }
 0x37a   :  { %v3086_v34 = vpop.f32.mrf.mxu0 }
 0x37b   :  { %v3420_v45 = vadd.f32 0.8, %v3411_v43  ;;  %v3454_v1 = vsel %vm3453_vm10, %v18420_v33, %v3450_v60 }
 0x37c   :  { %v3099_v38 = vpop.f32.mrf.mxu1  ;;  %v3514_v14 = vrot.slane %v3454_v1, 6 }
 0x37d   :  { %18421 = vrsqrt.f32 %v3420_v45  ;;  %vm3461_vm11 = vweird.f32 %v3420_v45 }
 0x37e   :  { %v3073_v48 = vpop.f32.mrf.mxu3 }
 0x37f   :  { %v3074_v49 = vadd.f32 %v3073_v48, %v1564_v42  ;;  %v1566_v48 = vperm.slane %v19296_v13, 6 }
 0x381   :  { %v3087_v53 = vadd.f32 %v3086_v34, %v3074_v49 }
 0x382   :  { %v3088_v52 = vpop.f32.mrf.mxu0 }
 0x383   :  { %v3100_v20 = vadd.f32 %v3099_v38, %v3087_v53  ;;  %v18422_v22 = vpop.eup %18421 }
 0x384   :  { %v3112_v40 = vpop.f32.mrf.mxu2  ;;  %v3101_v54 = vpop.f32.mrf.mxu1  ;;  %v3456_v18 = vmul.f32 %v18422_v22, %v3420_v45  ;;  %vm3462_vm6 = vweird.f32 %v18422_v22 }
 0x385   :  { %v19362_v36 = vadd.f32 %v3112_v40, %v3100_v20  ;;  %vm3463_vm12 = vmor %vm3461_vm11, %vm3462_vm6  ;;  %vm3525_vm11 = vcmask 1046534  }
 0x386   :  { %v3075_v46 = vpop.f32.mrf.mxu3  ;;  %v3457_v57 = vmul.f32 %v18422_v22, %v3456_v18 }
 0x387   :  { %v3276_v27 = vmul.f32 %v19065_v29, %v19362_v36 }
 0x388   :  { %v3458_v12 = vmul.f32 0.5, %v3457_v57 }
 0x389   :  { %v3304_v17 = vrot.slane %v3276_v27, 4  ;;  %v3340_v30 = vmul.f32 %v3276_v27, %v19362_v36 }
 0x38a   :  { %v3459_v0 = vsub.f32 1.5, %v3458_v12 }
 0x38b   :  { %v3305_v24 = vadd.f32 %v3304_v17, %v3276_v27  ;;  %v3368_v34 = vrot.slane %v3340_v30, 4 }
 0x38c   :  { %v3114_v2 = vpop.f32.mrf.mxu2  ;;  %v3460_v58 = vmul.f32 %v18422_v22, %v3459_v0 }
 0x38d   :  { %v3306_v43 = vrot.slane %v3305_v24, 2  ;;  %v3369_v42 = vadd.f32 %v3368_v34, %v3340_v30 }
 0x38e   :  { %v3464_v9 = vsel %vm3463_vm12, %v18422_v22, %v3460_v58 }
 0x38f   :  { %v3515_v44 = vrot.slane %v3464_v9, 5  ;;  %v3307_v49 = vadd.f32 %v3306_v43, %v3305_v24  ;;  %v3370_v40 = vrot.slane %v3369_v42, 2 }
 0x391   :  { %v3521_v41 = vsel %vm1237_vm8, %v3514_v14, %v3515_v44  ;;  %v3308_v46 = vrot.slane %v3307_v49, 1  ;;  %v3371_v2 = vadd.f32 %v3370_v40, %v3369_v42  ;;  %v17726_v42 = vld [vmem:[#allocation26 + $0xbbc] sm:$0xf0] }
 0x392   :  { %v19367_v37 = vsel %vm1239_vm9, %v19348_v4, %v3521_v41  ;;  %v17854_v40 = vld [vmem:[#allocation26 + $0xfbc] sm:$0xf0] }
 0x393   :  { %v3309_v1 = vadd.f32 %v3308_v46, %v3307_v49  ;;  %v3372_v58 = vrot.slane %v3371_v2, 1  ;;  %v17582_v46 = vld [vmem:[#allocation26 + $0x73c] sm:$0xf0] }
 0x39a   :  { %v3138_v62 = vpop.f32.mrf.mxu0 }
 0x39c   :  { %v3151_v6 = vpop.f32.mrf.mxu1 }
 0x39e   :  { %v3125_v55 = vpop.f32.mrf.mxu3 }
 0x39f   :  { %v3126_v8 = vadd.f32 %v3125_v55, %v1565_v10  ;;  %v19384_v10 = vmul.f32 0.5, %v3309_v1  ;;  %v3373_v55 = vadd.f32 %v3372_v58, %v3371_v2 }
 0x3a1   :  { %v3139_v19 = vadd.f32 %v3138_v62, %v3126_v8 }
 0x3a2   :  { %v3140_v16 = vpop.f32.mrf.mxu0 }
 0x3a3   :  { %v3152_v23 = vadd.f32 %v3151_v6, %v3139_v19 }
 0x3a4   :  { %v3164_v15 = vpop.f32.mrf.mxu2  ;;  %v3153_v50 = vpop.f32.mrf.mxu1 }
 0x3a5   :  { %v19370_v32 = vadd.f32 %v3164_v15, %v3152_v23 }
 0x3a6   :  { %v3127_v25 = vpop.f32.mrf.mxu3 }
 0x3a7   :  { %v3277_v4 = vmul.f32 %v19065_v29, %v19370_v32  ;;  %v3396_v25 = vmul.f32 0.5, %v3373_v55  ;;  %v17438_v55 = vld [vmem:[#allocation26 + $0x2bc] sm:$0xf0] }
 0x3a9   :  { %v3310_v21 = vrot.slane %v3277_v4, 4  ;;  %v3341_v33 = vmul.f32 %v3277_v4, %v19370_v32 }
 0x3ab   :  { %v3311_v35 = vadd.f32 %v3310_v21, %v3277_v4  ;;  %v3374_v11 = vrot.slane %v3341_v33, 4  ;;  %v13360_v21 = vld [vmem:[#allocation26 + $0x380] sm:$0xf] }
 0x3ac   :  { %v3166_v26 = vpop.f32.mrf.mxu2 }
 0x3ad   :  { %v3312_v45 = vrot.slane %v3311_v35, 2  ;;  %v3375_v47 = vadd.f32 %v3374_v11, %v3341_v33  ;;  %v3404_v26 = vmul.f32 %v19384_v10, %v19384_v10  ;;  %v17470_v33 = vld [vmem:[#allocation26 + $0x3bc] sm:$0xf0] }
 0x3ae   :  { %v13361_v34 = vor.u32 %v17470_v33, %v13360_v21  ;;  %v17598_v11 = vld [vmem:[#allocation26 + $0x7bc] sm:$0xf0] }
 0x3af   :  { %v3313_v53 = vadd.f32 %v3312_v45, %v3311_v35  ;;  %v3376_v54 = vrot.slane %v3375_v47, 2  ;;  %v3412_v24 = vsub.f32 %v3396_v25, %v3404_v26  ;;  %v13872_v35 = vld [vmem:[#allocation26 + $0x780] sm:$0xf] }
 0x3b0   :  { %v13873_v43 = vor.u32 %v17598_v11, %v13872_v35  ;;  %v14896_v45 = vld [vmem:[#allocation26 + $0xf80] sm:$0xf]  ;;  %9828 = vmatpush.bf16.msra.mxu3 %v13361_v34 }
 0x3b1   :  { %v3314_v57 = vrot.slane %v3313_v53, 1  ;;  %v3377_v60 = vadd.f32 %v3376_v54, %v3375_v47  ;;  %v13296_v54 = vld [vmem:[#allocation26 + $0x300] sm:$0xf] }
 0x3b2   :  { %9841 = vmatpush.bf16.msrb.mxu0 %v13873_v43  ;;  %v13168_v11 = vld [vmem:[#allocation26 + $0x200] sm:$0xf] }
 0x3b3   :  { %v3315_v9 = vadd.f32 %v3314_v57, %v3313_v53  ;;  %v3378_v14 = vrot.slane %v3377_v60, 1  ;;  %v14897_v53 = vor.u32 %v17854_v40, %v14896_v45  ;;  %v17678_v40 = vld [vmem:[#allocation26 + $0xa3c] sm:$0xf0] }
 0x3b5   :  { %v19386_v8 = vmul.f32 0.5, %v3315_v9  ;;  %v3379_v15 = vadd.f32 %v3378_v14, %v3377_v60  ;;  %9867 = vmatpush.bf16.msrb.mxu2 %v14897_v53  ;;  %v14320_v60 = vld [vmem:[#allocation26 + $0xb00] sm:$0xf] }
 0x3b7   :  { %v3397_v27 = vmul.f32 0.5, %v3379_v15  ;;  %v3405_v4 = vmul.f32 %v19386_v8, %v19386_v8  ;;  %v13744_v15 = vld [vmem:[#allocation26 + $0x680] sm:$0xf] }
 0x3ba   :  { %v3190_v38 = vpop.f32.mrf.mxu0 }
 0x3bc   :  { %v3203_v39 = vpop.f32.mrf.mxu1 }
 0x3be   :  { %v3177_v52 = vpop.f32.mrf.mxu3 }
 0x3bf   :  { %v3178_v56 = vadd.f32 %v3177_v52, %v1566_v48 }
 0x3c1   :  { %v3191_v7 = vadd.f32 %v3190_v38, %v3178_v56  ;;  %v14384_v38 = vld [vmem:[#allocation26 + $0xb80] sm:$0xf] }
 0x3c2   :  { %v3192_v22 = vpop.f32.mrf.mxu0  ;;  %v14385_v49 = vor.u32 %v17726_v42, %v14384_v38  ;;  %v17454_v56 = vld [vmem:[#allocation26 + $0x33c] sm:$0xf0] }
 0x3c3   :  { %v3204_v12 = vadd.f32 %v3203_v39, %v3191_v7  ;;  %v3413_v39 = vsub.f32 %v3397_v27, %v3405_v4  ;;  %v13297_v7 = vor.u32 %v17454_v56, %v13296_v54  ;;  %v14768_v4 = vld [vmem:[#allocation26 + $0xe80] sm:$0xf] }
 0x3c4   :  { %v3216_v20 = vpop.f32.mrf.mxu2  ;;  %v3205_v18 = vpop.f32.mrf.mxu1  ;;  %9854 = vmatpush.bf16.msrb.mxu1 %v14385_v49  ;;  %v17422_v38 = vld [vmem:[#allocation26 + $0x23c] sm:$0xf0] }
 0x3c5   :  { %v19379_v0 = vadd.f32 %v3216_v20, %v3204_v12  ;;  %v19392_v20 = vadd.f32 0.8, %v3412_v24  ;;  %v13808_v18 = vld [vmem:[#allocation26 + $0x700] sm:$0xf]  ;;  %v19394_v2 = vadd.f32 0.8, %v3413_v39  ;;  %9829 = vmatpush.bf16.msra.mxu3 %v13297_v7  ;;  %v13169_v45 = vor.u32 %v17422_v38, %v13168_v11 }
 0x3c6   :  { %v3179_v13 = vpop.f32.mrf.mxu3  ;;  %v13809_v57 = vor.u32 %v17582_v46, %v13808_v18  ;;  %v17710_v12 = vld [vmem:[#allocation26 + $0xb3c] sm:$0xf0] }
 0x3c7   :  { %v3278_v44 = vmul.f32 %v19065_v29, %v19379_v0  ;;  %v18431_v13 = vld [vmem:[#allocation22] sm:$0xff]  ;;  %v14321_v14 = vor.u32 %v17710_v12, %v14320_v60  ;;  %18423 = vrsqrt.f32 %v19392_v20  ;;  %v13680_v39 = vld [vmem:[#allocation26 + $0x600] sm:$0xf]  ;;  %vm3471_vm14 = vweird.f32 %v19392_v20 }
 0x3c8   :  { %v1567_v9 = vperm.slane %v18431_v13, 7  ;;  %9842 = vmatpush.bf16.msrb.mxu0 %v13809_v57  ;;  %18425 = vrsqrt.f32 %v19394_v2  ;;  %v14192_v49 = vld [vmem:[#allocation26 + $0xa00] sm:$0xf]  ;;  %vm3481_vm1 = vweird.f32 %v19394_v2 }
 0x3c9   :  { %v3316_v62 = vrot.slane %v3278_v44, 4  ;;  %v3342_v6 = vmul.f32 %v3278_v44, %v19379_v0  ;;  %9855 = vmatpush.bf16.msrb.mxu1 %v14321_v14  ;;  %v14193_v53 = vor.u32 %v17678_v40, %v14192_v49  ;;  %v14704_v54 = vld [vmem:[#allocation26 + $0xe00] sm:$0xf] }
 0x3ca   :  { %v17806_v56 = vld [vmem:[#allocation26 + $0xe3c] sm:$0xf0] }
 0x3cb   :  { %v3317_v16 = vadd.f32 %v3316_v62, %v3278_v44  ;;  %v3380_v19 = vrot.slane %v3342_v6, 4  ;;  %v14832_v44 = vld [vmem:[#allocation26 + $0xf00] sm:$0xf] }
 0x3cc   :  { %v3218_v41 = vpop.f32.mrf.mxu2  ;;  %v13104_v60 = vld [vmem:[#allocation26 + $0x180] sm:$0xf] }
 0x3cd   :  { %v3318_v50 = vrot.slane %v3317_v16, 2  ;;  %v3381_v23 = vadd.f32 %v3380_v19, %v3342_v6  ;;  %v17838_v41 = vld [vmem:[#allocation26 + $0xf3c] sm:$0xf0]  ;;  %v19400_v7 = vpop.eup %18423 }
 0x3ce   :  { %v14833_v62 = vor.u32 %v17838_v41, %v14832_v44  ;;  %v13232_v6 = vld [vmem:[#allocation26 + $0x280] sm:$0xf]  ;;  %v19406_v41 = vpop.eup %18425  ;;  %vm3472_vm13 = vweird.f32 %v19400_v7 }
 0x3cf   :  { %v3319_v17 = vadd.f32 %v3318_v50, %v3317_v16  ;;  %v3382_v30 = vrot.slane %v3381_v23, 2  ;;  %v13233_v16 = vor.u32 %v17438_v55, %v13232_v6  ;;  %v17566_v19 = vld [vmem:[#allocation26 + $0x6bc] sm:$0xf0]  ;;  %vm19443_vm15 = vmor %vm3471_vm14, %vm3472_vm13  ;;  %vm3482_vm0 = vweird.f32 %v19406_v41 }
 0x3d0   :  { %v14256_v50 = vld [vmem:[#allocation26 + $0xa80] sm:$0xf]  ;;  %9868 = vmatpush.bf16.msrb.mxu2 %v14833_v62  ;;  %v13745_v26 = vor.u32 %v17566_v19, %v13744_v15  ;;  %v3466_v62 = vmul.f32 %v19400_v7, %v19392_v20  ;;  %vm19461_vm2 = vmor %vm3481_vm1, %vm3482_vm0  ;;  %vm3527_vm14 = vcmask 1045508  }
 0x3d1   :  { %v3320_v47 = vrot.slane %v3319_v17, 1  ;;  %v3383_v48 = vadd.f32 %v3382_v30, %v3381_v23  ;;  %v17694_v23 = vld [vmem:[#allocation26 + $0xabc] sm:$0xf0]  ;;  %9830 = vmatpush.bf16.msra.mxu3 %v13233_v16 }
 0x3d2   :  { %v14257_v27 = vor.u32 %v17694_v23, %v14256_v50  ;;  %9843 = vmatpush.bf16.msrb.mxu0 %v13745_v26  ;;  %v17406_v12 = vld [vmem:[#allocation26 + $0x1bc] sm:$0xf0] }
 0x3d3   :  { %v3321_v1 = vadd.f32 %v3320_v47, %v3319_v17  ;;  %v3384_v58 = vrot.slane %v3383_v48, 1  ;;  %v17822_v17 = vld [vmem:[#allocation26 + $0xebc] sm:$0xf0]  ;;  %v13105_v13 = vor.u32 %v17406_v12, %v13104_v60 }
 0x3d4   :  { %v14769_v34 = vor.u32 %v17822_v17, %v14768_v4  ;;  %9856 = vmatpush.bf16.msrb.mxu1 %v14257_v27  ;;  %v17550_v47 = vld [vmem:[#allocation26 + $0x63c] sm:$0xf0]  ;;  %v3476_v4 = vmul.f32 %v19406_v41, %v19394_v2 }
 0x3d5   :  { %v19397_v30 = vmul.f32 0.5, %v3321_v1  ;;  %v3385_v21 = vadd.f32 %v3384_v58, %v3383_v48  ;;  %v13681_v48 = vor.u32 %v17550_v47, %v13680_v39  ;;  %9831 = vmatpush.bf16.msra.mxu3 %v13169_v45  ;;  %v13616_v1 = vld [vmem:[#allocation26 + $0x580] sm:$0xf] }
 0x3d6   :  { %9869 = vmatpush.bf16.msrb.mxu2 %v14769_v34  ;;  %v14128_v14 = vld [vmem:[#allocation26 + $0x980] sm:$0xf] }
 0x3d7   :  { %v3398_v18 = vmul.f32 0.5, %v3385_v21  ;;  %v3406_v46 = vmul.f32 %v19397_v30, %v19397_v30  ;;  %9844 = vmatpush.bf16.msrb.mxu0 %v13681_v48  ;;  %v17662_v44 = vld [vmem:[#allocation26 + $0x9bc] sm:$0xf0] }
 0x3d8   :  { %9857 = vmatpush.bf16.msrb.mxu1 %v14193_v53  ;;  %v14129_v55 = vor.u32 %v17662_v44, %v14128_v14  ;;  %v14640_v15 = vld [vmem:[#allocation26 + $0xd80] sm:$0xf] }
 0x3d9   :  { %v17790_v16 = vld [vmem:[#allocation26 + $0xdbc] sm:$0xf0]  ;;  %v3414_v19 = vsub.f32 %v3398_v18, %v3406_v46  ;;  %9832 = vmatpush.bf16.msra.mxu3 %v13105_v13 }
 0x3da   :  { %v13040_v26 = vld [vmem:[#allocation26 + $0x100] sm:$0xf] }
 0x3db   :  { %v17390_v27 = vld [vmem:[#allocation26 + $0x13c] sm:$0xf0] }
 0x3dc   :  { %9858 = vmatpush.bf16.msrb.mxu1 %v14129_v55  ;;  %v17518_v34 = vld [vmem:[#allocation26 + $0x53c] sm:$0xf0] }
 0x3dd   :  { %v3242_v52 = vpop.f32.mrf.mxu0  ;;  %v14064_v11 = vld [vmem:[#allocation26 + $0x900] sm:$0xf] }
 0x3de   :  { %v17646_v38 = vld [vmem:[#allocation26 + $0x93c] sm:$0xf0] }
 0x3df   :  { %v3255_v22 = vpop.f32.mrf.mxu1  ;;  %v14576_v39 = vld [vmem:[#allocation26 + $0xd00] sm:$0xf]  ;;  %v14065_v47 = vor.u32 %v17646_v38, %v14064_v11 }
 0x3e0   :  { %v17774_v49 = vld [vmem:[#allocation26 + $0xd3c] sm:$0xf0] }
 0x3e1   :  { %v3229_v25 = vpop.f32.mrf.mxu3  ;;  %v14577_v40 = vor.u32 %v17774_v49, %v14576_v39  ;;  %v12976_v48 = vld [vmem:[#allocation26 + $0x80] sm:$0xf]  ;;  %9859 = vmatpush.bf16.msrb.mxu1 %v14065_v47 }
 0x3e2   :  { %v3230_v33 = vadd.f32 %v3229_v25, %v1567_v9  ;;  %v17534_v9 = vld [vmem:[#allocation26 + $0x5bc] sm:$0xf0]  ;;  %v14641_v25 = vor.u32 %v17790_v16, %v14640_v15 }
 0x3e3   :  { %v17374_v53 = vld [vmem:[#allocation26 + $0xbc] sm:$0xf0] }
 0x3e4   :  { %v3243_v43 = vadd.f32 %v3242_v52, %v3230_v33  ;;  %v14705_v52 = vor.u32 %v17806_v56, %v14704_v54  ;;  %v13041_v33 = vor.u32 %v17390_v27, %v13040_v26  ;;  %v13488_v54 = vld [vmem:[#allocation26 + $0x480] sm:$0xf]  ;;  %v3477_v56 = vmul.f32 %v19406_v41, %v3476_v4 }
 0x3e5   :  { %v3244_v35 = vpop.f32.mrf.mxu0  ;;  %v14000_v60 = vld [vmem:[#allocation26 + $0x880] sm:$0xf] }
 0x3e6   :  { %v3256_v57 = vadd.f32 %v3255_v22, %v3243_v43  ;;  %9870 = vmatpush.bf16.msrb.mxu2 %v14705_v52  ;;  %v13617_v22 = vor.u32 %v17534_v9, %v13616_v1  ;;  %v3467_v35 = vmul.f32 %v19400_v7, %v3466_v62  ;;  %v19416_v43 = vadd.f32 0.8, %v3414_v19  ;;  %9833 = vmatpush.bf16.msra.mxu3 %v13041_v33  ;;  %v17502_v52 = vld [vmem:[#allocation26 + $0x4bc] sm:$0xf0] }
 0x3e7   :  { %v3268_v24 = vpop.f32.mrf.mxu2  ;;  %v3257_v42 = vpop.f32.mrf.mxu1  ;;  %v13489_v12 = vor.u32 %v17502_v52, %v13488_v54  ;;  %v17630_v1 = vld [vmem:[#allocation26 + $0x8bc] sm:$0xf0]  ;;  %v19422_v19 = vmul.f32 0.5, %v3477_v56 }
 0x3e8   :  { %v19404_v58 = vadd.f32 %v3268_v24, %v3256_v57  ;;  %9845 = vmatpush.bf16.msrb.mxu0 %v13617_v22  ;;  %v13552_v24 = vld [vmem:[#allocation26 + $0x500] sm:$0xf]  ;;  %v12977_v57 = vor.u32 %v17374_v53, %v12976_v48  ;;  %v19419_v14 = vmul.f32 0.5, %v3467_v35  ;;  %18427 = vrsqrt.f32 %v19416_v43 }
 0x3e9   :  { %v3231_v6 = vpop.f32.mrf.mxu3  ;;  %v14512_v13 = vld [vmem:[#allocation26 + $0xc80] sm:$0xf]  ;;  %v3479_v47 = vsub.f32 1.5, %v19422_v19  ;;  %vm3491_vm5 = vweird.f32 %v19416_v43 }
 0x3ea   :  { %v3279_v50 = vmul.f32 %v19065_v29, %v19404_v58  ;;  %9871 = vmatpush.bf16.msrb.mxu2 %v14641_v25  ;;  %v13553_v29 = vor.u32 %v17518_v34, %v13552_v24  ;;  %v17758_v9 = vld [vmem:[#allocation26 + $0xcbc] sm:$0xf0]  ;;  %9834 = vmatpush.bf16.msra.mxu3 %v12977_v57  ;;  %v14001_v6 = vor.u32 %v17630_v1, %v14000_v60  ;;  %v3469_v11 = vsub.f32 1.5, %v19419_v14 }
 0x3eb   :  { %v14513_v22 = vor.u32 %v17758_v9, %v14512_v13  ;;  %v12912_v55 = vld [vmem:[#allocation26] sm:$0xf] }
 0x3ec   :  { %v3322_v17 = vrot.slane %v3279_v50, 4  ;;  %v3343_v21 = vmul.f32 %v3279_v50, %v19404_v58  ;;  %9846 = vmatpush.bf16.msrb.mxu0 %v13553_v29  ;;  %v17358_v15 = vld [vmem:[#allocation26 + $0x3c] sm:$0xf0]  ;;  %9860 = vmatpush.bf16.msrb.mxu1 %v14001_v6 }
 0x3ed   :  { %v13424_v16 = vld [vmem:[#allocation26 + $0x400] sm:$0xf]  ;;  %v12913_v27 = vor.u32 %v17358_v15, %v12912_v55 }
 0x3ee   :  { %v3323_v42 = vadd.f32 %v3322_v17, %v3279_v50  ;;  %v3386_v45 = vrot.slane %v3343_v21, 4  ;;  %9872 = vmatpush.bf16.msrb.mxu2 %v14577_v40  ;;  %v17486_v25 = vld [vmem:[#allocation26 + $0x43c] sm:$0xf0] }
 0x3ef   :  { %v3270_v23 = vpop.f32.mrf.mxu2  ;;  %v13936_v26 = vld [vmem:[#allocation26 + $0x800] sm:$0xf]  ;;  %v13425_v4 = vor.u32 %v17486_v25, %v13424_v16  ;;  %9835 = vmatpush.bf16.msra.mxu3 %v12913_v27 }
 0x3f0   :  { %v3324_v18 = vrot.slane %v3323_v42, 2  ;;  %v3387_v46 = vadd.f32 %v3386_v45, %v3343_v21  ;;  %9847 = vmatpush.bf16.msrb.mxu0 %v13489_v12  ;;  %v17614_v17 = vld [vmem:[#allocation26 + $0x83c] sm:$0xf0]  ;;  %v19425_v45 = vpop.eup %18427 }
 0x3f1   :  { %v14448_v21 = vld [vmem:[#allocation26 + $0xc00] sm:$0xf]  ;;  %v13937_v34 = vor.u32 %v17614_v17, %v13936_v26  ;;  %v3486_v14 = vmul.f32 %v19425_v45, %v19416_v43  ;;  %vm3492_vm4 = vweird.f32 %v19425_v45 }
 0x3f2   :  { %v3325_v44 = vadd.f32 %v3324_v18, %v3323_v42  ;;  %v3388_v62 = vrot.slane %v3387_v46, 2  ;;  %9873 = vmatpush.bf16.msrb.mxu2 %v14513_v22  ;;  %v17742_v35 = vld [vmem:[#allocation26 + $0xc3c] sm:$0xf0]  ;;  %vm19477_vm10 = vmor %vm3491_vm5, %vm3492_vm4 }
 0x3f3   :  { %v15408_v29 = vld [vmem:[#allocation26 + $0x1380] sm:$0xf]  ;;  %v14449_v38 = vor.u32 %v17742_v35, %v14448_v21  ;;  %9861 = vmatpush.bf16.msrb.mxu1 %v13937_v34  ;;  %v3470_v35 = vmul.f32 %v19400_v7, %v3469_v11 }
 0x3f4   :  { %v3326_v50 = vrot.slane %v3325_v44, 1  ;;  %v3389_v23 = vadd.f32 %v3388_v62, %v3387_v46  ;;  %9848 = vmatpush.bf16.msrb.mxu0 %v13425_v4  ;;  %v17982_v39 = vld [vmem:[#allocation26 + $0x13bc] sm:$0xf0] }
 0x3f5   :  { %v15920_v42 = vld [vmem:[#allocation26 + $0x1780] sm:$0xf]  ;;  %v15409_v48 = vor.u32 %v17982_v39, %v15408_v29  ;;  %v3487_v29 = vmul.f32 %v19425_v45, %v3486_v14  ;;  %v3480_v14 = vmul.f32 %v19406_v41, %v3479_v47 }
 0x3f6   :  { %v3327_v33 = vadd.f32 %v3326_v50, %v3325_v44  ;;  %v3390_v24 = vrot.slane %v3389_v23, 1  ;;  %v18110_v53 = vld [vmem:[#allocation26 + $0x17bc] sm:$0xf0]  ;;  %9874 = vmatpush.bf16.msrb.mxu2 %v14449_v38 }
 0x3f7   :  { %v16432_v54 = vld [vmem:[#allocation26 + $0x1b80] sm:$0xf]  ;;  %v15921_v56 = vor.u32 %v18110_v53, %v15920_v42  ;;  %9880 = vmatpush.bf16.msrb.mxu3 %v15409_v48  ;;  %v3484_v2 = vsel %vm19461_vm2, %v19406_v41, %v3480_v14 }
 0x3f8   :  { %v19428_v49 = vmul.f32 0.5, %v3327_v33  ;;  %v3391_v40 = vadd.f32 %v3390_v24, %v3389_v23  ;;  %v18238_v18 = vld [vmem:[#allocation26 + $0x1bbc] sm:$0xf0]  ;;  %v3517_v41 = vrot.slane %v3484_v2, 3 }
 0x3f9   :  { %v16944_v46 = vld [vmem:[#allocation26 + $0x1f80] sm:$0xf]  ;;  %v16433_v12 = vor.u32 %v18238_v18, %v16432_v54  ;;  %9893 = vmatpush.bf16.msra.mxu0 %v15921_v56 }
 0x3fa   :  { %v18366_v57 = vld [vmem:[#allocation26 + $0x1fbc] sm:$0xf0]  ;;  %v3399_v52 = vmul.f32 0.5, %v3391_v40  ;;  %v3407_v60 = vmul.f32 %v19428_v49, %v19428_v49 }
 0x3fb   :  { %v16945_v1 = vor.u32 %v18366_v57, %v16944_v46  ;;  %v15344_v13 = vld [vmem:[#allocation26 + $0x1300] sm:$0xf]  ;;  %9906 = vmatpush.bf16.msra.mxu1 %v16433_v12 }
 0x3fc   :  { %v17966_v9 = vld [vmem:[#allocation26 + $0x133c] sm:$0xf0]  ;;  %v3415_v55 = vsub.f32 %v3399_v52, %v3407_v60 }
 0x3fd   :  { %v15345_v44 = vor.u32 %v17966_v9, %v15344_v13  ;;  %v15856_v62 = vld [vmem:[#allocation26 + $0x1700] sm:$0xf]  ;;  %9919 = vmatpush.bf16.msra.mxu2 %v16945_v1  ;;  %v3474_v13 = vsel %vm19443_vm15, %v19400_v7, %v3470_v35  ;;  %v3488_v9 = vmul.f32 0.5, %v3487_v29  ;;  %vm3529_vm15 = vcmask 1043456  }
 0x3fe   :  { %v18094_v6 = vld [vmem:[#allocation26 + $0x173c] sm:$0xf0]  ;;  %v19434_v21 = vadd.f32 0.8, %v3415_v55 }
 0x3ff   :  { %v16368_v22 = vld [vmem:[#allocation26 + $0x1b00] sm:$0xf]  ;;  %v15857_v15 = vor.u32 %v18094_v6, %v15856_v62  ;;  %9881 = vmatpush.bf16.msrb.mxu3 %v15345_v44 }
 0x400   :  { %v18222_v16 = vld [vmem:[#allocation26 + $0x1b3c] sm:$0xf0]  ;;  %18429 = vrsqrt.f32 %v19434_v21  ;;  %vm3501_vm12 = vweird.f32 %v19434_v21 }
 0x401   :  { %v16880_v50 = vld [vmem:[#allocation26 + $0x1f00] sm:$0xf]  ;;  %v16369_v25 = vor.u32 %v18222_v16, %v16368_v22  ;;  %9894 = vmatpush.bf16.msra.mxu0 %v15857_v15 }
 0x402   :  { %v18350_v23 = vld [vmem:[#allocation26 + $0x1f3c] sm:$0xf0] }
 0x403   :  { %v16881_v26 = vor.u32 %v18350_v23, %v16880_v50  ;;  %v15280_v27 = vld [vmem:[#allocation26 + $0x1280] sm:$0xf]  ;;  %9907 = vmatpush.bf16.msra.mxu1 %v16369_v25  ;;  %v19457_v25 = vrot.slane %v3474_v13, 4 }
 0x404   :  { %v17950_v4 = vld [vmem:[#allocation26 + $0x12bc] sm:$0xf0] }
 0x405   :  { %v15792_v17 = vld [vmem:[#allocation26 + $0x1680] sm:$0xf]  ;;  %v15281_v33 = vor.u32 %v17950_v4, %v15280_v27  ;;  %9920 = vmatpush.bf16.msra.mxu2 %v16881_v26  ;;  %v3489_v27 = vsub.f32 1.5, %v3488_v9 }
 0x406   :  { %v18078_v24 = vld [vmem:[#allocation26 + $0x16bc] sm:$0xf0]  ;;  %v19454_v7 = vpop.eup %18429 }
 0x407   :  { %v16304_v34 = vld [vmem:[#allocation26 + $0x1a80] sm:$0xf]  ;;  %v15793_v38 = vor.u32 %v18078_v24, %v15792_v17  ;;  %9882 = vmatpush.bf16.msrb.mxu3 %v15281_v33  ;;  %v3496_v4 = vmul.f32 %v19454_v7, %v19434_v21  ;;  %vm3502_vm6 = vweird.f32 %v19454_v7 }
 0x408   :  { %v18206_v39 = vld [vmem:[#allocation26 + $0x1abc] sm:$0xf0]  ;;  %vm19488_vm13 = vmor %vm3501_vm12, %vm3502_vm6 }
 0x409   :  { %v16816_v42 = vld [vmem:[#allocation26 + $0x1e80] sm:$0xf]  ;;  %v16305_v48 = vor.u32 %v18206_v39, %v16304_v34  ;;  %9895 = vmatpush.bf16.msra.mxu0 %v15793_v38  ;;  %v3497_v29 = vmul.f32 %v19454_v7, %v3496_v4 }
 0x40a   :  { %v18334_v40 = vld [vmem:[#allocation26 + $0x1ebc] sm:$0xf0] }
 0x40b   :  { %v16817_v53 = vor.u32 %v18334_v40, %v16816_v42  ;;  %v15216_v54 = vld [vmem:[#allocation26 + $0x1200] sm:$0xf]  ;;  %9908 = vmatpush.bf16.msra.mxu1 %v16305_v48 }
 0x40c   :  { %v17934_v56 = vld [vmem:[#allocation26 + $0x123c] sm:$0xf0] }
 0x40d   :  { %v15728_v18 = vld [vmem:[#allocation26 + $0x1600] sm:$0xf]  ;;  %v15217_v60 = vor.u32 %v17934_v56, %v15216_v54  ;;  %9921 = vmatpush.bf16.msra.mxu2 %v16817_v53  ;;  %v3490_v56 = vmul.f32 %v19425_v45, %v3489_v27 }
 0x40e   :  { %v18062_v11 = vld [vmem:[#allocation26 + $0x163c] sm:$0xf0] }
 0x40f   :  { %v16240_v46 = vld [vmem:[#allocation26 + $0x1a00] sm:$0xf]  ;;  %v15729_v20 = vor.u32 %v18062_v11, %v15728_v18  ;;  %9883 = vmatpush.bf16.msrb.mxu3 %v15217_v60  ;;  %v3498_v18 = vmul.f32 0.5, %v3497_v29  ;;  %v3416_v29 = vld [vmem:[#allocation23] sm:$0xff] }
 0x410   :  { %v18190_v57 = vld [vmem:[#allocation26 + $0x1a3c] sm:$0xf0] }
 0x411   :  { %v16752_v12 = vld [vmem:[#allocation26 + $0x1e00] sm:$0xf]  ;;  %v16241_v44 = vor.u32 %v18190_v57, %v16240_v46  ;;  %9896 = vmatpush.bf16.msra.mxu0 %v15729_v20  ;;  %v3499_v13 = vsub.f32 1.5, %v3498_v18 }
 0x412   :  { %v18318_v1 = vld [vmem:[#allocation26 + $0x1e3c] sm:$0xf0] }
 0x413   :  { %v16753_v62 = vor.u32 %v18318_v1, %v16752_v12  ;;  %v15152_v6 = vld [vmem:[#allocation26 + $0x1180] sm:$0xf]  ;;  %9909 = vmatpush.bf16.msra.mxu1 %v16241_v44 }
 0x414   :  { %v17918_v22 = vld [vmem:[#allocation26 + $0x11bc] sm:$0xf0] }
 0x415   :  { %v15664_v55 = vld [vmem:[#allocation26 + $0x1580] sm:$0xf]  ;;  %v15153_v19 = vor.u32 %v17918_v22, %v15152_v6  ;;  %9922 = vmatpush.bf16.msra.mxu2 %v16753_v62  ;;  %v3494_v6 = vsel %vm19477_vm10, %v19425_v45, %v3490_v56  ;;  %v3500_v22 = vmul.f32 %v19454_v7, %v3499_v13 }
 0x416   :  { %v18046_v15 = vld [vmem:[#allocation26 + $0x15bc] sm:$0xf0]  ;;  %v3518_v4 = vrot.slane %v3494_v6, 2 }
 0x417   :  { %v16176_v16 = vld [vmem:[#allocation26 + $0x1980] sm:$0xf]  ;;  %v15665_v17 = vor.u32 %v18046_v15, %v15664_v55  ;;  %9884 = vmatpush.bf16.msrb.mxu3 %v15153_v19  ;;  %v3504_v45 = vsel %vm19488_vm13, %v19454_v7, %v3500_v22 }
 0x418   :  { %v18174_v50 = vld [vmem:[#allocation26 + $0x19bc] sm:$0xf0] }
 0x419   :  { %v16688_v23 = vld [vmem:[#allocation26 + $0x1d80] sm:$0xf]  ;;  %v16177_v33 = vor.u32 %v18174_v50, %v16176_v16  ;;  %9897 = vmatpush.bf16.msra.mxu0 %v15665_v17  ;;  %v3519_v17 = vrot.slane %v3504_v45, 1 }
 0x41a   :  { %v18302_v47 = vld [vmem:[#allocation26 + $0x1dbc] sm:$0xf0] }
 0x41b   :  { %v16689_v24 = vor.u32 %v18302_v47, %v16688_v23  ;;  %v15088_v34 = vld [vmem:[#allocation26 + $0x1100] sm:$0xf]  ;;  %9910 = vmatpush.bf16.msra.mxu1 %v16177_v33 }
 0x41c   :  { %v17902_v35 = vld [vmem:[#allocation26 + $0x113c] sm:$0xf0] }
 0x41d   :  { %v15600_v38 = vld [vmem:[#allocation26 + $0x1500] sm:$0xf]  ;;  %v15089_v40 = vor.u32 %v17902_v35, %v15088_v34  ;;  %9923 = vmatpush.bf16.msra.mxu2 %v16689_v24  ;;  %v3524_v34 = vsel %vm3523_vm3, %v19457_v25, %v3517_v41 }
 0x41e   :  { %v18030_v39 = vld [vmem:[#allocation26 + $0x153c] sm:$0xf0] }
 0x41f   :  { %v16112_v42 = vld [vmem:[#allocation26 + $0x1900] sm:$0xf]  ;;  %v15601_v11 = vor.u32 %v18030_v39, %v15600_v38  ;;  %9885 = vmatpush.bf16.msrb.mxu3 %v15089_v40  ;;  %v3526_v38 = vsel %vm3525_vm11, %v3518_v4, %v3519_v17 }
 0x420   :  { %v18158_v48 = vld [vmem:[#allocation26 + $0x193c] sm:$0xf0] }
 0x421   :  { %v16624_v53 = vld [vmem:[#allocation26 + $0x1d00] sm:$0xf]  ;;  %v16113_v46 = vor.u32 %v18158_v48, %v16112_v42  ;;  %9898 = vmatpush.bf16.msra.mxu0 %v15601_v11  ;;  %v3528_v42 = vsel %vm3527_vm14, %v3524_v34, %v3526_v38  ;;  %v17590_v38 = vld [vmem:[#allocation26 + $0x784] sm:$0xf] }
 0x422   :  { %v18286_v54 = vld [vmem:[#allocation26 + $0x1d3c] sm:$0xf0]  ;;  %v3530_v40 = vsel %vm3529_vm15, %v19367_v37, %v3528_v42 }
 0x423   :  { %v16625_v57 = vor.u32 %v18286_v54, %v16624_v53  ;;  %v15024_v52 = vld [vmem:[#allocation26 + $0x1080] sm:$0xf]  ;;  %9911 = vmatpush.bf16.msra.mxu1 %v16113_v46  ;;  %v3532_v48 = vmul.f32 %v3530_v40, %v3416_v29  ;;  %v13362_v29 = vld [vmem:[#allocation26 + $0x3c0] sm:$0xf0] }
 0x424   :  { %v17886_v60 = vld [vmem:[#allocation26 + $0x10bc] sm:$0xf0] }
 0x425   :  { %v15536_v12 = vld [vmem:[#allocation26 + $0x1480] sm:$0xf]  ;;  %v15025_v43 = vor.u32 %v17886_v60, %v15024_v52  ;;  %9924 = vmatpush.bf16.msra.mxu2 %v16625_v57  ;;  %v3535_v25 = vperm.slane %v3532_v48, 0  ;;  %v3536_v53 = vperm.slane %v3532_v48, 1  ;;  %v3537_v54 = vperm.slane %v3532_v48, 2 }
 0x426   :  { %v18014_v9 = vld [vmem:[#allocation26 + $0x14bc] sm:$0xf0]  ;;  %v3538_v41 = vperm.slane %v3532_v48, 3  ;;  %v3539_v56 = vperm.slane %v3532_v48, 4  ;;  %v3540_v18 = vperm.slane %v3532_v48, 5  ;;  %v3541_v11 = vperm.slane %v3532_v48, 6 }
 0x427   :  { %v16048_v20 = vld [vmem:[#allocation26 + $0x1880] sm:$0xf]  ;;  %v15537_v21 = vor.u32 %v18014_v9, %v15536_v12  ;;  %9886 = vmatpush.bf16.msrb.mxu3 %v15025_v43  ;;  %v3542_v46 = vperm.slane %v3532_v48, 7  ;;  %v3551_v57 = vmul.f32 %v3535_v25, %v19305_v31  ;;  %v3552_v52 = vmul.f32 %v3536_v53, %v19322_v51  ;;  %v13874_v48 = vld [vmem:[#allocation26 + $0x7c0] sm:$0xf0] }
 0x428   :  { %v18142_v14 = vld [vmem:[#allocation26 + $0x18bc] sm:$0xf0]  ;;  %v3553_v60 = vmul.f32 %v3537_v54, %v19344_v59  ;;  %v3554_v37 = vmul.f32 %v3538_v41, %v19357_v28  ;;  %v3555_v12 = vmul.f32 %v3539_v56, %v19384_v10  ;;  %v3556_v1 = vmul.f32 %v3540_v18, %v19386_v8 }
 0x429   :  { %v16560_v44 = vld [vmem:[#allocation26 + $0x1c80] sm:$0xf]  ;;  %v16049_v15 = vor.u32 %v18142_v14, %v16048_v20  ;;  %9899 = vmatpush.bf16.msra.mxu0 %v15537_v21  ;;  %v3557_v13 = vmul.f32 %v3541_v11, %v19397_v30  ;;  %v3558_v9 = vmul.f32 %v3542_v46, %v19428_v49  ;;  %v3567_v20 = vrot.slane %v3552_v52, 7  ;;  %v3533_v30 = vld [vmem:[#allocation25] sm:$0xff] }
 0x42a   :  { %v18270_v62 = vld [vmem:[#allocation26 + $0x1cbc] sm:$0xf0]  ;;  %v3568_v43 = vrot.slane %v3553_v60, 6  ;;  %v3569_v14 = vrot.slane %v3554_v37, 5  ;;  %v3570_v31 = vrot.slane %v3555_v12, 4  ;;  %v3584_v10 = vmul.f32 %v3536_v53, %v19307_v61 }
 0x42b   :  { %v16561_v16 = vor.u32 %v18270_v62, %v16560_v44  ;;  %v14960_v50 = vld [vmem:[#allocation26 + $0x1000] sm:$0xf]  ;;  %9912 = vmatpush.bf16.msra.mxu1 %v16049_v15  ;;  %v3583_v44 = vmul.f32 %v3535_v25, %v19299_v63  ;;  %v3571_v62 = vrot.slane %v3556_v1, 3  ;;  %v3572_v51 = vrot.slane %v3557_v13, 2  ;;  %v17718_v25 = vld [vmem:[#allocation26 + $0xb84] sm:$0xf] }
 0x42c   :  { %v17870_v19 = vld [vmem:[#allocation26 + $0x103c] sm:$0xf0]  ;;  %v3573_v6 = vrot.slane %v3558_v9, 1  ;;  %v3574_v59 = vsel %vm579_vm7, %v3551_v57, %v3567_v20  ;;  %v3575_v28 = vsel %vm1237_vm8, %v3568_v43, %v3569_v14  ;;  %v3585_v8 = vmul.f32 %v3537_v54, %v19326_v3  ;;  %v17446_v12 = vld [vmem:[#allocation26 + $0x304] sm:$0xf] }
 0x42d   :  { %v15472_v23 = vld [vmem:[#allocation26 + $0x1400] sm:$0xf]  ;;  %v14961_v2 = vor.u32 %v17870_v19, %v14960_v50  ;;  %9925 = vmatpush.bf16.msra.mxu2 %v16561_v16  ;;  %v3576_v49 = vsel %vm1239_vm9, %v3574_v59, %v3575_v28  ;;  %v3577_v22 = vsel %vm3523_vm3, %v3570_v31, %v3571_v62  ;;  %v3586_v63 = vmul.f32 %v3538_v41, %v19352_v5  ;;  %v14386_v41 = vld [vmem:[#allocation26 + $0xbc0] sm:$0xf0] }
 0x42e   :  { %v17998_v47 = vld [vmem:[#allocation26 + $0x143c] sm:$0xf0]  ;;  %v3578_v55 = vsel %vm3525_vm11, %v3572_v51, %v3573_v6  ;;  %v3590_v16 = vmul.f32 %v3542_v46, %v19404_v58  ;;  %v3587_v61 = vmul.f32 %v3539_v56, %v19362_v36  ;;  %v3588_v3 = vmul.f32 %v3540_v18, %v19370_v32  ;;  %v17846_v56 = vld [vmem:[#allocation26 + $0xf84] sm:$0xf] }
 0x42f   :  { %v15984_v26 = vld [vmem:[#allocation26 + $0x1800] sm:$0xf]  ;;  %v15473_v35 = vor.u32 %v17998_v47, %v15472_v23  ;;  %9887 = vmatpush.bf16.msrb.mxu3 %v14961_v2  ;;  %v3579_v21 = vsel %vm3527_vm14, %v3577_v22, %v3578_v55  ;;  %v3589_v19 = vmul.f32 %v3541_v11, %v19379_v0  ;;  %v17462_v0 = vld [vmem:[#allocation26 + $0x384] sm:$0xf]  ;;  %v13877_v37 = vor.u32 %v17590_v38, %v13874_v48 }
 0x430   :  { %v18126_v27 = vld [vmem:[#allocation26 + $0x183c] sm:$0xf0]  ;;  %v3580_v15 = vsel %vm3529_vm15, %v3576_v49, %v3579_v21  ;;  %v14898_v18 = vld [vmem:[#allocation26 + $0xfc0] sm:$0xf0]  ;;  %v13365_v60 = vor.u32 %v17462_v0, %v13362_v29  ;;  %v14389_v20 = vor.u32 %v17718_v25, %v14386_v41 }
 0x431   :  { %v16496_v33 = vld [vmem:[#allocation26 + $0x1c00] sm:$0xf]  ;;  %v15985_v7 = vor.u32 %v18126_v27, %v15984_v26  ;;  %9900 = vmatpush.bf16.msra.mxu0 %v15473_v35  ;;  %v3582_v50 = vsub.f32 %v3533_v30, %v3580_v15  ;;  %v13298_v1 = vld [vmem:[#allocation26 + $0x340] sm:$0xf0]  ;;  %v14901_v43 = vor.u32 %v17846_v56, %v14898_v18 }
 0x432   :  { %v18254_v24 = vld [vmem:[#allocation26 + $0x1c3c] sm:$0xf0]  ;;  %v17574_v14 = vld [vmem:[#allocation26 + $0x704] sm:$0xf]  ;;  %v13301_v28 = vor.u32 %v17446_v12, %v13298_v1 }
 0x433   :  { %v16497_v39 = vor.u32 %v18254_v24, %v16496_v33  ;;  %9913 = vmatpush.bf16.msra.mxu1 %v15985_v7  ;;  %v3592_v23 = vperm.slane %v3582_v50, 0  ;;  %v3593_v45 = vperm.slane %v3582_v50, 1  ;;  %v3594_v47 = vperm.slane %v3582_v50, 2  ;;  %v17702_v31 = vld [vmem:[#allocation26 + $0xb04] sm:$0xf] }
 0x434   :  { %v3595_v26 = vperm.slane %v3582_v50, 3  ;;  %v3596_v27 = vperm.slane %v3582_v50, 4  ;;  %v3597_v4 = vperm.slane %v3582_v50, 5  ;;  %v3598_v5 = vperm.slane %v3582_v50, 6  ;;  %v14322_v62 = vld [vmem:[#allocation26 + $0xb40] sm:$0xf0] }
 0x435   :  { %9926 = vmatpush.bf16.msra.mxu2 %v16497_v39  ;;  %v3599_v17 = vperm.slane %v3582_v50, 7  ;;  %v3608_v2 = vadd.f32 %v3592_v23, %v3583_v44  ;;  %v3609_v33 = vadd.f32 %v3593_v45, %v3584_v10  ;;  %v3610_v24 = vadd.f32 %v3594_v47, %v3585_v8  ;;  %v13810_v44 = vld [vmem:[#allocation26 + $0x740] sm:$0xf0] }
 0x436   :  { %v3611_v34 = vadd.f32 %v3595_v26, %v3586_v63  ;;  %v19524_v58 = vadd.f32 %v3596_v27, %v3587_v61  ;;  %v19526_v35 = vadd.f32 %v3597_v4, %v3588_v3  ;;  %v19528_v36 = vadd.f32 %v3598_v5, %v3589_v19  ;;  %v17830_v51 = vld [vmem:[#allocation26 + $0xf04] sm:$0xf] }
 0x437   :  { %v19530_v32 = vadd.f32 %v3599_v17, %v3590_v16  ;;  %vm3616_vm7 = vcmp.gt.f32.partialorder %v3608_v2, 0.0  ;;  %vm3617_vm8 = vcmp.gt.f32.partialorder %v3609_v33, 0.0  ;;  %vm3618_vm9 = vcmp.gt.f32.partialorder %v3610_v24, 0.0  ;;  %v14834_v6 = vld [vmem:[#allocation26 + $0xf40] sm:$0xf0] }
 0x438   :  { %vm3619_vm0 = vcmp.gt.f32.partialorder %v3611_v34, 0.0  ;;  %v3624_v7 = vmul.f32 0.2, %v3608_v2  ;;  %v3625_v39 = vmul.f32 0.2, %v3609_v33  ;;  %v13813_v10 = vor.u32 %v17574_v14, %v13810_v44 }
 0x439   :  { %v3626_v42 = vmul.f32 0.2, %v3610_v24  ;;  %v3627_v40 = vmul.f32 0.2, %v3611_v34  ;;  %v17430_v59 = vld [vmem:[#allocation26 + $0x284] sm:$0xf]  ;;  %v14325_v22 = vor.u32 %v17702_v31, %v14322_v62  ;;  %v14837_v55 = vor.u32 %v17830_v51, %v14834_v6 }
 0x43a   :  { %v3632_v53 = vsel %vm3616_vm7, %v3608_v2, %v3624_v7  ;;  %v3633_v54 = vsel %vm3617_vm8, %v3609_v33, %v3625_v39  ;;  %v13234_v8 = vld [vmem:[#allocation26 + $0x2c0] sm:$0xf0]  ;;  %v3628_v17 = vmul.f32 0.2, %v19524_v58  ;;  %v3629_v2 = vmul.f32 0.2, %v19526_v35 }
 0x43b   :  { %v3634_v11 = vsel %vm3618_vm9, %v3610_v24, %v3626_v42  ;;  %v3635_v46 = vsel %vm3619_vm0, %v3611_v34, %v3627_v40  ;;  %v19534_v57 = vpack.c.bf16 %v3632_v53, %v3632_v53  ;;  %v19536_v52 = vpack.c.bf16 %v3633_v54, %v3633_v54  ;;  %v17558_v30 = vld [vmem:[#allocation26 + $0x684] sm:$0xf] }
 0x43c   :  { %v19538_v13 = vpack.c.bf16 %v3634_v11, %v3634_v11  ;;  %v19540_v9 = vpack.c.bf16 %v3635_v46, %v3635_v46  ;;  %v13746_v49 = vld [vmem:[#allocation26 + $0x6c0] sm:$0xf0]  ;;  %v13237_v45 = vor.u32 %v17430_v59, %v13234_v8  ;;  %v3630_v33 = vmul.f32 0.2, %v19528_v36 }
 0x43d   :  { %9836 = vmatmul.bf16.vlgmr.msra.gmra.mxu3 %v19534_v57  ;;  %9849 = vmatmul.bf16.vlgmr.msrb.gmra.mxu0 %v19536_v52  ;;  %v17686_v63 = vld [vmem:[#allocation26 + $0xa84] sm:$0xf]  ;;  %v13749_v47 = vor.u32 %v17558_v30, %v13746_v49  ;;  %vm3620_vm1 = vcmp.gt.f32.partialorder %v19524_v58, 0.0  ;;  %vm3621_vm2 = vcmp.gt.f32.partialorder %v19526_v35, 0.0  ;;  %vm3622_vm3 = vcmp.gt.f32.partialorder %v19528_v36, 0.0 }
 0x43e   :  { %9862 = vmatmul.bf16.vlgmr.msrb.gmra.mxu1 %v19538_v13  ;;  %9875 = vmatmul.bf16.vlgmr.msrb.gmra.mxu2 %v19540_v9  ;;  %v14258_v21 = vld [vmem:[#allocation26 + $0xac0] sm:$0xf0]  ;;  %v3631_v34 = vmul.f32 0.2, %v19530_v32  ;;  %vm3623_vm4 = vcmp.gt.f32.partialorder %v19530_v32, 0.0  ;;  %v3636_v25 = vsel %vm3620_vm1, %v19524_v58, %v3628_v17  ;;  %v3637_v53 = vsel %vm3621_vm2, %v19526_v35, %v3629_v2 }
 0x43f   :  { %9932 = vmatpush.bf16.msra.mxu3 %v13365_v60  ;;  %9945 = vmatpush.bf16.msrb.mxu0 %v13877_v37  ;;  %v17814_v15 = vld [vmem:[#allocation26 + $0xe84] sm:$0xf]  ;;  %v14261_v26 = vor.u32 %v17686_v63, %v14258_v21  ;;  %v3638_v54 = vsel %vm3622_vm3, %v19528_v36, %v3630_v33  ;;  %v19560_v12 = vpack.c.bf16 %v3636_v25, %v3636_v25 }
 0x440   :  { %9958 = vmatpush.bf16.msrb.mxu1 %v14389_v20  ;;  %9971 = vmatpush.bf16.msrb.mxu2 %v14901_v43  ;;  %v14770_v16 = vld [vmem:[#allocation26 + $0xec0] sm:$0xf0]  ;;  %v3639_v56 = vsel %vm3623_vm4, %v19530_v32, %v3631_v34  ;;  %v19562_v1 = vpack.c.bf16 %v3637_v53, %v3637_v53  ;;  %v19564_v58 = vpack.c.bf16 %v3638_v54, %v3638_v54 }
 0x441   :  { %v17414_v50 = vld [vmem:[#allocation26 + $0x204] sm:$0xf]  ;;  %v14773_v24 = vor.u32 %v17814_v15, %v14770_v16  ;;  %v19566_v20 = vpack.c.bf16 %v3639_v56, %v3639_v56 }
 0x442   :  { %v13170_v61 = vld [vmem:[#allocation26 + $0x240] sm:$0xf0] }
 0x443   :  { %v17542_v3 = vld [vmem:[#allocation26 + $0x604] sm:$0xf]  ;;  %9933 = vmatpush.bf16.msra.mxu3 %v13301_v28  ;;  %9946 = vmatpush.bf16.msrb.mxu0 %v13813_v10  ;;  %v13173_v0 = vor.u32 %v17414_v50, %v13170_v61 }
 0x444   :  { %v13682_v19 = vld [vmem:[#allocation26 + $0x640] sm:$0xf0]  ;;  %9959 = vmatpush.bf16.msrb.mxu1 %v14325_v22  ;;  %9972 = vmatpush.bf16.msrb.mxu2 %v14837_v55 }
 0x445   :  { %v17670_v23 = vld [vmem:[#allocation26 + $0xa04] sm:$0xf]  ;;  %v13685_v38 = vor.u32 %v17542_v3, %v13682_v19 }
 0x446   :  { %v14194_v27 = vld [vmem:[#allocation26 + $0xa40] sm:$0xf0] }
 0x447   :  { %v17798_v4 = vld [vmem:[#allocation26 + $0xe04] sm:$0xf]  ;;  %9934 = vmatpush.bf16.msra.mxu3 %v13237_v45  ;;  %9947 = vmatpush.bf16.msrb.mxu0 %v13749_v47  ;;  %v14197_v7 = vor.u32 %v17670_v23, %v14194_v27 }
 0x448   :  { %v14706_v5 = vld [vmem:[#allocation26 + $0xe40] sm:$0xf0]  ;;  %9960 = vmatpush.bf16.msrb.mxu1 %v14261_v26  ;;  %9973 = vmatpush.bf16.msrb.mxu2 %v14773_v24 }
 0x449   :  { %v17398_v29 = vld [vmem:[#allocation26 + $0x184] sm:$0xf]  ;;  %v14709_v39 = vor.u32 %v17798_v4, %v14706_v5 }
 0x44a   :  { %v13106_v42 = vld [vmem:[#allocation26 + $0x1c0] sm:$0xf0] }
 0x44b   :  { %v17526_v40 = vld [vmem:[#allocation26 + $0x584] sm:$0xf]  ;;  %v13109_v60 = vor.u32 %v17398_v29, %v13106_v42  ;;  %9935 = vmatpush.bf16.msra.mxu3 %v13173_v0  ;;  %9948 = vmatpush.bf16.msrb.mxu0 %v13685_v38 }
 0x44c   :  { %v13618_v48 = vld [vmem:[#allocation26 + $0x5c0] sm:$0xf0]  ;;  %9961 = vmatpush.bf16.msrb.mxu1 %v14197_v7  ;;  %9974 = vmatpush.bf16.msrb.mxu2 %v14709_v39 }
 0x44d   :  { %v17654_v41 = vld [vmem:[#allocation26 + $0x984] sm:$0xf]  ;;  %v13621_v37 = vor.u32 %v17526_v40, %v13618_v48  ;;  %9888 = vmatmul.bf16.vlgmr.msrb.gmra.mxu3 %v19560_v12  ;;  %9901 = vmatmul.bf16.vlgmr.msra.gmra.mxu0 %v19562_v1 }
 0x44e   :  { %v14130_v18 = vld [vmem:[#allocation26 + $0x9c0] sm:$0xf0]  ;;  %9914 = vmatmul.bf16.vlgmr.msra.gmra.mxu1 %v19564_v58  ;;  %9927 = vmatmul.bf16.vlgmr.msra.gmra.mxu2 %v19566_v20 }
 0x44f   :  { %v17782_v11 = vld [vmem:[#allocation26 + $0xd84] sm:$0xf]  ;;  %v14133_v32 = vor.u32 %v17654_v41, %v14130_v18  ;;  %9936 = vmatpush.bf16.msra.mxu3 %v13109_v60  ;;  %9949 = vmatpush.bf16.msrb.mxu0 %v13621_v37 }
 0x450   :  { %v14642_v46 = vld [vmem:[#allocation26 + $0xdc0] sm:$0xf0] }
 0x451   :  { %v17382_v35 = vld [vmem:[#allocation26 + $0x104] sm:$0xf]  ;;  %v14645_v43 = vor.u32 %v17782_v11, %v14642_v46  ;;  %9962 = vmatpush.bf16.msrb.mxu1 %v14133_v32 }
 0x452   :  { %v13042_v36 = vld [vmem:[#allocation26 + $0x140] sm:$0xf0] }
 0x453   :  { %v17510_v14 = vld [vmem:[#allocation26 + $0x504] sm:$0xf]  ;;  %v13045_v59 = vor.u32 %v17382_v35, %v13042_v36  ;;  %9975 = vmatpush.bf16.msrb.mxu2 %v14645_v43 }
 0x454   :  { %v13554_v44 = vld [vmem:[#allocation26 + $0x540] sm:$0xf0] }
 0x455   :  { %v17638_v31 = vld [vmem:[#allocation26 + $0x904] sm:$0xf]  ;;  %v13557_v28 = vor.u32 %v17510_v14, %v13554_v44  ;;  %9937 = vmatpush.bf16.msra.mxu3 %v13045_v59 }
 0x456   :  { %v14066_v62 = vld [vmem:[#allocation26 + $0x940] sm:$0xf0] }
 0x457   :  { %v17766_v51 = vld [vmem:[#allocation26 + $0xd04] sm:$0xf]  ;;  %v14069_v30 = vor.u32 %v17638_v31, %v14066_v62  ;;  %9950 = vmatpush.bf16.msrb.mxu0 %v13557_v28 }
 0x458   :  { %v14578_v6 = vld [vmem:[#allocation26 + $0xd40] sm:$0xf0] }
 0x459   :  { %v17366_v10 = vld [vmem:[#allocation26 + $0x84] sm:$0xf]  ;;  %v14581_v49 = vor.u32 %v17766_v51, %v14578_v6  ;;  %9963 = vmatpush.bf16.msrb.mxu1 %v14069_v30 }
 0x45a   :  { %v12978_v8 = vld [vmem:[#allocation26 + $0xc0] sm:$0xf0] }
 0x45b   :  { %v17494_v22 = vld [vmem:[#allocation26 + $0x484] sm:$0xf]  ;;  %v12981_v61 = vor.u32 %v17366_v10, %v12978_v8  ;;  %9976 = vmatpush.bf16.msrb.mxu2 %v14581_v49 }
 0x45c   :  { %v13490_v55 = vld [vmem:[#allocation26 + $0x4c0] sm:$0xf0] }
 0x45d   :  { %v17622_v63 = vld [vmem:[#allocation26 + $0x884] sm:$0xf]  ;;  %v13493_v3 = vor.u32 %v17494_v22, %v13490_v55  ;;  %9938 = vmatpush.bf16.msra.mxu3 %v12981_v61 }
 0x45e   :  { %v14002_v21 = vld [vmem:[#allocation26 + $0x8c0] sm:$0xf0] }
 0x45f   :  { %v17750_v15 = vld [vmem:[#allocation26 + $0xc84] sm:$0xf]  ;;  %v14005_v47 = vor.u32 %v17622_v63, %v14002_v21  ;;  %9951 = vmatpush.bf16.msrb.mxu0 %v13493_v3 }
 0x460   :  { %v14514_v16 = vld [vmem:[#allocation26 + $0xcc0] sm:$0xf0] }
 0x461   :  { %v17350_v50 = vld [vmem:[#allocation26 + $0x4] sm:$0xf]  ;;  %v14517_v26 = vor.u32 %v17750_v15, %v14514_v16  ;;  %9964 = vmatpush.bf16.msrb.mxu1 %v14005_v47 }
 0x462   :  { %v12914_v19 = vld [vmem:[#allocation26 + $0x40] sm:$0xf0] }
 0x463   :  { %v17478_v23 = vld [vmem:[#allocation26 + $0x404] sm:$0xf]  ;;  %v12917_v29 = vor.u32 %v17350_v50, %v12914_v19  ;;  %9977 = vmatpush.bf16.msrb.mxu2 %v14517_v26 }
 0x464   :  { %v13426_v45 = vld [vmem:[#allocation26 + $0x440] sm:$0xf0] }
 0x465   :  { %v17606_v27 = vld [vmem:[#allocation26 + $0x804] sm:$0xf]  ;;  %v13429_v38 = vor.u32 %v17478_v23, %v13426_v45  ;;  %9939 = vmatpush.bf16.msra.mxu3 %v12917_v29 }
 0x466   :  { %v13938_v4 = vld [vmem:[#allocation26 + $0x840] sm:$0xf0] }
 0x467   :  { %v17734_v5 = vld [vmem:[#allocation26 + $0xc04] sm:$0xf]  ;;  %v13941_v40 = vor.u32 %v17606_v27, %v13938_v4  ;;  %9952 = vmatpush.bf16.msrb.mxu0 %v13429_v38 }
 0x468   :  { %v14450_v17 = vld [vmem:[#allocation26 + $0xc40] sm:$0xf0]  ;;  %9940 = vmatmul.bf16.vlgmr.msra.gmra.mxu3 %v19534_v57 }
 0x469   :  { %v17974_v2 = vld [vmem:[#allocation26 + $0x1384] sm:$0xf]  ;;  %v14453_v48 = vor.u32 %v17734_v5, %v14450_v17  ;;  %9965 = vmatpush.bf16.msrb.mxu1 %v13941_v40 }
 0x46a   :  { %v15410_v33 = vld [vmem:[#allocation26 + $0x13c0] sm:$0xf0]  ;;  %9953 = vmatmul.bf16.vlgmr.msrb.gmra.mxu0 %v19536_v52 }
 0x46b   :  { %v18102_v24 = vld [vmem:[#allocation26 + $0x1784] sm:$0xf]  ;;  %v15413_v25 = vor.u32 %v17974_v2, %v15410_v33  ;;  %9978 = vmatpush.bf16.msrb.mxu2 %v14453_v48 }
 0x46c   :  { %v15922_v34 = vld [vmem:[#allocation26 + $0x17c0] sm:$0xf0]  ;;  %9966 = vmatmul.bf16.vlgmr.msrb.gmra.mxu1 %v19538_v13 }
 0x46d   :  { %v18230_v0 = vld [vmem:[#allocation26 + $0x1b84] sm:$0xf]  ;;  %v15925_v53 = vor.u32 %v18102_v24, %v15922_v34  ;;  %9984 = vmatpush.bf16.msrb.mxu3 %v15413_v25 }
 0x46e   :  { %v16434_v7 = vld [vmem:[#allocation26 + $0x1bc0] sm:$0xf0]  ;;  %9979 = vmatmul.bf16.vlgmr.msrb.gmra.mxu2 %v19540_v9 }
 0x46f   :  { %v18358_v39 = vld [vmem:[#allocation26 + $0x1f84] sm:$0xf]  ;;  %v16437_v56 = vor.u32 %v18230_v0, %v16434_v7  ;;  %9997 = vmatpush.bf16.msra.mxu0 %v15925_v53 }
 0x470   :  { %v16946_v42 = vld [vmem:[#allocation26 + $0x1fc0] sm:$0xf0] }
 0x471   :  { %v17958_v54 = vld [vmem:[#allocation26 + $0x1304] sm:$0xf]  ;;  %v16949_v18 = vor.u32 %v18358_v39, %v16946_v42  ;;  %10010 = vmatpush.bf16.msra.mxu1 %v16437_v56 }
 0x472   :  { %v15346_v41 = vld [vmem:[#allocation26 + $0x1340] sm:$0xf0] }
 0x473   :  { %v18086_v11 = vld [vmem:[#allocation26 + $0x1704] sm:$0xf]  ;;  %v15349_v32 = vor.u32 %v17958_v54, %v15346_v41  ;;  %10023 = vmatpush.bf16.msra.mxu2 %v16949_v18 }
 0x474   :  { %v15858_v46 = vld [vmem:[#allocation26 + $0x1740] sm:$0xf0] }
 0x475   :  { %v18214_v60 = vld [vmem:[#allocation26 + $0x1b04] sm:$0xf]  ;;  %v15861_v43 = vor.u32 %v18086_v11, %v15858_v46  ;;  %9985 = vmatpush.bf16.msrb.mxu3 %v15349_v32 }
 0x476   :  { %v16370_v37 = vld [vmem:[#allocation26 + $0x1b40] sm:$0xf0] }
 0x477   :  { %v18342_v35 = vld [vmem:[#allocation26 + $0x1f04] sm:$0xf]  ;;  %v16373_v31 = vor.u32 %v18214_v60, %v16370_v37  ;;  %9998 = vmatpush.bf16.msra.mxu0 %v15861_v43 }
 0x478   :  { %v16882_v36 = vld [vmem:[#allocation26 + $0x1f40] sm:$0xf0] }
 0x479   :  { %v17942_v14 = vld [vmem:[#allocation26 + $0x1284] sm:$0xf]  ;;  %v16885_v62 = vor.u32 %v18342_v35, %v16882_v36  ;;  %10011 = vmatpush.bf16.msra.mxu1 %v16373_v31 }
 0x47a   :  { %v15282_v44 = vld [vmem:[#allocation26 + $0x12c0] sm:$0xf0] }
 0x47b   :  { %v18070_v51 = vld [vmem:[#allocation26 + $0x1684] sm:$0xf]  ;;  %v15285_v30 = vor.u32 %v17942_v14, %v15282_v44  ;;  %10024 = vmatpush.bf16.msra.mxu2 %v16885_v62 }
 0x47c   :  { %v15794_v6 = vld [vmem:[#allocation26 + $0x16c0] sm:$0xf0] }
 0x47d   :  { %v18198_v59 = vld [vmem:[#allocation26 + $0x1a84] sm:$0xf]  ;;  %v15797_v49 = vor.u32 %v18070_v51, %v15794_v6  ;;  %9986 = vmatpush.bf16.msrb.mxu3 %v15285_v30 }
 0x47e   :  { %v16306_v28 = vld [vmem:[#allocation26 + $0x1ac0] sm:$0xf0] }
 0x47f   :  { %v18326_v10 = vld [vmem:[#allocation26 + $0x1e84] sm:$0xf]  ;;  %v16309_v63 = vor.u32 %v18198_v59, %v16306_v28  ;;  %9999 = vmatpush.bf16.msra.mxu0 %v15797_v49 }
 0x480   :  { %v16818_v8 = vld [vmem:[#allocation26 + $0x1ec0] sm:$0xf0] }
 0x481   :  { %v17926_v22 = vld [vmem:[#allocation26 + $0x1204] sm:$0xf]  ;;  %v16821_v21 = vor.u32 %v18326_v10, %v16818_v8  ;;  %10012 = vmatpush.bf16.msra.mxu1 %v16309_v63  ;;  %v13368_v63 = vld [vmem:[#allocation26 + $0x388] sm:$0xf] }
 0x482   :  { %v15218_v55 = vld [vmem:[#allocation26 + $0x1240] sm:$0xf0] }
 0x483   :  { %v18054_v15 = vld [vmem:[#allocation26 + $0x1604] sm:$0xf]  ;;  %v15221_v23 = vor.u32 %v17926_v22, %v15218_v55  ;;  %10025 = vmatpush.bf16.msra.mxu2 %v16821_v21  ;;  %v17471_v21 = vld [vmem:[#allocation26 + $0x3c4] sm:$0xf0] }
 0x484   :  { %v15730_v16 = vld [vmem:[#allocation26 + $0x1640] sm:$0xf0] }
 0x485   :  { %v18182_v50 = vld [vmem:[#allocation26 + $0x1a04] sm:$0xf]  ;;  %v15733_v45 = vor.u32 %v18054_v15, %v15730_v16  ;;  %9987 = vmatpush.bf16.msrb.mxu3 %v15221_v23  ;;  %v13880_v15 = vld [vmem:[#allocation26 + $0x788] sm:$0xf] }
 0x486   :  { %v16242_v61 = vld [vmem:[#allocation26 + $0x1a40] sm:$0xf0]  ;;  %v17599_v16 = vld [vmem:[#allocation26 + $0x7c4] sm:$0xf0] }
 0x487   :  { %v18310_v3 = vld [vmem:[#allocation26 + $0x1e04] sm:$0xf]  ;;  %v16245_v27 = vor.u32 %v18182_v50, %v16242_v61  ;;  %10000 = vmatpush.bf16.msra.mxu0 %v15733_v45  ;;  %v14392_v50 = vld [vmem:[#allocation26 + $0xb88] sm:$0xf] }
 0x488   :  { %v16754_v19 = vld [vmem:[#allocation26 + $0x1e40] sm:$0xf0]  ;;  %v14904_v23 = vld [vmem:[#allocation26 + $0xf88] sm:$0xf] }
 0x489   :  { %v17910_v47 = vld [vmem:[#allocation26 + $0x1184] sm:$0xf]  ;;  %v16757_v4 = vor.u32 %v18310_v3, %v16754_v19  ;;  %10013 = vmatpush.bf16.msra.mxu1 %v16245_v27  ;;  %v17727_v19 = vld [vmem:[#allocation26 + $0xbc4] sm:$0xf0]  ;;  %v13369_v27 = vor.u32 %v17471_v21, %v13368_v63 }
 0x48a   :  { %v15154_v26 = vld [vmem:[#allocation26 + $0x11c0] sm:$0xf0]  ;;  %v17855_v45 = vld [vmem:[#allocation26 + $0xfc4] sm:$0xf0] }
 0x48b   :  { %v18038_v5 = vld [vmem:[#allocation26 + $0x1584] sm:$0xf]  ;;  %v15157_v0 = vor.u32 %v17910_v47, %v15154_v26  ;;  %10026 = vmatpush.bf16.msra.mxu2 %v16757_v4  ;;  %v13881_v4 = vor.u32 %v17599_v16, %v13880_v15  ;;  %v14136_v63 = vld [vmem:[#allocation26 + $0x988] sm:$0xf] }
 0x48c   :  { %v15666_v17 = vld [vmem:[#allocation26 + $0x15c0] sm:$0xf0]  ;;  %v17663_v21 = vld [vmem:[#allocation26 + $0x9c4] sm:$0xf0] }
 0x48d   :  { %v18166_v2 = vld [vmem:[#allocation26 + $0x1984] sm:$0xf]  ;;  %v15669_v29 = vor.u32 %v18038_v5, %v15666_v17  ;;  %9988 = vmatpush.bf16.msrb.mxu3 %v15157_v0  ;;  %v13304_v5 = vld [vmem:[#allocation26 + $0x308] sm:$0xf] }
 0x48e   :  { %v16178_v33 = vld [vmem:[#allocation26 + $0x19c0] sm:$0xf0]  ;;  %v17455_v17 = vld [vmem:[#allocation26 + $0x344] sm:$0xf0] }
 0x48f   :  { %v18294_v24 = vld [vmem:[#allocation26 + $0x1d84] sm:$0xf]  ;;  %v16181_v39 = vor.u32 %v18166_v2, %v16178_v33  ;;  %10001 = vmatpush.bf16.msra.mxu0 %v15669_v29  ;;  %v14393_v2 = vor.u32 %v17727_v19, %v14392_v50  ;;  %v14905_v33 = vor.u32 %v17855_v45, %v14904_v23  ;;  %v14328_v0 = vld [vmem:[#allocation26 + $0xb08] sm:$0xf]  ;;  %v14137_v23 = vor.u32 %v17663_v21, %v14136_v63 }
 0x490   :  { %v16690_v34 = vld [vmem:[#allocation26 + $0x1dc0] sm:$0xf0]  ;;  %v17711_v29 = vld [vmem:[#allocation26 + $0xb44] sm:$0xf0] }
 0x491   :  { %v17894_v38 = vld [vmem:[#allocation26 + $0x1104] sm:$0xf]  ;;  %v16693_v42 = vor.u32 %v18294_v24, %v16690_v34  ;;  %10014 = vmatpush.bf16.msra.mxu1 %v16181_v39  ;;  %v13816_v24 = vld [vmem:[#allocation26 + $0x708] sm:$0xf]  ;;  %v13305_v39 = vor.u32 %v17455_v17, %v13304_v5 }
 0x492   :  { %v15090_v7 = vld [vmem:[#allocation26 + $0x1140] sm:$0xf0]  ;;  %v17583_v34 = vld [vmem:[#allocation26 + $0x744] sm:$0xf0] }
 0x493   :  { %v18022_v40 = vld [vmem:[#allocation26 + $0x1504] sm:$0xf]  ;;  %v15093_v56 = vor.u32 %v17894_v38, %v15090_v7  ;;  %10027 = vmatpush.bf16.msra.mxu2 %v16693_v42  ;;  %v14840_v38 = vld [vmem:[#allocation26 + $0xf08] sm:$0xf]  ;;  %v13817_v42 = vor.u32 %v17583_v34, %v13816_v24 }
 0x494   :  { %v15602_v48 = vld [vmem:[#allocation26 + $0x1540] sm:$0xf0]  ;;  %v17839_v7 = vld [vmem:[#allocation26 + $0xf44] sm:$0xf0] }
 0x495   :  { %v18150_v25 = vld [vmem:[#allocation26 + $0x1904] sm:$0xf]  ;;  %v15605_v18 = vor.u32 %v18022_v40, %v15602_v48  ;;  %9989 = vmatpush.bf16.msrb.mxu3 %v15093_v56  ;;  %v13240_v40 = vld [vmem:[#allocation26 + $0x288] sm:$0xf] }
 0x496   :  { %v16114_v53 = vld [vmem:[#allocation26 + $0x1940] sm:$0xf0]  ;;  %v17439_v48 = vld [vmem:[#allocation26 + $0x2c4] sm:$0xf0] }
 0x497   :  { %v18278_v54 = vld [vmem:[#allocation26 + $0x1d04] sm:$0xf]  ;;  %v16117_v60 = vor.u32 %v18150_v25, %v16114_v53  ;;  %10002 = vmatpush.bf16.msra.mxu0 %v15605_v18  ;;  %v14329_v25 = vor.u32 %v17711_v29, %v14328_v0  ;;  %v14841_v53 = vor.u32 %v17839_v7, %v14840_v38  ;;  %v14264_v56 = vld [vmem:[#allocation26 + $0xa88] sm:$0xf] }
 0x498   :  { %v16626_v41 = vld [vmem:[#allocation26 + $0x1d40] sm:$0xf0]  ;;  %v17695_v18 = vld [vmem:[#allocation26 + $0xac4] sm:$0xf0] }
 0x499   :  { %v17878_v11 = vld [vmem:[#allocation26 + $0x1084] sm:$0xf]  ;;  %v16629_v37 = vor.u32 %v18278_v54, %v16626_v41  ;;  %10015 = vmatpush.bf16.msra.mxu1 %v16117_v60  ;;  %v13752_v54 = vld [vmem:[#allocation26 + $0x688] sm:$0xf]  ;;  %v13241_v60 = vor.u32 %v17439_v48, %v13240_v40 }
 0x49a   :  { %v15026_v46 = vld [vmem:[#allocation26 + $0x10c0] sm:$0xf0]  ;;  %v17567_v41 = vld [vmem:[#allocation26 + $0x6c4] sm:$0xf0] }
 0x49b   :  { %v18006_v35 = vld [vmem:[#allocation26 + $0x1484] sm:$0xf]  ;;  %v15029_v62 = vor.u32 %v17878_v11, %v15026_v46  ;;  %10028 = vmatpush.bf16.msra.mxu2 %v16629_v37  ;;  %v14776_v11 = vld [vmem:[#allocation26 + $0xe88] sm:$0xf]  ;;  %v13753_v37 = vor.u32 %v17567_v41, %v13752_v54 }
 0x49c   :  { %v15538_v36 = vld [vmem:[#allocation26 + $0x14c0] sm:$0xf0]  ;;  %v17823_v46 = vld [vmem:[#allocation26 + $0xec4] sm:$0xf0] }
 0x49d   :  { %v18134_v32 = vld [vmem:[#allocation26 + $0x1884] sm:$0xf]  ;;  %v15541_v51 = vor.u32 %v18006_v35, %v15538_v36  ;;  %9990 = vmatpush.bf16.msrb.mxu3 %v15029_v62  ;;  %v13176_v35 = vld [vmem:[#allocation26 + $0x208] sm:$0xf] }
 0x49e   :  { %v16050_v43 = vld [vmem:[#allocation26 + $0x18c0] sm:$0xf0]  ;;  %v17423_v36 = vld [vmem:[#allocation26 + $0x244] sm:$0xf0] }
 0x49f   :  { %v18262_v14 = vld [vmem:[#allocation26 + $0x1c84] sm:$0xf]  ;;  %v16053_v10 = vor.u32 %v18134_v32, %v16050_v43  ;;  %10003 = vmatpush.bf16.msra.mxu0 %v15541_v51  ;;  %v14265_v32 = vor.u32 %v17695_v18, %v14264_v56  ;;  %v14777_v43 = vor.u32 %v17823_v46, %v14776_v11  ;;  %v17679_v62 = vld [vmem:[#allocation26 + $0xa44] sm:$0xf0] }
 0x4a0   :  { %v16562_v44 = vld [vmem:[#allocation26 + $0x1cc0] sm:$0xf0]  ;;  %v14712_v51 = vld [vmem:[#allocation26 + $0xe08] sm:$0xf] }
 0x4a1   :  { %v17862_v31 = vld [vmem:[#allocation26 + $0x1004] sm:$0xf]  ;;  %v16565_v8 = vor.u32 %v18262_v14, %v16562_v44  ;;  %10016 = vmatpush.bf16.msra.mxu1 %v16053_v10  ;;  %v13688_v14 = vld [vmem:[#allocation26 + $0x608] sm:$0xf] }
 0x4a2   :  { %v14962_v6 = vld [vmem:[#allocation26 + $0x1040] sm:$0xf0]  ;;  %v17551_v44 = vld [vmem:[#allocation26 + $0x644] sm:$0xf0] }
 0x4a3   :  { %v17990_v59 = vld [vmem:[#allocation26 + $0x1404] sm:$0xf]  ;;  %v14965_v61 = vor.u32 %v17862_v31, %v14962_v6  ;;  %10029 = vmatpush.bf16.msra.mxu2 %v16565_v8  ;;  %v14200_v31 = vld [vmem:[#allocation26 + $0xa08] sm:$0xf] }
 0x4a4   :  { %v15474_v28 = vld [vmem:[#allocation26 + $0x1440] sm:$0xf0]  ;;  %v17807_v6 = vld [vmem:[#allocation26 + $0xe44] sm:$0xf0] }
 0x4a5   :  { %v18118_v30 = vld [vmem:[#allocation26 + $0x1804] sm:$0xf]  ;;  %v15477_v3 = vor.u32 %v17990_v59, %v15474_v28  ;;  %9991 = vmatpush.bf16.msrb.mxu3 %v14965_v61  ;;  %v13177_v59 = vor.u32 %v17423_v36, %v13176_v35  ;;  %v13689_v28 = vor.u32 %v17551_v44, %v13688_v14  ;;  %v13112_v10 = vld [vmem:[#allocation26 + $0x188] sm:$0xf] }
 0x4a6   :  { %v15986_v49 = vld [vmem:[#allocation26 + $0x1840] sm:$0xf0]  ;;  %v17407_v8 = vld [vmem:[#allocation26 + $0x1c4] sm:$0xf0] }
 0x4a7   :  { %v18246_v22 = vld [vmem:[#allocation26 + $0x1c04] sm:$0xf]  ;;  %v15989_v47 = vor.u32 %v18118_v30, %v15986_v49  ;;  %10004 = vmatpush.bf16.msra.mxu0 %v15477_v3  ;;  %v14201_v30 = vor.u32 %v17679_v62, %v14200_v31  ;;  %v14713_v49 = vor.u32 %v17807_v6, %v14712_v51  ;;  %v14648_v15 = vld [vmem:[#allocation26 + $0xd88] sm:$0xf]  ;;  %v13113_v50 = vor.u32 %v17407_v8, %v13112_v10 }
 0x4a8   :  { %v16498_v55 = vld [vmem:[#allocation26 + $0x1c40] sm:$0xf0]  ;;  %9992 = vmatmul.bf16.vlgmr.msrb.gmra.mxu3 %v19560_v12  ;;  %v17791_v16 = vld [vmem:[#allocation26 + $0xdc4] sm:$0xf0] }
 0x4a9   :  { %v16501_v26 = vor.u32 %v18246_v22, %v16498_v55  ;;  %10017 = vmatpush.bf16.msra.mxu1 %v15989_v47  ;;  %10036 = vmatpush.bf16.msra.mxu3 %v13369_v27  ;;  %v13624_v22 = vld [vmem:[#allocation26 + $0x588] sm:$0xf]  ;;  %v14649_v45 = vor.u32 %v17791_v16, %v14648_v15 }
 0x4aa   :  { %10005 = vmatmul.bf16.vlgmr.msra.gmra.mxu0 %v19562_v1  ;;  %v17535_v55 = vld [vmem:[#allocation26 + $0x5c4] sm:$0xf0] }
 0x4ab   :  { %10030 = vmatpush.bf16.msra.mxu2 %v16501_v26  ;;  %10049 = vmatpush.bf16.msrb.mxu0 %v13881_v4  ;;  %v13625_v61 = vor.u32 %v17535_v55, %v13624_v22  ;;  %v13048_v3 = vld [vmem:[#allocation26 + $0x108] sm:$0xf] }
 0x4ac   :  { %10018 = vmatmul.bf16.vlgmr.msra.gmra.mxu1 %v19564_v58  ;;  %v17391_v19 = vld [vmem:[#allocation26 + $0x144] sm:$0xf0] }
 0x4ad   :  { %10062 = vmatpush.bf16.msrb.mxu1 %v14393_v2  ;;  %10037 = vmatpush.bf16.msra.mxu3 %v13305_v39  ;;  %v13560_v47 = vld [vmem:[#allocation26 + $0x508] sm:$0xf]  ;;  %v13049_v2 = vor.u32 %v17391_v19, %v13048_v3 }
 0x4ae   :  { %10031 = vmatmul.bf16.vlgmr.msra.gmra.mxu2 %v19566_v20  ;;  %v17519_v26 = vld [vmem:[#allocation26 + $0x544] sm:$0xf0] }
 0x4af   :  { %10075 = vmatpush.bf16.msrb.mxu2 %v14905_v33  ;;  %10050 = vmatpush.bf16.msrb.mxu0 %v13817_v42  ;;  %v14072_v27 = vld [vmem:[#allocation26 + $0x908] sm:$0xf]  ;;  %v13561_v33 = vor.u32 %v17519_v26, %v13560_v47 }
 0x4b0   :  { %v17647_v4 = vld [vmem:[#allocation26 + $0x944] sm:$0xf0] }
 0x4b1   :  { %10063 = vmatpush.bf16.msrb.mxu1 %v14329_v25  ;;  %10038 = vmatpush.bf16.msra.mxu3 %v13241_v60  ;;  %v14584_v5 = vld [vmem:[#allocation26 + $0xd08] sm:$0xf]  ;;  %v14073_v0 = vor.u32 %v17647_v4, %v14072_v27 }
 0x4b2   :  { %v17775_v17 = vld [vmem:[#allocation26 + $0xd44] sm:$0xf0] }
 0x4b3   :  { %10076 = vmatpush.bf16.msrb.mxu2 %v14841_v53  ;;  %10051 = vmatpush.bf16.msrb.mxu0 %v13753_v37  ;;  %v12984_v24 = vld [vmem:[#allocation26 + $0x88] sm:$0xf]  ;;  %v14585_v29 = vor.u32 %v17775_v17, %v14584_v5 }
 0x4b4   :  { %v17375_v34 = vld [vmem:[#allocation26 + $0xc4] sm:$0xf0] }
 0x4b5   :  { %10064 = vmatpush.bf16.msrb.mxu1 %v14265_v32  ;;  %10039 = vmatpush.bf16.msra.mxu3 %v13177_v59  ;;  %v13496_v38 = vld [vmem:[#allocation26 + $0x488] sm:$0xf]  ;;  %v12985_v53 = vor.u32 %v17375_v34, %v12984_v24 }
 0x4b6   :  { %v17503_v7 = vld [vmem:[#allocation26 + $0x4c4] sm:$0xf0] }
 0x4b7   :  { %10077 = vmatpush.bf16.msrb.mxu2 %v14777_v43  ;;  %10052 = vmatpush.bf16.msrb.mxu0 %v13689_v28  ;;  %v14008_v39 = vld [vmem:[#allocation26 + $0x888] sm:$0xf]  ;;  %v13497_v54 = vor.u32 %v17503_v7, %v13496_v38 }
 0x4b8   :  { %v17631_v42 = vld [vmem:[#allocation26 + $0x8c4] sm:$0xf0] }
 0x4b9   :  { %10065 = vmatpush.bf16.msrb.mxu1 %v14201_v30  ;;  %10040 = vmatpush.bf16.msra.mxu3 %v13113_v50  ;;  %v14520_v40 = vld [vmem:[#allocation26 + $0xc88] sm:$0xf]  ;;  %v14009_v11 = vor.u32 %v17631_v42, %v14008_v39 }
 0x4ba   :  { %v17759_v48 = vld [vmem:[#allocation26 + $0xcc4] sm:$0xf0] }
 0x4bb   :  { %10078 = vmatpush.bf16.msrb.mxu2 %v14713_v49  ;;  %10053 = vmatpush.bf16.msrb.mxu0 %v13625_v61  ;;  %v12920_v25 = vld [vmem:[#allocation26 + $0x8] sm:$0xf]  ;;  %v14521_v46 = vor.u32 %v17759_v48, %v14520_v40 }
 0x4bc   :  { %v17359_v41 = vld [vmem:[#allocation26 + $0x44] sm:$0xf0] }
 0x4bd   :  { %10066 = vmatpush.bf16.msrb.mxu1 %v14137_v23  ;;  %10041 = vmatpush.bf16.msra.mxu3 %v13049_v2  ;;  %v13432_v56 = vld [vmem:[#allocation26 + $0x408] sm:$0xf]  ;;  %v12921_v62 = vor.u32 %v17359_v41, %v12920_v25 }
 0x4be   :  { %v17487_v18 = vld [vmem:[#allocation26 + $0x444] sm:$0xf0] }
 0x4bf   :  { %10079 = vmatpush.bf16.msrb.mxu2 %v14649_v45  ;;  %10054 = vmatpush.bf16.msrb.mxu0 %v13561_v33  ;;  %v13944_v60 = vld [vmem:[#allocation26 + $0x808] sm:$0xf]  ;;  %v13433_v51 = vor.u32 %v17487_v18, %v13432_v56 }
 0x4c0   :  { %v17615_v37 = vld [vmem:[#allocation26 + $0x844] sm:$0xf0] }
 0x4c1   :  { %10067 = vmatpush.bf16.msrb.mxu1 %v14073_v0  ;;  %v14456_v35 = vld [vmem:[#allocation26 + $0xc08] sm:$0xf]  ;;  %10042 = vmatpush.bf16.msra.mxu3 %v12985_v53  ;;  %v13945_v10 = vor.u32 %v17615_v37, %v13944_v60 }
 0x4c2   :  { %v17743_v36 = vld [vmem:[#allocation26 + $0xc44] sm:$0xf0] }
 0x4c3   :  { %10080 = vmatpush.bf16.msrb.mxu2 %v14585_v29  ;;  %v15416_v32 = vld [vmem:[#allocation26 + $0x1388] sm:$0xf]  ;;  %10055 = vmatpush.bf16.msrb.mxu0 %v13497_v54  ;;  %v14457_v8 = vor.u32 %v17743_v36, %v14456_v35 }
 0x4c4   :  { %v17983_v43 = vld [vmem:[#allocation26 + $0x13c4] sm:$0xf0] }
 0x4c5   :  { %v15928_v14 = vld [vmem:[#allocation26 + $0x1788] sm:$0xf]  ;;  %10068 = vmatpush.bf16.msrb.mxu1 %v14009_v11  ;;  %v15417_v30 = vor.u32 %v17983_v43, %v15416_v32  ;;  %10043 = vmatpush.bf16.msra.mxu3 %v12921_v62 }
 0x4c6   :  { %v18111_v44 = vld [vmem:[#allocation26 + $0x17c4] sm:$0xf0] }
 0x4c7   :  { %v16440_v31 = vld [vmem:[#allocation26 + $0x1b88] sm:$0xf]  ;;  %10081 = vmatpush.bf16.msrb.mxu2 %v14521_v46  ;;  %v15929_v49 = vor.u32 %v18111_v44, %v15928_v14  ;;  %10056 = vmatpush.bf16.msrb.mxu0 %v13433_v51 }
 0x4c8   :  { %v18239_v6 = vld [vmem:[#allocation26 + $0x1bc4] sm:$0xf0]  ;;  %10044 = vmatmul.bf16.vlgmr.msra.gmra.mxu3 %v19534_v57 }
 0x4c9   :  { %v16952_v59 = vld [vmem:[#allocation26 + $0x1f88] sm:$0xf]  ;;  %v16441_v63 = vor.u32 %v18239_v6, %v16440_v31  ;;  %10069 = vmatpush.bf16.msrb.mxu1 %v13945_v10  ;;  %10088 = vmatpush.bf16.msrb.mxu3 %v15417_v30 }
 0x4ca   :  { %v18367_v28 = vld [vmem:[#allocation26 + $0x1fc4] sm:$0xf0]  ;;  %10057 = vmatmul.bf16.vlgmr.msrb.gmra.mxu0 %v19536_v52 }
 0x4cb   :  { %v15352_v22 = vld [vmem:[#allocation26 + $0x1308] sm:$0xf]  ;;  %v16953_v21 = vor.u32 %v18367_v28, %v16952_v59  ;;  %10082 = vmatpush.bf16.msrb.mxu2 %v14457_v8  ;;  %10101 = vmatpush.bf16.msra.mxu0 %v15929_v49 }
 0x4cc   :  { %v17967_v55 = vld [vmem:[#allocation26 + $0x1344] sm:$0xf0]  ;;  %10070 = vmatmul.bf16.vlgmr.msrb.gmra.mxu1 %v19538_v13 }
 0x4cd   :  { %v15864_v15 = vld [vmem:[#allocation26 + $0x1708] sm:$0xf]  ;;  %v15353_v23 = vor.u32 %v17967_v55, %v15352_v22  ;;  %10114 = vmatpush.bf16.msra.mxu1 %v16441_v63 }
 0x4ce   :  { %v18095_v16 = vld [vmem:[#allocation26 + $0x1744] sm:$0xf0]  ;;  %10083 = vmatmul.bf16.vlgmr.msrb.gmra.mxu2 %v19540_v9 }
 0x4cf   :  { %v16376_v50 = vld [vmem:[#allocation26 + $0x1b08] sm:$0xf]  ;;  %v15865_v45 = vor.u32 %v18095_v16, %v15864_v15  ;;  %10127 = vmatpush.bf16.msra.mxu2 %v16953_v21  ;;  %10089 = vmatpush.bf16.msrb.mxu3 %v15353_v23 }
 0x4d0   :  { %v18223_v61 = vld [vmem:[#allocation26 + $0x1b44] sm:$0xf0] }
 0x4d1   :  { %v16888_v3 = vld [vmem:[#allocation26 + $0x1f08] sm:$0xf]  ;;  %v16377_v27 = vor.u32 %v18223_v61, %v16376_v50  ;;  %10102 = vmatpush.bf16.msra.mxu0 %v15865_v45 }
 0x4d2   :  { %v18351_v19 = vld [vmem:[#allocation26 + $0x1f44] sm:$0xf0] }
 0x4d3   :  { %v15288_v47 = vld [vmem:[#allocation26 + $0x1288] sm:$0xf]  ;;  %v16889_v4 = vor.u32 %v18351_v19, %v16888_v3  ;;  %10115 = vmatpush.bf16.msra.mxu1 %v16377_v27 }
 0x4d4   :  { %v17951_v26 = vld [vmem:[#allocation26 + $0x12c4] sm:$0xf0] }
 0x4d5   :  { %v15800_v5 = vld [vmem:[#allocation26 + $0x1688] sm:$0xf]  ;;  %v15289_v0 = vor.u32 %v17951_v26, %v15288_v47  ;;  %10128 = vmatpush.bf16.msra.mxu2 %v16889_v4 }
 0x4d6   :  { %v18079_v17 = vld [vmem:[#allocation26 + $0x16c4] sm:$0xf0] }
 0x4d7   :  { %v16312_v2 = vld [vmem:[#allocation26 + $0x1a88] sm:$0xf]  ;;  %v15801_v29 = vor.u32 %v18079_v17, %v15800_v5  ;;  %10090 = vmatpush.bf16.msrb.mxu3 %v15289_v0 }
 0x4d8   :  { %v18207_v33 = vld [vmem:[#allocation26 + $0x1ac4] sm:$0xf0] }
 0x4d9   :  { %v16824_v24 = vld [vmem:[#allocation26 + $0x1e88] sm:$0xf]  ;;  %v16313_v39 = vor.u32 %v18207_v33, %v16312_v2  ;;  %10103 = vmatpush.bf16.msra.mxu0 %v15801_v29 }
 0x4da   :  { %v18335_v34 = vld [vmem:[#allocation26 + $0x1ec4] sm:$0xf0] }
 0x4db   :  { %v15224_v38 = vld [vmem:[#allocation26 + $0x1208] sm:$0xf]  ;;  %v16825_v42 = vor.u32 %v18335_v34, %v16824_v24  ;;  %10116 = vmatpush.bf16.msra.mxu1 %v16313_v39  ;;  %v17463_v39 = vld [vmem:[#allocation26 + $0x38c] sm:$0xf] }
 0x4dc   :  { %v17935_v7 = vld [vmem:[#allocation26 + $0x1244] sm:$0xf0] }
 0x4dd   :  { %v15736_v40 = vld [vmem:[#allocation26 + $0x1608] sm:$0xf]  ;;  %v15225_v56 = vor.u32 %v17935_v7, %v15224_v38  ;;  %10129 = vmatpush.bf16.msra.mxu2 %v16825_v42  ;;  %v13370_v42 = vld [vmem:[#allocation26 + $0x3c8] sm:$0xf0] }
 0x4de   :  { %v18063_v48 = vld [vmem:[#allocation26 + $0x1644] sm:$0xf0] }
 0x4df   :  { %v16248_v25 = vld [vmem:[#allocation26 + $0x1a08] sm:$0xf]  ;;  %v15737_v18 = vor.u32 %v18063_v48, %v15736_v40  ;;  %10091 = vmatpush.bf16.msrb.mxu3 %v15225_v56  ;;  %v17591_v40 = vld [vmem:[#allocation26 + $0x78c] sm:$0xf] }
 0x4e0   :  { %v18191_v53 = vld [vmem:[#allocation26 + $0x1a44] sm:$0xf0]  ;;  %v13882_v48 = vld [vmem:[#allocation26 + $0x7c8] sm:$0xf0] }
 0x4e1   :  { %v16760_v54 = vld [vmem:[#allocation26 + $0x1e08] sm:$0xf]  ;;  %v16249_v60 = vor.u32 %v18191_v53, %v16248_v25  ;;  %10104 = vmatpush.bf16.msra.mxu0 %v15737_v18  ;;  %v17719_v25 = vld [vmem:[#allocation26 + $0xb8c] sm:$0xf] }
 0x4e2   :  { %v18319_v41 = vld [vmem:[#allocation26 + $0x1e44] sm:$0xf0]  ;;  %v17847_v56 = vld [vmem:[#allocation26 + $0xf8c] sm:$0xf] }
 0x4e3   :  { %v15160_v11 = vld [vmem:[#allocation26 + $0x1188] sm:$0xf]  ;;  %v16761_v37 = vor.u32 %v18319_v41, %v16760_v54  ;;  %10117 = vmatpush.bf16.msra.mxu1 %v16249_v60  ;;  %v14394_v41 = vld [vmem:[#allocation26 + $0xbc8] sm:$0xf0]  ;;  %v13373_v60 = vor.u32 %v17463_v39, %v13370_v42 }
 0x4e4   :  { %v17919_v46 = vld [vmem:[#allocation26 + $0x11c4] sm:$0xf0]  ;;  %v14906_v18 = vld [vmem:[#allocation26 + $0xfc8] sm:$0xf0] }
 0x4e5   :  { %v15672_v35 = vld [vmem:[#allocation26 + $0x1588] sm:$0xf]  ;;  %v15161_v31 = vor.u32 %v17919_v46, %v15160_v11  ;;  %10130 = vmatpush.bf16.msra.mxu2 %v16761_v37  ;;  %v13885_v37 = vor.u32 %v17591_v40, %v13882_v48  ;;  %v9837_v40 = vpop.f32.mrf.mxu3  ;;  %v17527_v48 = vld [vmem:[#allocation26 + $0x58c] sm:$0xf] }
 0x4e6   :  { %v18047_v36 = vld [vmem:[#allocation26 + $0x15c4] sm:$0xf0] }
 0x4e7   :  { %v16184_v32 = vld [vmem:[#allocation26 + $0x1988] sm:$0xf]  ;;  %v15673_v62 = vor.u32 %v18047_v36, %v15672_v35  ;;  %10092 = vmatpush.bf16.msrb.mxu3 %v15161_v31  ;;  %v17447_v35 = vld [vmem:[#allocation26 + $0x30c] sm:$0xf] }
 0x4e8   :  { %v18175_v43 = vld [vmem:[#allocation26 + $0x19c4] sm:$0xf0]  ;;  %v13306_v36 = vld [vmem:[#allocation26 + $0x348] sm:$0xf0] }
 0x4e9   :  { %v16696_v14 = vld [vmem:[#allocation26 + $0x1d88] sm:$0xf]  ;;  %v16185_v59 = vor.u32 %v18175_v43, %v16184_v32  ;;  %10105 = vmatpush.bf16.msra.mxu0 %v15673_v62  ;;  %v14397_v32 = vor.u32 %v17719_v25, %v14394_v41  ;;  %v14909_v43 = vor.u32 %v17847_v56, %v14906_v18  ;;  %v17703_v31 = vld [vmem:[#allocation26 + $0xb0c] sm:$0xf] }
 0x4ea   :  { %v18303_v44 = vld [vmem:[#allocation26 + $0x1dc4] sm:$0xf0]  ;;  %v14330_v62 = vld [vmem:[#allocation26 + $0xb48] sm:$0xf0] }
 0x4eb   :  { %v15096_v51 = vld [vmem:[#allocation26 + $0x1108] sm:$0xf]  ;;  %v16697_v28 = vor.u32 %v18303_v44, %v16696_v14  ;;  %10118 = vmatpush.bf16.msra.mxu1 %v16185_v59  ;;  %v17575_v14 = vld [vmem:[#allocation26 + $0x70c] sm:$0xf]  ;;  %v13309_v59 = vor.u32 %v17447_v35, %v13306_v36 }
 0x4ec   :  { %v17903_v6 = vld [vmem:[#allocation26 + $0x1144] sm:$0xf0]  ;;  %v13818_v44 = vld [vmem:[#allocation26 + $0x748] sm:$0xf0] }
 0x4ed   :  { %v15608_v10 = vld [vmem:[#allocation26 + $0x1508] sm:$0xf]  ;;  %v15097_v63 = vor.u32 %v17903_v6, %v15096_v51  ;;  %10131 = vmatpush.bf16.msra.mxu2 %v16697_v28  ;;  %v17831_v51 = vld [vmem:[#allocation26 + $0xf0c] sm:$0xf]  ;;  %v13821_v28 = vor.u32 %v17575_v14, %v13818_v44 }
 0x4ee   :  { %v18031_v8 = vld [vmem:[#allocation26 + $0x1544] sm:$0xf0]  ;;  %v14842_v6 = vld [vmem:[#allocation26 + $0xf48] sm:$0xf0] }
 0x4ef   :  { %v16120_v30 = vld [vmem:[#allocation26 + $0x1908] sm:$0xf]  ;;  %v15609_v21 = vor.u32 %v18031_v8, %v15608_v10  ;;  %10093 = vmatpush.bf16.msrb.mxu3 %v15097_v63  ;;  %v17431_v10 = vld [vmem:[#allocation26 + $0x28c] sm:$0xf] }
 0x4f0   :  { %v18159_v49 = vld [vmem:[#allocation26 + $0x1944] sm:$0xf0]  ;;  %v13242_v8 = vld [vmem:[#allocation26 + $0x2c8] sm:$0xf0] }
 0x4f1   :  { %v16632_v22 = vld [vmem:[#allocation26 + $0x1d08] sm:$0xf]  ;;  %v16121_v50 = vor.u32 %v18159_v49, %v16120_v30  ;;  %10106 = vmatpush.bf16.msra.mxu0 %v15609_v21  ;;  %v14333_v30 = vor.u32 %v17703_v31, %v14330_v62  ;;  %v14845_v49 = vor.u32 %v17831_v51, %v14842_v6  ;;  %v17687_v63 = vld [vmem:[#allocation26 + $0xa8c] sm:$0xf] }
 0x4f2   :  { %v18287_v55 = vld [vmem:[#allocation26 + $0x1d44] sm:$0xf0]  ;;  %v14266_v21 = vld [vmem:[#allocation26 + $0xac8] sm:$0xf0] }
 0x4f3   :  { %v15032_v15 = vld [vmem:[#allocation26 + $0x1088] sm:$0xf]  ;;  %v16633_v61 = vor.u32 %v18287_v55, %v16632_v22  ;;  %10119 = vmatpush.bf16.msra.mxu1 %v16121_v50  ;;  %v17559_v22 = vld [vmem:[#allocation26 + $0x68c] sm:$0xf]  ;;  %v9850_v50 = vpop.f32.mrf.mxu0 }
 0x4f4   :  { %v17887_v16 = vld [vmem:[#allocation26 + $0x10c4] sm:$0xf0]  ;;  %v13754_v55 = vld [vmem:[#allocation26 + $0x6c8] sm:$0xf0] }
 0x4f5   :  { %v15544_v3 = vld [vmem:[#allocation26 + $0x1488] sm:$0xf]  ;;  %v15033_v4 = vor.u32 %v17887_v16, %v15032_v15  ;;  %10132 = vmatpush.bf16.msra.mxu2 %v16633_v61  ;;  %v17815_v15 = vld [vmem:[#allocation26 + $0xe8c] sm:$0xf]  ;;  %v13245_v61 = vor.u32 %v17431_v10, %v13242_v8 }
 0x4f6   :  { %v18015_v19 = vld [vmem:[#allocation26 + $0x14c4] sm:$0xf0]  ;;  %v14778_v16 = vld [vmem:[#allocation26 + $0xec8] sm:$0xf0] }
 0x4f7   :  { %v16056_v23 = vld [vmem:[#allocation26 + $0x1888] sm:$0xf]  ;;  %v15545_v5 = vor.u32 %v18015_v19, %v15544_v3  ;;  %10094 = vmatpush.bf16.msrb.mxu3 %v15033_v4  ;;  %v13757_v3 = vor.u32 %v17559_v22, %v13754_v55  ;;  %v19588_v19 = vpop.f32.mrf.mxu1  ;;  %v13690_v4 = vld [vmem:[#allocation26 + $0x648] sm:$0xf0] }
 0x4f8   :  { %v18143_v45 = vld [vmem:[#allocation26 + $0x18c4] sm:$0xf0]  ;;  %v13626_v25 = vld [vmem:[#allocation26 + $0x5c8] sm:$0xf0] }
 0x4f9   :  { %v16568_v47 = vld [vmem:[#allocation26 + $0x1c88] sm:$0xf]  ;;  %v16057_v24 = vor.u32 %v18143_v45, %v16056_v23  ;;  %10107 = vmatpush.bf16.msra.mxu0 %v15545_v5  ;;  %v17415_v23 = vld [vmem:[#allocation26 + $0x20c] sm:$0xf] }
 0x4fa   :  { %v18271_v26 = vld [vmem:[#allocation26 + $0x1cc4] sm:$0xf0]  ;;  %v13178_v45 = vld [vmem:[#allocation26 + $0x248] sm:$0xf0] }
 0x4fb   :  { %v14968_v27 = vld [vmem:[#allocation26 + $0x1008] sm:$0xf]  ;;  %v16569_v34 = vor.u32 %v18271_v26, %v16568_v47  ;;  %10120 = vmatpush.bf16.msra.mxu1 %v16057_v24  ;;  %v17543_v47 = vld [vmem:[#allocation26 + $0x60c] sm:$0xf]  ;;  %v14269_v26 = vor.u32 %v17687_v63, %v14266_v21  ;;  %v9839_v63 = vpop.f32.mrf.mxu3 }
 0x4fc   :  { %v17871_v17 = vld [vmem:[#allocation26 + $0x1044] sm:$0xf0]  ;;  %v17671_v5 = vld [vmem:[#allocation26 + $0xa0c] sm:$0xf] }
 0x4fd   :  { %v15480_v2 = vld [vmem:[#allocation26 + $0x1408] sm:$0xf]  ;;  %v14969_v53 = vor.u32 %v17871_v17, %v14968_v27  ;;  %10133 = vmatpush.bf16.msra.mxu2 %v16569_v34  ;;  %v14781_v27 = vor.u32 %v17815_v15, %v14778_v16  ;;  %v19590_v17 = vld [vmem:[#allocation28] sm:$0xff]  ;;  %v14714_v24 = vld [vmem:[#allocation26 + $0xe48] sm:$0xf0]  ;;  %v13181_v34 = vor.u32 %v17415_v23, %v13178_v45 }
 0x4fe   :  { %v17999_v33 = vld [vmem:[#allocation26 + $0x1444] sm:$0xf0]  ;;  %v14138_v41 = vld [vmem:[#allocation26 + $0x9c8] sm:$0xf0] }
 0x4ff   :  { %v15992_v0 = vld [vmem:[#allocation26 + $0x1808] sm:$0xf]  ;;  %v15481_v54 = vor.u32 %v17999_v33, %v15480_v2  ;;  %10095 = vmatpush.bf16.msrb.mxu3 %v14969_v53  ;;  %v14202_v2 = vld [vmem:[#allocation26 + $0xa48] sm:$0xf0]  ;;  %v9865_v35 = vpop.f32.mrf.mxu1 }
 0x500   :  { %v18127_v29 = vld [vmem:[#allocation26 + $0x1844] sm:$0xf0]  ;;  %v17799_v33 = vld [vmem:[#allocation26 + $0xe0c] sm:$0xf]  ;;  %v14205_v39 = vor.u32 %v17671_v5, %v14202_v2 }
 0x501   :  { %v16504_v38 = vld [vmem:[#allocation26 + $0x1c08] sm:$0xf]  ;;  %v15993_v11 = vor.u32 %v18127_v29, %v15992_v0  ;;  %10108 = vmatpush.bf16.msra.mxu0 %v15481_v54  ;;  %v13693_v0 = vor.u32 %v17543_v47, %v13690_v4  ;;  %v4676_v29 = vperm.slane %v19590_v17, 0  ;;  %v14717_v42 = vor.u32 %v17799_v33, %v14714_v24  ;;  %v17655_v53 = vld [vmem:[#allocation26 + $0x98c] sm:$0xf]  ;;  %v19593_v54 = vpop.f32.mrf.mxu2 }
 0x502   :  { %v18255_v7 = vld [vmem:[#allocation26 + $0x1c44] sm:$0xf0]  ;;  %10096 = vmatmul.bf16.vlgmr.msrb.gmra.mxu3 %v19560_v12  ;;  %v17783_v56 = vld [vmem:[#allocation26 + $0xd8c] sm:$0xf] }
 0x503   :  { %v16505_v46 = vor.u32 %v18255_v7, %v16504_v38  ;;  %10121 = vmatpush.bf16.msra.mxu1 %v15993_v11  ;;  %10140 = vmatpush.bf16.msra.mxu3 %v13373_v60  ;;  %v17399_v38 = vld [vmem:[#allocation26 + $0x18c] sm:$0xf]  ;;  %v9852_v11 = vpop.f32.mrf.mxu0  ;;  %v9889_v35 = vpop.f32.mrf.mxu3 }
 0x504   :  { %10109 = vmatmul.bf16.vlgmr.msra.gmra.mxu0 %v19562_v1  ;;  %v13114_v7 = vld [vmem:[#allocation26 + $0x1c8] sm:$0xf0] }
 0x505   :  { %10134 = vmatpush.bf16.msra.mxu2 %v16505_v46  ;;  %10153 = vmatpush.bf16.msrb.mxu0 %v13885_v37  ;;  %v14650_v18 = vld [vmem:[#allocation26 + $0xdc8] sm:$0xf0]  ;;  %v9838_v46 = vadd.f32 %v9837_v40, %v4676_v29  ;;  %v13117_v60 = vor.u32 %v17399_v38, %v13114_v7  ;;  %v13629_v37 = vor.u32 %v17527_v48, %v13626_v25 }
 0x506   :  { %10122 = vmatmul.bf16.vlgmr.msra.gmra.mxu1 %v19564_v58  ;;  %v17383_v36 = vld [vmem:[#allocation26 + $0x10c] sm:$0xf]  ;;  %v14653_v14 = vor.u32 %v17783_v56, %v14650_v18 }
 0x507   :  { %10166 = vmatpush.bf16.msrb.mxu1 %v14397_v32  ;;  %10141 = vmatpush.bf16.msra.mxu3 %v13309_v59  ;;  %v13050_v32 = vld [vmem:[#allocation26 + $0x148] sm:$0xf0]  ;;  %v9915_v5 = vpop.f32.mrf.mxu1 }
 0x508   :  { %10135 = vmatmul.bf16.vlgmr.msra.gmra.mxu2 %v19566_v20  ;;  %v17511_v44 = vld [vmem:[#allocation26 + $0x50c] sm:$0xf]  ;;  %v13053_v10 = vor.u32 %v17383_v36, %v13050_v32 }
 0x509   :  { %10179 = vmatpush.bf16.msrb.mxu2 %v14909_v43  ;;  %10154 = vmatpush.bf16.msrb.mxu0 %v13821_v28  ;;  %v14141_v43 = vor.u32 %v17655_v53, %v14138_v41  ;;  %v13562_v31 = vld [vmem:[#allocation26 + $0x548] sm:$0xf0]  ;;  %v9851_v28 = vadd.f32 %v9850_v50, %v9838_v46 }
 0x50a   :  { %v17639_v62 = vld [vmem:[#allocation26 + $0x90c] sm:$0xf]  ;;  %v13565_v8 = vor.u32 %v17511_v44, %v13562_v31 }
 0x50b   :  { %10167 = vmatpush.bf16.msrb.mxu1 %v14333_v30  ;;  %10142 = vmatpush.bf16.msra.mxu3 %v13245_v61  ;;  %v14074_v51 = vld [vmem:[#allocation26 + $0x948] sm:$0xf0]  ;;  %v9878_v61 = vpop.f32.mrf.mxu2  ;;  %v9902_v47 = vpop.f32.mrf.mxu0 }
 0x50c   :  { %v17767_v6 = vld [vmem:[#allocation26 + $0xd0c] sm:$0xf]  ;;  %v14077_v22 = vor.u32 %v17639_v62, %v14074_v51 }
 0x50d   :  { %10180 = vmatpush.bf16.msrb.mxu2 %v14845_v49  ;;  %10155 = vmatpush.bf16.msrb.mxu0 %v13757_v3  ;;  %v14586_v59 = vld [vmem:[#allocation26 + $0xd48] sm:$0xf0] }
 0x50e   :  { %v17367_v30 = vld [vmem:[#allocation26 + $0x8c] sm:$0xf]  ;;  %v14589_v55 = vor.u32 %v17767_v6, %v14586_v59 }
 0x50f   :  { %10168 = vmatpush.bf16.msrb.mxu1 %v14269_v26  ;;  %10143 = vmatpush.bf16.msra.mxu3 %v13181_v34  ;;  %v12986_v49 = vld [vmem:[#allocation26 + $0xc8] sm:$0xf0]  ;;  %v9864_v26 = vadd.f32 %v19588_v19, %v9851_v28 }
 0x510   :  { %v17495_v21 = vld [vmem:[#allocation26 + $0x48c] sm:$0xf] }
 0x511   :  { %10181 = vmatpush.bf16.msrb.mxu2 %v14781_v27  ;;  %10156 = vmatpush.bf16.msrb.mxu0 %v13693_v0  ;;  %v13498_v15 = vld [vmem:[#allocation26 + $0x4c8] sm:$0xf0]  ;;  %v12989_v27 = vor.u32 %v17367_v30, %v12986_v49  ;;  %v9877_v53 = vadd.f32 %v19593_v54, %v9864_v26 }
 0x512   :  { %v17623_v16 = vld [vmem:[#allocation26 + $0x88c] sm:$0xf]  ;;  %v13501_v4 = vor.u32 %v17495_v21, %v13498_v15 }
 0x513   :  { %10169 = vmatpush.bf16.msrb.mxu1 %v14205_v39  ;;  %10144 = vmatpush.bf16.msra.mxu3 %v13117_v60  ;;  %v14010_v3 = vld [vmem:[#allocation26 + $0x8c8] sm:$0xf0]  ;;  %v9904_v51 = vpop.f32.mrf.mxu0 }
 0x514   :  { %v17751_v23 = vld [vmem:[#allocation26 + $0xc8c] sm:$0xf]  ;;  %v14013_v34 = vor.u32 %v17623_v16, %v14010_v3 }
 0x515   :  { %10182 = vmatpush.bf16.msrb.mxu2 %v14717_v42  ;;  %10157 = vmatpush.bf16.msrb.mxu0 %v13629_v37  ;;  %v14522_v45 = vld [vmem:[#allocation26 + $0xcc8] sm:$0xf0] }
 0x516   :  { %v17351_v50 = vld [vmem:[#allocation26 + $0xc] sm:$0xf]  ;;  %v14525_v0 = vor.u32 %v17751_v23, %v14522_v45 }
 0x517   :  { %10170 = vmatpush.bf16.msrb.mxu1 %v14141_v43  ;;  %10145 = vmatpush.bf16.msra.mxu3 %v13053_v10  ;;  %v12922_v2 = vld [vmem:[#allocation26 + $0x48] sm:$0xf0]  ;;  %v9890_v43 = vadd.f32 %v9889_v35, %v9877_v53 }
 0x518   :  { %v17479_v33 = vld [vmem:[#allocation26 + $0x40c] sm:$0xf]  ;;  %v12925_v41 = vor.u32 %v17351_v50, %v12922_v2 }
 0x519   :  { %10183 = vmatpush.bf16.msrb.mxu2 %v14653_v14  ;;  %10158 = vmatpush.bf16.msrb.mxu0 %v13565_v8  ;;  %v13434_v24 = vld [vmem:[#allocation26 + $0x448] sm:$0xf0]  ;;  %v9928_v14 = vpop.f32.mrf.mxu2  ;;  %v9903_v10 = vadd.f32 %v9902_v47, %v9890_v43  ;;  %v9917_v8 = vpop.f32.mrf.mxu1 }
 0x51a   :  { %v17607_v29 = vld [vmem:[#allocation26 + $0x80c] sm:$0xf]  ;;  %v13437_v56 = vor.u32 %v17479_v33, %v13434_v24 }
 0x51b   :  { %10171 = vmatpush.bf16.msrb.mxu1 %v14077_v22  ;;  %v13946_v38 = vld [vmem:[#allocation26 + $0x848] sm:$0xf0]  ;;  %10146 = vmatpush.bf16.msra.mxu3 %v12989_v27 }
 0x51c   :  { %v17735_v7 = vld [vmem:[#allocation26 + $0xc0c] sm:$0xf]  ;;  %v13949_v60 = vor.u32 %v17607_v29, %v13946_v38 }
 0x51d   :  { %10184 = vmatpush.bf16.msrb.mxu2 %v14589_v55  ;;  %v14458_v39 = vld [vmem:[#allocation26 + $0xc48] sm:$0xf0]  ;;  %10159 = vmatpush.bf16.msrb.mxu0 %v13501_v4  ;;  %v9916_v55 = vadd.f32 %v9915_v5, %v9903_v10  ;;  %v9891_v5 = vpop.f32.mrf.mxu3 }
 0x51e   :  { %v17975_v42 = vld [vmem:[#allocation26 + $0x138c] sm:$0xf]  ;;  %v14461_v37 = vor.u32 %v17735_v7, %v14458_v39 }
 0x51f   :  { %v15418_v40 = vld [vmem:[#allocation26 + $0x13c8] sm:$0xf0]  ;;  %10172 = vmatpush.bf16.msrb.mxu1 %v14013_v34  ;;  %10147 = vmatpush.bf16.msra.mxu3 %v12925_v41  ;;  %v9929_v50 = vadd.f32 %v9928_v14, %v9916_v55 }
 0x520   :  { %v18103_v48 = vld [vmem:[#allocation26 + $0x178c] sm:$0xf]  ;;  %v15421_v36 = vor.u32 %v17975_v42, %v15418_v40 }
 0x521   :  { %v15930_v19 = vld [vmem:[#allocation26 + $0x17c8] sm:$0xf0]  ;;  %10185 = vmatpush.bf16.msrb.mxu2 %v14525_v0  ;;  %10160 = vmatpush.bf16.msrb.mxu0 %v13437_v56  ;;  %11492 = vst [vmem:[#allocation29] sm:$0xff] %v9929_v50  ;;  %v9930_v24 = vpop.f32.mrf.mxu2  ;;  %v19603_v53 = vpop.f32.mrf.mxu1 }
 0x522   :  { %v18231_v25 = vld [vmem:[#allocation26 + $0x1b8c] sm:$0xf]  ;;  %v15933_v32 = vor.u32 %v18103_v48, %v15930_v19  ;;  %10148 = vmatmul.bf16.vlgmr.msra.gmra.mxu3 %v19534_v57 }
 0x523   :  { %v16442_v18 = vld [vmem:[#allocation26 + $0x1bc8] sm:$0xf0]  ;;  %10173 = vmatpush.bf16.msrb.mxu1 %v13949_v60  ;;  %10192 = vmatpush.bf16.msrb.mxu3 %v15421_v36 }
 0x524   :  { %v18359_v11 = vld [vmem:[#allocation26 + $0x1f8c] sm:$0xf]  ;;  %v16445_v62 = vor.u32 %v18231_v25, %v16442_v18  ;;  %10161 = vmatmul.bf16.vlgmr.msrb.gmra.mxu0 %v19536_v52  ;;  %v19601_v25 = vpop.f32.mrf.mxu0 }
 0x525   :  { %v16954_v46 = vld [vmem:[#allocation26 + $0x1fc8] sm:$0xf0]  ;;  %10186 = vmatpush.bf16.msrb.mxu2 %v14461_v37  ;;  %10205 = vmatpush.bf16.msra.mxu0 %v15933_v32 }
 0x526   :  { %v17959_v44 = vld [vmem:[#allocation26 + $0x130c] sm:$0xf]  ;;  %v16957_v54 = vor.u32 %v18359_v11, %v16954_v46  ;;  %10174 = vmatmul.bf16.vlgmr.msrb.gmra.mxu1 %v19538_v13 }
 0x527   :  { %v15354_v31 = vld [vmem:[#allocation26 + $0x1348] sm:$0xf0]  ;;  %10218 = vmatpush.bf16.msra.mxu1 %v16445_v62 }
 0x528   :  { %v18087_v6 = vld [vmem:[#allocation26 + $0x170c] sm:$0xf]  ;;  %v15357_v63 = vor.u32 %v17959_v44, %v15354_v31  ;;  %10187 = vmatmul.bf16.vlgmr.msrb.gmra.mxu2 %v19540_v9 }
 0x529   :  { %v15866_v59 = vld [vmem:[#allocation26 + $0x1748] sm:$0xf0]  ;;  %10231 = vmatpush.bf16.msra.mxu2 %v16957_v54 }
 0x52a   :  { %v18215_v28 = vld [vmem:[#allocation26 + $0x1b0c] sm:$0xf]  ;;  %v15869_v21 = vor.u32 %v18087_v6, %v15866_v59  ;;  %10193 = vmatpush.bf16.msrb.mxu3 %v15357_v63  ;;  %v19605_v59 = vpop.f32.mrf.mxu3 }
 0x52b   :  { %v16378_v30 = vld [vmem:[#allocation26 + $0x1b48] sm:$0xf0] }
 0x52c   :  { %v18343_v49 = vld [vmem:[#allocation26 + $0x1f0c] sm:$0xf]  ;;  %v16381_v61 = vor.u32 %v18215_v28, %v16378_v30  ;;  %10206 = vmatpush.bf16.msra.mxu0 %v15869_v21  ;;  %v19607_v30 = vpop.f32.mrf.mxu2  ;;  %v9956_v63 = vpop.f32.mrf.mxu0 }
 0x52d   :  { %v16890_v22 = vld [vmem:[#allocation26 + $0x1f48] sm:$0xf0]  ;;  %v9969_v21 = vpop.f32.mrf.mxu1  ;;  %v14848_v63 = vld [vmem:[#allocation26 + $0xf10] sm:$0xf] }
 0x52e   :  { %v17943_v15 = vld [vmem:[#allocation26 + $0x128c] sm:$0xf]  ;;  %v16893_v3 = vor.u32 %v18343_v49, %v16890_v22  ;;  %10219 = vmatpush.bf16.msra.mxu1 %v16381_v61  ;;  %v17840_v21 = vld [vmem:[#allocation26 + $0xf4c] sm:$0xf0] }
 0x52f   :  { %v15290_v16 = vld [vmem:[#allocation26 + $0x12c8] sm:$0xf0] }
 0x530   :  { %v18071_v23 = vld [vmem:[#allocation26 + $0x168c] sm:$0xf]  ;;  %v15293_v2 = vor.u32 %v17943_v15, %v15290_v16  ;;  %10232 = vmatpush.bf16.msra.mxu2 %v16893_v3 }
 0x531   :  { %v15802_v45 = vld [vmem:[#allocation26 + $0x16c8] sm:$0xf0] }
 0x532   :  { %v18199_v47 = vld [vmem:[#allocation26 + $0x1a8c] sm:$0xf]  ;;  %v15805_v33 = vor.u32 %v18071_v23, %v15802_v45  ;;  %10194 = vmatpush.bf16.msrb.mxu3 %v15293_v2 }
 0x533   :  { %v16314_v26 = vld [vmem:[#allocation26 + $0x1ac8] sm:$0xf0] }
 0x534   :  { %v18327_v27 = vld [vmem:[#allocation26 + $0x1e8c] sm:$0xf]  ;;  %v16317_v29 = vor.u32 %v18199_v47, %v16314_v26  ;;  %10207 = vmatpush.bf16.msra.mxu0 %v15805_v33 }
 0x535   :  { %v16826_v4 = vld [vmem:[#allocation26 + $0x1ec8] sm:$0xf0] }
 0x536   :  { %v17927_v34 = vld [vmem:[#allocation26 + $0x120c] sm:$0xf]  ;;  %v16829_v38 = vor.u32 %v18327_v27, %v16826_v4  ;;  %10220 = vmatpush.bf16.msra.mxu1 %v16317_v29 }
 0x537   :  { %v15226_v0 = vld [vmem:[#allocation26 + $0x1248] sm:$0xf0] }
 0x538   :  { %v18055_v7 = vld [vmem:[#allocation26 + $0x160c] sm:$0xf]  ;;  %v15229_v41 = vor.u32 %v17927_v34, %v15226_v0  ;;  %10233 = vmatpush.bf16.msra.mxu2 %v16829_v38 }
 0x539   :  { %v15738_v39 = vld [vmem:[#allocation26 + $0x1648] sm:$0xf0] }
 0x53a   :  { %v18183_v42 = vld [vmem:[#allocation26 + $0x1a0c] sm:$0xf]  ;;  %v15741_v56 = vor.u32 %v18055_v7, %v15738_v39  ;;  %10195 = vmatpush.bf16.msrb.mxu3 %v15229_v41  ;;  %v9943_v39 = vpop.f32.mrf.mxu3 }
 0x53b   :  { %v16250_v40 = vld [vmem:[#allocation26 + $0x1a48] sm:$0xf0]  ;;  %v14208_v39 = vld [vmem:[#allocation26 + $0xa10] sm:$0xf] }
 0x53c   :  { %v18311_v48 = vld [vmem:[#allocation26 + $0x1e0c] sm:$0xf]  ;;  %v16253_v46 = vor.u32 %v18183_v42, %v16250_v40  ;;  %10208 = vmatpush.bf16.msra.mxu0 %v15741_v56  ;;  %v13376_v56 = vld [vmem:[#allocation26 + $0x390] sm:$0xf] }
 0x53d   :  { %v16762_v19 = vld [vmem:[#allocation26 + $0x1e48] sm:$0xf0] }
 0x53e   :  { %v17911_v18 = vld [vmem:[#allocation26 + $0x118c] sm:$0xf]  ;;  %v16765_v60 = vor.u32 %v18311_v48, %v16762_v19  ;;  %10221 = vmatpush.bf16.msra.mxu1 %v16253_v46  ;;  %v9982_v19 = vpop.f32.mrf.mxu2  ;;  %v17600_v46 = vld [vmem:[#allocation26 + $0x7cc] sm:$0xf0] }
 0x53f   :  { %v15162_v11 = vld [vmem:[#allocation26 + $0x11c8] sm:$0xf0]  ;;  %v10006_v19 = vpop.f32.mrf.mxu0 }
 0x540   :  { %v18039_v37 = vld [vmem:[#allocation26 + $0x158c] sm:$0xf]  ;;  %v15165_v44 = vor.u32 %v17911_v18, %v15162_v11  ;;  %10234 = vmatpush.bf16.msra.mxu2 %v16765_v60  ;;  %v17472_v18 = vld [vmem:[#allocation26 + $0x3cc] sm:$0xf0] }
 0x541   :  { %v15674_v35 = vld [vmem:[#allocation26 + $0x15c8] sm:$0xf0]  ;;  %v13888_v11 = vld [vmem:[#allocation26 + $0x790] sm:$0xf] }
 0x542   :  { %v18167_v36 = vld [vmem:[#allocation26 + $0x198c] sm:$0xf]  ;;  %v15677_v31 = vor.u32 %v18039_v37, %v15674_v35  ;;  %10196 = vmatpush.bf16.msrb.mxu3 %v15165_v44  ;;  %v14400_v60 = vld [vmem:[#allocation26 + $0xb90] sm:$0xf] }
 0x543   :  { %v16186_v32 = vld [vmem:[#allocation26 + $0x19c8] sm:$0xf0] }
 0x544   :  { %v18295_v43 = vld [vmem:[#allocation26 + $0x1d8c] sm:$0xf]  ;;  %v16189_v51 = vor.u32 %v18167_v36, %v16186_v32  ;;  %10209 = vmatpush.bf16.msra.mxu0 %v15677_v31  ;;  %v17728_v36 = vld [vmem:[#allocation26 + $0xbcc] sm:$0xf0]  ;;  %v4677_v31 = vperm.slane %v19590_v17, 1 }
 0x545   :  { %v16698_v14 = vld [vmem:[#allocation26 + $0x1dc8] sm:$0xf0]  ;;  %v14912_v32 = vld [vmem:[#allocation26 + $0xf90] sm:$0xf] }
 0x546   :  { %v17895_v62 = vld [vmem:[#allocation26 + $0x110c] sm:$0xf]  ;;  %v16701_v6 = vor.u32 %v18295_v43, %v16698_v14  ;;  %10222 = vmatpush.bf16.msra.mxu1 %v16189_v51  ;;  %v17856_v43 = vld [vmem:[#allocation26 + $0xfcc] sm:$0xf0] }
 0x547   :  { %v15098_v54 = vld [vmem:[#allocation26 + $0x1148] sm:$0xf0]  ;;  %v13312_v51 = vld [vmem:[#allocation26 + $0x310] sm:$0xf] }
 0x548   :  { %v18023_v28 = vld [vmem:[#allocation26 + $0x150c] sm:$0xf]  ;;  %v15101_v15 = vor.u32 %v17895_v62, %v15098_v54  ;;  %10235 = vmatpush.bf16.msra.mxu2 %v16701_v6  ;;  %v13377_v62 = vor.u32 %v17472_v18, %v13376_v56  ;;  %v13889_v54 = vor.u32 %v17600_v46, %v13888_v11  ;;  %v17456_v6 = vld [vmem:[#allocation26 + $0x34c] sm:$0xf0] }
 0x549   :  { %v15610_v10 = vld [vmem:[#allocation26 + $0x1548] sm:$0xf0]  ;;  %v13313_v17 = vor.u32 %v17456_v6, %v13312_v51  ;;  %v13120_v11 = vld [vmem:[#allocation26 + $0x190] sm:$0xf] }
 0x54a   :  { %v18151_v8 = vld [vmem:[#allocation26 + $0x190c] sm:$0xf]  ;;  %v15613_v16 = vor.u32 %v18023_v28, %v15610_v10  ;;  %10197 = vmatpush.bf16.msrb.mxu3 %v15101_v15  ;;  %v14401_v28 = vor.u32 %v17728_v36, %v14400_v60  ;;  %v14913_v10 = vor.u32 %v17856_v43, %v14912_v32  ;;  %v9942_v15 = vadd.f32 %v19605_v59, %v4677_v31  ;;  %v17824_v59 = vld [vmem:[#allocation26 + $0xecc] sm:$0xf0] }
 0x54b   :  { %v16122_v49 = vld [vmem:[#allocation26 + $0x1948] sm:$0xf0]  ;;  %v17408_v46 = vld [vmem:[#allocation26 + $0x1cc] sm:$0xf0] }
 0x54c   :  { %v18279_v22 = vld [vmem:[#allocation26 + $0x1d0c] sm:$0xf]  ;;  %v16125_v23 = vor.u32 %v18151_v8, %v16122_v49  ;;  %10210 = vmatpush.bf16.msra.mxu0 %v15613_v16  ;;  %v13824_v8 = vld [vmem:[#allocation26 + $0x710] sm:$0xf] }
 0x54d   :  { %v16634_v55 = vld [vmem:[#allocation26 + $0x1d48] sm:$0xf0]  ;;  %v17584_v49 = vld [vmem:[#allocation26 + $0x74c] sm:$0xf0] }
 0x54e   :  { %v17879_v61 = vld [vmem:[#allocation26 + $0x108c] sm:$0xf]  ;;  %v16637_v45 = vor.u32 %v18279_v22, %v16634_v55  ;;  %10223 = vmatpush.bf16.msra.mxu1 %v16125_v23  ;;  %v14336_v22 = vld [vmem:[#allocation26 + $0xb10] sm:$0xf]  ;;  %v13825_v16 = vor.u32 %v17584_v49, %v13824_v8 }
 0x54f   :  { %v15034_v3 = vld [vmem:[#allocation26 + $0x10c8] sm:$0xf0]  ;;  %v17712_v55 = vld [vmem:[#allocation26 + $0xb4c] sm:$0xf0] }
 0x550   :  { %v18007_v47 = vld [vmem:[#allocation26 + $0x148c] sm:$0xf]  ;;  %v15037_v33 = vor.u32 %v17879_v61, %v15034_v3  ;;  %10236 = vmatpush.bf16.msra.mxu2 %v16637_v45  ;;  %v13248_v61 = vld [vmem:[#allocation26 + $0x290] sm:$0xf]  ;;  %v14337_v23 = vor.u32 %v17712_v55, %v14336_v22  ;;  %v14849_v45 = vor.u32 %v17840_v21, %v14848_v63  ;;  %v10032_v63 = vpop.f32.mrf.mxu2 }
 0x551   :  { %v15546_v50 = vld [vmem:[#allocation26 + $0x14c8] sm:$0xf0]  ;;  %v17440_v3 = vld [vmem:[#allocation26 + $0x2cc] sm:$0xf0] }
 0x552   :  { %v18135_v26 = vld [vmem:[#allocation26 + $0x188c] sm:$0xf]  ;;  %v15549_v24 = vor.u32 %v18007_v47, %v15546_v50  ;;  %10198 = vmatpush.bf16.msrb.mxu3 %v15037_v33  ;;  %v13760_v47 = vld [vmem:[#allocation26 + $0x690] sm:$0xf] }
 0x553   :  { %v16058_v27 = vld [vmem:[#allocation26 + $0x18c8] sm:$0xf0]  ;;  %v17568_v50 = vld [vmem:[#allocation26 + $0x6cc] sm:$0xf0] }
 0x554   :  { %v18263_v4 = vld [vmem:[#allocation26 + $0x1c8c] sm:$0xf]  ;;  %v16061_v38 = vor.u32 %v18135_v26, %v16058_v27  ;;  %10211 = vmatpush.bf16.msra.mxu0 %v15549_v24  ;;  %v14272_v26 = vld [vmem:[#allocation26 + $0xa90] sm:$0xf]  ;;  %v13761_v33 = vor.u32 %v17568_v50, %v13760_v47 }
 0x555   :  { %v16570_v5 = vld [vmem:[#allocation26 + $0x1cc8] sm:$0xf0]  ;;  %v17696_v27 = vld [vmem:[#allocation26 + $0xacc] sm:$0xf0] }
 0x556   :  { %v17863_v2 = vld [vmem:[#allocation26 + $0x100c] sm:$0xf]  ;;  %v16573_v7 = vor.u32 %v18263_v4, %v16570_v5  ;;  %10224 = vmatpush.bf16.msra.mxu1 %v16061_v38  ;;  %v14784_v4 = vld [vmem:[#allocation26 + $0xe90] sm:$0xf]  ;;  %v9955_v5 = vadd.f32 %v19601_v25, %v9942_v15  ;;  %v10019_v25 = vpop.f32.mrf.mxu1 }
 0x557   :  { %v14970_v34 = vld [vmem:[#allocation26 + $0x1048] sm:$0xf0]  ;;  %v13184_v24 = vld [vmem:[#allocation26 + $0x210] sm:$0xf] }
 0x558   :  { %v17991_v0 = vld [vmem:[#allocation26 + $0x140c] sm:$0xf]  ;;  %v14973_v37 = vor.u32 %v17863_v2, %v14970_v34  ;;  %10237 = vmatpush.bf16.msra.mxu2 %v16573_v7  ;;  %v13249_v2 = vor.u32 %v17440_v3, %v13248_v61  ;;  %v17424_v34 = vld [vmem:[#allocation26 + $0x24c] sm:$0xf0] }
 0x559   :  { %v15482_v29 = vld [vmem:[#allocation26 + $0x1448] sm:$0xf0]  ;;  %v13696_v38 = vld [vmem:[#allocation26 + $0x610] sm:$0xf]  ;;  %v13185_v56 = vor.u32 %v17424_v34, %v13184_v24 }
 0x55a   :  { %v18119_v42 = vld [vmem:[#allocation26 + $0x180c] sm:$0xf]  ;;  %v15485_v35 = vor.u32 %v17991_v0, %v15482_v29  ;;  %10199 = vmatpush.bf16.msrb.mxu3 %v14973_v37  ;;  %v14273_v0 = vor.u32 %v17696_v27, %v14272_v26  ;;  %v14785_v29 = vor.u32 %v17824_v59, %v14784_v4  ;;  %v17552_v7 = vld [vmem:[#allocation26 + $0x64c] sm:$0xf0] }
 0x55b   :  { %v15994_v40 = vld [vmem:[#allocation26 + $0x1848] sm:$0xf0]  ;;  %v13697_v18 = vor.u32 %v17552_v7, %v13696_v38  ;;  %v17536_v36 = vld [vmem:[#allocation26 + $0x5cc] sm:$0xf0] }
 0x55c   :  { %v18247_v48 = vld [vmem:[#allocation26 + $0x1c0c] sm:$0xf]  ;;  %v15997_v14 = vor.u32 %v18119_v42, %v15994_v40  ;;  %10212 = vmatpush.bf16.msra.mxu0 %v15485_v35  ;;  %v17680_v42 = vld [vmem:[#allocation26 + $0xa4c] sm:$0xf0] }
 0x55d   :  { %v16506_v41 = vld [vmem:[#allocation26 + $0x1c48] sm:$0xf0]  ;;  %10200 = vmatmul.bf16.vlgmr.msrb.gmra.mxu3 %v19560_v12  ;;  %v14720_v40 = vld [vmem:[#allocation26 + $0xe10] sm:$0xf]  ;;  %v14209_v60 = vor.u32 %v17680_v42, %v14208_v39 }
 0x55e   :  { %v16509_v44 = vor.u32 %v18247_v48, %v16506_v41  ;;  %10225 = vmatpush.bf16.msra.mxu1 %v15997_v14  ;;  %10244 = vmatpush.bf16.msra.mxu3 %v13377_v62  ;;  %v17808_v48 = vld [vmem:[#allocation26 + $0xe4c] sm:$0xf0]  ;;  %v9968_v41 = vadd.f32 %v19603_v53, %v9955_v5  ;;  %v13121_v53 = vor.u32 %v17408_v46, %v13120_v11  ;;  %v10021_v61 = vpop.f32.mrf.mxu1  ;;  %v10034_v11 = vpop.f32.mrf.mxu2 }
 0x55f   :  { %10213 = vmatmul.bf16.vlgmr.msra.gmra.mxu0 %v19562_v1  ;;  %v14721_v37 = vor.u32 %v17808_v48, %v14720_v40  ;;  %v13632_v35 = vld [vmem:[#allocation26 + $0x590] sm:$0xf] }
 0x560   :  { %10238 = vmatpush.bf16.msra.mxu2 %v16509_v44  ;;  %10257 = vmatpush.bf16.msrb.mxu0 %v13889_v54  ;;  %v14144_v32 = vld [vmem:[#allocation26 + $0x990] sm:$0xf]  ;;  %v9981_v31 = vadd.f32 %v19607_v30, %v9968_v41  ;;  %v13633_v62 = vor.u32 %v17536_v36, %v13632_v35  ;;  %v10008_v30 = vpop.f32.mrf.mxu0 }
 0x561   :  { %10226 = vmatmul.bf16.vlgmr.msra.gmra.mxu1 %v19564_v58  ;;  %v17664_v43 = vld [vmem:[#allocation26 + $0x9cc] sm:$0xf0] }
 0x562   :  { %10270 = vmatpush.bf16.msrb.mxu1 %v14401_v28  ;;  %10245 = vmatpush.bf16.msra.mxu3 %v13313_v17  ;;  %v14656_v14 = vld [vmem:[#allocation26 + $0xd90] sm:$0xf]  ;;  %v14145_v6 = vor.u32 %v17664_v43, %v14144_v32 }
 0x563   :  { %10239 = vmatmul.bf16.vlgmr.msra.gmra.mxu2 %v19566_v20  ;;  %v17792_v44 = vld [vmem:[#allocation26 + $0xdcc] sm:$0xf0] }
 0x564   :  { %10283 = vmatpush.bf16.msrb.mxu2 %v14913_v10  ;;  %10258 = vmatpush.bf16.msrb.mxu0 %v13825_v16  ;;  %v13056_v54 = vld [vmem:[#allocation26 + $0x110] sm:$0xf]  ;;  %v14657_v28 = vor.u32 %v17792_v44, %v14656_v14  ;;  %v9993_v10 = vpop.f32.mrf.mxu3 }
 0x565   :  { %v17392_v51 = vld [vmem:[#allocation26 + $0x14c] sm:$0xf0]  ;;  %v9994_v55 = vadd.f32 %v9993_v10, %v9981_v31 }
 0x566   :  { %10271 = vmatpush.bf16.msrb.mxu1 %v14337_v23  ;;  %10246 = vmatpush.bf16.msra.mxu3 %v13249_v2  ;;  %v13568_v8 = vld [vmem:[#allocation26 + $0x510] sm:$0xf]  ;;  %v13057_v3 = vor.u32 %v17392_v51, %v13056_v54 }
 0x567   :  { %v17520_v49 = vld [vmem:[#allocation26 + $0x54c] sm:$0xf0]  ;;  %v10007_v16 = vadd.f32 %v10006_v19, %v9994_v55 }
 0x568   :  { %10284 = vmatpush.bf16.msrb.mxu2 %v14849_v45  ;;  %10259 = vmatpush.bf16.msrb.mxu0 %v13761_v33  ;;  %v14080_v22 = vld [vmem:[#allocation26 + $0x910] sm:$0xf]  ;;  %v13569_v23 = vor.u32 %v17520_v49, %v13568_v8 }
 0x569   :  { %v17648_v21 = vld [vmem:[#allocation26 + $0x94c] sm:$0xf0]  ;;  %v10020_v5 = vadd.f32 %v10019_v25, %v10007_v16 }
 0x56a   :  { %10272 = vmatpush.bf16.msrb.mxu1 %v14273_v0  ;;  %10247 = vmatpush.bf16.msra.mxu3 %v13185_v56  ;;  %v14592_v15 = vld [vmem:[#allocation26 + $0xd10] sm:$0xf]  ;;  %v14081_v50 = vor.u32 %v17648_v21, %v14080_v22 }
 0x56b   :  { %v17776_v17 = vld [vmem:[#allocation26 + $0xd4c] sm:$0xf0] }
 0x56c   :  { %10285 = vmatpush.bf16.msrb.mxu2 %v14785_v29  ;;  %10260 = vmatpush.bf16.msrb.mxu0 %v13697_v18  ;;  %v12992_v45 = vld [vmem:[#allocation26 + $0x90] sm:$0xf]  ;;  %v14593_v26 = vor.u32 %v17776_v17, %v14592_v15  ;;  %v10033_v29 = vadd.f32 %v10032_v63, %v10020_v5  ;;  %v9995_v41 = vpop.f32.mrf.mxu3 }
 0x56d   :  { %v17376_v47 = vld [vmem:[#allocation26 + $0xcc] sm:$0xf0] }
 0x56e   :  { %10273 = vmatpush.bf16.msrb.mxu1 %v14209_v60  ;;  %10248 = vmatpush.bf16.msra.mxu3 %v13121_v53  ;;  %v13504_v27 = vld [vmem:[#allocation26 + $0x490] sm:$0xf]  ;;  %v12993_v38 = vor.u32 %v17376_v47, %v12992_v45  ;;  %11493 = vst [vmem:[#allocation29 + $0x8] sm:$0xff] %v10033_v29 }
 0x56f   :  { %v17504_v4 = vld [vmem:[#allocation26 + $0x4cc] sm:$0xf0] }
 0x570   :  { %10286 = vmatpush.bf16.msrb.mxu2 %v14721_v37  ;;  %10261 = vmatpush.bf16.msrb.mxu0 %v13633_v62  ;;  %v14016_v59 = vld [vmem:[#allocation26 + $0x890] sm:$0xf]  ;;  %v13505_v7 = vor.u32 %v17504_v4, %v13504_v27 }
 0x571   :  { %v17632_v2 = vld [vmem:[#allocation26 + $0x8cc] sm:$0xf0] }
 0x572   :  { %10274 = vmatpush.bf16.msrb.mxu1 %v14145_v6  ;;  %v14528_v33 = vld [vmem:[#allocation26 + $0xc90] sm:$0xf]  ;;  %10249 = vmatpush.bf16.msra.mxu3 %v13057_v3  ;;  %v14017_v48 = vor.u32 %v17632_v2, %v14016_v59 }
 0x573   :  { %v17760_v24 = vld [vmem:[#allocation26 + $0xccc] sm:$0xf0] }
 0x574   :  { %10287 = vmatpush.bf16.msrb.mxu2 %v14657_v28  ;;  %v12928_v34 = vld [vmem:[#allocation26 + $0x10] sm:$0xf]  ;;  %10262 = vmatpush.bf16.msrb.mxu0 %v13569_v23  ;;  %v14529_v19 = vor.u32 %v17760_v24, %v14528_v33 }
 0x575   :  { %v17360_v0 = vld [vmem:[#allocation26 + $0x4c] sm:$0xf0] }
 0x576   :  { %v13440_v39 = vld [vmem:[#allocation26 + $0x410] sm:$0xf]  ;;  %10275 = vmatpush.bf16.msrb.mxu1 %v14081_v50  ;;  %10250 = vmatpush.bf16.msra.mxu3 %v12993_v38  ;;  %v12929_v32 = vor.u32 %v17360_v0, %v12928_v34 }
 0x577   :  { %v17488_v42 = vld [vmem:[#allocation26 + $0x44c] sm:$0xf0] }
 0x578   :  { %v13952_v40 = vld [vmem:[#allocation26 + $0x810] sm:$0xf]  ;;  %10288 = vmatpush.bf16.msrb.mxu2 %v14593_v26  ;;  %10263 = vmatpush.bf16.msrb.mxu0 %v13505_v7  ;;  %v13441_v43 = vor.u32 %v17488_v42, %v13440_v39 }
 0x579   :  { %v17616_v56 = vld [vmem:[#allocation26 + $0x84c] sm:$0xf0] }
 0x57a   :  { %v14464_v25 = vld [vmem:[#allocation26 + $0xc10] sm:$0xf]  ;;  %10276 = vmatpush.bf16.msrb.mxu1 %v14017_v48  ;;  %v13953_v53 = vor.u32 %v17616_v56, %v13952_v40  ;;  %10251 = vmatpush.bf16.msra.mxu3 %v12929_v32  ;;  %v19622_v40 = vpop.f32.mrf.mxu0  ;;  %v19624_v48 = vpop.f32.mrf.mxu1 }
 0x57b   :  { %v17744_v18 = vld [vmem:[#allocation26 + $0xc4c] sm:$0xf0] }
 0x57c   :  { %v15424_v46 = vld [vmem:[#allocation26 + $0x1390] sm:$0xf]  ;;  %10289 = vmatpush.bf16.msrb.mxu2 %v14529_v19  ;;  %v14465_v62 = vor.u32 %v17744_v18, %v14464_v25  ;;  %10264 = vmatpush.bf16.msrb.mxu0 %v13441_v43 }
 0x57d   :  { %v17984_v60 = vld [vmem:[#allocation26 + $0x13cc] sm:$0xf0]  ;;  %10252 = vmatmul.bf16.vlgmr.msra.gmra.mxu3 %v19534_v57 }
 0x57e   :  { %v15936_v37 = vld [vmem:[#allocation26 + $0x1790] sm:$0xf]  ;;  %v15425_v54 = vor.u32 %v17984_v60, %v15424_v46  ;;  %10277 = vmatpush.bf16.msrb.mxu1 %v13953_v53 }
 0x57f   :  { %v18112_v35 = vld [vmem:[#allocation26 + $0x17cc] sm:$0xf0]  ;;  %10265 = vmatmul.bf16.vlgmr.msrb.gmra.mxu0 %v19536_v52 }
 0x580   :  { %v16448_v36 = vld [vmem:[#allocation26 + $0x1b90] sm:$0xf]  ;;  %v15937_v51 = vor.u32 %v18112_v35, %v15936_v37  ;;  %10290 = vmatpush.bf16.msrb.mxu2 %v14465_v62  ;;  %10296 = vmatpush.bf16.msrb.mxu3 %v15425_v54  ;;  %v19626_v54 = vpop.f32.mrf.mxu3 }
 0x581   :  { %v18240_v14 = vld [vmem:[#allocation26 + $0x1bcc] sm:$0xf0]  ;;  %10278 = vmatmul.bf16.vlgmr.msrb.gmra.mxu1 %v19538_v13 }
 0x582   :  { %v16960_v44 = vld [vmem:[#allocation26 + $0x1f90] sm:$0xf]  ;;  %v16449_v10 = vor.u32 %v18240_v14, %v16448_v36  ;;  %10309 = vmatpush.bf16.msra.mxu0 %v15937_v51 }
 0x583   :  { %v18368_v31 = vld [vmem:[#allocation26 + $0x1fcc] sm:$0xf0]  ;;  %10291 = vmatmul.bf16.vlgmr.msrb.gmra.mxu2 %v19540_v9 }
 0x584   :  { %v15360_v6 = vld [vmem:[#allocation26 + $0x1310] sm:$0xf]  ;;  %v16961_v8 = vor.u32 %v18368_v31, %v16960_v44  ;;  %10322 = vmatpush.bf16.msra.mxu1 %v16449_v10  ;;  %v19628_v10 = vpop.f32.mrf.mxu2 }
 0x585   :  { %v17968_v28 = vld [vmem:[#allocation26 + $0x134c] sm:$0xf0] }
 0x586   :  { %v15872_v49 = vld [vmem:[#allocation26 + $0x1710] sm:$0xf]  ;;  %v15361_v17 = vor.u32 %v17968_v28, %v15360_v6  ;;  %10335 = vmatpush.bf16.msra.mxu2 %v16961_v8 }
 0x587   :  { %v18096_v22 = vld [vmem:[#allocation26 + $0x174c] sm:$0xf0] }
 0x588   :  { %v16384_v55 = vld [vmem:[#allocation26 + $0x1b10] sm:$0xf]  ;;  %v15873_v30 = vor.u32 %v18096_v22, %v15872_v49  ;;  %10297 = vmatpush.bf16.msrb.mxu3 %v15361_v17 }
 0x589   :  { %v18224_v63 = vld [vmem:[#allocation26 + $0x1b4c] sm:$0xf0] }
 0x58a   :  { %v16896_v21 = vld [vmem:[#allocation26 + $0x1f10] sm:$0xf]  ;;  %v16385_v3 = vor.u32 %v18224_v63, %v16384_v55  ;;  %10310 = vmatpush.bf16.msra.mxu0 %v15873_v30  ;;  %v10060_v55 = vpop.f32.mrf.mxu0  ;;  %v10073_v63 = vpop.f32.mrf.mxu1 }
 0x58b   :  { %v18352_v15 = vld [vmem:[#allocation26 + $0x1f4c] sm:$0xf0]  ;;  %v17832_v55 = vld [vmem:[#allocation26 + $0xf14] sm:$0xf] }
 0x58c   :  { %v15296_v16 = vld [vmem:[#allocation26 + $0x1290] sm:$0xf]  ;;  %v16897_v23 = vor.u32 %v18352_v15, %v16896_v21  ;;  %10323 = vmatpush.bf16.msra.mxu1 %v16385_v3  ;;  %v14850_v63 = vld [vmem:[#allocation26 + $0xf50] sm:$0xf0] }
 0x58d   :  { %v17952_v61 = vld [vmem:[#allocation26 + $0x12cc] sm:$0xf0] }
 0x58e   :  { %v15808_v45 = vld [vmem:[#allocation26 + $0x1690] sm:$0xf]  ;;  %v15297_v59 = vor.u32 %v17952_v61, %v15296_v16  ;;  %10336 = vmatpush.bf16.msra.mxu2 %v16897_v23 }
 0x58f   :  { %v18080_v47 = vld [vmem:[#allocation26 + $0x16cc] sm:$0xf0] }
 0x590   :  { %v16320_v50 = vld [vmem:[#allocation26 + $0x1a90] sm:$0xf]  ;;  %v15809_v5 = vor.u32 %v18080_v47, %v15808_v45  ;;  %10298 = vmatpush.bf16.msrb.mxu3 %v15297_v59 }
 0x591   :  { %v18208_v26 = vld [vmem:[#allocation26 + $0x1acc] sm:$0xf0] }
 0x592   :  { %v16832_v27 = vld [vmem:[#allocation26 + $0x1e90] sm:$0xf]  ;;  %v16321_v24 = vor.u32 %v18208_v26, %v16320_v50  ;;  %10311 = vmatpush.bf16.msra.mxu0 %v15809_v5 }
 0x593   :  { %v18336_v4 = vld [vmem:[#allocation26 + $0x1ecc] sm:$0xf0] }
 0x594   :  { %v15232_v2 = vld [vmem:[#allocation26 + $0x1210] sm:$0xf]  ;;  %v16833_v34 = vor.u32 %v18336_v4, %v16832_v27  ;;  %10324 = vmatpush.bf16.msra.mxu1 %v16321_v24 }
 0x595   :  { %v17936_v33 = vld [vmem:[#allocation26 + $0x124c] sm:$0xf0] }
 0x596   :  { %v15744_v0 = vld [vmem:[#allocation26 + $0x1610] sm:$0xf]  ;;  %v15233_v19 = vor.u32 %v17936_v33, %v15232_v2  ;;  %10337 = vmatpush.bf16.msra.mxu2 %v16833_v34 }
 0x597   :  { %v18064_v29 = vld [vmem:[#allocation26 + $0x164c] sm:$0xf0] }
 0x598   :  { %v16256_v38 = vld [vmem:[#allocation26 + $0x1a10] sm:$0xf]  ;;  %v15745_v41 = vor.u32 %v18064_v29, %v15744_v0  ;;  %10299 = vmatpush.bf16.msrb.mxu3 %v15233_v19  ;;  %v10047_v0 = vpop.f32.mrf.mxu3  ;;  %v17464_v19 = vld [vmem:[#allocation26 + $0x394] sm:$0xf] }
 0x599   :  { %v18192_v7 = vld [vmem:[#allocation26 + $0x1a4c] sm:$0xf0]  ;;  %v13698_v0 = vld [vmem:[#allocation26 + $0x650] sm:$0xf0] }
 0x59a   :  { %v16768_v39 = vld [vmem:[#allocation26 + $0x1e10] sm:$0xf]  ;;  %v16257_v18 = vor.u32 %v18192_v7, %v16256_v38  ;;  %10312 = vmatpush.bf16.msra.mxu0 %v15745_v41  ;;  %v13378_v41 = vld [vmem:[#allocation26 + $0x3d0] sm:$0xf0] }
 0x59b   :  { %v18320_v42 = vld [vmem:[#allocation26 + $0x1e4c] sm:$0xf0] }
 0x59c   :  { %v15168_v56 = vld [vmem:[#allocation26 + $0x1190] sm:$0xf]  ;;  %v16769_v11 = vor.u32 %v18320_v42, %v16768_v39  ;;  %10325 = vmatpush.bf16.msra.mxu1 %v16257_v18  ;;  %v10086_v39 = vpop.f32.mrf.mxu2  ;;  %v17720_v18 = vld [vmem:[#allocation26 + $0xb94] sm:$0xf] }
 0x59d   :  { %v17920_v25 = vld [vmem:[#allocation26 + $0x11cc] sm:$0xf0]  ;;  %v14722_v39 = vld [vmem:[#allocation26 + $0xe50] sm:$0xf0] }
 0x59e   :  { %v15680_v46 = vld [vmem:[#allocation26 + $0x1590] sm:$0xf]  ;;  %v15169_v43 = vor.u32 %v17920_v25, %v15168_v56  ;;  %10338 = vmatpush.bf16.msra.mxu2 %v16769_v11  ;;  %v17592_v56 = vld [vmem:[#allocation26 + $0x794] sm:$0xf] }
 0x59f   :  { %v18048_v60 = vld [vmem:[#allocation26 + $0x15cc] sm:$0xf0]  ;;  %v13890_v25 = vld [vmem:[#allocation26 + $0x7d0] sm:$0xf0] }
 0x5a0   :  { %v16192_v37 = vld [vmem:[#allocation26 + $0x1990] sm:$0xf]  ;;  %v15681_v14 = vor.u32 %v18048_v60, %v15680_v46  ;;  %10300 = vmatpush.bf16.msrb.mxu3 %v15169_v43  ;;  %v14402_v60 = vld [vmem:[#allocation26 + $0xbd0] sm:$0xf0]  ;;  %v19630_v43 = vld [vmem:[#allocation28] sm:$0xff] }
 0x5a1   :  { %v18176_v35 = vld [vmem:[#allocation26 + $0x19cc] sm:$0xf0] }
 0x5a2   :  { %v16704_v36 = vld [vmem:[#allocation26 + $0x1d90] sm:$0xf]  ;;  %v16193_v53 = vor.u32 %v18176_v35, %v16192_v37  ;;  %10313 = vmatpush.bf16.msra.mxu0 %v15681_v14  ;;  %v17848_v37 = vld [vmem:[#allocation26 + $0xf94] sm:$0xf]  ;;  %v4678_v14 = vperm.slane %v19630_v43, 2 }
 0x5a3   :  { %v18304_v32 = vld [vmem:[#allocation26 + $0x1dcc] sm:$0xf0]  ;;  %v14914_v35 = vld [vmem:[#allocation26 + $0xfd0] sm:$0xf0] }
 0x5a4   :  { %v15104_v44 = vld [vmem:[#allocation26 + $0x1110] sm:$0xf]  ;;  %v16705_v62 = vor.u32 %v18304_v32, %v16704_v36  ;;  %10326 = vmatpush.bf16.msra.mxu1 %v16193_v53  ;;  %v17448_v53 = vld [vmem:[#allocation26 + $0x314] sm:$0xf] }
 0x5a5   :  { %v17904_v31 = vld [vmem:[#allocation26 + $0x114c] sm:$0xf0] }
 0x5a6   :  { %v15616_v51 = vld [vmem:[#allocation26 + $0x1510] sm:$0xf]  ;;  %v15105_v21 = vor.u32 %v17904_v31, %v15104_v44  ;;  %10339 = vmatpush.bf16.msra.mxu2 %v16705_v62  ;;  %v13381_v44 = vor.u32 %v17464_v19, %v13378_v41  ;;  %v13893_v31 = vor.u32 %v17592_v56, %v13890_v25  ;;  %v13314_v62 = vld [vmem:[#allocation26 + $0x350] sm:$0xf0] }
 0x5a7   :  { %v18032_v6 = vld [vmem:[#allocation26 + $0x154c] sm:$0xf0]  ;;  %v17400_v25 = vld [vmem:[#allocation26 + $0x194] sm:$0xf] }
 0x5a8   :  { %v16128_v28 = vld [vmem:[#allocation26 + $0x1910] sm:$0xf]  ;;  %v15617_v15 = vor.u32 %v18032_v6, %v15616_v51  ;;  %10301 = vmatpush.bf16.msrb.mxu3 %v15105_v21  ;;  %v14405_v51 = vor.u32 %v17720_v18, %v14402_v60  ;;  %v14917_v6 = vor.u32 %v17848_v37, %v14914_v35  ;;  %v10046_v21 = vadd.f32 %v19626_v54, %v4678_v14  ;;  %v14786_v54 = vld [vmem:[#allocation26 + $0xed0] sm:$0xf0] }
 0x5a9   :  { %v18160_v8 = vld [vmem:[#allocation26 + $0x194c] sm:$0xf0]  ;;  %v13122_v18 = vld [vmem:[#allocation26 + $0x1d0] sm:$0xf0] }
 0x5aa   :  { %v16640_v49 = vld [vmem:[#allocation26 + $0x1d10] sm:$0xf]  ;;  %v16129_v16 = vor.u32 %v18160_v8, %v16128_v28  ;;  %10314 = vmatpush.bf16.msra.mxu0 %v15617_v15  ;;  %v17576_v28 = vld [vmem:[#allocation26 + $0x714] sm:$0xf]  ;;  %v13317_v15 = vor.u32 %v17448_v53, %v13314_v62 }
 0x5ab   :  { %v18288_v22 = vld [vmem:[#allocation26 + $0x1d4c] sm:$0xf0]  ;;  %v13826_v8 = vld [vmem:[#allocation26 + $0x750] sm:$0xf0] }
 0x5ac   :  { %v15040_v17 = vld [vmem:[#allocation26 + $0x1090] sm:$0xf]  ;;  %v16641_v61 = vor.u32 %v18288_v22, %v16640_v49  ;;  %10327 = vmatpush.bf16.msra.mxu1 %v16129_v16  ;;  %v17704_v49 = vld [vmem:[#allocation26 + $0xb14] sm:$0xf] }
 0x5ad   :  { %v17888_v30 = vld [vmem:[#allocation26 + $0x10cc] sm:$0xf0]  ;;  %v14338_v22 = vld [vmem:[#allocation26 + $0xb50] sm:$0xf0] }
 0x5ae   :  { %v15552_v3 = vld [vmem:[#allocation26 + $0x1490] sm:$0xf]  ;;  %v15041_v4 = vor.u32 %v17888_v30, %v15040_v17  ;;  %10340 = vmatpush.bf16.msra.mxu2 %v16641_v61  ;;  %v13829_v17 = vor.u32 %v17576_v28, %v13826_v8  ;;  %v17432_v30 = vld [vmem:[#allocation26 + $0x294] sm:$0xf]  ;;  %v14341_v61 = vor.u32 %v17704_v49, %v14338_v22  ;;  %v10097_v28 = vpop.f32.mrf.mxu3 }
 0x5af   :  { %v18016_v23 = vld [vmem:[#allocation26 + $0x14cc] sm:$0xf0]  ;;  %v13250_v16 = vld [vmem:[#allocation26 + $0x2d0] sm:$0xf0] }
 0x5b0   :  { %v16064_v45 = vld [vmem:[#allocation26 + $0x1890] sm:$0xf]  ;;  %v15553_v59 = vor.u32 %v18016_v23, %v15552_v3  ;;  %10302 = vmatpush.bf16.msrb.mxu3 %v15041_v4  ;;  %v14853_v3 = vor.u32 %v17832_v55, %v14850_v63  ;;  %v17560_v23 = vld [vmem:[#allocation26 + $0x694] sm:$0xf]  ;;  %v13253_v4 = vor.u32 %v17432_v30, %v13250_v16  ;;  %v10136_v63 = vpop.f32.mrf.mxu2 }
 0x5b1   :  { %v18144_v47 = vld [vmem:[#allocation26 + $0x18cc] sm:$0xf0]  ;;  %v17528_v60 = vld [vmem:[#allocation26 + $0x594] sm:$0xf] }
 0x5b2   :  { %v16576_v50 = vld [vmem:[#allocation26 + $0x1c90] sm:$0xf]  ;;  %v16065_v24 = vor.u32 %v18144_v47, %v16064_v45  ;;  %10315 = vmatpush.bf16.msra.mxu0 %v15553_v59  ;;  %v13762_v45 = vld [vmem:[#allocation26 + $0x6d0] sm:$0xf0] }
 0x5b3   :  { %v18272_v26 = vld [vmem:[#allocation26 + $0x1ccc] sm:$0xf0]  ;;  %v17688_v47 = vld [vmem:[#allocation26 + $0xa94] sm:$0xf]  ;;  %v13765_v59 = vor.u32 %v17560_v23, %v13762_v45 }
 0x5b4   :  { %v14976_v27 = vld [vmem:[#allocation26 + $0x1010] sm:$0xf]  ;;  %v16577_v34 = vor.u32 %v18272_v26, %v16576_v50  ;;  %10328 = vmatpush.bf16.msra.mxu1 %v16065_v24  ;;  %v14274_v50 = vld [vmem:[#allocation26 + $0xad0] sm:$0xf0] }
 0x5b5   :  { %v17872_v5 = vld [vmem:[#allocation26 + $0x104c] sm:$0xf0]  ;;  %v17816_v26 = vld [vmem:[#allocation26 + $0xe94] sm:$0xf] }
 0x5b6   :  { %v15488_v2 = vld [vmem:[#allocation26 + $0x1410] sm:$0xf]  ;;  %v14977_v11 = vor.u32 %v17872_v5, %v14976_v27  ;;  %10341 = vmatpush.bf16.msra.mxu2 %v16577_v34  ;;  %v10059_v27 = vadd.f32 %v19622_v40, %v10046_v21  ;;  %v17416_v5 = vld [vmem:[#allocation26 + $0x214] sm:$0xf]  ;;  %v14789_v24 = vor.u32 %v17816_v26, %v14786_v54  ;;  %v10123_v40 = vpop.f32.mrf.mxu1 }
 0x5b7   :  { %v18000_v33 = vld [vmem:[#allocation26 + $0x144c] sm:$0xf0]  ;;  %v17544_v34 = vld [vmem:[#allocation26 + $0x614] sm:$0xf] }
 0x5b8   :  { %v16000_v29 = vld [vmem:[#allocation26 + $0x1810] sm:$0xf]  ;;  %v15489_v46 = vor.u32 %v18000_v33, %v15488_v2  ;;  %10303 = vmatpush.bf16.msrb.mxu3 %v14977_v11  ;;  %v13186_v2 = vld [vmem:[#allocation26 + $0x250] sm:$0xf0]  ;;  %v14277_v33 = vor.u32 %v17688_v47, %v14274_v50  ;;  %v10072_v19 = vadd.f32 %v19624_v48, %v10059_v27  ;;  %v13701_v56 = vor.u32 %v17544_v34, %v13698_v0 }
 0x5b9   :  { %v18128_v38 = vld [vmem:[#allocation26 + $0x184c] sm:$0xf0]  ;;  %v13189_v41 = vor.u32 %v17416_v5, %v13186_v2  ;;  %v13634_v37 = vld [vmem:[#allocation26 + $0x5d0] sm:$0xf0]  ;;  %v13125_v48 = vor.u32 %v17400_v25, %v13122_v18  ;;  %v10138_v18 = vpop.f32.mrf.mxu2 }
 0x5ba   :  { %v16512_v7 = vld [vmem:[#allocation26 + $0x1c10] sm:$0xf]  ;;  %v16001_v36 = vor.u32 %v18128_v38, %v16000_v29  ;;  %10316 = vmatpush.bf16.msra.mxu0 %v15489_v46  ;;  %v17672_v29 = vld [vmem:[#allocation26 + $0xa14] sm:$0xf] }
 0x5bb   :  { %v18256_v42 = vld [vmem:[#allocation26 + $0x1c4c] sm:$0xf0]  ;;  %10304 = vmatmul.bf16.vlgmr.msrb.gmra.mxu3 %v19560_v12  ;;  %v14210_v38 = vld [vmem:[#allocation26 + $0xa50] sm:$0xf0] }
 0x5bc   :  { %v16513_v32 = vor.u32 %v18256_v42, %v16512_v7  ;;  %10329 = vmatpush.bf16.msra.mxu1 %v16001_v36  ;;  %10348 = vmatpush.bf16.msra.mxu3 %v13381_v44  ;;  %v17800_v7 = vld [vmem:[#allocation26 + $0xe14] sm:$0xf]  ;;  %v10110_v42 = vpop.f32.mrf.mxu0  ;;  %v14213_v11 = vor.u32 %v17672_v29, %v14210_v38  ;;  %v10085_v44 = vadd.f32 %v19628_v10, %v10072_v19 }
 0x5bd   :  { %10317 = vmatmul.bf16.vlgmr.msra.gmra.mxu0 %v19562_v1  ;;  %v14725_v46 = vor.u32 %v17800_v7, %v14722_v39  ;;  %v17656_v35 = vld [vmem:[#allocation26 + $0x994] sm:$0xf] }
 0x5be   :  { %10342 = vmatpush.bf16.msra.mxu2 %v16513_v32  ;;  %10361 = vmatpush.bf16.msrb.mxu0 %v13893_v31  ;;  %v14146_v36 = vld [vmem:[#allocation26 + $0x9d0] sm:$0xf0]  ;;  %v13637_v31 = vor.u32 %v17528_v60, %v13634_v37  ;;  %v10098_v55 = vadd.f32 %v10097_v28, %v10085_v44  ;;  %v10125_v16 = vpop.f32.mrf.mxu1 }
 0x5bf   :  { %10330 = vmatmul.bf16.vlgmr.msra.gmra.mxu1 %v19564_v58  ;;  %v17784_v32 = vld [vmem:[#allocation26 + $0xd94] sm:$0xf] }
 0x5c0   :  { %10374 = vmatpush.bf16.msrb.mxu1 %v14405_v51  ;;  %10349 = vmatpush.bf16.msra.mxu3 %v13317_v15  ;;  %v14658_v14 = vld [vmem:[#allocation26 + $0xdd0] sm:$0xf0]  ;;  %v14149_v51 = vor.u32 %v17656_v35, %v14146_v36  ;;  %v10111_v30 = vadd.f32 %v10110_v42, %v10098_v55 }
 0x5c1   :  { %10343 = vmatmul.bf16.vlgmr.msra.gmra.mxu2 %v19566_v20  ;;  %v17384_v53 = vld [vmem:[#allocation26 + $0x114] sm:$0xf] }
 0x5c2   :  { %10387 = vmatpush.bf16.msrb.mxu2 %v14917_v6  ;;  %10362 = vmatpush.bf16.msrb.mxu0 %v13829_v17  ;;  %v13058_v62 = vld [vmem:[#allocation26 + $0x150] sm:$0xf0]  ;;  %v14661_v6 = vor.u32 %v17784_v32, %v14658_v14 }
 0x5c3   :  { %v17512_v8 = vld [vmem:[#allocation26 + $0x514] sm:$0xf] }
 0x5c4   :  { %10375 = vmatpush.bf16.msrb.mxu1 %v14341_v61  ;;  %10350 = vmatpush.bf16.msra.mxu3 %v13253_v4  ;;  %v13570_v49 = vld [vmem:[#allocation26 + $0x550] sm:$0xf0]  ;;  %v10112_v10 = vpop.f32.mrf.mxu0  ;;  %v13061_v61 = vor.u32 %v17384_v53, %v13058_v62  ;;  %v10124_v4 = vadd.f32 %v10123_v40, %v10111_v30 }
 0x5c5   :  { %v17640_v22 = vld [vmem:[#allocation26 + $0x914] sm:$0xf] }
 0x5c6   :  { %10388 = vmatpush.bf16.msrb.mxu2 %v14853_v3  ;;  %10363 = vmatpush.bf16.msrb.mxu0 %v13765_v59  ;;  %v14082_v21 = vld [vmem:[#allocation26 + $0x950] sm:$0xf0]  ;;  %v13573_v3 = vor.u32 %v17512_v8, %v13570_v49  ;;  %v10137_v34 = vadd.f32 %v10136_v63, %v10124_v4 }
 0x5c7   :  { %v17768_v15 = vld [vmem:[#allocation26 + $0xd14] sm:$0xf]  ;;  %v14085_v47 = vor.u32 %v17640_v22, %v14082_v21 }
 0x5c8   :  { %10376 = vmatpush.bf16.msrb.mxu1 %v14277_v33  ;;  %10351 = vmatpush.bf16.msra.mxu3 %v13189_v41  ;;  %v14594_v17 = vld [vmem:[#allocation26 + $0xd50] sm:$0xf0]  ;;  %v10099_v41 = vpop.f32.mrf.mxu3  ;;  %11494 = vst [vmem:[#allocation29 + $0x10] sm:$0xff] %v10137_v34 }
 0x5c9   :  { %v17368_v23 = vld [vmem:[#allocation26 + $0x94] sm:$0xf]  ;;  %v14597_v50 = vor.u32 %v17768_v15, %v14594_v17 }
 0x5ca   :  { %10389 = vmatpush.bf16.msrb.mxu2 %v14789_v24  ;;  %10364 = vmatpush.bf16.msrb.mxu0 %v13701_v56  ;;  %v12994_v45 = vld [vmem:[#allocation26 + $0xd0] sm:$0xf0] }
 0x5cb   :  { %v17496_v26 = vld [vmem:[#allocation26 + $0x494] sm:$0xf]  ;;  %v12997_v0 = vor.u32 %v17368_v23, %v12994_v45 }
 0x5cc   :  { %10377 = vmatpush.bf16.msrb.mxu1 %v14213_v11  ;;  %10352 = vmatpush.bf16.msra.mxu3 %v13125_v48  ;;  %v13506_v54 = vld [vmem:[#allocation26 + $0x4d0] sm:$0xf0] }
 0x5cd   :  { %v17624_v27 = vld [vmem:[#allocation26 + $0x894] sm:$0xf]  ;;  %v13509_v29 = vor.u32 %v17496_v26, %v13506_v54 }
 0x5ce   :  { %10390 = vmatpush.bf16.msrb.mxu2 %v14725_v46  ;;  %10365 = vmatpush.bf16.msrb.mxu0 %v13637_v31  ;;  %v14018_v59 = vld [vmem:[#allocation26 + $0x8d0] sm:$0xf0] }
 0x5cf   :  { %v17752_v5 = vld [vmem:[#allocation26 + $0xc94] sm:$0xf]  ;;  %v14021_v42 = vor.u32 %v17624_v27, %v14018_v59 }
 0x5d0   :  { %10378 = vmatpush.bf16.msrb.mxu1 %v14149_v51  ;;  %v14530_v2 = vld [vmem:[#allocation26 + $0xcd0] sm:$0xf0]  ;;  %10353 = vmatpush.bf16.msra.mxu3 %v13061_v61 }
 0x5d1   :  { %v17352_v33 = vld [vmem:[#allocation26 + $0x14] sm:$0xf]  ;;  %v14533_v19 = vor.u32 %v17752_v5, %v14530_v2 }
 0x5d2   :  { %10391 = vmatpush.bf16.msrb.mxu2 %v14661_v6  ;;  %v12930_v24 = vld [vmem:[#allocation26 + $0x50] sm:$0xf0]  ;;  %10366 = vmatpush.bf16.msrb.mxu0 %v13573_v3 }
 0x5d3   :  { %v17480_v38 = vld [vmem:[#allocation26 + $0x414] sm:$0xf]  ;;  %v12933_v36 = vor.u32 %v17352_v33, %v12930_v24 }
 0x5d4   :  { %v13442_v7 = vld [vmem:[#allocation26 + $0x450] sm:$0xf0]  ;;  %10379 = vmatpush.bf16.msrb.mxu1 %v14085_v47  ;;  %10354 = vmatpush.bf16.msra.mxu3 %v12997_v0 }
 0x5d5   :  { %v17608_v39 = vld [vmem:[#allocation26 + $0x814] sm:$0xf]  ;;  %v13445_v32 = vor.u32 %v17480_v38, %v13442_v7 }
 0x5d6   :  { %10392 = vmatpush.bf16.msrb.mxu2 %v14597_v50  ;;  %v13954_v56 = vld [vmem:[#allocation26 + $0x850] sm:$0xf0]  ;;  %10367 = vmatpush.bf16.msrb.mxu0 %v13509_v29 }
 0x5d7   :  { %v17736_v40 = vld [vmem:[#allocation26 + $0xc14] sm:$0xf]  ;;  %v13957_v31 = vor.u32 %v17608_v39, %v13954_v56 }
 0x5d8   :  { %v14466_v25 = vld [vmem:[#allocation26 + $0xc50] sm:$0xf0]  ;;  %10380 = vmatpush.bf16.msrb.mxu1 %v14021_v42  ;;  %10355 = vmatpush.bf16.msra.mxu3 %v12933_v36  ;;  %v19645_v42 = vpop.f32.mrf.mxu0 }
 0x5d9   :  { %v17976_v11 = vld [vmem:[#allocation26 + $0x1394] sm:$0xf]  ;;  %v14469_v53 = vor.u32 %v17736_v40, %v14466_v25 }
 0x5da   :  { %v15426_v46 = vld [vmem:[#allocation26 + $0x13d0] sm:$0xf0]  ;;  %10393 = vmatpush.bf16.msrb.mxu2 %v14533_v19  ;;  %10368 = vmatpush.bf16.msrb.mxu0 %v13445_v32  ;;  %v19647_v19 = vpop.f32.mrf.mxu1 }
 0x5db   :  { %v18104_v60 = vld [vmem:[#allocation26 + $0x1794] sm:$0xf]  ;;  %v15429_v62 = vor.u32 %v17976_v11, %v15426_v46  ;;  %10356 = vmatmul.bf16.vlgmr.msra.gmra.mxu3 %v19534_v57 }
 0x5dc   :  { %v15938_v37 = vld [vmem:[#allocation26 + $0x17d0] sm:$0xf0]  ;;  %10381 = vmatpush.bf16.msrb.mxu1 %v13957_v31 }
 0x5dd   :  { %v18232_v35 = vld [vmem:[#allocation26 + $0x1b94] sm:$0xf]  ;;  %v15941_v51 = vor.u32 %v18104_v60, %v15938_v37  ;;  %10400 = vmatpush.bf16.msrb.mxu3 %v15429_v62  ;;  %10369 = vmatmul.bf16.vlgmr.msrb.gmra.mxu0 %v19536_v52 }
 0x5de   :  { %v16450_v14 = vld [vmem:[#allocation26 + $0x1bd0] sm:$0xf0]  ;;  %10394 = vmatpush.bf16.msrb.mxu2 %v14469_v53 }
 0x5df   :  { %v18360_v44 = vld [vmem:[#allocation26 + $0x1f94] sm:$0xf]  ;;  %v16453_v8 = vor.u32 %v18232_v35, %v16450_v14  ;;  %10413 = vmatpush.bf16.msra.mxu0 %v15941_v51  ;;  %10382 = vmatmul.bf16.vlgmr.msrb.gmra.mxu1 %v19538_v13  ;;  %v19649_v51 = vpop.f32.mrf.mxu3 }
 0x5e0   :  { %v16962_v48 = vld [vmem:[#allocation26 + $0x1fd0] sm:$0xf0] }
 0x5e1   :  { %v17960_v6 = vld [vmem:[#allocation26 + $0x1314] sm:$0xf]  ;;  %v16965_v49 = vor.u32 %v18360_v44, %v16962_v48  ;;  %10426 = vmatpush.bf16.msra.mxu1 %v16453_v8  ;;  %10395 = vmatmul.bf16.vlgmr.msrb.gmra.mxu2 %v19540_v9 }
 0x5e2   :  { %v15362_v28 = vld [vmem:[#allocation26 + $0x1350] sm:$0xf0] }
 0x5e3   :  { %v18088_v22 = vld [vmem:[#allocation26 + $0x1714] sm:$0xf]  ;;  %v15365_v10 = vor.u32 %v17960_v6, %v15362_v28  ;;  %10439 = vmatpush.bf16.msra.mxu2 %v16965_v49  ;;  %v19651_v49 = vpop.f32.mrf.mxu2 }
 0x5e4   :  { %v15874_v55 = vld [vmem:[#allocation26 + $0x1750] sm:$0xf0] }
 0x5e5   :  { %v18216_v63 = vld [vmem:[#allocation26 + $0x1b14] sm:$0xf]  ;;  %v15877_v30 = vor.u32 %v18088_v22, %v15874_v55  ;;  %10401 = vmatpush.bf16.msrb.mxu3 %v15365_v10 }
 0x5e6   :  { %v16386_v21 = vld [vmem:[#allocation26 + $0x1b50] sm:$0xf0] }
 0x5e7   :  { %v18344_v15 = vld [vmem:[#allocation26 + $0x1f14] sm:$0xf]  ;;  %v16389_v3 = vor.u32 %v18216_v63, %v16386_v21  ;;  %10414 = vmatpush.bf16.msra.mxu0 %v15877_v30  ;;  %v10164_v21 = vpop.f32.mrf.mxu0 }
 0x5e8   :  { %v16898_v17 = vld [vmem:[#allocation26 + $0x1f50] sm:$0xf0]  ;;  %v14856_v21 = vld [vmem:[#allocation26 + $0xf18] sm:$0xf] }
 0x5e9   :  { %v17944_v16 = vld [vmem:[#allocation26 + $0x1294] sm:$0xf]  ;;  %v16901_v23 = vor.u32 %v18344_v15, %v16898_v17  ;;  %10427 = vmatpush.bf16.msra.mxu1 %v16389_v3  ;;  %v10177_v15 = vpop.f32.mrf.mxu1 }
 0x5ea   :  { %v15298_v61 = vld [vmem:[#allocation26 + $0x12d0] sm:$0xf0]  ;;  %v17841_v15 = vld [vmem:[#allocation26 + $0xf54] sm:$0xf0] }
 0x5eb   :  { %v18072_v45 = vld [vmem:[#allocation26 + $0x1694] sm:$0xf]  ;;  %v15301_v4 = vor.u32 %v17944_v16, %v15298_v61  ;;  %10440 = vmatpush.bf16.msra.mxu2 %v16901_v23 }
 0x5ec   :  { %v15810_v47 = vld [vmem:[#allocation26 + $0x16d0] sm:$0xf0] }
 0x5ed   :  { %v18200_v50 = vld [vmem:[#allocation26 + $0x1a94] sm:$0xf]  ;;  %v15813_v59 = vor.u32 %v18072_v45, %v15810_v47  ;;  %10402 = vmatpush.bf16.msrb.mxu3 %v15301_v4 }
 0x5ee   :  { %v16322_v26 = vld [vmem:[#allocation26 + $0x1ad0] sm:$0xf0] }
 0x5ef   :  { %v18328_v54 = vld [vmem:[#allocation26 + $0x1e94] sm:$0xf]  ;;  %v16325_v33 = vor.u32 %v18200_v50, %v16322_v26  ;;  %10415 = vmatpush.bf16.msra.mxu0 %v15813_v59 }
 0x5f0   :  { %v16834_v27 = vld [vmem:[#allocation26 + $0x1ed0] sm:$0xf0] }
 0x5f1   :  { %v17928_v5 = vld [vmem:[#allocation26 + $0x1214] sm:$0xf]  ;;  %v16837_v24 = vor.u32 %v18328_v54, %v16834_v27  ;;  %10428 = vmatpush.bf16.msra.mxu1 %v16325_v33 }
 0x5f2   :  { %v15234_v2 = vld [vmem:[#allocation26 + $0x1250] sm:$0xf0] }
 0x5f3   :  { %v18056_v34 = vld [vmem:[#allocation26 + $0x1614] sm:$0xf]  ;;  %v15237_v41 = vor.u32 %v17928_v5, %v15234_v2  ;;  %10441 = vmatpush.bf16.msra.mxu2 %v16837_v24 }
 0x5f4   :  { %v15746_v0 = vld [vmem:[#allocation26 + $0x1650] sm:$0xf0] }
 0x5f5   :  { %v18184_v29 = vld [vmem:[#allocation26 + $0x1a14] sm:$0xf]  ;;  %v15749_v56 = vor.u32 %v18056_v34, %v15746_v0  ;;  %10403 = vmatpush.bf16.msrb.mxu3 %v15237_v41  ;;  %v10151_v0 = vpop.f32.mrf.mxu3 }
 0x5f6   :  { %v16258_v38 = vld [vmem:[#allocation26 + $0x1a50] sm:$0xf0]  ;;  %v14216_v0 = vld [vmem:[#allocation26 + $0xa18] sm:$0xf] }
 0x5f7   :  { %v18312_v7 = vld [vmem:[#allocation26 + $0x1e14] sm:$0xf]  ;;  %v16261_v18 = vor.u32 %v18184_v29, %v16258_v38  ;;  %10416 = vmatpush.bf16.msra.mxu0 %v15749_v56  ;;  %v13384_v56 = vld [vmem:[#allocation26 + $0x398] sm:$0xf] }
 0x5f8   :  { %v16770_v39 = vld [vmem:[#allocation26 + $0x1e50] sm:$0xf0] }
 0x5f9   :  { %v17912_v40 = vld [vmem:[#allocation26 + $0x1194] sm:$0xf]  ;;  %v16773_v11 = vor.u32 %v18312_v7, %v16770_v39  ;;  %10429 = vmatpush.bf16.msra.mxu1 %v16261_v18  ;;  %v10190_v39 = vpop.f32.mrf.mxu2  ;;  %v17601_v18 = vld [vmem:[#allocation26 + $0x7d4] sm:$0xf0] }
 0x5fa   :  { %v15170_v25 = vld [vmem:[#allocation26 + $0x11d0] sm:$0xf0]  ;;  %v10214_v39 = vpop.f32.mrf.mxu0 }
 0x5fb   :  { %v18040_v46 = vld [vmem:[#allocation26 + $0x1594] sm:$0xf]  ;;  %v15173_v14 = vor.u32 %v17912_v40, %v15170_v25  ;;  %10442 = vmatpush.bf16.msra.mxu2 %v16773_v11  ;;  %v17473_v40 = vld [vmem:[#allocation26 + $0x3d4] sm:$0xf0] }
 0x5fc   :  { %v15682_v60 = vld [vmem:[#allocation26 + $0x15d0] sm:$0xf0]  ;;  %v13896_v25 = vld [vmem:[#allocation26 + $0x798] sm:$0xf] }
 0x5fd   :  { %v18168_v37 = vld [vmem:[#allocation26 + $0x1994] sm:$0xf]  ;;  %v15685_v44 = vor.u32 %v18040_v46, %v15682_v60  ;;  %10404 = vmatpush.bf16.msrb.mxu3 %v15173_v14  ;;  %v14408_v11 = vld [vmem:[#allocation26 + $0xb98] sm:$0xf] }
 0x5fe   :  { %v16194_v35 = vld [vmem:[#allocation26 + $0x19d0] sm:$0xf0] }
 0x5ff   :  { %v18296_v36 = vld [vmem:[#allocation26 + $0x1d94] sm:$0xf]  ;;  %v16197_v53 = vor.u32 %v18168_v37, %v16194_v35  ;;  %10417 = vmatpush.bf16.msra.mxu0 %v15685_v44  ;;  %v17729_v37 = vld [vmem:[#allocation26 + $0xbd4] sm:$0xf0]  ;;  %v4679_v44 = vperm.slane %v19630_v43, 3 }
 0x600   :  { %v16706_v32 = vld [vmem:[#allocation26 + $0x1dd0] sm:$0xf0]  ;;  %v14920_v35 = vld [vmem:[#allocation26 + $0xf98] sm:$0xf] }
 0x601   :  { %v17896_v48 = vld [vmem:[#allocation26 + $0x1114] sm:$0xf]  ;;  %v16709_v62 = vor.u32 %v18296_v36, %v16706_v32  ;;  %10430 = vmatpush.bf16.msra.mxu1 %v16197_v53  ;;  %v17857_v36 = vld [vmem:[#allocation26 + $0xfd4] sm:$0xf0] }
 0x602   :  { %v15106_v31 = vld [vmem:[#allocation26 + $0x1150] sm:$0xf0]  ;;  %v13320_v53 = vld [vmem:[#allocation26 + $0x318] sm:$0xf] }
 0x603   :  { %v18024_v6 = vld [vmem:[#allocation26 + $0x1514] sm:$0xf]  ;;  %v15109_v17 = vor.u32 %v17896_v48, %v15106_v31  ;;  %10443 = vmatpush.bf16.msra.mxu2 %v16709_v62  ;;  %v13385_v48 = vor.u32 %v17473_v40, %v13384_v56  ;;  %v13897_v31 = vor.u32 %v17601_v18, %v13896_v25  ;;  %v17457_v62 = vld [vmem:[#allocation26 + $0x354] sm:$0xf0] }
 0x604   :  { %v15618_v28 = vld [vmem:[#allocation26 + $0x1550] sm:$0xf0]  ;;  %v13321_v43 = vor.u32 %v17457_v62, %v13320_v53  ;;  %v13128_v25 = vld [vmem:[#allocation26 + $0x198] sm:$0xf] }
 0x605   :  { %v18152_v8 = vld [vmem:[#allocation26 + $0x1914] sm:$0xf]  ;;  %v15621_v10 = vor.u32 %v18024_v6, %v15618_v28  ;;  %10405 = vmatpush.bf16.msrb.mxu3 %v15109_v17  ;;  %v14409_v6 = vor.u32 %v17729_v37, %v14408_v11  ;;  %v14921_v28 = vor.u32 %v17857_v36, %v14920_v35  ;;  %v10150_v17 = vadd.f32 %v19649_v51, %v4679_v44  ;;  %v17825_v51 = vld [vmem:[#allocation26 + $0xed4] sm:$0xf0] }
 0x606   :  { %v16130_v22 = vld [vmem:[#allocation26 + $0x1950] sm:$0xf0]  ;;  %v17409_v18 = vld [vmem:[#allocation26 + $0x1d4] sm:$0xf0] }
 0x607   :  { %v18280_v55 = vld [vmem:[#allocation26 + $0x1d14] sm:$0xf]  ;;  %v16133_v61 = vor.u32 %v18152_v8, %v16130_v22  ;;  %10418 = vmatpush.bf16.msra.mxu0 %v15621_v10  ;;  %v13832_v8 = vld [vmem:[#allocation26 + $0x718] sm:$0xf] }
 0x608   :  { %v16642_v63 = vld [vmem:[#allocation26 + $0x1d50] sm:$0xf0]  ;;  %v17585_v22 = vld [vmem:[#allocation26 + $0x754] sm:$0xf0] }
 0x609   :  { %v17880_v30 = vld [vmem:[#allocation26 + $0x1094] sm:$0xf]  ;;  %v16645_v3 = vor.u32 %v18280_v55, %v16642_v63  ;;  %10431 = vmatpush.bf16.msra.mxu1 %v16133_v61  ;;  %v14344_v55 = vld [vmem:[#allocation26 + $0xb18] sm:$0xf]  ;;  %v13833_v10 = vor.u32 %v17585_v22, %v13832_v8 }
 0x60a   :  { %v15042_v16 = vld [vmem:[#allocation26 + $0x10d0] sm:$0xf0]  ;;  %v17713_v63 = vld [vmem:[#allocation26 + $0xb54] sm:$0xf0] }
 0x60b   :  { %v18008_v23 = vld [vmem:[#allocation26 + $0x1494] sm:$0xf]  ;;  %v15045_v4 = vor.u32 %v17880_v30, %v15042_v16  ;;  %10444 = vmatpush.bf16.msra.mxu2 %v16645_v3  ;;  %v13256_v30 = vld [vmem:[#allocation26 + $0x298] sm:$0xf]  ;;  %v14345_v61 = vor.u32 %v17713_v63, %v14344_v55  ;;  %v14857_v3 = vor.u32 %v17841_v15, %v14856_v21  ;;  %v10240_v21 = vpop.f32.mrf.mxu2 }
 0x60c   :  { %v15554_v45 = vld [vmem:[#allocation26 + $0x14d0] sm:$0xf0]  ;;  %v17441_v16 = vld [vmem:[#allocation26 + $0x2d4] sm:$0xf0] }
 0x60d   :  { %v18136_v47 = vld [vmem:[#allocation26 + $0x1894] sm:$0xf]  ;;  %v15557_v59 = vor.u32 %v18008_v23, %v15554_v45  ;;  %10406 = vmatpush.bf16.msrb.mxu3 %v15045_v4  ;;  %v13768_v23 = vld [vmem:[#allocation26 + $0x698] sm:$0xf] }
 0x60e   :  { %v16066_v50 = vld [vmem:[#allocation26 + $0x18d0] sm:$0xf0]  ;;  %v17569_v45 = vld [vmem:[#allocation26 + $0x6d4] sm:$0xf0] }
 0x60f   :  { %v18264_v26 = vld [vmem:[#allocation26 + $0x1c94] sm:$0xf]  ;;  %v16069_v24 = vor.u32 %v18136_v47, %v16066_v50  ;;  %10419 = vmatpush.bf16.msra.mxu0 %v15557_v59  ;;  %v14280_v47 = vld [vmem:[#allocation26 + $0xa98] sm:$0xf]  ;;  %v13769_v4 = vor.u32 %v17569_v45, %v13768_v23 }
 0x610   :  { %v16578_v54 = vld [vmem:[#allocation26 + $0x1cd0] sm:$0xf0]  ;;  %v17697_v50 = vld [vmem:[#allocation26 + $0xad4] sm:$0xf0] }
 0x611   :  { %v17864_v27 = vld [vmem:[#allocation26 + $0x1014] sm:$0xf]  ;;  %v16581_v34 = vor.u32 %v18264_v26, %v16578_v54  ;;  %10432 = vmatpush.bf16.msra.mxu1 %v16069_v24  ;;  %v14792_v26 = vld [vmem:[#allocation26 + $0xe98] sm:$0xf]  ;;  %v10163_v54 = vadd.f32 %v19645_v42, %v10150_v17  ;;  %v10227_v42 = vpop.f32.mrf.mxu1 }
 0x612   :  { %v14978_v5 = vld [vmem:[#allocation26 + $0x1050] sm:$0xf0]  ;;  %v13192_v59 = vld [vmem:[#allocation26 + $0x218] sm:$0xf] }
 0x613   :  { %v17992_v2 = vld [vmem:[#allocation26 + $0x1414] sm:$0xf]  ;;  %v14981_v46 = vor.u32 %v17864_v27, %v14978_v5  ;;  %10445 = vmatpush.bf16.msra.mxu2 %v16581_v34  ;;  %v13257_v27 = vor.u32 %v17441_v16, %v13256_v30  ;;  %v17425_v5 = vld [vmem:[#allocation26 + $0x254] sm:$0xf0] }
 0x614   :  { %v15490_v33 = vld [vmem:[#allocation26 + $0x1450] sm:$0xf0]  ;;  %v13704_v24 = vld [vmem:[#allocation26 + $0x618] sm:$0xf]  ;;  %v13193_v56 = vor.u32 %v17425_v5, %v13192_v59 }
 0x615   :  { %v18120_v29 = vld [vmem:[#allocation26 + $0x1814] sm:$0xf]  ;;  %v15493_v60 = vor.u32 %v17992_v2, %v15490_v33  ;;  %10407 = vmatpush.bf16.msrb.mxu3 %v14981_v46  ;;  %v14281_v2 = vor.u32 %v17697_v50, %v14280_v47  ;;  %v14793_v33 = vor.u32 %v17825_v51, %v14792_v26  ;;  %v17553_v34 = vld [vmem:[#allocation26 + $0x654] sm:$0xf0] }
 0x616   :  { %v16002_v38 = vld [vmem:[#allocation26 + $0x1850] sm:$0xf0]  ;;  %v13705_v40 = vor.u32 %v17553_v34, %v13704_v24  ;;  %v17537_v37 = vld [vmem:[#allocation26 + $0x5d4] sm:$0xf0] }
 0x617   :  { %v18248_v7 = vld [vmem:[#allocation26 + $0x1c14] sm:$0xf]  ;;  %v16005_v32 = vor.u32 %v18120_v29, %v16002_v38  ;;  %10420 = vmatpush.bf16.msra.mxu0 %v15493_v60  ;;  %v17681_v29 = vld [vmem:[#allocation26 + $0xa54] sm:$0xf0] }
 0x618   :  { %v16514_v41 = vld [vmem:[#allocation26 + $0x1c50] sm:$0xf0]  ;;  %10408 = vmatmul.bf16.vlgmr.msrb.gmra.mxu3 %v19560_v12  ;;  %v14728_v38 = vld [vmem:[#allocation26 + $0xe18] sm:$0xf]  ;;  %v14217_v11 = vor.u32 %v17681_v29, %v14216_v0 }
 0x619   :  { %v16517_v14 = vor.u32 %v18248_v7, %v16514_v41  ;;  %10433 = vmatpush.bf16.msra.mxu1 %v16005_v32  ;;  %10452 = vmatpush.bf16.msra.mxu3 %v13385_v48  ;;  %v17809_v7 = vld [vmem:[#allocation26 + $0xe54] sm:$0xf0]  ;;  %v10176_v41 = vadd.f32 %v19647_v19, %v10163_v54  ;;  %v13129_v19 = vor.u32 %v17409_v18, %v13128_v25  ;;  %v10229_v30 = vpop.f32.mrf.mxu1  ;;  %v10242_v25 = vpop.f32.mrf.mxu2 }
 0x61a   :  { %10421 = vmatmul.bf16.vlgmr.msra.gmra.mxu0 %v19562_v1  ;;  %v14729_v46 = vor.u32 %v17809_v7, %v14728_v38  ;;  %v13640_v60 = vld [vmem:[#allocation26 + $0x598] sm:$0xf] }
 0x61b   :  { %10446 = vmatpush.bf16.msra.mxu2 %v16517_v14  ;;  %10465 = vmatpush.bf16.msrb.mxu0 %v13897_v31  ;;  %v14152_v35 = vld [vmem:[#allocation26 + $0x998] sm:$0xf]  ;;  %v10189_v44 = vadd.f32 %v19651_v49, %v10176_v41  ;;  %v13641_v48 = vor.u32 %v17537_v37, %v13640_v60  ;;  %v10216_v49 = vpop.f32.mrf.mxu0 }
 0x61c   :  { %10434 = vmatmul.bf16.vlgmr.msra.gmra.mxu1 %v19564_v58  ;;  %v17665_v36 = vld [vmem:[#allocation26 + $0x9d4] sm:$0xf0] }
 0x61d   :  { %10478 = vmatpush.bf16.msrb.mxu1 %v14409_v6  ;;  %10453 = vmatpush.bf16.msra.mxu3 %v13321_v43  ;;  %v14664_v32 = vld [vmem:[#allocation26 + $0xd98] sm:$0xf]  ;;  %v14153_v62 = vor.u32 %v17665_v36, %v14152_v35 }
 0x61e   :  { %10447 = vmatmul.bf16.vlgmr.msra.gmra.mxu2 %v19566_v20  ;;  %v17793_v14 = vld [vmem:[#allocation26 + $0xdd4] sm:$0xf0] }
 0x61f   :  { %10491 = vmatpush.bf16.msrb.mxu2 %v14921_v28  ;;  %10466 = vmatpush.bf16.msrb.mxu0 %v13833_v10  ;;  %v13064_v31 = vld [vmem:[#allocation26 + $0x118] sm:$0xf]  ;;  %v14665_v6 = vor.u32 %v17793_v14, %v14664_v32  ;;  %v10201_v28 = vpop.f32.mrf.mxu3 }
 0x620   :  { %v17393_v53 = vld [vmem:[#allocation26 + $0x154] sm:$0xf0]  ;;  %v10202_v63 = vadd.f32 %v10201_v28, %v10189_v44 }
 0x621   :  { %10479 = vmatpush.bf16.msrb.mxu1 %v14345_v61  ;;  %10454 = vmatpush.bf16.msra.mxu3 %v13257_v27  ;;  %v13576_v8 = vld [vmem:[#allocation26 + $0x518] sm:$0xf]  ;;  %v13065_v16 = vor.u32 %v17393_v53, %v13064_v31 }
 0x622   :  { %v17521_v22 = vld [vmem:[#allocation26 + $0x554] sm:$0xf0]  ;;  %v10215_v10 = vadd.f32 %v10214_v39, %v10202_v63 }
 0x623   :  { %10492 = vmatpush.bf16.msrb.mxu2 %v14857_v3  ;;  %10467 = vmatpush.bf16.msrb.mxu0 %v13769_v4  ;;  %v14088_v55 = vld [vmem:[#allocation26 + $0x918] sm:$0xf]  ;;  %v13577_v61 = vor.u32 %v17521_v22, %v13576_v8 }
 0x624   :  { %v17649_v15 = vld [vmem:[#allocation26 + $0x954] sm:$0xf0]  ;;  %v10228_v54 = vadd.f32 %v10227_v42, %v10215_v10 }
 0x625   :  { %10480 = vmatpush.bf16.msrb.mxu1 %v14281_v2  ;;  %10455 = vmatpush.bf16.msra.mxu3 %v13193_v56  ;;  %v14600_v17 = vld [vmem:[#allocation26 + $0xd18] sm:$0xf]  ;;  %v14089_v45 = vor.u32 %v17649_v15, %v14088_v55 }
 0x626   :  { %v17777_v43 = vld [vmem:[#allocation26 + $0xd54] sm:$0xf0] }
 0x627   :  { %10493 = vmatpush.bf16.msrb.mxu2 %v14793_v33  ;;  %10468 = vmatpush.bf16.msrb.mxu0 %v13705_v40  ;;  %v13000_v3 = vld [vmem:[#allocation26 + $0x98] sm:$0xf]  ;;  %v14601_v47 = vor.u32 %v17777_v43, %v14600_v17  ;;  %v10241_v33 = vadd.f32 %v10240_v21, %v10228_v54  ;;  %v10203_v41 = vpop.f32.mrf.mxu3 }
 0x628   :  { %v17377_v23 = vld [vmem:[#allocation26 + $0xd4] sm:$0xf0] }
 0x629   :  { %10481 = vmatpush.bf16.msrb.mxu1 %v14217_v11  ;;  %10456 = vmatpush.bf16.msra.mxu3 %v13129_v19  ;;  %v13512_v50 = vld [vmem:[#allocation26 + $0x498] sm:$0xf]  ;;  %v13001_v24 = vor.u32 %v17377_v23, %v13000_v3  ;;  %11495 = vst [vmem:[#allocation29 + $0x18] sm:$0xff] %v10241_v33 }
 0x62a   :  { %v17505_v26 = vld [vmem:[#allocation26 + $0x4d4] sm:$0xf0] }
 0x62b   :  { %10494 = vmatpush.bf16.msrb.mxu2 %v14729_v46  ;;  %10469 = vmatpush.bf16.msrb.mxu0 %v13641_v48  ;;  %v14024_v51 = vld [vmem:[#allocation26 + $0x898] sm:$0xf]  ;;  %v13513_v34 = vor.u32 %v17505_v26, %v13512_v50 }
 0x62c   :  { %v17633_v27 = vld [vmem:[#allocation26 + $0x8d4] sm:$0xf0] }
 0x62d   :  { %10482 = vmatpush.bf16.msrb.mxu1 %v14153_v62  ;;  %v14536_v4 = vld [vmem:[#allocation26 + $0xc98] sm:$0xf]  ;;  %10457 = vmatpush.bf16.msra.mxu3 %v13065_v16  ;;  %v14025_v7 = vor.u32 %v17633_v27, %v14024_v51 }
 0x62e   :  { %v17761_v59 = vld [vmem:[#allocation26 + $0xcd4] sm:$0xf0] }
 0x62f   :  { %10495 = vmatpush.bf16.msrb.mxu2 %v14665_v6  ;;  %v12936_v5 = vld [vmem:[#allocation26 + $0x18] sm:$0xf]  ;;  %10470 = vmatpush.bf16.msrb.mxu0 %v13577_v61  ;;  %v14537_v39 = vor.u32 %v17761_v59, %v14536_v4 }
 0x630   :  { %v17361_v2 = vld [vmem:[#allocation26 + $0x54] sm:$0xf0] }
 0x631   :  { %v13448_v0 = vld [vmem:[#allocation26 + $0x418] sm:$0xf]  ;;  %10483 = vmatpush.bf16.msrb.mxu1 %v14089_v45  ;;  %10458 = vmatpush.bf16.msra.mxu3 %v13001_v24  ;;  %v12937_v35 = vor.u32 %v17361_v2, %v12936_v5 }
 0x632   :  { %v17489_v29 = vld [vmem:[#allocation26 + $0x454] sm:$0xf0] }
 0x633   :  { %v13960_v38 = vld [vmem:[#allocation26 + $0x818] sm:$0xf]  ;;  %10496 = vmatpush.bf16.msrb.mxu2 %v14601_v47  ;;  %10471 = vmatpush.bf16.msrb.mxu0 %v13513_v34  ;;  %v13449_v36 = vor.u32 %v17489_v29, %v13448_v0 }
 0x634   :  { %v17617_v56 = vld [vmem:[#allocation26 + $0x854] sm:$0xf0] }
 0x635   :  { %v14472_v42 = vld [vmem:[#allocation26 + $0xc18] sm:$0xf]  ;;  %10484 = vmatpush.bf16.msrb.mxu1 %v14025_v7  ;;  %v13961_v19 = vor.u32 %v17617_v56, %v13960_v38  ;;  %10459 = vmatpush.bf16.msra.mxu3 %v12937_v35  ;;  %v19666_v38 = vpop.f32.mrf.mxu0  ;;  %v19668_v7 = vpop.f32.mrf.mxu1 }
 0x636   :  { %v17745_v40 = vld [vmem:[#allocation26 + $0xc54] sm:$0xf0] }
 0x637   :  { %v15432_v18 = vld [vmem:[#allocation26 + $0x1398] sm:$0xf]  ;;  %10497 = vmatpush.bf16.msrb.mxu2 %v14537_v39  ;;  %v14473_v48 = vor.u32 %v17745_v40, %v14472_v42  ;;  %10472 = vmatpush.bf16.msrb.mxu0 %v13449_v36 }
 0x638   :  { %v17985_v11 = vld [vmem:[#allocation26 + $0x13d4] sm:$0xf0]  ;;  %10460 = vmatmul.bf16.vlgmr.msra.gmra.mxu3 %v19534_v57 }
 0x639   :  { %v15944_v46 = vld [vmem:[#allocation26 + $0x1798] sm:$0xf]  ;;  %v15433_v31 = vor.u32 %v17985_v11, %v15432_v18  ;;  %10485 = vmatpush.bf16.msrb.mxu1 %v13961_v19 }
 0x63a   :  { %v18113_v60 = vld [vmem:[#allocation26 + $0x17d4] sm:$0xf0]  ;;  %10473 = vmatmul.bf16.vlgmr.msrb.gmra.mxu0 %v19536_v52 }
 0x63b   :  { %v16456_v37 = vld [vmem:[#allocation26 + $0x1b98] sm:$0xf]  ;;  %v15945_v53 = vor.u32 %v18113_v60, %v15944_v46  ;;  %10498 = vmatpush.bf16.msrb.mxu2 %v14473_v48  ;;  %10504 = vmatpush.bf16.msrb.mxu3 %v15433_v31  ;;  %v19670_v31 = vpop.f32.mrf.mxu3 }
 0x63c   :  { %v18241_v32 = vld [vmem:[#allocation26 + $0x1bd4] sm:$0xf0]  ;;  %10486 = vmatmul.bf16.vlgmr.msrb.gmra.mxu1 %v19538_v13 }
 0x63d   :  { %v16968_v14 = vld [vmem:[#allocation26 + $0x1f98] sm:$0xf]  ;;  %v16457_v28 = vor.u32 %v18241_v32, %v16456_v37  ;;  %10517 = vmatpush.bf16.msra.mxu0 %v15945_v53 }
 0x63e   :  { %v18369_v44 = vld [vmem:[#allocation26 + $0x1fd4] sm:$0xf0]  ;;  %10499 = vmatmul.bf16.vlgmr.msrb.gmra.mxu2 %v19540_v9 }
 0x63f   :  { %v15368_v62 = vld [vmem:[#allocation26 + $0x1318] sm:$0xf]  ;;  %v16969_v8 = vor.u32 %v18369_v44, %v16968_v14  ;;  %10530 = vmatpush.bf16.msra.mxu1 %v16457_v28  ;;  %v19672_v28 = vpop.f32.mrf.mxu2 }
 0x640   :  { %v17969_v6 = vld [vmem:[#allocation26 + $0x1354] sm:$0xf0] }
 0x641   :  { %v15880_v22 = vld [vmem:[#allocation26 + $0x1718] sm:$0xf]  ;;  %v15369_v43 = vor.u32 %v17969_v6, %v15368_v62  ;;  %10543 = vmatpush.bf16.msra.mxu2 %v16969_v8 }
 0x642   :  { %v18097_v55 = vld [vmem:[#allocation26 + $0x1754] sm:$0xf0] }
 0x643   :  { %v16392_v63 = vld [vmem:[#allocation26 + $0x1b18] sm:$0xf]  ;;  %v15881_v49 = vor.u32 %v18097_v55, %v15880_v22  ;;  %10505 = vmatpush.bf16.msrb.mxu3 %v15369_v43 }
 0x644   :  { %v18225_v21 = vld [vmem:[#allocation26 + $0x1b54] sm:$0xf0] }
 0x645   :  { %v16904_v15 = vld [vmem:[#allocation26 + $0x1f18] sm:$0xf]  ;;  %v16393_v16 = vor.u32 %v18225_v21, %v16392_v63  ;;  %10518 = vmatpush.bf16.msra.mxu0 %v15881_v49  ;;  %v10268_v63 = vpop.f32.mrf.mxu0  ;;  %v10281_v21 = vpop.f32.mrf.mxu1 }
 0x646   :  { %v18353_v17 = vld [vmem:[#allocation26 + $0x1f54] sm:$0xf0]  ;;  %v17833_v63 = vld [vmem:[#allocation26 + $0xf1c] sm:$0xf] }
 0x647   :  { %v15304_v10 = vld [vmem:[#allocation26 + $0x1298] sm:$0xf]  ;;  %v16905_v61 = vor.u32 %v18353_v17, %v16904_v15  ;;  %10531 = vmatpush.bf16.msra.mxu1 %v16393_v16  ;;  %v14858_v21 = vld [vmem:[#allocation26 + $0xf58] sm:$0xf0] }
 0x648   :  { %v17953_v30 = vld [vmem:[#allocation26 + $0x12d4] sm:$0xf0] }
 0x649   :  { %v15816_v3 = vld [vmem:[#allocation26 + $0x1698] sm:$0xf]  ;;  %v15305_v51 = vor.u32 %v17953_v30, %v15304_v10  ;;  %10544 = vmatpush.bf16.msra.mxu2 %v16905_v61 }
 0x64a   :  { %v18081_v23 = vld [vmem:[#allocation26 + $0x16d4] sm:$0xf0] }
 0x64b   :  { %v16328_v45 = vld [vmem:[#allocation26 + $0x1a98] sm:$0xf]  ;;  %v15817_v54 = vor.u32 %v18081_v23, %v15816_v3  ;;  %10506 = vmatpush.bf16.msrb.mxu3 %v15305_v51 }
 0x64c   :  { %v18209_v47 = vld [vmem:[#allocation26 + $0x1ad4] sm:$0xf0] }
 0x64d   :  { %v16840_v50 = vld [vmem:[#allocation26 + $0x1e98] sm:$0xf]  ;;  %v16329_v59 = vor.u32 %v18209_v47, %v16328_v45  ;;  %10519 = vmatpush.bf16.msra.mxu0 %v15817_v54 }
 0x64e   :  { %v18337_v26 = vld [vmem:[#allocation26 + $0x1ed4] sm:$0xf0] }
 0x64f   :  { %v15240_v27 = vld [vmem:[#allocation26 + $0x1218] sm:$0xf]  ;;  %v16841_v5 = vor.u32 %v18337_v26, %v16840_v50  ;;  %10532 = vmatpush.bf16.msra.mxu1 %v16329_v59 }
 0x650   :  { %v17937_v4 = vld [vmem:[#allocation26 + $0x1254] sm:$0xf0] }
 0x651   :  { %v15752_v2 = vld [vmem:[#allocation26 + $0x1618] sm:$0xf]  ;;  %v15241_v39 = vor.u32 %v17937_v4, %v15240_v27  ;;  %10545 = vmatpush.bf16.msra.mxu2 %v16841_v5 }
 0x652   :  { %v18065_v33 = vld [vmem:[#allocation26 + $0x1654] sm:$0xf0] }
 0x653   :  { %v16264_v24 = vld [vmem:[#allocation26 + $0x1a18] sm:$0xf]  ;;  %v15753_v41 = vor.u32 %v18065_v33, %v15752_v2  ;;  %10507 = vmatpush.bf16.msrb.mxu3 %v15241_v39  ;;  %v10255_v2 = vpop.f32.mrf.mxu3  ;;  %v17465_v39 = vld [vmem:[#allocation26 + $0x39c] sm:$0xf] }
 0x654   :  { %v18193_v34 = vld [vmem:[#allocation26 + $0x1a54] sm:$0xf0]  ;;  %v13706_v2 = vld [vmem:[#allocation26 + $0x658] sm:$0xf0] }
 0x655   :  { %v16776_v0 = vld [vmem:[#allocation26 + $0x1e18] sm:$0xf]  ;;  %v16265_v40 = vor.u32 %v18193_v34, %v16264_v24  ;;  %10520 = vmatpush.bf16.msra.mxu0 %v15753_v41  ;;  %v13386_v41 = vld [vmem:[#allocation26 + $0x3d8] sm:$0xf0] }
 0x656   :  { %v18321_v29 = vld [vmem:[#allocation26 + $0x1e54] sm:$0xf0] }
 0x657   :  { %v15176_v56 = vld [vmem:[#allocation26 + $0x1198] sm:$0xf]  ;;  %v16777_v25 = vor.u32 %v18321_v29, %v16776_v0  ;;  %10533 = vmatpush.bf16.msra.mxu1 %v16265_v40  ;;  %v10294_v0 = vpop.f32.mrf.mxu2  ;;  %v17721_v40 = vld [vmem:[#allocation26 + $0xb9c] sm:$0xf] }
 0x658   :  { %v17921_v42 = vld [vmem:[#allocation26 + $0x11d4] sm:$0xf0]  ;;  %v14730_v0 = vld [vmem:[#allocation26 + $0xe58] sm:$0xf0] }
 0x659   :  { %v15688_v18 = vld [vmem:[#allocation26 + $0x1598] sm:$0xf]  ;;  %v15177_v36 = vor.u32 %v17921_v42, %v15176_v56  ;;  %10546 = vmatpush.bf16.msra.mxu2 %v16777_v25  ;;  %v17593_v56 = vld [vmem:[#allocation26 + $0x79c] sm:$0xf] }
 0x65a   :  { %v18049_v11 = vld [vmem:[#allocation26 + $0x15d4] sm:$0xf0]  ;;  %v13898_v42 = vld [vmem:[#allocation26 + $0x7d8] sm:$0xf0] }
 0x65b   :  { %v16200_v46 = vld [vmem:[#allocation26 + $0x1998] sm:$0xf]  ;;  %v15689_v32 = vor.u32 %v18049_v11, %v15688_v18  ;;  %10508 = vmatpush.bf16.msrb.mxu3 %v15177_v36  ;;  %v14410_v11 = vld [vmem:[#allocation26 + $0xbd8] sm:$0xf0]  ;;  %v19674_v36 = vld [vmem:[#allocation28] sm:$0xff] }
 0x65c   :  { %v18177_v60 = vld [vmem:[#allocation26 + $0x19d4] sm:$0xf0] }
 0x65d   :  { %v16712_v37 = vld [vmem:[#allocation26 + $0x1d98] sm:$0xf]  ;;  %v16201_v19 = vor.u32 %v18177_v60, %v16200_v46  ;;  %10521 = vmatpush.bf16.msra.mxu0 %v15689_v32  ;;  %v17849_v46 = vld [vmem:[#allocation26 + $0xf9c] sm:$0xf]  ;;  %v4680_v32 = vperm.slane %v19674_v36, 4 }
 0x65e   :  { %v18305_v35 = vld [vmem:[#allocation26 + $0x1dd4] sm:$0xf0]  ;;  %v14922_v60 = vld [vmem:[#allocation26 + $0xfd8] sm:$0xf0] }
 0x65f   :  { %v15112_v14 = vld [vmem:[#allocation26 + $0x1118] sm:$0xf]  ;;  %v16713_v48 = vor.u32 %v18305_v35, %v16712_v37  ;;  %10534 = vmatpush.bf16.msra.mxu1 %v16201_v19  ;;  %v17449_v19 = vld [vmem:[#allocation26 + $0x31c] sm:$0xf] }
 0x660   :  { %v17905_v44 = vld [vmem:[#allocation26 + $0x1154] sm:$0xf0] }
 0x661   :  { %v15624_v53 = vld [vmem:[#allocation26 + $0x1518] sm:$0xf]  ;;  %v15113_v15 = vor.u32 %v17905_v44, %v15112_v14  ;;  %10547 = vmatpush.bf16.msra.mxu2 %v16713_v48  ;;  %v13389_v14 = vor.u32 %v17465_v39, %v13386_v41  ;;  %v13901_v44 = vor.u32 %v17593_v56, %v13898_v42  ;;  %v13322_v48 = vld [vmem:[#allocation26 + $0x358] sm:$0xf0] }
 0x662   :  { %v18033_v62 = vld [vmem:[#allocation26 + $0x1554] sm:$0xf0]  ;;  %v17401_v42 = vld [vmem:[#allocation26 + $0x19c] sm:$0xf] }
 0x663   :  { %v16136_v6 = vld [vmem:[#allocation26 + $0x1918] sm:$0xf]  ;;  %v15625_v17 = vor.u32 %v18033_v62, %v15624_v53  ;;  %10509 = vmatpush.bf16.msrb.mxu3 %v15113_v15  ;;  %v14413_v53 = vor.u32 %v17721_v40, %v14410_v11  ;;  %v14925_v62 = vor.u32 %v17849_v46, %v14922_v60  ;;  %v10254_v15 = vadd.f32 %v19670_v31, %v4680_v32  ;;  %v14794_v31 = vld [vmem:[#allocation26 + $0xed8] sm:$0xf0] }
 0x664   :  { %v18161_v8 = vld [vmem:[#allocation26 + $0x1954] sm:$0xf0]  ;;  %v13130_v40 = vld [vmem:[#allocation26 + $0x1d8] sm:$0xf0] }
 0x665   :  { %v16648_v22 = vld [vmem:[#allocation26 + $0x1d18] sm:$0xf]  ;;  %v16137_v10 = vor.u32 %v18161_v8, %v16136_v6  ;;  %10522 = vmatpush.bf16.msra.mxu0 %v15625_v17  ;;  %v17577_v6 = vld [vmem:[#allocation26 + $0x71c] sm:$0xf]  ;;  %v13325_v17 = vor.u32 %v17449_v19, %v13322_v48 }
 0x666   :  { %v18289_v55 = vld [vmem:[#allocation26 + $0x1d54] sm:$0xf0]  ;;  %v13834_v8 = vld [vmem:[#allocation26 + $0x758] sm:$0xf0] }
 0x667   :  { %v15048_v43 = vld [vmem:[#allocation26 + $0x1098] sm:$0xf]  ;;  %v16649_v30 = vor.u32 %v18289_v55, %v16648_v22  ;;  %10535 = vmatpush.bf16.msra.mxu1 %v16137_v10  ;;  %v17705_v22 = vld [vmem:[#allocation26 + $0xb1c] sm:$0xf] }
 0x668   :  { %v17889_v49 = vld [vmem:[#allocation26 + $0x10d4] sm:$0xf0]  ;;  %v14346_v55 = vld [vmem:[#allocation26 + $0xb58] sm:$0xf0] }
 0x669   :  { %v15560_v16 = vld [vmem:[#allocation26 + $0x1498] sm:$0xf]  ;;  %v15049_v26 = vor.u32 %v17889_v49, %v15048_v43  ;;  %10548 = vmatpush.bf16.msra.mxu2 %v16649_v30  ;;  %v13837_v43 = vor.u32 %v17577_v6, %v13834_v8  ;;  %v17433_v49 = vld [vmem:[#allocation26 + $0x29c] sm:$0xf]  ;;  %v14349_v30 = vor.u32 %v17705_v22, %v14346_v55  ;;  %v10305_v6 = vpop.f32.mrf.mxu3 }
 0x66a   :  { %v18017_v61 = vld [vmem:[#allocation26 + $0x14d4] sm:$0xf0]  ;;  %v13258_v10 = vld [vmem:[#allocation26 + $0x2d8] sm:$0xf0] }
 0x66b   :  { %v16072_v3 = vld [vmem:[#allocation26 + $0x1898] sm:$0xf]  ;;  %v15561_v51 = vor.u32 %v18017_v61, %v15560_v16  ;;  %10510 = vmatpush.bf16.msrb.mxu3 %v15049_v26  ;;  %v14861_v16 = vor.u32 %v17833_v63, %v14858_v21  ;;  %v17561_v61 = vld [vmem:[#allocation26 + $0x69c] sm:$0xf]  ;;  %v13261_v26 = vor.u32 %v17433_v49, %v13258_v10  ;;  %v10344_v21 = vpop.f32.mrf.mxu2 }
 0x66c   :  { %v18145_v23 = vld [vmem:[#allocation26 + $0x18d4] sm:$0xf0]  ;;  %v17529_v11 = vld [vmem:[#allocation26 + $0x59c] sm:$0xf] }
 0x66d   :  { %v16584_v45 = vld [vmem:[#allocation26 + $0x1c98] sm:$0xf]  ;;  %v16073_v59 = vor.u32 %v18145_v23, %v16072_v3  ;;  %10523 = vmatpush.bf16.msra.mxu0 %v15561_v51  ;;  %v13770_v3 = vld [vmem:[#allocation26 + $0x6d8] sm:$0xf0] }
 0x66e   :  { %v18273_v47 = vld [vmem:[#allocation26 + $0x1cd4] sm:$0xf0]  ;;  %v17689_v23 = vld [vmem:[#allocation26 + $0xa9c] sm:$0xf]  ;;  %v13773_v51 = vor.u32 %v17561_v61, %v13770_v3 }
 0x66f   :  { %v14984_v50 = vld [vmem:[#allocation26 + $0x1018] sm:$0xf]  ;;  %v16585_v5 = vor.u32 %v18273_v47, %v16584_v45  ;;  %10536 = vmatpush.bf16.msra.mxu1 %v16073_v59  ;;  %v14282_v45 = vld [vmem:[#allocation26 + $0xad8] sm:$0xf0] }
 0x670   :  { %v17873_v54 = vld [vmem:[#allocation26 + $0x1054] sm:$0xf0]  ;;  %v17817_v47 = vld [vmem:[#allocation26 + $0xe9c] sm:$0xf] }
 0x671   :  { %v15496_v27 = vld [vmem:[#allocation26 + $0x1418] sm:$0xf]  ;;  %v14985_v25 = vor.u32 %v17873_v54, %v14984_v50  ;;  %10549 = vmatpush.bf16.msra.mxu2 %v16585_v5  ;;  %v10267_v50 = vadd.f32 %v19666_v38, %v10254_v15  ;;  %v17417_v54 = vld [vmem:[#allocation26 + $0x21c] sm:$0xf]  ;;  %v14797_v59 = vor.u32 %v17817_v47, %v14794_v31  ;;  %v10331_v38 = vpop.f32.mrf.mxu1 }
 0x672   :  { %v18001_v4 = vld [vmem:[#allocation26 + $0x1454] sm:$0xf0]  ;;  %v17545_v5 = vld [vmem:[#allocation26 + $0x61c] sm:$0xf] }
 0x673   :  { %v16008_v33 = vld [vmem:[#allocation26 + $0x1818] sm:$0xf]  ;;  %v15497_v18 = vor.u32 %v18001_v4, %v15496_v27  ;;  %10511 = vmatpush.bf16.msrb.mxu3 %v14985_v25  ;;  %v13194_v27 = vld [vmem:[#allocation26 + $0x258] sm:$0xf0]  ;;  %v14285_v4 = vor.u32 %v17689_v23, %v14282_v45  ;;  %v10280_v39 = vadd.f32 %v19668_v7, %v10267_v50  ;;  %v13709_v56 = vor.u32 %v17545_v5, %v13706_v2 }
 0x674   :  { %v18129_v24 = vld [vmem:[#allocation26 + $0x1854] sm:$0xf0]  ;;  %v13197_v41 = vor.u32 %v17417_v54, %v13194_v27  ;;  %v13642_v46 = vld [vmem:[#allocation26 + $0x5d8] sm:$0xf0]  ;;  %v13133_v7 = vor.u32 %v17401_v42, %v13130_v40  ;;  %v10346_v40 = vpop.f32.mrf.mxu2 }
 0x675   :  { %v16520_v34 = vld [vmem:[#allocation26 + $0x1c18] sm:$0xf]  ;;  %v16009_v37 = vor.u32 %v18129_v24, %v16008_v33  ;;  %10524 = vmatpush.bf16.msra.mxu0 %v15497_v18  ;;  %v17673_v33 = vld [vmem:[#allocation26 + $0xa1c] sm:$0xf] }
 0x676   :  { %v18257_v29 = vld [vmem:[#allocation26 + $0x1c54] sm:$0xf0]  ;;  %10512 = vmatmul.bf16.vlgmr.msrb.gmra.mxu3 %v19560_v12  ;;  %v14218_v24 = vld [vmem:[#allocation26 + $0xa58] sm:$0xf0] }
 0x677   :  { %v16521_v35 = vor.u32 %v18257_v29, %v16520_v34  ;;  %10537 = vmatpush.bf16.msra.mxu1 %v16009_v37  ;;  %10556 = vmatpush.bf16.msra.mxu3 %v13389_v14  ;;  %v17801_v34 = vld [vmem:[#allocation26 + $0xe1c] sm:$0xf]  ;;  %v10318_v29 = vpop.f32.mrf.mxu0  ;;  %v14221_v25 = vor.u32 %v17673_v33, %v14218_v24  ;;  %v10293_v14 = vadd.f32 %v19672_v28, %v10280_v39 }
 0x678   :  { %10525 = vmatmul.bf16.vlgmr.msra.gmra.mxu0 %v19562_v1  ;;  %v14733_v18 = vor.u32 %v17801_v34, %v14730_v0  ;;  %v17657_v60 = vld [vmem:[#allocation26 + $0x99c] sm:$0xf] }
 0x679   :  { %10550 = vmatpush.bf16.msra.mxu2 %v16521_v35  ;;  %10569 = vmatpush.bf16.msrb.mxu0 %v13901_v44  ;;  %v14154_v37 = vld [vmem:[#allocation26 + $0x9d8] sm:$0xf0]  ;;  %v13645_v44 = vor.u32 %v17529_v11, %v13642_v46  ;;  %v10306_v63 = vadd.f32 %v10305_v6, %v10293_v14  ;;  %v10333_v10 = vpop.f32.mrf.mxu1 }
 0x67a   :  { %10538 = vmatmul.bf16.vlgmr.msra.gmra.mxu1 %v19564_v58  ;;  %v17785_v35 = vld [vmem:[#allocation26 + $0xd9c] sm:$0xf] }
 0x67b   :  { %10582 = vmatpush.bf16.msrb.mxu1 %v14413_v53  ;;  %10557 = vmatpush.bf16.msra.mxu3 %v13325_v17  ;;  %v14666_v32 = vld [vmem:[#allocation26 + $0xdd8] sm:$0xf0]  ;;  %v14157_v53 = vor.u32 %v17657_v60, %v14154_v37  ;;  %v10319_v49 = vadd.f32 %v10318_v29, %v10306_v63 }
 0x67c   :  { %10551 = vmatmul.bf16.vlgmr.msra.gmra.mxu2 %v19566_v20  ;;  %v17385_v19 = vld [vmem:[#allocation26 + $0x11c] sm:$0xf] }
 0x67d   :  { %10595 = vmatpush.bf16.msrb.mxu2 %v14925_v62  ;;  %10570 = vmatpush.bf16.msrb.mxu0 %v13837_v43  ;;  %v13066_v48 = vld [vmem:[#allocation26 + $0x158] sm:$0xf0]  ;;  %v14669_v62 = vor.u32 %v17785_v35, %v14666_v32 }
 0x67e   :  { %v17513_v8 = vld [vmem:[#allocation26 + $0x51c] sm:$0xf] }
 0x67f   :  { %10583 = vmatpush.bf16.msrb.mxu1 %v14349_v30  ;;  %10558 = vmatpush.bf16.msra.mxu3 %v13261_v26  ;;  %v13578_v22 = vld [vmem:[#allocation26 + $0x558] sm:$0xf0]  ;;  %v10320_v28 = vpop.f32.mrf.mxu0  ;;  %v13069_v30 = vor.u32 %v17385_v19, %v13066_v48  ;;  %v10332_v26 = vadd.f32 %v10331_v38, %v10319_v49 }
 0x680   :  { %v17641_v55 = vld [vmem:[#allocation26 + $0x91c] sm:$0xf] }
 0x681   :  { %10596 = vmatpush.bf16.msrb.mxu2 %v14861_v16  ;;  %10571 = vmatpush.bf16.msrb.mxu0 %v13773_v51  ;;  %v14090_v15 = vld [vmem:[#allocation26 + $0x958] sm:$0xf0]  ;;  %v13581_v16 = vor.u32 %v17513_v8, %v13578_v22  ;;  %v10345_v5 = vadd.f32 %v10344_v21, %v10332_v26 }
 0x682   :  { %v17769_v17 = vld [vmem:[#allocation26 + $0xd1c] sm:$0xf]  ;;  %v14093_v23 = vor.u32 %v17641_v55, %v14090_v15 }
 0x683   :  { %10584 = vmatpush.bf16.msrb.mxu1 %v14285_v4  ;;  %10559 = vmatpush.bf16.msra.mxu3 %v13197_v41  ;;  %v14602_v43 = vld [vmem:[#allocation26 + $0xd58] sm:$0xf0]  ;;  %v10307_v41 = vpop.f32.mrf.mxu3  ;;  %11496 = vst [vmem:[#allocation29 + $0x20] sm:$0xff] %v10345_v5 }
 0x684   :  { %v17369_v61 = vld [vmem:[#allocation26 + $0x9c] sm:$0xf]  ;;  %v14605_v45 = vor.u32 %v17769_v17, %v14602_v43 }
 0x685   :  { %10597 = vmatpush.bf16.msrb.mxu2 %v14797_v59  ;;  %10572 = vmatpush.bf16.msrb.mxu0 %v13709_v56  ;;  %v13002_v3 = vld [vmem:[#allocation26 + $0xd8] sm:$0xf0] }
 0x686   :  { %v17497_v47 = vld [vmem:[#allocation26 + $0x49c] sm:$0xf]  ;;  %v13005_v2 = vor.u32 %v17369_v61, %v13002_v3 }
 0x687   :  { %10585 = vmatpush.bf16.msrb.mxu1 %v14221_v25  ;;  %10560 = vmatpush.bf16.msra.mxu3 %v13133_v7  ;;  %v13514_v31 = vld [vmem:[#allocation26 + $0x4d8] sm:$0xf0] }
 0x688   :  { %v17625_v50 = vld [vmem:[#allocation26 + $0x89c] sm:$0xf]  ;;  %v13517_v33 = vor.u32 %v17497_v47, %v13514_v31 }
 0x689   :  { %10598 = vmatpush.bf16.msrb.mxu2 %v14733_v18  ;;  %10573 = vmatpush.bf16.msrb.mxu0 %v13645_v44  ;;  %v14026_v51 = vld [vmem:[#allocation26 + $0x8d8] sm:$0xf0] }
 0x68a   :  { %v17753_v54 = vld [vmem:[#allocation26 + $0xc9c] sm:$0xf]  ;;  %v14029_v29 = vor.u32 %v17625_v50, %v14026_v51 }
 0x68b   :  { %10586 = vmatpush.bf16.msrb.mxu1 %v14157_v53  ;;  %v14538_v27 = vld [vmem:[#allocation26 + $0xcd8] sm:$0xf0]  ;;  %10561 = vmatpush.bf16.msra.mxu3 %v13069_v30 }
 0x68c   :  { %v17353_v4 = vld [vmem:[#allocation26 + $0x1c] sm:$0xf]  ;;  %v14541_v39 = vor.u32 %v17753_v54, %v14538_v27 }
 0x68d   :  { %10599 = vmatpush.bf16.msrb.mxu2 %v14669_v62  ;;  %v12938_v59 = vld [vmem:[#allocation26 + $0x58] sm:$0xf0]  ;;  %10574 = vmatpush.bf16.msrb.mxu0 %v13581_v16 }
 0x68e   :  { %v17481_v24 = vld [vmem:[#allocation26 + $0x41c] sm:$0xf]  ;;  %v12941_v37 = vor.u32 %v17353_v4, %v12938_v59 }
 0x68f   :  { %v13450_v34 = vld [vmem:[#allocation26 + $0x458] sm:$0xf0]  ;;  %10587 = vmatpush.bf16.msrb.mxu1 %v14093_v23  ;;  %10562 = vmatpush.bf16.msra.mxu3 %v13005_v2 }
 0x690   :  { %v17609_v0 = vld [vmem:[#allocation26 + $0x81c] sm:$0xf]  ;;  %v13453_v35 = vor.u32 %v17481_v24, %v13450_v34 }
 0x691   :  { %10600 = vmatpush.bf16.msrb.mxu2 %v14605_v45  ;;  %v13962_v56 = vld [vmem:[#allocation26 + $0x858] sm:$0xf0]  ;;  %10575 = vmatpush.bf16.msrb.mxu0 %v13517_v33 }
 0x692   :  { %v17737_v38 = vld [vmem:[#allocation26 + $0xc1c] sm:$0xf]  ;;  %v13965_v44 = vor.u32 %v17609_v0, %v13962_v56 }
 0x693   :  { %v14474_v42 = vld [vmem:[#allocation26 + $0xc58] sm:$0xf0]  ;;  %10588 = vmatpush.bf16.msrb.mxu1 %v14029_v29  ;;  %10563 = vmatpush.bf16.msra.mxu3 %v12941_v37  ;;  %v19689_v29 = vpop.f32.mrf.mxu0 }
 0x694   :  { %v17977_v25 = vld [vmem:[#allocation26 + $0x139c] sm:$0xf]  ;;  %v14477_v19 = vor.u32 %v17737_v38, %v14474_v42 }
 0x695   :  { %v15434_v18 = vld [vmem:[#allocation26 + $0x13d8] sm:$0xf0]  ;;  %10601 = vmatpush.bf16.msrb.mxu2 %v14541_v39  ;;  %10576 = vmatpush.bf16.msrb.mxu0 %v13453_v35  ;;  %v19691_v39 = vpop.f32.mrf.mxu1 }
 0x696   :  { %v18105_v11 = vld [vmem:[#allocation26 + $0x179c] sm:$0xf]  ;;  %v15437_v48 = vor.u32 %v17977_v25, %v15434_v18  ;;  %10564 = vmatmul.bf16.vlgmr.msra.gmra.mxu3 %v19534_v57 }
 0x697   :  { %v15946_v46 = vld [vmem:[#allocation26 + $0x17d8] sm:$0xf0]  ;;  %10589 = vmatpush.bf16.msrb.mxu1 %v13965_v44 }
 0x698   :  { %v18233_v60 = vld [vmem:[#allocation26 + $0x1b9c] sm:$0xf]  ;;  %v15949_v53 = vor.u32 %v18105_v11, %v15946_v46  ;;  %10608 = vmatpush.bf16.msrb.mxu3 %v15437_v48  ;;  %10577 = vmatmul.bf16.vlgmr.msrb.gmra.mxu0 %v19536_v52 }
 0x699   :  { %v16458_v32 = vld [vmem:[#allocation26 + $0x1bd8] sm:$0xf0]  ;;  %10602 = vmatpush.bf16.msrb.mxu2 %v14477_v19 }
 0x69a   :  { %v18361_v14 = vld [vmem:[#allocation26 + $0x1f9c] sm:$0xf]  ;;  %v16461_v8 = vor.u32 %v18233_v60, %v16458_v32  ;;  %10621 = vmatpush.bf16.msra.mxu0 %v15949_v53  ;;  %10590 = vmatmul.bf16.vlgmr.msrb.gmra.mxu1 %v19538_v13  ;;  %v19693_v53 = vpop.f32.mrf.mxu3 }
 0x69b   :  { %v16970_v7 = vld [vmem:[#allocation26 + $0x1fd8] sm:$0xf0] }
 0x69c   :  { %v17961_v62 = vld [vmem:[#allocation26 + $0x131c] sm:$0xf]  ;;  %v16973_v22 = vor.u32 %v18361_v14, %v16970_v7  ;;  %10634 = vmatpush.bf16.msra.mxu1 %v16461_v8  ;;  %10603 = vmatmul.bf16.vlgmr.msrb.gmra.mxu2 %v19540_v9 }
 0x69d   :  { %v15370_v6 = vld [vmem:[#allocation26 + $0x1358] sm:$0xf0] }
 0x69e   :  { %v18089_v55 = vld [vmem:[#allocation26 + $0x171c] sm:$0xf]  ;;  %v15373_v28 = vor.u32 %v17961_v62, %v15370_v6  ;;  %10647 = vmatpush.bf16.msra.mxu2 %v16973_v22  ;;  %v19695_v22 = vpop.f32.mrf.mxu2 }
 0x69f   :  { %v15882_v63 = vld [vmem:[#allocation26 + $0x1758] sm:$0xf0] }
 0x6a0   :  { %v18217_v21 = vld [vmem:[#allocation26 + $0x1b1c] sm:$0xf]  ;;  %v15885_v49 = vor.u32 %v18089_v55, %v15882_v63  ;;  %10609 = vmatpush.bf16.msrb.mxu3 %v15373_v28 }
 0x6a1   :  { %v16394_v15 = vld [vmem:[#allocation26 + $0x1b58] sm:$0xf0] }
 0x6a2   :  { %v18345_v17 = vld [vmem:[#allocation26 + $0x1f1c] sm:$0xf]  ;;  %v16397_v16 = vor.u32 %v18217_v21, %v16394_v15  ;;  %10622 = vmatpush.bf16.msra.mxu0 %v15885_v49  ;;  %v10372_v15 = vpop.f32.mrf.mxu0 }
 0x6a3   :  { %v16906_v43 = vld [vmem:[#allocation26 + $0x1f58] sm:$0xf0]  ;;  %v14864_v15 = vld [vmem:[#allocation26 + $0xf20] sm:$0xf] }
 0x6a4   :  { %v17945_v10 = vld [vmem:[#allocation26 + $0x129c] sm:$0xf]  ;;  %v16909_v61 = vor.u32 %v18345_v17, %v16906_v43  ;;  %10635 = vmatpush.bf16.msra.mxu1 %v16397_v16  ;;  %v10385_v17 = vpop.f32.mrf.mxu1 }
 0x6a5   :  { %v15306_v30 = vld [vmem:[#allocation26 + $0x12d8] sm:$0xf0]  ;;  %v17842_v17 = vld [vmem:[#allocation26 + $0xf5c] sm:$0xf0] }
 0x6a6   :  { %v18073_v3 = vld [vmem:[#allocation26 + $0x169c] sm:$0xf]  ;;  %v15309_v26 = vor.u32 %v17945_v10, %v15306_v30  ;;  %10648 = vmatpush.bf16.msra.mxu2 %v16909_v61 }
 0x6a7   :  { %v15818_v23 = vld [vmem:[#allocation26 + $0x16d8] sm:$0xf0] }
 0x6a8   :  { %v18201_v45 = vld [vmem:[#allocation26 + $0x1a9c] sm:$0xf]  ;;  %v15821_v51 = vor.u32 %v18073_v3, %v15818_v23  ;;  %10610 = vmatpush.bf16.msrb.mxu3 %v15309_v26 }
 0x6a9   :  { %v16330_v47 = vld [vmem:[#allocation26 + $0x1ad8] sm:$0xf0] }
 0x6aa   :  { %v18329_v31 = vld [vmem:[#allocation26 + $0x1e9c] sm:$0xf]  ;;  %v16333_v4 = vor.u32 %v18201_v45, %v16330_v47  ;;  %10623 = vmatpush.bf16.msra.mxu0 %v15821_v51 }
 0x6ab   :  { %v16842_v50 = vld [vmem:[#allocation26 + $0x1ed8] sm:$0xf0] }
 0x6ac   :  { %v17929_v54 = vld [vmem:[#allocation26 + $0x121c] sm:$0xf]  ;;  %v16845_v59 = vor.u32 %v18329_v31, %v16842_v50  ;;  %10636 = vmatpush.bf16.msra.mxu1 %v16333_v4 }
 0x6ad   :  { %v15242_v27 = vld [vmem:[#allocation26 + $0x1258] sm:$0xf0] }
 0x6ae   :  { %v18057_v5 = vld [vmem:[#allocation26 + $0x161c] sm:$0xf]  ;;  %v15245_v41 = vor.u32 %v17929_v54, %v15242_v27  ;;  %10649 = vmatpush.bf16.msra.mxu2 %v16845_v59 }
 0x6af   :  { %v15754_v2 = vld [vmem:[#allocation26 + $0x1658] sm:$0xf0] }
 0x6b0   :  { %v18185_v33 = vld [vmem:[#allocation26 + $0x1a1c] sm:$0xf]  ;;  %v15757_v56 = vor.u32 %v18057_v5, %v15754_v2  ;;  %10611 = vmatpush.bf16.msrb.mxu3 %v15245_v41  ;;  %v10359_v2 = vpop.f32.mrf.mxu3 }
 0x6b1   :  { %v16266_v24 = vld [vmem:[#allocation26 + $0x1a58] sm:$0xf0]  ;;  %v14224_v2 = vld [vmem:[#allocation26 + $0xa20] sm:$0xf] }
 0x6b2   :  { %v18313_v34 = vld [vmem:[#allocation26 + $0x1e1c] sm:$0xf]  ;;  %v16269_v40 = vor.u32 %v18185_v33, %v16266_v24  ;;  %10624 = vmatpush.bf16.msra.mxu0 %v15757_v56  ;;  %v13392_v56 = vld [vmem:[#allocation26 + $0x3a0] sm:$0xf] }
 0x6b3   :  { %v16778_v0 = vld [vmem:[#allocation26 + $0x1e58] sm:$0xf0] }
 0x6b4   :  { %v17913_v38 = vld [vmem:[#allocation26 + $0x119c] sm:$0xf]  ;;  %v16781_v25 = vor.u32 %v18313_v34, %v16778_v0  ;;  %10637 = vmatpush.bf16.msra.mxu1 %v16269_v40  ;;  %v10398_v0 = vpop.f32.mrf.mxu2  ;;  %v17602_v40 = vld [vmem:[#allocation26 + $0x7dc] sm:$0xf0] }
 0x6b5   :  { %v15178_v42 = vld [vmem:[#allocation26 + $0x11d8] sm:$0xf0]  ;;  %v10422_v0 = vpop.f32.mrf.mxu0 }
 0x6b6   :  { %v18041_v18 = vld [vmem:[#allocation26 + $0x159c] sm:$0xf]  ;;  %v15181_v32 = vor.u32 %v17913_v38, %v15178_v42  ;;  %10650 = vmatpush.bf16.msra.mxu2 %v16781_v25  ;;  %v17474_v38 = vld [vmem:[#allocation26 + $0x3dc] sm:$0xf0] }
 0x6b7   :  { %v15690_v11 = vld [vmem:[#allocation26 + $0x15d8] sm:$0xf0]  ;;  %v13904_v42 = vld [vmem:[#allocation26 + $0x7a0] sm:$0xf] }
 0x6b8   :  { %v18169_v46 = vld [vmem:[#allocation26 + $0x199c] sm:$0xf]  ;;  %v15693_v14 = vor.u32 %v18041_v18, %v15690_v11  ;;  %10612 = vmatpush.bf16.msrb.mxu3 %v15181_v32  ;;  %v14416_v25 = vld [vmem:[#allocation26 + $0xba0] sm:$0xf] }
 0x6b9   :  { %v16202_v60 = vld [vmem:[#allocation26 + $0x19d8] sm:$0xf0] }
 0x6ba   :  { %v18297_v37 = vld [vmem:[#allocation26 + $0x1d9c] sm:$0xf]  ;;  %v16205_v19 = vor.u32 %v18169_v46, %v16202_v60  ;;  %10625 = vmatpush.bf16.msra.mxu0 %v15693_v14  ;;  %v17730_v46 = vld [vmem:[#allocation26 + $0xbdc] sm:$0xf0]  ;;  %v4681_v14 = vperm.slane %v19674_v36, 5 }
 0x6bb   :  { %v16714_v35 = vld [vmem:[#allocation26 + $0x1dd8] sm:$0xf0]  ;;  %v14928_v60 = vld [vmem:[#allocation26 + $0xfa0] sm:$0xf] }
 0x6bc   :  { %v17897_v7 = vld [vmem:[#allocation26 + $0x111c] sm:$0xf]  ;;  %v16717_v48 = vor.u32 %v18297_v37, %v16714_v35  ;;  %10638 = vmatpush.bf16.msra.mxu1 %v16205_v19  ;;  %v17858_v37 = vld [vmem:[#allocation26 + $0xfdc] sm:$0xf0] }
 0x6bd   :  { %v15114_v44 = vld [vmem:[#allocation26 + $0x1158] sm:$0xf0]  ;;  %v13328_v19 = vld [vmem:[#allocation26 + $0x320] sm:$0xf] }
 0x6be   :  { %v18025_v62 = vld [vmem:[#allocation26 + $0x151c] sm:$0xf]  ;;  %v15117_v43 = vor.u32 %v17897_v7, %v15114_v44  ;;  %10651 = vmatpush.bf16.msra.mxu2 %v16717_v48  ;;  %v13393_v7 = vor.u32 %v17474_v38, %v13392_v56  ;;  %v13905_v44 = vor.u32 %v17602_v40, %v13904_v42  ;;  %v17458_v48 = vld [vmem:[#allocation26 + $0x35c] sm:$0xf0] }
 0x6bf   :  { %v15626_v6 = vld [vmem:[#allocation26 + $0x1558] sm:$0xf0]  ;;  %v13329_v36 = vor.u32 %v17458_v48, %v13328_v19  ;;  %v13136_v42 = vld [vmem:[#allocation26 + $0x1a0] sm:$0xf] }
 0x6c0   :  { %v18153_v8 = vld [vmem:[#allocation26 + $0x191c] sm:$0xf]  ;;  %v15629_v28 = vor.u32 %v18025_v62, %v15626_v6  ;;  %10613 = vmatpush.bf16.msrb.mxu3 %v15117_v43  ;;  %v14417_v62 = vor.u32 %v17730_v46, %v14416_v25  ;;  %v14929_v6 = vor.u32 %v17858_v37, %v14928_v60  ;;  %v10358_v43 = vadd.f32 %v19693_v53, %v4681_v14  ;;  %v17826_v53 = vld [vmem:[#allocation26 + $0xedc] sm:$0xf0] }
 0x6c1   :  { %v16138_v55 = vld [vmem:[#allocation26 + $0x1958] sm:$0xf0]  ;;  %v17410_v40 = vld [vmem:[#allocation26 + $0x1dc] sm:$0xf0] }
 0x6c2   :  { %v18281_v63 = vld [vmem:[#allocation26 + $0x1d1c] sm:$0xf]  ;;  %v16141_v30 = vor.u32 %v18153_v8, %v16138_v55  ;;  %10626 = vmatpush.bf16.msra.mxu0 %v15629_v28  ;;  %v13840_v8 = vld [vmem:[#allocation26 + $0x720] sm:$0xf] }
 0x6c3   :  { %v16650_v21 = vld [vmem:[#allocation26 + $0x1d58] sm:$0xf0]  ;;  %v17586_v55 = vld [vmem:[#allocation26 + $0x75c] sm:$0xf0] }
 0x6c4   :  { %v17881_v49 = vld [vmem:[#allocation26 + $0x109c] sm:$0xf]  ;;  %v16653_v16 = vor.u32 %v18281_v63, %v16650_v21  ;;  %10639 = vmatpush.bf16.msra.mxu1 %v16141_v30  ;;  %v14352_v63 = vld [vmem:[#allocation26 + $0xb20] sm:$0xf]  ;;  %v13841_v28 = vor.u32 %v17586_v55, %v13840_v8 }
 0x6c5   :  { %v15050_v10 = vld [vmem:[#allocation26 + $0x10d8] sm:$0xf0]  ;;  %v17714_v21 = vld [vmem:[#allocation26 + $0xb5c] sm:$0xf0] }
 0x6c6   :  { %v18009_v61 = vld [vmem:[#allocation26 + $0x149c] sm:$0xf]  ;;  %v15053_v26 = vor.u32 %v17881_v49, %v15050_v10  ;;  %10652 = vmatpush.bf16.msra.mxu2 %v16653_v16  ;;  %v13264_v49 = vld [vmem:[#allocation26 + $0x2a0] sm:$0xf]  ;;  %v14353_v30 = vor.u32 %v17714_v21, %v14352_v63  ;;  %v14865_v16 = vor.u32 %v17842_v17, %v14864_v15  ;;  %v10448_v15 = vpop.f32.mrf.mxu2 }
 0x6c7   :  { %v15562_v3 = vld [vmem:[#allocation26 + $0x14d8] sm:$0xf0]  ;;  %v17442_v10 = vld [vmem:[#allocation26 + $0x2dc] sm:$0xf0] }
 0x6c8   :  { %v18137_v23 = vld [vmem:[#allocation26 + $0x189c] sm:$0xf]  ;;  %v15565_v51 = vor.u32 %v18009_v61, %v15562_v3  ;;  %10614 = vmatpush.bf16.msrb.mxu3 %v15053_v26  ;;  %v13776_v61 = vld [vmem:[#allocation26 + $0x6a0] sm:$0xf] }
 0x6c9   :  { %v16074_v45 = vld [vmem:[#allocation26 + $0x18d8] sm:$0xf0]  ;;  %v17570_v3 = vld [vmem:[#allocation26 + $0x6dc] sm:$0xf0] }
 0x6ca   :  { %v18265_v47 = vld [vmem:[#allocation26 + $0x1c9c] sm:$0xf]  ;;  %v16077_v59 = vor.u32 %v18137_v23, %v16074_v45  ;;  %10627 = vmatpush.bf16.msra.mxu0 %v15565_v51  ;;  %v14288_v23 = vld [vmem:[#allocation26 + $0xaa0] sm:$0xf]  ;;  %v13777_v26 = vor.u32 %v17570_v3, %v13776_v61 }
 0x6cb   :  { %v16586_v31 = vld [vmem:[#allocation26 + $0x1cd8] sm:$0xf0]  ;;  %v17698_v45 = vld [vmem:[#allocation26 + $0xadc] sm:$0xf0] }
 0x6cc   :  { %v17865_v50 = vld [vmem:[#allocation26 + $0x101c] sm:$0xf]  ;;  %v16589_v5 = vor.u32 %v18265_v47, %v16586_v31  ;;  %10640 = vmatpush.bf16.msra.mxu1 %v16077_v59  ;;  %v14800_v47 = vld [vmem:[#allocation26 + $0xea0] sm:$0xf]  ;;  %v10371_v31 = vadd.f32 %v19689_v29, %v10358_v43  ;;  %v10435_v29 = vpop.f32.mrf.mxu1 }
 0x6cd   :  { %v14986_v54 = vld [vmem:[#allocation26 + $0x1058] sm:$0xf0]  ;;  %v13200_v51 = vld [vmem:[#allocation26 + $0x220] sm:$0xf] }
 0x6ce   :  { %v17993_v27 = vld [vmem:[#allocation26 + $0x141c] sm:$0xf]  ;;  %v14989_v18 = vor.u32 %v17865_v50, %v14986_v54  ;;  %10653 = vmatpush.bf16.msra.mxu2 %v16589_v5  ;;  %v13265_v50 = vor.u32 %v17442_v10, %v13264_v49  ;;  %v17426_v54 = vld [vmem:[#allocation26 + $0x25c] sm:$0xf0] }
 0x6cf   :  { %v15498_v4 = vld [vmem:[#allocation26 + $0x1458] sm:$0xf0]  ;;  %v13712_v59 = vld [vmem:[#allocation26 + $0x620] sm:$0xf]  ;;  %v13201_v56 = vor.u32 %v17426_v54, %v13200_v51 }
 0x6d0   :  { %v18121_v33 = vld [vmem:[#allocation26 + $0x181c] sm:$0xf]  ;;  %v15501_v11 = vor.u32 %v17993_v27, %v15498_v4  ;;  %10615 = vmatpush.bf16.msrb.mxu3 %v14989_v18  ;;  %v14289_v27 = vor.u32 %v17698_v45, %v14288_v23  ;;  %v14801_v4 = vor.u32 %v17826_v53, %v14800_v47  ;;  %v17554_v5 = vld [vmem:[#allocation26 + $0x65c] sm:$0xf0] }
 0x6d1   :  { %v16010_v24 = vld [vmem:[#allocation26 + $0x1858] sm:$0xf0]  ;;  %v13713_v38 = vor.u32 %v17554_v5, %v13712_v59  ;;  %v17538_v46 = vld [vmem:[#allocation26 + $0x5dc] sm:$0xf0] }
 0x6d2   :  { %v18249_v34 = vld [vmem:[#allocation26 + $0x1c1c] sm:$0xf]  ;;  %v16013_v35 = vor.u32 %v18121_v33, %v16010_v24  ;;  %10628 = vmatpush.bf16.msra.mxu0 %v15501_v11  ;;  %v17682_v33 = vld [vmem:[#allocation26 + $0xa5c] sm:$0xf0] }
 0x6d3   :  { %v16522_v41 = vld [vmem:[#allocation26 + $0x1c58] sm:$0xf0]  ;;  %10616 = vmatmul.bf16.vlgmr.msrb.gmra.mxu3 %v19560_v12  ;;  %v14736_v24 = vld [vmem:[#allocation26 + $0xe20] sm:$0xf]  ;;  %v14225_v25 = vor.u32 %v17682_v33, %v14224_v2 }
 0x6d4   :  { %v16525_v32 = vor.u32 %v18249_v34, %v16522_v41  ;;  %10641 = vmatpush.bf16.msra.mxu1 %v16013_v35  ;;  %10660 = vmatpush.bf16.msra.mxu3 %v13393_v7  ;;  %v17810_v34 = vld [vmem:[#allocation26 + $0xe5c] sm:$0xf0]  ;;  %v10384_v41 = vadd.f32 %v19691_v39, %v10371_v31  ;;  %v13137_v39 = vor.u32 %v17410_v40, %v13136_v42  ;;  %v10437_v49 = vpop.f32.mrf.mxu1  ;;  %v10450_v42 = vpop.f32.mrf.mxu2 }
 0x6d5   :  { %10629 = vmatmul.bf16.vlgmr.msra.gmra.mxu0 %v19562_v1  ;;  %v14737_v18 = vor.u32 %v17810_v34, %v14736_v24  ;;  %v13648_v11 = vld [vmem:[#allocation26 + $0x5a0] sm:$0xf] }
 0x6d6   :  { %10654 = vmatpush.bf16.msra.mxu2 %v16525_v32  ;;  %10673 = vmatpush.bf16.msrb.mxu0 %v13905_v44  ;;  %v14160_v60 = vld [vmem:[#allocation26 + $0x9a0] sm:$0xf]  ;;  %v10397_v14 = vadd.f32 %v19695_v22, %v10384_v41  ;;  %v13649_v7 = vor.u32 %v17538_v46, %v13648_v11  ;;  %v10424_v22 = vpop.f32.mrf.mxu0 }
 0x6d7   :  { %10642 = vmatmul.bf16.vlgmr.msra.gmra.mxu1 %v19564_v58  ;;  %v17666_v37 = vld [vmem:[#allocation26 + $0x9dc] sm:$0xf0] }
 0x6d8   :  { %10686 = vmatpush.bf16.msrb.mxu1 %v14417_v62  ;;  %10661 = vmatpush.bf16.msra.mxu3 %v13329_v36  ;;  %v14672_v35 = vld [vmem:[#allocation26 + $0xda0] sm:$0xf]  ;;  %v14161_v48 = vor.u32 %v17666_v37, %v14160_v60 }
 0x6d9   :  { %10655 = vmatmul.bf16.vlgmr.msra.gmra.mxu2 %v19566_v20  ;;  %v17794_v32 = vld [vmem:[#allocation26 + $0xddc] sm:$0xf0] }
 0x6da   :  { %10699 = vmatpush.bf16.msrb.mxu2 %v14929_v6  ;;  %10674 = vmatpush.bf16.msrb.mxu0 %v13841_v28  ;;  %v13072_v44 = vld [vmem:[#allocation26 + $0x120] sm:$0xf]  ;;  %v14673_v62 = vor.u32 %v17794_v32, %v14672_v35  ;;  %v10409_v6 = vpop.f32.mrf.mxu3 }
 0x6db   :  { %v17394_v19 = vld [vmem:[#allocation26 + $0x15c] sm:$0xf0]  ;;  %v10410_v21 = vadd.f32 %v10409_v6, %v10397_v14 }
 0x6dc   :  { %10687 = vmatpush.bf16.msrb.mxu1 %v14353_v30  ;;  %10662 = vmatpush.bf16.msra.mxu3 %v13265_v50  ;;  %v13584_v8 = vld [vmem:[#allocation26 + $0x520] sm:$0xf]  ;;  %v13073_v10 = vor.u32 %v17394_v19, %v13072_v44 }
 0x6dd   :  { %v17522_v55 = vld [vmem:[#allocation26 + $0x55c] sm:$0xf0]  ;;  %v10423_v28 = vadd.f32 %v10422_v0, %v10410_v21 }
 0x6de   :  { %10700 = vmatpush.bf16.msrb.mxu2 %v14865_v16  ;;  %10675 = vmatpush.bf16.msrb.mxu0 %v13777_v26  ;;  %v14096_v63 = vld [vmem:[#allocation26 + $0x920] sm:$0xf]  ;;  %v13585_v30 = vor.u32 %v17522_v55, %v13584_v8 }
 0x6df   :  { %v17650_v17 = vld [vmem:[#allocation26 + $0x95c] sm:$0xf0]  ;;  %v10436_v31 = vadd.f32 %v10435_v29, %v10423_v28 }
 0x6e0   :  { %10688 = vmatpush.bf16.msrb.mxu1 %v14289_v27  ;;  %10663 = vmatpush.bf16.msra.mxu3 %v13201_v56  ;;  %v14608_v43 = vld [vmem:[#allocation26 + $0xd20] sm:$0xf]  ;;  %v14097_v3 = vor.u32 %v17650_v17, %v14096_v63 }
 0x6e1   :  { %v17778_v36 = vld [vmem:[#allocation26 + $0xd5c] sm:$0xf0] }
 0x6e2   :  { %10701 = vmatpush.bf16.msrb.mxu2 %v14801_v4  ;;  %10676 = vmatpush.bf16.msrb.mxu0 %v13713_v38  ;;  %v13008_v16 = vld [vmem:[#allocation26 + $0xa0] sm:$0xf]  ;;  %v14609_v23 = vor.u32 %v17778_v36, %v14608_v43  ;;  %v10449_v4 = vadd.f32 %v10448_v15, %v10436_v31  ;;  %v10411_v41 = vpop.f32.mrf.mxu3 }
 0x6e3   :  { %v17378_v61 = vld [vmem:[#allocation26 + $0xdc] sm:$0xf0] }
 0x6e4   :  { %10689 = vmatpush.bf16.msrb.mxu1 %v14225_v25  ;;  %10664 = vmatpush.bf16.msra.mxu3 %v13137_v39  ;;  %v13520_v45 = vld [vmem:[#allocation26 + $0x4a0] sm:$0xf]  ;;  %v13009_v59 = vor.u32 %v17378_v61, %v13008_v16  ;;  %11497 = vst [vmem:[#allocation29 + $0x28] sm:$0xff] %v10449_v4 }
 0x6e5   :  { %v17506_v47 = vld [vmem:[#allocation26 + $0x4dc] sm:$0xf0] }
 0x6e6   :  { %10702 = vmatpush.bf16.msrb.mxu2 %v14737_v18  ;;  %10677 = vmatpush.bf16.msrb.mxu0 %v13649_v7  ;;  %v14032_v53 = vld [vmem:[#allocation26 + $0x8a0] sm:$0xf]  ;;  %v13521_v5 = vor.u32 %v17506_v47, %v13520_v45 }
 0x6e7   :  { %v17634_v50 = vld [vmem:[#allocation26 + $0x8dc] sm:$0xf0] }
 0x6e8   :  { %10690 = vmatpush.bf16.msrb.mxu1 %v14161_v48  ;;  %v14544_v26 = vld [vmem:[#allocation26 + $0xca0] sm:$0xf]  ;;  %10665 = vmatpush.bf16.msra.mxu3 %v13073_v10  ;;  %v14033_v34 = vor.u32 %v17634_v50, %v14032_v53 }
 0x6e9   :  { %v17762_v51 = vld [vmem:[#allocation26 + $0xcdc] sm:$0xf0] }
 0x6ea   :  { %10703 = vmatpush.bf16.msrb.mxu2 %v14673_v62  ;;  %v12944_v54 = vld [vmem:[#allocation26 + $0x20] sm:$0xf]  ;;  %10678 = vmatpush.bf16.msrb.mxu0 %v13585_v30  ;;  %v14545_v0 = vor.u32 %v17762_v51, %v14544_v26 }
 0x6eb   :  { %v17362_v27 = vld [vmem:[#allocation26 + $0x5c] sm:$0xf0] }
 0x6ec   :  { %v13456_v2 = vld [vmem:[#allocation26 + $0x420] sm:$0xf]  ;;  %10691 = vmatpush.bf16.msrb.mxu1 %v14097_v3  ;;  %10666 = vmatpush.bf16.msra.mxu3 %v13009_v59  ;;  %v12945_v60 = vor.u32 %v17362_v27, %v12944_v54 }
 0x6ed   :  { %v17490_v33 = vld [vmem:[#allocation26 + $0x45c] sm:$0xf0] }
 0x6ee   :  { %v13968_v24 = vld [vmem:[#allocation26 + $0x820] sm:$0xf]  ;;  %10704 = vmatpush.bf16.msrb.mxu2 %v14609_v23  ;;  %10679 = vmatpush.bf16.msrb.mxu0 %v13521_v5  ;;  %v13457_v37 = vor.u32 %v17490_v33, %v13456_v2 }
 0x6ef   :  { %v17618_v56 = vld [vmem:[#allocation26 + $0x85c] sm:$0xf0] }
 0x6f0   :  { %v14480_v29 = vld [vmem:[#allocation26 + $0xc20] sm:$0xf]  ;;  %10692 = vmatpush.bf16.msrb.mxu1 %v14033_v34  ;;  %v13969_v39 = vor.u32 %v17618_v56, %v13968_v24  ;;  %10667 = vmatpush.bf16.msra.mxu3 %v12945_v60  ;;  %v19710_v24 = vpop.f32.mrf.mxu0  ;;  %v19712_v34 = vpop.f32.mrf.mxu1 }
 0x6f1   :  { %v17746_v38 = vld [vmem:[#allocation26 + $0xc5c] sm:$0xf0] }
 0x6f2   :  { %v15440_v40 = vld [vmem:[#allocation26 + $0x13a0] sm:$0xf]  ;;  %10705 = vmatpush.bf16.msrb.mxu2 %v14545_v0  ;;  %v14481_v7 = vor.u32 %v17746_v38, %v14480_v29  ;;  %10680 = vmatpush.bf16.msrb.mxu0 %v13457_v37 }
 0x6f3   :  { %v17986_v25 = vld [vmem:[#allocation26 + $0x13dc] sm:$0xf0]  ;;  %10668 = vmatmul.bf16.vlgmr.msra.gmra.mxu3 %v19534_v57 }
 0x6f4   :  { %v15952_v18 = vld [vmem:[#allocation26 + $0x17a0] sm:$0xf]  ;;  %v15441_v44 = vor.u32 %v17986_v25, %v15440_v40  ;;  %10693 = vmatpush.bf16.msrb.mxu1 %v13969_v39 }
 0x6f5   :  { %v18114_v11 = vld [vmem:[#allocation26 + $0x17dc] sm:$0xf0]  ;;  %10681 = vmatmul.bf16.vlgmr.msrb.gmra.mxu0 %v19536_v52 }
 0x6f6   :  { %v16464_v46 = vld [vmem:[#allocation26 + $0x1ba0] sm:$0xf]  ;;  %v15953_v19 = vor.u32 %v18114_v11, %v15952_v18  ;;  %10706 = vmatpush.bf16.msrb.mxu2 %v14481_v7  ;;  %10712 = vmatpush.bf16.msrb.mxu3 %v15441_v44  ;;  %v19714_v44 = vpop.f32.mrf.mxu3 }
 0x6f7   :  { %v18242_v35 = vld [vmem:[#allocation26 + $0x1bdc] sm:$0xf0]  ;;  %10694 = vmatmul.bf16.vlgmr.msrb.gmra.mxu1 %v19538_v13 }
 0x6f8   :  { %v16976_v32 = vld [vmem:[#allocation26 + $0x1fa0] sm:$0xf]  ;;  %v16465_v6 = vor.u32 %v18242_v35, %v16464_v46  ;;  %10725 = vmatpush.bf16.msra.mxu0 %v15953_v19 }
 0x6f9   :  { %v18370_v14 = vld [vmem:[#allocation26 + $0x1fdc] sm:$0xf0]  ;;  %10707 = vmatmul.bf16.vlgmr.msrb.gmra.mxu2 %v19540_v9 }
 0x6fa   :  { %v15376_v48 = vld [vmem:[#allocation26 + $0x1320] sm:$0xf]  ;;  %v16977_v8 = vor.u32 %v18370_v14, %v16976_v32  ;;  %10738 = vmatpush.bf16.msra.mxu1 %v16465_v6  ;;  %v19716_v6 = vpop.f32.mrf.mxu2 }
 0x6fb   :  { %v17970_v62 = vld [vmem:[#allocation26 + $0x135c] sm:$0xf0] }
 0x6fc   :  { %v15888_v55 = vld [vmem:[#allocation26 + $0x1720] sm:$0xf]  ;;  %v15377_v36 = vor.u32 %v17970_v62, %v15376_v48  ;;  %10751 = vmatpush.bf16.msra.mxu2 %v16977_v8 }
 0x6fd   :  { %v18098_v63 = vld [vmem:[#allocation26 + $0x175c] sm:$0xf0] }
 0x6fe   :  { %v16400_v21 = vld [vmem:[#allocation26 + $0x1b20] sm:$0xf]  ;;  %v15889_v22 = vor.u32 %v18098_v63, %v15888_v55  ;;  %10713 = vmatpush.bf16.msrb.mxu3 %v15377_v36 }
 0x6ff   :  { %v18226_v15 = vld [vmem:[#allocation26 + $0x1b5c] sm:$0xf0] }
 0x700   :  { %v16912_v17 = vld [vmem:[#allocation26 + $0x1f20] sm:$0xf]  ;;  %v16401_v10 = vor.u32 %v18226_v15, %v16400_v21  ;;  %10726 = vmatpush.bf16.msra.mxu0 %v15889_v22  ;;  %v10476_v21 = vpop.f32.mrf.mxu0  ;;  %v10489_v15 = vpop.f32.mrf.mxu1 }
 0x701   :  { %v18354_v43 = vld [vmem:[#allocation26 + $0x1f5c] sm:$0xf0]  ;;  %v17834_v21 = vld [vmem:[#allocation26 + $0xf24] sm:$0xf] }
 0x702   :  { %v15312_v28 = vld [vmem:[#allocation26 + $0x12a0] sm:$0xf]  ;;  %v16913_v30 = vor.u32 %v18354_v43, %v16912_v17  ;;  %10739 = vmatpush.bf16.msra.mxu1 %v16401_v10  ;;  %v14866_v15 = vld [vmem:[#allocation26 + $0xf60] sm:$0xf0] }
 0x703   :  { %v17954_v49 = vld [vmem:[#allocation26 + $0x12dc] sm:$0xf0] }
 0x704   :  { %v15824_v16 = vld [vmem:[#allocation26 + $0x16a0] sm:$0xf]  ;;  %v15313_v53 = vor.u32 %v17954_v49, %v15312_v28  ;;  %10752 = vmatpush.bf16.msra.mxu2 %v16913_v30 }
 0x705   :  { %v18082_v61 = vld [vmem:[#allocation26 + $0x16dc] sm:$0xf0] }
 0x706   :  { %v16336_v3 = vld [vmem:[#allocation26 + $0x1aa0] sm:$0xf]  ;;  %v15825_v31 = vor.u32 %v18082_v61, %v15824_v16  ;;  %10714 = vmatpush.bf16.msrb.mxu3 %v15313_v53 }
 0x707   :  { %v18210_v23 = vld [vmem:[#allocation26 + $0x1adc] sm:$0xf0] }
 0x708   :  { %v16848_v45 = vld [vmem:[#allocation26 + $0x1ea0] sm:$0xf]  ;;  %v16337_v51 = vor.u32 %v18210_v23, %v16336_v3  ;;  %10727 = vmatpush.bf16.msra.mxu0 %v15825_v31 }
 0x709   :  { %v18338_v47 = vld [vmem:[#allocation26 + $0x1edc] sm:$0xf0] }
 0x70a   :  { %v15248_v50 = vld [vmem:[#allocation26 + $0x1220] sm:$0xf]  ;;  %v16849_v54 = vor.u32 %v18338_v47, %v16848_v45  ;;  %10740 = vmatpush.bf16.msra.mxu1 %v16337_v51 }
 0x70b   :  { %v17938_v26 = vld [vmem:[#allocation26 + $0x125c] sm:$0xf0] }
 0x70c   :  { %v15760_v27 = vld [vmem:[#allocation26 + $0x1620] sm:$0xf]  ;;  %v15249_v0 = vor.u32 %v17938_v26, %v15248_v50  ;;  %10753 = vmatpush.bf16.msra.mxu2 %v16849_v54 }
 0x70d   :  { %v18066_v4 = vld [vmem:[#allocation26 + $0x165c] sm:$0xf0] }
 0x70e   :  { %v16272_v59 = vld [vmem:[#allocation26 + $0x1a20] sm:$0xf]  ;;  %v15761_v41 = vor.u32 %v18066_v4, %v15760_v27  ;;  %10715 = vmatpush.bf16.msrb.mxu3 %v15249_v0  ;;  %v10463_v27 = vpop.f32.mrf.mxu3  ;;  %v17466_v0 = vld [vmem:[#allocation26 + $0x3a4] sm:$0xf] }
 0x70f   :  { %v18194_v5 = vld [vmem:[#allocation26 + $0x1a5c] sm:$0xf0]  ;;  %v13714_v27 = vld [vmem:[#allocation26 + $0x660] sm:$0xf0] }
 0x710   :  { %v16784_v2 = vld [vmem:[#allocation26 + $0x1e20] sm:$0xf]  ;;  %v16273_v38 = vor.u32 %v18194_v5, %v16272_v59  ;;  %10728 = vmatpush.bf16.msra.mxu0 %v15761_v41  ;;  %v13394_v41 = vld [vmem:[#allocation26 + $0x3e0] sm:$0xf0] }
 0x711   :  { %v18322_v33 = vld [vmem:[#allocation26 + $0x1e5c] sm:$0xf0] }
 0x712   :  { %v15184_v56 = vld [vmem:[#allocation26 + $0x11a0] sm:$0xf]  ;;  %v16785_v42 = vor.u32 %v18322_v33, %v16784_v2  ;;  %10741 = vmatpush.bf16.msra.mxu1 %v16273_v38  ;;  %v10502_v2 = vpop.f32.mrf.mxu2  ;;  %v17722_v38 = vld [vmem:[#allocation26 + $0xba4] sm:$0xf] }
 0x713   :  { %v17922_v29 = vld [vmem:[#allocation26 + $0x11dc] sm:$0xf0]  ;;  %v14738_v2 = vld [vmem:[#allocation26 + $0xe60] sm:$0xf0] }
 0x714   :  { %v15696_v40 = vld [vmem:[#allocation26 + $0x15a0] sm:$0xf]  ;;  %v15185_v37 = vor.u32 %v17922_v29, %v15184_v56  ;;  %10754 = vmatpush.bf16.msra.mxu2 %v16785_v42  ;;  %v17594_v56 = vld [vmem:[#allocation26 + $0x7a4] sm:$0xf] }
 0x715   :  { %v18050_v25 = vld [vmem:[#allocation26 + $0x15dc] sm:$0xf0]  ;;  %v13906_v29 = vld [vmem:[#allocation26 + $0x7e0] sm:$0xf0] }
 0x716   :  { %v16208_v18 = vld [vmem:[#allocation26 + $0x19a0] sm:$0xf]  ;;  %v15697_v35 = vor.u32 %v18050_v25, %v15696_v40  ;;  %10716 = vmatpush.bf16.msrb.mxu3 %v15185_v37  ;;  %v14418_v25 = vld [vmem:[#allocation26 + $0xbe0] sm:$0xf0] }
 0x717   :  { %v18178_v11 = vld [vmem:[#allocation26 + $0x19dc] sm:$0xf0] }
 0x718   :  { %v16720_v46 = vld [vmem:[#allocation26 + $0x1da0] sm:$0xf]  ;;  %v16209_v39 = vor.u32 %v18178_v11, %v16208_v18  ;;  %10729 = vmatpush.bf16.msra.mxu0 %v15697_v35  ;;  %v17850_v18 = vld [vmem:[#allocation26 + $0xfa4] sm:$0xf] }
 0x719   :  { %v18306_v60 = vld [vmem:[#allocation26 + $0x1ddc] sm:$0xf0]  ;;  %v14930_v11 = vld [vmem:[#allocation26 + $0xfe0] sm:$0xf0] }
 0x71a   :  { %v15120_v32 = vld [vmem:[#allocation26 + $0x1120] sm:$0xf]  ;;  %v16721_v7 = vor.u32 %v18306_v60, %v16720_v46  ;;  %10742 = vmatpush.bf16.msra.mxu1 %v16209_v39  ;;  %v17450_v39 = vld [vmem:[#allocation26 + $0x324] sm:$0xf] }
 0x71b   :  { %v17906_v14 = vld [vmem:[#allocation26 + $0x115c] sm:$0xf0] }
 0x71c   :  { %v15632_v19 = vld [vmem:[#allocation26 + $0x1520] sm:$0xf]  ;;  %v15121_v17 = vor.u32 %v17906_v14, %v15120_v32  ;;  %10755 = vmatpush.bf16.msra.mxu2 %v16721_v7  ;;  %v13397_v32 = vor.u32 %v17466_v0, %v13394_v41  ;;  %v13909_v14 = vor.u32 %v17594_v56, %v13906_v29  ;;  %v13330_v7 = vld [vmem:[#allocation26 + $0x360] sm:$0xf0] }
 0x71d   :  { %v18034_v48 = vld [vmem:[#allocation26 + $0x155c] sm:$0xf0]  ;;  %v17402_v29 = vld [vmem:[#allocation26 + $0x1a4] sm:$0xf] }
 0x71e   :  { %v16144_v62 = vld [vmem:[#allocation26 + $0x1920] sm:$0xf]  ;;  %v15633_v43 = vor.u32 %v18034_v48, %v15632_v19  ;;  %10717 = vmatpush.bf16.msrb.mxu3 %v15121_v17  ;;  %v14421_v19 = vor.u32 %v17722_v38, %v14418_v25  ;;  %v14933_v48 = vor.u32 %v17850_v18, %v14930_v11  ;;  %v13138_v38 = vld [vmem:[#allocation26 + $0x1e0] sm:$0xf0] }
 0x71f   :  { %v18162_v8 = vld [vmem:[#allocation26 + $0x195c] sm:$0xf0]  ;;  %v17530_v25 = vld [vmem:[#allocation26 + $0x5a4] sm:$0xf] }
 0x720   :  { %v16656_v55 = vld [vmem:[#allocation26 + $0x1d20] sm:$0xf]  ;;  %v16145_v28 = vor.u32 %v18162_v8, %v16144_v62  ;;  %10730 = vmatpush.bf16.msra.mxu0 %v15633_v43  ;;  %v17578_v62 = vld [vmem:[#allocation26 + $0x724] sm:$0xf]  ;;  %v13333_v43 = vor.u32 %v17450_v39, %v13330_v7 }
 0x721   :  { %v18290_v63 = vld [vmem:[#allocation26 + $0x1d5c] sm:$0xf0]  ;;  %v13842_v8 = vld [vmem:[#allocation26 + $0x760] sm:$0xf0] }
 0x722   :  { %v15056_v36 = vld [vmem:[#allocation26 + $0x10a0] sm:$0xf]  ;;  %v16657_v49 = vor.u32 %v18290_v63, %v16656_v55  ;;  %10743 = vmatpush.bf16.msra.mxu1 %v16145_v28  ;;  %v17706_v55 = vld [vmem:[#allocation26 + $0xb24] sm:$0xf] }
 0x723   :  { %v17890_v22 = vld [vmem:[#allocation26 + $0x10dc] sm:$0xf0]  ;;  %v14354_v63 = vld [vmem:[#allocation26 + $0xb60] sm:$0xf0] }
 0x724   :  { %v15568_v10 = vld [vmem:[#allocation26 + $0x14a0] sm:$0xf]  ;;  %v15057_v47 = vor.u32 %v17890_v22, %v15056_v36  ;;  %10756 = vmatpush.bf16.msra.mxu2 %v16657_v49  ;;  %v13845_v36 = vor.u32 %v17578_v62, %v13842_v8  ;;  %v17434_v22 = vld [vmem:[#allocation26 + $0x2a4] sm:$0xf]  ;;  %v14357_v49 = vor.u32 %v17706_v55, %v14354_v63  ;;  %v10513_v62 = vpop.f32.mrf.mxu3 }
 0x725   :  { %v18018_v30 = vld [vmem:[#allocation26 + $0x14dc] sm:$0xf0]  ;;  %v13266_v28 = vld [vmem:[#allocation26 + $0x2e0] sm:$0xf0] }
 0x726   :  { %v16080_v16 = vld [vmem:[#allocation26 + $0x18a0] sm:$0xf]  ;;  %v15569_v53 = vor.u32 %v18018_v30, %v15568_v10  ;;  %10718 = vmatpush.bf16.msrb.mxu3 %v15057_v47  ;;  %v14869_v10 = vor.u32 %v17834_v21, %v14866_v15  ;;  %v17562_v30 = vld [vmem:[#allocation26 + $0x6a4] sm:$0xf]  ;;  %v13269_v47 = vor.u32 %v17434_v22, %v13266_v28  ;;  %v10552_v15 = vpop.f32.mrf.mxu2 }
 0x727   :  { %v18146_v61 = vld [vmem:[#allocation26 + $0x18dc] sm:$0xf0]  ;;  %v13650_v18 = vld [vmem:[#allocation26 + $0x5e0] sm:$0xf0] }
 0x728   :  { %v16592_v3 = vld [vmem:[#allocation26 + $0x1ca0] sm:$0xf]  ;;  %v16081_v51 = vor.u32 %v18146_v61, %v16080_v16  ;;  %10731 = vmatpush.bf16.msra.mxu0 %v15569_v53  ;;  %v13778_v16 = vld [vmem:[#allocation26 + $0x6e0] sm:$0xf0] }
 0x729   :  { %v18274_v23 = vld [vmem:[#allocation26 + $0x1cdc] sm:$0xf0]  ;;  %v17690_v61 = vld [vmem:[#allocation26 + $0xaa4] sm:$0xf]  ;;  %v13781_v53 = vor.u32 %v17562_v30, %v13778_v16 }
 0x72a   :  { %v14992_v45 = vld [vmem:[#allocation26 + $0x1020] sm:$0xf]  ;;  %v16593_v54 = vor.u32 %v18274_v23, %v16592_v3  ;;  %10744 = vmatpush.bf16.msra.mxu1 %v16081_v51  ;;  %v14290_v3 = vld [vmem:[#allocation26 + $0xae0] sm:$0xf0] }
 0x72b   :  { %v17874_v31 = vld [vmem:[#allocation26 + $0x105c] sm:$0xf0]  ;;  %v17818_v23 = vld [vmem:[#allocation26 + $0xea4] sm:$0xf] }
 0x72c   :  { %v15504_v50 = vld [vmem:[#allocation26 + $0x1420] sm:$0xf]  ;;  %v14993_v42 = vor.u32 %v17874_v31, %v14992_v45  ;;  %10757 = vmatpush.bf16.msra.mxu2 %v16593_v54  ;;  %v17418_v31 = vld [vmem:[#allocation26 + $0x224] sm:$0xf] }
 0x72d   :  { %v18002_v26 = vld [vmem:[#allocation26 + $0x145c] sm:$0xf0]  ;;  %v17546_v54 = vld [vmem:[#allocation26 + $0x624] sm:$0xf] }
 0x72e   :  { %v16016_v4 = vld [vmem:[#allocation26 + $0x1820] sm:$0xf]  ;;  %v15505_v40 = vor.u32 %v18002_v26, %v15504_v50  ;;  %10719 = vmatpush.bf16.msrb.mxu3 %v14993_v42  ;;  %v13202_v50 = vld [vmem:[#allocation26 + $0x260] sm:$0xf0]  ;;  %v14293_v26 = vor.u32 %v17690_v61, %v14290_v3  ;;  %v13717_v56 = vor.u32 %v17546_v54, %v13714_v27 }
 0x72f   :  { %v18130_v59 = vld [vmem:[#allocation26 + $0x185c] sm:$0xf0]  ;;  %v13205_v41 = vor.u32 %v17418_v31, %v13202_v50  ;;  %v17658_v11 = vld [vmem:[#allocation26 + $0x9a4] sm:$0xf] }
 0x730   :  { %v16528_v5 = vld [vmem:[#allocation26 + $0x1c20] sm:$0xf]  ;;  %v16017_v46 = vor.u32 %v18130_v59, %v16016_v4  ;;  %10732 = vmatpush.bf16.msra.mxu0 %v15505_v40  ;;  %v17674_v4 = vld [vmem:[#allocation26 + $0xa24] sm:$0xf] }
 0x731   :  { %v18258_v33 = vld [vmem:[#allocation26 + $0x1c5c] sm:$0xf0]  ;;  %10720 = vmatmul.bf16.vlgmr.msrb.gmra.mxu3 %v19560_v12  ;;  %v14226_v59 = vld [vmem:[#allocation26 + $0xa60] sm:$0xf0] }
 0x732   :  { %v16529_v60 = vor.u32 %v18258_v33, %v16528_v5  ;;  %v19718_v37 = vld [vmem:[#allocation28] sm:$0xff]  ;;  %10745 = vmatpush.bf16.msra.mxu1 %v16017_v46  ;;  %10764 = vmatpush.bf16.msra.mxu3 %v13397_v32  ;;  %v10526_v33 = vpop.f32.mrf.mxu0  ;;  %v14229_v42 = vor.u32 %v17674_v4, %v14226_v59 }
 0x733   :  { %v4682_v35 = vperm.slane %v19718_v37, 6  ;;  %10733 = vmatmul.bf16.vlgmr.msra.gmra.mxu0 %v19562_v1  ;;  %v17802_v5 = vld [vmem:[#allocation26 + $0xe24] sm:$0xf] }
 0x734   :  { %10758 = vmatpush.bf16.msra.mxu2 %v16529_v60  ;;  %10777 = vmatpush.bf16.msrb.mxu0 %v13909_v14  ;;  %v14741_v40 = vor.u32 %v17802_v5, %v14738_v2  ;;  %v14162_v46 = vld [vmem:[#allocation26 + $0x9e0] sm:$0xf0]  ;;  %v13653_v14 = vor.u32 %v17530_v25, %v13650_v18 }
 0x735   :  { %v10462_v17 = vadd.f32 %v19714_v44, %v4682_v35  ;;  %v14802_v44 = vld [vmem:[#allocation26 + $0xee0] sm:$0xf0]  ;;  %10746 = vmatmul.bf16.vlgmr.msra.gmra.mxu1 %v19564_v58 }
 0x736   :  { %10790 = vmatpush.bf16.msrb.mxu1 %v14421_v19  ;;  %10765 = vmatpush.bf16.msra.mxu3 %v13333_v43  ;;  %v14805_v51 = vor.u32 %v17818_v23, %v14802_v44  ;;  %v17786_v60 = vld [vmem:[#allocation26 + $0xda4] sm:$0xf]  ;;  %v14165_v19 = vor.u32 %v17658_v11, %v14162_v46 }
 0x737   :  { %10759 = vmatmul.bf16.vlgmr.msra.gmra.mxu2 %v19566_v20  ;;  %v10475_v45 = vadd.f32 %v19710_v24, %v10462_v17  ;;  %v10539_v24 = vpop.f32.mrf.mxu1  ;;  %v14674_v35 = vld [vmem:[#allocation26 + $0xde0] sm:$0xf0] }
 0x738   :  { %10803 = vmatpush.bf16.msrb.mxu2 %v14933_v48  ;;  %10778 = vmatpush.bf16.msrb.mxu0 %v13845_v36  ;;  %v17386_v39 = vld [vmem:[#allocation26 + $0x124] sm:$0xf]  ;;  %v14677_v48 = vor.u32 %v17786_v60, %v14674_v35 }
 0x739   :  { %v10488_v0 = vadd.f32 %v19712_v34, %v10475_v45  ;;  %v13141_v34 = vor.u32 %v17402_v29, %v13138_v38  ;;  %v13074_v7 = vld [vmem:[#allocation26 + $0x160] sm:$0xf0]  ;;  %v10554_v38 = vpop.f32.mrf.mxu2 }
 0x73a   :  { %10791 = vmatpush.bf16.msrb.mxu1 %v14357_v49  ;;  %10766 = vmatpush.bf16.msra.mxu3 %v13269_v47  ;;  %v17514_v8 = vld [vmem:[#allocation26 + $0x524] sm:$0xf]  ;;  %v13077_v49 = vor.u32 %v17386_v39, %v13074_v7 }
 0x73b   :  { %v10501_v32 = vadd.f32 %v19716_v6, %v10488_v0  ;;  %v13586_v55 = vld [vmem:[#allocation26 + $0x560] sm:$0xf0]  ;;  %v10528_v6 = vpop.f32.mrf.mxu0 }
 0x73c   :  { %10804 = vmatpush.bf16.msrb.mxu2 %v14869_v10  ;;  %10779 = vmatpush.bf16.msrb.mxu0 %v13781_v53  ;;  %v17642_v63 = vld [vmem:[#allocation26 + $0x924] sm:$0xf]  ;;  %v13589_v10 = vor.u32 %v17514_v8, %v13586_v55 }
 0x73d   :  { %v10514_v21 = vadd.f32 %v10513_v62, %v10501_v32  ;;  %v14098_v17 = vld [vmem:[#allocation26 + $0x960] sm:$0xf0] }
 0x73e   :  { %10792 = vmatpush.bf16.msrb.mxu1 %v14293_v26  ;;  %10767 = vmatpush.bf16.msra.mxu3 %v13205_v41  ;;  %v17770_v43 = vld [vmem:[#allocation26 + $0xd24] sm:$0xf]  ;;  %v14101_v61 = vor.u32 %v17642_v63, %v14098_v17  ;;  %v10515_v41 = vpop.f32.mrf.mxu3 }
 0x73f   :  { %v14610_v36 = vld [vmem:[#allocation26 + $0xd60] sm:$0xf0]  ;;  %v10527_v22 = vadd.f32 %v10526_v33, %v10514_v21  ;;  %v10541_v28 = vpop.f32.mrf.mxu1 }
 0x740   :  { %10805 = vmatpush.bf16.msrb.mxu2 %v14805_v51  ;;  %10780 = vmatpush.bf16.msrb.mxu0 %v13717_v56  ;;  %v17370_v30 = vld [vmem:[#allocation26 + $0xa4] sm:$0xf]  ;;  %v14613_v3 = vor.u32 %v17770_v43, %v14610_v36 }
 0x741   :  { %v13010_v16 = vld [vmem:[#allocation26 + $0xe0] sm:$0xf0]  ;;  %v10540_v47 = vadd.f32 %v10539_v24, %v10527_v22 }
 0x742   :  { %10793 = vmatpush.bf16.msrb.mxu1 %v14229_v42  ;;  %10768 = vmatpush.bf16.msra.mxu3 %v13141_v34  ;;  %v17498_v23 = vld [vmem:[#allocation26 + $0x4a4] sm:$0xf]  ;;  %v13013_v27 = vor.u32 %v17370_v30, %v13010_v16 }
 0x743   :  { %v13522_v44 = vld [vmem:[#allocation26 + $0x4e0] sm:$0xf0]  ;;  %v10553_v54 = vadd.f32 %v10552_v15, %v10540_v47 }
 0x744   :  { %10806 = vmatpush.bf16.msrb.mxu2 %v14741_v40  ;;  %10781 = vmatpush.bf16.msrb.mxu0 %v13653_v14  ;;  %v17626_v45 = vld [vmem:[#allocation26 + $0x8a4] sm:$0xf]  ;;  %v13525_v4 = vor.u32 %v17498_v23, %v13522_v44 }
 0x745   :  { %v14034_v53 = vld [vmem:[#allocation26 + $0x8e0] sm:$0xf0]  ;;  %11498 = vst [vmem:[#allocation29 + $0x30] sm:$0xff] %v10553_v54 }
 0x746   :  { %10794 = vmatpush.bf16.msrb.mxu1 %v14165_v19  ;;  %v17754_v31 = vld [vmem:[#allocation26 + $0xca4] sm:$0xf]  ;;  %10769 = vmatpush.bf16.msra.mxu3 %v13077_v49  ;;  %v14037_v33 = vor.u32 %v17626_v45, %v14034_v53 }
 0x747   :  { %v14546_v50 = vld [vmem:[#allocation26 + $0xce0] sm:$0xf0] }
 0x748   :  { %10807 = vmatpush.bf16.msrb.mxu2 %v14677_v48  ;;  %v17354_v26 = vld [vmem:[#allocation26 + $0x24] sm:$0xf]  ;;  %10782 = vmatpush.bf16.msrb.mxu0 %v13589_v10  ;;  %v14549_v0 = vor.u32 %v17754_v31, %v14546_v50 }
 0x749   :  { %v12946_v51 = vld [vmem:[#allocation26 + $0x60] sm:$0xf0] }
 0x74a   :  { %v17482_v59 = vld [vmem:[#allocation26 + $0x424] sm:$0xf]  ;;  %10795 = vmatpush.bf16.msrb.mxu1 %v14101_v61  ;;  %10770 = vmatpush.bf16.msra.mxu3 %v13013_v27  ;;  %v12949_v46 = vor.u32 %v17354_v26, %v12946_v51 }
 0x74b   :  { %v13458_v5 = vld [vmem:[#allocation26 + $0x460] sm:$0xf0] }
 0x74c   :  { %v17610_v2 = vld [vmem:[#allocation26 + $0x824] sm:$0xf]  ;;  %10808 = vmatpush.bf16.msrb.mxu2 %v14613_v3  ;;  %10783 = vmatpush.bf16.msrb.mxu0 %v13525_v4  ;;  %v13461_v60 = vor.u32 %v17482_v59, %v13458_v5 }
 0x74d   :  { %v13970_v56 = vld [vmem:[#allocation26 + $0x860] sm:$0xf0] }
 0x74e   :  { %v17738_v24 = vld [vmem:[#allocation26 + $0xc24] sm:$0xf]  ;;  %10796 = vmatpush.bf16.msrb.mxu1 %v14037_v33  ;;  %v13973_v14 = vor.u32 %v17610_v2, %v13970_v56  ;;  %10771 = vmatpush.bf16.msra.mxu3 %v12949_v46  ;;  %v19733_v33 = vpop.f32.mrf.mxu0 }
 0x74f   :  { %v14482_v29 = vld [vmem:[#allocation26 + $0xc60] sm:$0xf0] }
 0x750   :  { %v17978_v42 = vld [vmem:[#allocation26 + $0x13a4] sm:$0xf]  ;;  %10809 = vmatpush.bf16.msrb.mxu2 %v14549_v0  ;;  %v14485_v39 = vor.u32 %v17738_v24, %v14482_v29  ;;  %10784 = vmatpush.bf16.msrb.mxu0 %v13461_v60  ;;  %v19735_v0 = vpop.f32.mrf.mxu1 }
 0x751   :  { %v15442_v40 = vld [vmem:[#allocation26 + $0x13e0] sm:$0xf0]  ;;  %10772 = vmatmul.bf16.vlgmr.msra.gmra.mxu3 %v19534_v57 }
 0x752   :  { %v18106_v25 = vld [vmem:[#allocation26 + $0x17a4] sm:$0xf]  ;;  %v15445_v7 = vor.u32 %v17978_v42, %v15442_v40  ;;  %10797 = vmatpush.bf16.msrb.mxu1 %v13973_v14 }
 0x753   :  { %v15954_v18 = vld [vmem:[#allocation26 + $0x17e0] sm:$0xf0]  ;;  %10785 = vmatmul.bf16.vlgmr.msrb.gmra.mxu0 %v19536_v52 }
 0x754   :  { %v18234_v11 = vld [vmem:[#allocation26 + $0x1ba4] sm:$0xf]  ;;  %v15957_v19 = vor.u32 %v18106_v25, %v15954_v18  ;;  %10810 = vmatpush.bf16.msrb.mxu2 %v14485_v39  ;;  %10816 = vmatpush.bf16.msrb.mxu3 %v15445_v7 }
 0x755   :  { %v16466_v35 = vld [vmem:[#allocation26 + $0x1be0] sm:$0xf0]  ;;  %10798 = vmatmul.bf16.vlgmr.msrb.gmra.mxu1 %v19538_v13 }
 0x756   :  { %v18362_v32 = vld [vmem:[#allocation26 + $0x1fa4] sm:$0xf]  ;;  %v16469_v8 = vor.u32 %v18234_v11, %v16466_v35  ;;  %10829 = vmatpush.bf16.msra.mxu0 %v15957_v19  ;;  %v19737_v19 = vpop.f32.mrf.mxu3 }
 0x757   :  { %v16978_v34 = vld [vmem:[#allocation26 + $0x1fe0] sm:$0xf0]  ;;  %10811 = vmatmul.bf16.vlgmr.msrb.gmra.mxu2 %v19540_v9 }
 0x758   :  { %v17962_v48 = vld [vmem:[#allocation26 + $0x1324] sm:$0xf]  ;;  %v16981_v55 = vor.u32 %v18362_v32, %v16978_v34  ;;  %10842 = vmatpush.bf16.msra.mxu1 %v16469_v8 }
 0x759   :  { %v15378_v62 = vld [vmem:[#allocation26 + $0x1360] sm:$0xf0] }
 0x75a   :  { %v18090_v63 = vld [vmem:[#allocation26 + $0x1724] sm:$0xf]  ;;  %v15381_v6 = vor.u32 %v17962_v48, %v15378_v62  ;;  %10855 = vmatpush.bf16.msra.mxu2 %v16981_v55  ;;  %v19739_v55 = vpop.f32.mrf.mxu2 }
 0x75b   :  { %v15890_v21 = vld [vmem:[#allocation26 + $0x1760] sm:$0xf0] }
 0x75c   :  { %v18218_v15 = vld [vmem:[#allocation26 + $0x1b24] sm:$0xf]  ;;  %v15893_v22 = vor.u32 %v18090_v63, %v15890_v21  ;;  %10817 = vmatpush.bf16.msrb.mxu3 %v15381_v6 }
 0x75d   :  { %v16402_v17 = vld [vmem:[#allocation26 + $0x1b60] sm:$0xf0] }
 0x75e   :  { %v18346_v43 = vld [vmem:[#allocation26 + $0x1f24] sm:$0xf]  ;;  %v16405_v10 = vor.u32 %v18218_v15, %v16402_v17  ;;  %10830 = vmatpush.bf16.msra.mxu0 %v15893_v22  ;;  %v10580_v17 = vpop.f32.mrf.mxu0 }
 0x75f   :  { %v16914_v36 = vld [vmem:[#allocation26 + $0x1f60] sm:$0xf0]  ;;  %v14872_v17 = vld [vmem:[#allocation26 + $0xf28] sm:$0xf] }
 0x760   :  { %v17946_v28 = vld [vmem:[#allocation26 + $0x12a4] sm:$0xf]  ;;  %v16917_v30 = vor.u32 %v18346_v43, %v16914_v36  ;;  %10843 = vmatpush.bf16.msra.mxu1 %v16405_v10  ;;  %v10593_v43 = vpop.f32.mrf.mxu1 }
 0x761   :  { %v15314_v49 = vld [vmem:[#allocation26 + $0x12e0] sm:$0xf0]  ;;  %v17843_v43 = vld [vmem:[#allocation26 + $0xf64] sm:$0xf0] }
 0x762   :  { %v18074_v16 = vld [vmem:[#allocation26 + $0x16a4] sm:$0xf]  ;;  %v15317_v47 = vor.u32 %v17946_v28, %v15314_v49  ;;  %10856 = vmatpush.bf16.msra.mxu2 %v16917_v30 }
 0x763   :  { %v15826_v61 = vld [vmem:[#allocation26 + $0x16e0] sm:$0xf0] }
 0x764   :  { %v18202_v3 = vld [vmem:[#allocation26 + $0x1aa4] sm:$0xf]  ;;  %v15829_v53 = vor.u32 %v18074_v16, %v15826_v61  ;;  %10818 = vmatpush.bf16.msrb.mxu3 %v15317_v47 }
 0x765   :  { %v16338_v23 = vld [vmem:[#allocation26 + $0x1ae0] sm:$0xf0] }
 0x766   :  { %v18330_v44 = vld [vmem:[#allocation26 + $0x1ea4] sm:$0xf]  ;;  %v16341_v26 = vor.u32 %v18202_v3, %v16338_v23  ;;  %10831 = vmatpush.bf16.msra.mxu0 %v15829_v53 }
 0x767   :  { %v16850_v45 = vld [vmem:[#allocation26 + $0x1ee0] sm:$0xf0] }
 0x768   :  { %v17930_v31 = vld [vmem:[#allocation26 + $0x1224] sm:$0xf]  ;;  %v16853_v51 = vor.u32 %v18330_v44, %v16850_v45  ;;  %10844 = vmatpush.bf16.msra.mxu1 %v16341_v26 }
 0x769   :  { %v15250_v50 = vld [vmem:[#allocation26 + $0x1260] sm:$0xf0] }
 0x76a   :  { %v18058_v54 = vld [vmem:[#allocation26 + $0x1624] sm:$0xf]  ;;  %v15253_v41 = vor.u32 %v17930_v31, %v15250_v50  ;;  %10857 = vmatpush.bf16.msra.mxu2 %v16853_v51 }
 0x76b   :  { %v15762_v27 = vld [vmem:[#allocation26 + $0x1660] sm:$0xf0] }
 0x76c   :  { %v18186_v4 = vld [vmem:[#allocation26 + $0x1a24] sm:$0xf]  ;;  %v15765_v56 = vor.u32 %v18058_v54, %v15762_v27  ;;  %10819 = vmatpush.bf16.msrb.mxu3 %v15253_v41  ;;  %v10567_v27 = vpop.f32.mrf.mxu3 }
 0x76d   :  { %v16274_v59 = vld [vmem:[#allocation26 + $0x1a60] sm:$0xf0]  ;;  %v14232_v27 = vld [vmem:[#allocation26 + $0xa28] sm:$0xf] }
 0x76e   :  { %v18314_v5 = vld [vmem:[#allocation26 + $0x1e24] sm:$0xf]  ;;  %v16277_v38 = vor.u32 %v18186_v4, %v16274_v59  ;;  %10832 = vmatpush.bf16.msra.mxu0 %v15765_v56  ;;  %v13400_v56 = vld [vmem:[#allocation26 + $0x3a8] sm:$0xf] }
 0x76f   :  { %v16786_v2 = vld [vmem:[#allocation26 + $0x1e60] sm:$0xf0] }
 0x770   :  { %v17914_v24 = vld [vmem:[#allocation26 + $0x11a4] sm:$0xf]  ;;  %v16789_v42 = vor.u32 %v18314_v5, %v16786_v2  ;;  %10845 = vmatpush.bf16.msra.mxu1 %v16277_v38  ;;  %v10606_v2 = vpop.f32.mrf.mxu2  ;;  %v17603_v38 = vld [vmem:[#allocation26 + $0x7e4] sm:$0xf0] }
 0x771   :  { %v15186_v29 = vld [vmem:[#allocation26 + $0x11e0] sm:$0xf0]  ;;  %v10630_v2 = vpop.f32.mrf.mxu0 }
 0x772   :  { %v18042_v40 = vld [vmem:[#allocation26 + $0x15a4] sm:$0xf]  ;;  %v15189_v35 = vor.u32 %v17914_v24, %v15186_v29  ;;  %10858 = vmatpush.bf16.msra.mxu2 %v16789_v42  ;;  %v17475_v24 = vld [vmem:[#allocation26 + $0x3e4] sm:$0xf0] }
 0x773   :  { %v15698_v25 = vld [vmem:[#allocation26 + $0x15e0] sm:$0xf0]  ;;  %v13912_v29 = vld [vmem:[#allocation26 + $0x7a8] sm:$0xf] }
 0x774   :  { %v18170_v18 = vld [vmem:[#allocation26 + $0x19a4] sm:$0xf]  ;;  %v15701_v32 = vor.u32 %v18042_v40, %v15698_v25  ;;  %10820 = vmatpush.bf16.msrb.mxu3 %v15189_v35  ;;  %v14424_v42 = vld [vmem:[#allocation26 + $0xba8] sm:$0xf] }
 0x775   :  { %v16210_v11 = vld [vmem:[#allocation26 + $0x19e0] sm:$0xf0] }
 0x776   :  { %v18298_v46 = vld [vmem:[#allocation26 + $0x1da4] sm:$0xf]  ;;  %v16213_v39 = vor.u32 %v18170_v18, %v16210_v11  ;;  %10833 = vmatpush.bf16.msra.mxu0 %v15701_v32  ;;  %v17731_v18 = vld [vmem:[#allocation26 + $0xbe4] sm:$0xf0]  ;;  %v4683_v32 = vperm.slane %v19718_v37, 7 }
 0x777   :  { %v16722_v60 = vld [vmem:[#allocation26 + $0x1de0] sm:$0xf0]  ;;  %v14936_v11 = vld [vmem:[#allocation26 + $0xfa8] sm:$0xf] }
 0x778   :  { %v17898_v34 = vld [vmem:[#allocation26 + $0x1124] sm:$0xf]  ;;  %v16725_v7 = vor.u32 %v18298_v46, %v16722_v60  ;;  %10846 = vmatpush.bf16.msra.mxu1 %v16213_v39  ;;  %v17859_v46 = vld [vmem:[#allocation26 + $0xfe4] sm:$0xf0] }
 0x779   :  { %v15122_v14 = vld [vmem:[#allocation26 + $0x1160] sm:$0xf0]  ;;  %v13336_v39 = vld [vmem:[#allocation26 + $0x328] sm:$0xf] }
 0x77a   :  { %v18026_v48 = vld [vmem:[#allocation26 + $0x1524] sm:$0xf]  ;;  %v15125_v36 = vor.u32 %v17898_v34, %v15122_v14  ;;  %10859 = vmatpush.bf16.msra.mxu2 %v16725_v7  ;;  %v13401_v34 = vor.u32 %v17475_v24, %v13400_v56  ;;  %v13913_v14 = vor.u32 %v17603_v38, %v13912_v29  ;;  %v17459_v7 = vld [vmem:[#allocation26 + $0x364] sm:$0xf0] }
 0x77b   :  { %v15634_v62 = vld [vmem:[#allocation26 + $0x1560] sm:$0xf0]  ;;  %v13337_v37 = vor.u32 %v17459_v7, %v13336_v39  ;;  %v13144_v29 = vld [vmem:[#allocation26 + $0x1a8] sm:$0xf] }
 0x77c   :  { %v18154_v8 = vld [vmem:[#allocation26 + $0x1924] sm:$0xf]  ;;  %v15637_v6 = vor.u32 %v18026_v48, %v15634_v62  ;;  %10821 = vmatpush.bf16.msrb.mxu3 %v15125_v36  ;;  %v14425_v48 = vor.u32 %v17731_v18, %v14424_v42  ;;  %v14937_v62 = vor.u32 %v17859_v46, %v14936_v11  ;;  %v10566_v36 = vadd.f32 %v19737_v19, %v4683_v32  ;;  %v17827_v19 = vld [vmem:[#allocation26 + $0xee4] sm:$0xf0] }
 0x77d   :  { %v16146_v63 = vld [vmem:[#allocation26 + $0x1960] sm:$0xf0]  ;;  %v17411_v38 = vld [vmem:[#allocation26 + $0x1e4] sm:$0xf0] }
 0x77e   :  { %v18282_v21 = vld [vmem:[#allocation26 + $0x1d24] sm:$0xf]  ;;  %v16149_v49 = vor.u32 %v18154_v8, %v16146_v63  ;;  %10834 = vmatpush.bf16.msra.mxu0 %v15637_v6  ;;  %v13848_v8 = vld [vmem:[#allocation26 + $0x728] sm:$0xf] }
 0x77f   :  { %v16658_v15 = vld [vmem:[#allocation26 + $0x1d60] sm:$0xf0]  ;;  %v17587_v63 = vld [vmem:[#allocation26 + $0x764] sm:$0xf0] }
 0x780   :  { %v17882_v22 = vld [vmem:[#allocation26 + $0x10a4] sm:$0xf]  ;;  %v16661_v10 = vor.u32 %v18282_v21, %v16658_v15  ;;  %10847 = vmatpush.bf16.msra.mxu1 %v16149_v49  ;;  %v14360_v21 = vld [vmem:[#allocation26 + $0xb28] sm:$0xf]  ;;  %v13849_v6 = vor.u32 %v17587_v63, %v13848_v8 }
 0x781   :  { %v15058_v28 = vld [vmem:[#allocation26 + $0x10e0] sm:$0xf0]  ;;  %v17715_v15 = vld [vmem:[#allocation26 + $0xb64] sm:$0xf0] }
 0x782   :  { %v18010_v30 = vld [vmem:[#allocation26 + $0x14a4] sm:$0xf]  ;;  %v15061_v47 = vor.u32 %v17882_v22, %v15058_v28  ;;  %10860 = vmatpush.bf16.msra.mxu2 %v16661_v10  ;;  %v13272_v22 = vld [vmem:[#allocation26 + $0x2a8] sm:$0xf]  ;;  %v14361_v49 = vor.u32 %v17715_v15, %v14360_v21  ;;  %v14873_v10 = vor.u32 %v17843_v43, %v14872_v17  ;;  %v10656_v17 = vpop.f32.mrf.mxu2 }
 0x783   :  { %v15570_v16 = vld [vmem:[#allocation26 + $0x14e0] sm:$0xf0]  ;;  %v17443_v28 = vld [vmem:[#allocation26 + $0x2e4] sm:$0xf0] }
 0x784   :  { %v18138_v61 = vld [vmem:[#allocation26 + $0x18a4] sm:$0xf]  ;;  %v15573_v53 = vor.u32 %v18010_v30, %v15570_v16  ;;  %10822 = vmatpush.bf16.msrb.mxu3 %v15061_v47  ;;  %v13784_v30 = vld [vmem:[#allocation26 + $0x6a8] sm:$0xf] }
 0x785   :  { %v16082_v3 = vld [vmem:[#allocation26 + $0x18e0] sm:$0xf0]  ;;  %v17571_v16 = vld [vmem:[#allocation26 + $0x6e4] sm:$0xf0] }
 0x786   :  { %v18266_v23 = vld [vmem:[#allocation26 + $0x1ca4] sm:$0xf]  ;;  %v16085_v51 = vor.u32 %v18138_v61, %v16082_v3  ;;  %10835 = vmatpush.bf16.msra.mxu0 %v15573_v53  ;;  %v14296_v61 = vld [vmem:[#allocation26 + $0xaa8] sm:$0xf]  ;;  %v13785_v47 = vor.u32 %v17571_v16, %v13784_v30 }
 0x787   :  { %v16594_v44 = vld [vmem:[#allocation26 + $0x1ce0] sm:$0xf0]  ;;  %v17699_v3 = vld [vmem:[#allocation26 + $0xae4] sm:$0xf0] }
 0x788   :  { %v17866_v45 = vld [vmem:[#allocation26 + $0x1024] sm:$0xf]  ;;  %v16597_v54 = vor.u32 %v18266_v23, %v16594_v44  ;;  %10848 = vmatpush.bf16.msra.mxu1 %v16085_v51  ;;  %v14808_v23 = vld [vmem:[#allocation26 + $0xea8] sm:$0xf]  ;;  %v10579_v44 = vadd.f32 %v19733_v33, %v10566_v36  ;;  %v10643_v33 = vpop.f32.mrf.mxu1 }
 0x789   :  { %v14994_v31 = vld [vmem:[#allocation26 + $0x1060] sm:$0xf0]  ;;  %v13208_v53 = vld [vmem:[#allocation26 + $0x228] sm:$0xf] }
 0x78a   :  { %v17994_v50 = vld [vmem:[#allocation26 + $0x1424] sm:$0xf]  ;;  %v14997_v40 = vor.u32 %v17866_v45, %v14994_v31  ;;  %10861 = vmatpush.bf16.msra.mxu2 %v16597_v54  ;;  %v13273_v45 = vor.u32 %v17443_v28, %v13272_v22  ;;  %v17427_v31 = vld [vmem:[#allocation26 + $0x264] sm:$0xf0] }
 0x78b   :  { %v15506_v26 = vld [vmem:[#allocation26 + $0x1460] sm:$0xf0]  ;;  %v13720_v51 = vld [vmem:[#allocation26 + $0x628] sm:$0xf]  ;;  %v13209_v56 = vor.u32 %v17427_v31, %v13208_v53 }
 0x78c   :  { %v18122_v4 = vld [vmem:[#allocation26 + $0x1824] sm:$0xf]  ;;  %v15509_v25 = vor.u32 %v17994_v50, %v15506_v26  ;;  %10823 = vmatpush.bf16.msrb.mxu3 %v14997_v40  ;;  %v14297_v50 = vor.u32 %v17699_v3, %v14296_v61  ;;  %v14809_v26 = vor.u32 %v17827_v19, %v14808_v23  ;;  %v17555_v54 = vld [vmem:[#allocation26 + $0x664] sm:$0xf0] }
 0x78d   :  { %v16018_v59 = vld [vmem:[#allocation26 + $0x1860] sm:$0xf0]  ;;  %v13721_v24 = vor.u32 %v17555_v54, %v13720_v51  ;;  %v17539_v18 = vld [vmem:[#allocation26 + $0x5e4] sm:$0xf0] }
 0x78e   :  { %v18250_v5 = vld [vmem:[#allocation26 + $0x1c24] sm:$0xf]  ;;  %v16021_v60 = vor.u32 %v18122_v4, %v16018_v59  ;;  %10836 = vmatpush.bf16.msra.mxu0 %v15509_v25  ;;  %v17683_v4 = vld [vmem:[#allocation26 + $0xa64] sm:$0xf0] }
 0x78f   :  { %v16530_v41 = vld [vmem:[#allocation26 + $0x1c60] sm:$0xf0]  ;;  %10824 = vmatmul.bf16.vlgmr.msrb.gmra.mxu3 %v19560_v12  ;;  %v14744_v59 = vld [vmem:[#allocation26 + $0xe28] sm:$0xf]  ;;  %v14233_v42 = vor.u32 %v17683_v4, %v14232_v27 }
 0x790   :  { %v16533_v35 = vor.u32 %v18250_v5, %v16530_v41  ;;  %10849 = vmatpush.bf16.msra.mxu1 %v16021_v60  ;;  %10868 = vmatpush.bf16.msra.mxu3 %v13401_v34  ;;  %v17811_v5 = vld [vmem:[#allocation26 + $0xe64] sm:$0xf0]  ;;  %v10592_v41 = vadd.f32 %v19735_v0, %v10579_v44  ;;  %v13145_v0 = vor.u32 %v17411_v38, %v13144_v29  ;;  %v10645_v22 = vpop.f32.mrf.mxu1  ;;  %v10658_v29 = vpop.f32.mrf.mxu2 }
 0x791   :  { %10837 = vmatmul.bf16.vlgmr.msra.gmra.mxu0 %v19562_v1  ;;  %v14745_v40 = vor.u32 %v17811_v5, %v14744_v59  ;;  %v13656_v25 = vld [vmem:[#allocation26 + $0x5a8] sm:$0xf] }
 0x792   :  { %10862 = vmatpush.bf16.msra.mxu2 %v16533_v35  ;;  %10881 = vmatpush.bf16.msrb.mxu0 %v13913_v14  ;;  %v14168_v11 = vld [vmem:[#allocation26 + $0x9a8] sm:$0xf]  ;;  %v10605_v32 = vadd.f32 %v19739_v55, %v10592_v41  ;;  %v13657_v34 = vor.u32 %v17539_v18, %v13656_v25  ;;  %v10632_v55 = vpop.f32.mrf.mxu0 }
 0x793   :  { %10850 = vmatmul.bf16.vlgmr.msra.gmra.mxu1 %v19564_v58  ;;  %v17667_v46 = vld [vmem:[#allocation26 + $0x9e4] sm:$0xf0] }
 0x794   :  { %10894 = vmatpush.bf16.msrb.mxu1 %v14425_v48  ;;  %10869 = vmatpush.bf16.msra.mxu3 %v13337_v37  ;;  %v14680_v60 = vld [vmem:[#allocation26 + $0xda8] sm:$0xf]  ;;  %v14169_v7 = vor.u32 %v17667_v46, %v14168_v11 }
 0x795   :  { %10863 = vmatmul.bf16.vlgmr.msra.gmra.mxu2 %v19566_v20  ;;  %v17795_v35 = vld [vmem:[#allocation26 + $0xde4] sm:$0xf0] }
 0x796   :  { %10907 = vmatpush.bf16.msrb.mxu2 %v14937_v62  ;;  %10882 = vmatpush.bf16.msrb.mxu0 %v13849_v6  ;;  %v13080_v14 = vld [vmem:[#allocation26 + $0x128] sm:$0xf]  ;;  %v14681_v48 = vor.u32 %v17795_v35, %v14680_v60  ;;  %v10617_v62 = vpop.f32.mrf.mxu3 }
 0x797   :  { %v17395_v39 = vld [vmem:[#allocation26 + $0x164] sm:$0xf0]  ;;  %v10618_v15 = vadd.f32 %v10617_v62, %v10605_v32 }
 0x798   :  { %10895 = vmatpush.bf16.msrb.mxu1 %v14361_v49  ;;  %10870 = vmatpush.bf16.msra.mxu3 %v13273_v45  ;;  %v13592_v8 = vld [vmem:[#allocation26 + $0x528] sm:$0xf]  ;;  %v13081_v28 = vor.u32 %v17395_v39, %v13080_v14 }
 0x799   :  { %v17523_v63 = vld [vmem:[#allocation26 + $0x564] sm:$0xf0]  ;;  %v10631_v6 = vadd.f32 %v10630_v2, %v10618_v15 }
 0x79a   :  { %10908 = vmatpush.bf16.msrb.mxu2 %v14873_v10  ;;  %10883 = vmatpush.bf16.msrb.mxu0 %v13785_v47  ;;  %v14104_v21 = vld [vmem:[#allocation26 + $0x928] sm:$0xf]  ;;  %v13593_v49 = vor.u32 %v17523_v63, %v13592_v8 }
 0x79b   :  { %v17651_v43 = vld [vmem:[#allocation26 + $0x964] sm:$0xf0]  ;;  %v10644_v44 = vadd.f32 %v10643_v33, %v10631_v6 }
 0x79c   :  { %10896 = vmatpush.bf16.msrb.mxu1 %v14297_v50  ;;  %10871 = vmatpush.bf16.msra.mxu3 %v13209_v56  ;;  %v14616_v36 = vld [vmem:[#allocation26 + $0xd28] sm:$0xf]  ;;  %v14105_v16 = vor.u32 %v17651_v43, %v14104_v21 }
 0x79d   :  { %v17779_v37 = vld [vmem:[#allocation26 + $0xd64] sm:$0xf0] }
 0x79e   :  { %10909 = vmatpush.bf16.msrb.mxu2 %v14809_v26  ;;  %10884 = vmatpush.bf16.msrb.mxu0 %v13721_v24  ;;  %v13016_v10 = vld [vmem:[#allocation26 + $0xa8] sm:$0xf]  ;;  %v14617_v61 = vor.u32 %v17779_v37, %v14616_v36  ;;  %v10657_v26 = vadd.f32 %v10656_v17, %v10644_v44  ;;  %v10619_v41 = vpop.f32.mrf.mxu3 }
 0x79f   :  { %v17379_v30 = vld [vmem:[#allocation26 + $0xe4] sm:$0xf0] }
 0x7a0   :  { %10897 = vmatpush.bf16.msrb.mxu1 %v14233_v42  ;;  %10872 = vmatpush.bf16.msra.mxu3 %v13145_v0  ;;  %v13528_v3 = vld [vmem:[#allocation26 + $0x4a8] sm:$0xf]  ;;  %v13017_v51 = vor.u32 %v17379_v30, %v13016_v10  ;;  %11499 = vst [vmem:[#allocation29 + $0x38] sm:$0xff] %v10657_v26 }
 0x7a1   :  { %v17507_v23 = vld [vmem:[#allocation26 + $0x4e4] sm:$0xf0] }
 0x7a2   :  { %10910 = vmatpush.bf16.msrb.mxu2 %v14745_v40  ;;  %10885 = vmatpush.bf16.msrb.mxu0 %v13657_v34  ;;  %v14040_v19 = vld [vmem:[#allocation26 + $0x8a8] sm:$0xf]  ;;  %v13529_v54 = vor.u32 %v17507_v23, %v13528_v3 }
 0x7a3   :  { %v17635_v45 = vld [vmem:[#allocation26 + $0x8e4] sm:$0xf0] }
 0x7a4   :  { %10898 = vmatpush.bf16.msrb.mxu1 %v14169_v7  ;;  %v14552_v47 = vld [vmem:[#allocation26 + $0xca8] sm:$0xf]  ;;  %10873 = vmatpush.bf16.msra.mxu3 %v13081_v28  ;;  %v14041_v5 = vor.u32 %v17635_v45, %v14040_v19 }
 0x7a5   :  { %v17763_v53 = vld [vmem:[#allocation26 + $0xce4] sm:$0xf0] }
 0x7a6   :  { %10911 = vmatpush.bf16.msrb.mxu2 %v14681_v48  ;;  %v12952_v31 = vld [vmem:[#allocation26 + $0x28] sm:$0xf]  ;;  %10886 = vmatpush.bf16.msrb.mxu0 %v13593_v49  ;;  %v14553_v2 = vor.u32 %v17763_v53, %v14552_v47 }
 0x7a7   :  { %v17363_v50 = vld [vmem:[#allocation26 + $0x64] sm:$0xf0] }
 0x7a8   :  { %v13464_v27 = vld [vmem:[#allocation26 + $0x428] sm:$0xf]  ;;  %10899 = vmatpush.bf16.msrb.mxu1 %v14105_v16  ;;  %10874 = vmatpush.bf16.msra.mxu3 %v13017_v51  ;;  %v12953_v11 = vor.u32 %v17363_v50, %v12952_v31 }
 0x7a9   :  { %v17491_v4 = vld [vmem:[#allocation26 + $0x464] sm:$0xf0] }
 0x7aa   :  { %v13976_v59 = vld [vmem:[#allocation26 + $0x828] sm:$0xf]  ;;  %10912 = vmatpush.bf16.msrb.mxu2 %v14617_v61  ;;  %10887 = vmatpush.bf16.msrb.mxu0 %v13529_v54  ;;  %v13465_v46 = vor.u32 %v17491_v4, %v13464_v27 }
 0x7ab   :  { %v17619_v56 = vld [vmem:[#allocation26 + $0x864] sm:$0xf0] }
 0x7ac   :  { %v14488_v33 = vld [vmem:[#allocation26 + $0xc28] sm:$0xf]  ;;  %10900 = vmatpush.bf16.msrb.mxu1 %v14041_v5  ;;  %v13977_v0 = vor.u32 %v17619_v56, %v13976_v59  ;;  %10875 = vmatpush.bf16.msra.mxu3 %v12953_v11  ;;  %v19754_v59 = vpop.f32.mrf.mxu0  ;;  %v19756_v5 = vpop.f32.mrf.mxu1 }
 0x7ad   :  { %v17747_v24 = vld [vmem:[#allocation26 + $0xc64] sm:$0xf0] }
 0x7ae   :  { %v15448_v38 = vld [vmem:[#allocation26 + $0x13a8] sm:$0xf]  ;;  %10913 = vmatpush.bf16.msrb.mxu2 %v14553_v2  ;;  %v14489_v34 = vor.u32 %v17747_v24, %v14488_v33  ;;  %10888 = vmatpush.bf16.msrb.mxu0 %v13465_v46 }
 0x7af   :  { %v17987_v42 = vld [vmem:[#allocation26 + $0x13e4] sm:$0xf0]  ;;  %10876 = vmatmul.bf16.vlgmr.msra.gmra.mxu3 %v19534_v57 }
 0x7b0   :  { %v15960_v40 = vld [vmem:[#allocation26 + $0x17a8] sm:$0xf]  ;;  %v15449_v14 = vor.u32 %v17987_v42, %v15448_v38  ;;  %10901 = vmatpush.bf16.msrb.mxu1 %v13977_v0 }
 0x7b1   :  { %v18115_v25 = vld [vmem:[#allocation26 + $0x17e4] sm:$0xf0]  ;;  %10889 = vmatmul.bf16.vlgmr.msrb.gmra.mxu0 %v19536_v52 }
 0x7b2   :  { %v16472_v18 = vld [vmem:[#allocation26 + $0x1ba8] sm:$0xf]  ;;  %v15961_v39 = vor.u32 %v18115_v25, %v15960_v40  ;;  %10914 = vmatpush.bf16.msrb.mxu2 %v14489_v34  ;;  %10920 = vmatpush.bf16.msrb.mxu3 %v15449_v14  ;;  %v19758_v14 = vpop.f32.mrf.mxu3 }
 0x7b3   :  { %v18243_v60 = vld [vmem:[#allocation26 + $0x1be4] sm:$0xf0]  ;;  %10902 = vmatmul.bf16.vlgmr.msrb.gmra.mxu1 %v19538_v13 }
 0x7b4   :  { %v16984_v35 = vld [vmem:[#allocation26 + $0x1fa8] sm:$0xf]  ;;  %v16473_v62 = vor.u32 %v18243_v60, %v16472_v18  ;;  %10933 = vmatpush.bf16.msra.mxu0 %v15961_v39 }
 0x7b5   :  { %v18371_v32 = vld [vmem:[#allocation26 + $0x1fe4] sm:$0xf0]  ;;  %10915 = vmatmul.bf16.vlgmr.msrb.gmra.mxu2 %v19540_v9 }
 0x7b6   :  { %v15384_v7 = vld [vmem:[#allocation26 + $0x1328] sm:$0xf]  ;;  %v16985_v8 = vor.u32 %v18371_v32, %v16984_v35  ;;  %10946 = vmatpush.bf16.msra.mxu1 %v16473_v62  ;;  %v19760_v62 = vpop.f32.mrf.mxu2 }
 0x7b7   :  { %v17971_v48 = vld [vmem:[#allocation26 + $0x1364] sm:$0xf0] }
 0x7b8   :  { %v15896_v63 = vld [vmem:[#allocation26 + $0x1728] sm:$0xf]  ;;  %v15385_v37 = vor.u32 %v17971_v48, %v15384_v7  ;;  %10959 = vmatpush.bf16.msra.mxu2 %v16985_v8 }
 0x7b9   :  { %v18099_v21 = vld [vmem:[#allocation26 + $0x1764] sm:$0xf0] }
 0x7ba   :  { %v16408_v15 = vld [vmem:[#allocation26 + $0x1b28] sm:$0xf]  ;;  %v15897_v55 = vor.u32 %v18099_v21, %v15896_v63  ;;  %10921 = vmatpush.bf16.msrb.mxu3 %v15385_v37 }
 0x7bb   :  { %v18227_v17 = vld [vmem:[#allocation26 + $0x1b64] sm:$0xf0] }
 0x7bc   :  { %v16920_v43 = vld [vmem:[#allocation26 + $0x1f28] sm:$0xf]  ;;  %v16409_v28 = vor.u32 %v18227_v17, %v16408_v15  ;;  %10934 = vmatpush.bf16.msra.mxu0 %v15897_v55  ;;  %v10684_v15 = vpop.f32.mrf.mxu0  ;;  %v10697_v17 = vpop.f32.mrf.mxu1 }
 0x7bd   :  { %v18355_v36 = vld [vmem:[#allocation26 + $0x1f64] sm:$0xf0]  ;;  %v17835_v15 = vld [vmem:[#allocation26 + $0xf2c] sm:$0xf] }
 0x7be   :  { %v15320_v6 = vld [vmem:[#allocation26 + $0x12a8] sm:$0xf]  ;;  %v16921_v49 = vor.u32 %v18355_v36, %v16920_v43  ;;  %10947 = vmatpush.bf16.msra.mxu1 %v16409_v28  ;;  %v14874_v17 = vld [vmem:[#allocation26 + $0xf68] sm:$0xf0] }
 0x7bf   :  { %v17955_v22 = vld [vmem:[#allocation26 + $0x12e4] sm:$0xf0] }
 0x7c0   :  { %v15832_v10 = vld [vmem:[#allocation26 + $0x16a8] sm:$0xf]  ;;  %v15321_v19 = vor.u32 %v17955_v22, %v15320_v6  ;;  %10960 = vmatpush.bf16.msra.mxu2 %v16921_v49 }
 0x7c1   :  { %v18083_v30 = vld [vmem:[#allocation26 + $0x16e4] sm:$0xf0] }
 0x7c2   :  { %v16344_v16 = vld [vmem:[#allocation26 + $0x1aa8] sm:$0xf]  ;;  %v15833_v44 = vor.u32 %v18083_v30, %v15832_v10  ;;  %10922 = vmatpush.bf16.msrb.mxu3 %v15321_v19 }
 0x7c3   :  { %v18211_v61 = vld [vmem:[#allocation26 + $0x1ae4] sm:$0xf0] }
 0x7c4   :  { %v16856_v3 = vld [vmem:[#allocation26 + $0x1ea8] sm:$0xf]  ;;  %v16345_v53 = vor.u32 %v18211_v61, %v16344_v16  ;;  %10935 = vmatpush.bf16.msra.mxu0 %v15833_v44 }
 0x7c5   :  { %v18339_v23 = vld [vmem:[#allocation26 + $0x1ee4] sm:$0xf0] }
 0x7c6   :  { %v15256_v45 = vld [vmem:[#allocation26 + $0x1228] sm:$0xf]  ;;  %v16857_v31 = vor.u32 %v18339_v23, %v16856_v3  ;;  %10948 = vmatpush.bf16.msra.mxu1 %v16345_v53 }
 0x7c7   :  { %v17939_v47 = vld [vmem:[#allocation26 + $0x1264] sm:$0xf0] }
 0x7c8   :  { %v15768_v50 = vld [vmem:[#allocation26 + $0x1628] sm:$0xf]  ;;  %v15257_v2 = vor.u32 %v17939_v47, %v15256_v45  ;;  %10961 = vmatpush.bf16.msra.mxu2 %v16857_v31 }
 0x7c9   :  { %v18067_v26 = vld [vmem:[#allocation26 + $0x1664] sm:$0xf0] }
 0x7ca   :  { %v16280_v51 = vld [vmem:[#allocation26 + $0x1a28] sm:$0xf]  ;;  %v15769_v41 = vor.u32 %v18067_v26, %v15768_v50  ;;  %10923 = vmatpush.bf16.msrb.mxu3 %v15257_v2  ;;  %v10671_v26 = vpop.f32.mrf.mxu3 }
 0x7cb   :  { %v18195_v54 = vld [vmem:[#allocation26 + $0x1a64] sm:$0xf0]  ;;  %v13722_v26 = vld [vmem:[#allocation26 + $0x668] sm:$0xf0] }
 0x7cc   :  { %v16792_v27 = vld [vmem:[#allocation26 + $0x1e28] sm:$0xf]  ;;  %v16281_v24 = vor.u32 %v18195_v54, %v16280_v51  ;;  %10936 = vmatpush.bf16.msra.mxu0 %v15769_v41  ;;  %v17467_v41 = vld [vmem:[#allocation26 + $0x3ac] sm:$0xf] }
 0x7cd   :  { %v18323_v4 = vld [vmem:[#allocation26 + $0x1e64] sm:$0xf0] }
 0x7ce   :  { %v15192_v56 = vld [vmem:[#allocation26 + $0x11a8] sm:$0xf]  ;;  %v16793_v29 = vor.u32 %v18323_v4, %v16792_v27  ;;  %10949 = vmatpush.bf16.msra.mxu1 %v16281_v24  ;;  %v10710_v4 = vpop.f32.mrf.mxu2  ;;  %v13914_v24 = vld [vmem:[#allocation26 + $0x7e8] sm:$0xf0] }
 0x7cf   :  { %v17923_v33 = vld [vmem:[#allocation26 + $0x11e4] sm:$0xf0]  ;;  %v14746_v4 = vld [vmem:[#allocation26 + $0xe68] sm:$0xf0] }
 0x7d0   :  { %v15704_v38 = vld [vmem:[#allocation26 + $0x15a8] sm:$0xf]  ;;  %v15193_v46 = vor.u32 %v17923_v33, %v15192_v56  ;;  %10962 = vmatpush.bf16.msra.mxu2 %v16793_v29  ;;  %v13402_v56 = vld [vmem:[#allocation26 + $0x3e8] sm:$0xf0] }
 0x7d1   :  { %v18051_v42 = vld [vmem:[#allocation26 + $0x15e4] sm:$0xf0]  ;;  %v17595_v33 = vld [vmem:[#allocation26 + $0x7ac] sm:$0xf] }
 0x7d2   :  { %v16216_v40 = vld [vmem:[#allocation26 + $0x19a8] sm:$0xf]  ;;  %v15705_v60 = vor.u32 %v18051_v42, %v15704_v38  ;;  %10924 = vmatpush.bf16.msrb.mxu3 %v15193_v46  ;;  %v17723_v29 = vld [vmem:[#allocation26 + $0xbac] sm:$0xf] }
 0x7d3   :  { %v18179_v25 = vld [vmem:[#allocation26 + $0x19e4] sm:$0xf0] }
 0x7d4   :  { %v16728_v18 = vld [vmem:[#allocation26 + $0x1da8] sm:$0xf]  ;;  %v16217_v0 = vor.u32 %v18179_v25, %v16216_v40  ;;  %10937 = vmatpush.bf16.msra.mxu0 %v15705_v60  ;;  %v14426_v40 = vld [vmem:[#allocation26 + $0xbe8] sm:$0xf0] }
 0x7d5   :  { %v18307_v11 = vld [vmem:[#allocation26 + $0x1de4] sm:$0xf0]  ;;  %v17851_v25 = vld [vmem:[#allocation26 + $0xfac] sm:$0xf] }
 0x7d6   :  { %v15128_v35 = vld [vmem:[#allocation26 + $0x1128] sm:$0xf]  ;;  %v16729_v34 = vor.u32 %v18307_v11, %v16728_v18  ;;  %10950 = vmatpush.bf16.msra.mxu1 %v16217_v0  ;;  %v14938_v18 = vld [vmem:[#allocation26 + $0xfe8] sm:$0xf0] }
 0x7d7   :  { %v17907_v32 = vld [vmem:[#allocation26 + $0x1164] sm:$0xf0]  ;;  %v17451_v0 = vld [vmem:[#allocation26 + $0x32c] sm:$0xf] }
 0x7d8   :  { %v15640_v39 = vld [vmem:[#allocation26 + $0x1528] sm:$0xf]  ;;  %v15129_v43 = vor.u32 %v17907_v32, %v15128_v35  ;;  %10963 = vmatpush.bf16.msra.mxu2 %v16729_v34  ;;  %v13405_v35 = vor.u32 %v17467_v41, %v13402_v56  ;;  %v13917_v32 = vor.u32 %v17595_v33, %v13914_v24  ;;  %v13338_v34 = vld [vmem:[#allocation26 + $0x368] sm:$0xf0] }
 0x7d9   :  { %v18035_v7 = vld [vmem:[#allocation26 + $0x1564] sm:$0xf0]  ;;  %v17403_v24 = vld [vmem:[#allocation26 + $0x1ac] sm:$0xf] }
 0x7da   :  { %v16152_v48 = vld [vmem:[#allocation26 + $0x1928] sm:$0xf]  ;;  %v15641_v36 = vor.u32 %v18035_v7, %v15640_v39  ;;  %10925 = vmatpush.bf16.msrb.mxu3 %v15129_v43  ;;  %v14429_v39 = vor.u32 %v17723_v29, %v14426_v40  ;;  %v14941_v7 = vor.u32 %v17851_v25, %v14938_v18  ;;  %v13146_v29 = vld [vmem:[#allocation26 + $0x1e8] sm:$0xf0] }
 0x7db   :  { %v18163_v8 = vld [vmem:[#allocation26 + $0x1964] sm:$0xf0]  ;;  %v17531_v40 = vld [vmem:[#allocation26 + $0x5ac] sm:$0xf] }
 0x7dc   :  { %v16664_v63 = vld [vmem:[#allocation26 + $0x1d28] sm:$0xf]  ;;  %v16153_v6 = vor.u32 %v18163_v8, %v16152_v48  ;;  %10938 = vmatpush.bf16.msra.mxu0 %v15641_v36  ;;  %v17579_v48 = vld [vmem:[#allocation26 + $0x72c] sm:$0xf]  ;;  %v13341_v36 = vor.u32 %v17451_v0, %v13338_v34 }
 0x7dd   :  { %v18291_v21 = vld [vmem:[#allocation26 + $0x1d64] sm:$0xf0]  ;;  %v13850_v8 = vld [vmem:[#allocation26 + $0x768] sm:$0xf0] }
 0x7de   :  { %v15064_v37 = vld [vmem:[#allocation26 + $0x10a8] sm:$0xf]  ;;  %v16665_v22 = vor.u32 %v18291_v21, %v16664_v63  ;;  %10951 = vmatpush.bf16.msra.mxu1 %v16153_v6  ;;  %v17707_v63 = vld [vmem:[#allocation26 + $0xb2c] sm:$0xf] }
 0x7df   :  { %v17891_v55 = vld [vmem:[#allocation26 + $0x10e4] sm:$0xf0]  ;;  %v14362_v21 = vld [vmem:[#allocation26 + $0xb68] sm:$0xf0] }
 0x7e0   :  { %v15576_v28 = vld [vmem:[#allocation26 + $0x14a8] sm:$0xf]  ;;  %v15065_v23 = vor.u32 %v17891_v55, %v15064_v37  ;;  %10964 = vmatpush.bf16.msra.mxu2 %v16665_v22  ;;  %v13853_v37 = vor.u32 %v17579_v48, %v13850_v8  ;;  %v17435_v55 = vld [vmem:[#allocation26 + $0x2ac] sm:$0xf]  ;;  %v14365_v22 = vor.u32 %v17707_v63, %v14362_v21  ;;  %v10721_v48 = vpop.f32.mrf.mxu3 }
 0x7e1   :  { %v18019_v49 = vld [vmem:[#allocation26 + $0x14e4] sm:$0xf0]  ;;  %v13274_v6 = vld [vmem:[#allocation26 + $0x2e8] sm:$0xf0] }
 0x7e2   :  { %v16088_v10 = vld [vmem:[#allocation26 + $0x18a8] sm:$0xf]  ;;  %v15577_v19 = vor.u32 %v18019_v49, %v15576_v28  ;;  %10926 = vmatpush.bf16.msrb.mxu3 %v15065_v23  ;;  %v14877_v28 = vor.u32 %v17835_v15, %v14874_v17  ;;  %v17563_v49 = vld [vmem:[#allocation26 + $0x6ac] sm:$0xf]  ;;  %v13277_v23 = vor.u32 %v17435_v55, %v13274_v6  ;;  %v10760_v17 = vpop.f32.mrf.mxu2 }
 0x7e3   :  { %v18147_v30 = vld [vmem:[#allocation26 + $0x18e4] sm:$0xf0]  ;;  %v13658_v25 = vld [vmem:[#allocation26 + $0x5e8] sm:$0xf0] }
 0x7e4   :  { %v16600_v16 = vld [vmem:[#allocation26 + $0x1ca8] sm:$0xf]  ;;  %v16089_v31 = vor.u32 %v18147_v30, %v16088_v10  ;;  %10939 = vmatpush.bf16.msra.mxu0 %v15577_v19  ;;  %v13786_v10 = vld [vmem:[#allocation26 + $0x6e8] sm:$0xf0] }
 0x7e5   :  { %v18275_v61 = vld [vmem:[#allocation26 + $0x1ce4] sm:$0xf0]  ;;  %v17691_v30 = vld [vmem:[#allocation26 + $0xaac] sm:$0xf]  ;;  %v13789_v19 = vor.u32 %v17563_v49, %v13786_v10 }
 0x7e6   :  { %v15000_v3 = vld [vmem:[#allocation26 + $0x1028] sm:$0xf]  ;;  %v16601_v50 = vor.u32 %v18275_v61, %v16600_v16  ;;  %10952 = vmatpush.bf16.msra.mxu1 %v16089_v31  ;;  %v14298_v16 = vld [vmem:[#allocation26 + $0xae8] sm:$0xf0] }
 0x7e7   :  { %v17875_v44 = vld [vmem:[#allocation26 + $0x1064] sm:$0xf0]  ;;  %v17819_v61 = vld [vmem:[#allocation26 + $0xeac] sm:$0xf] }
 0x7e8   :  { %v15512_v45 = vld [vmem:[#allocation26 + $0x1428] sm:$0xf]  ;;  %v15001_v38 = vor.u32 %v17875_v44, %v15000_v3  ;;  %10965 = vmatpush.bf16.msra.mxu2 %v16601_v50  ;;  %v17419_v44 = vld [vmem:[#allocation26 + $0x22c] sm:$0xf] }
 0x7e9   :  { %v18003_v47 = vld [vmem:[#allocation26 + $0x1464] sm:$0xf0]  ;;  %v17547_v50 = vld [vmem:[#allocation26 + $0x62c] sm:$0xf] }
 0x7ea   :  { %v19762_v53 = vld [vmem:[#allocation28 + $0x8] sm:$0xff]  ;;  %v15513_v42 = vor.u32 %v18003_v47, %v15512_v45  ;;  %10927 = vmatpush.bf16.msrb.mxu3 %v15001_v38  ;;  %v14301_v47 = vor.u32 %v17691_v30, %v14298_v16  ;;  %v13725_v33 = vor.u32 %v17547_v50, %v13722_v26 }
 0x7eb   :  { %v16024_v51 = vld [vmem:[#allocation26 + $0x1828] sm:$0xf]  ;;  %v4684_v60 = vperm.slane %v19762_v53, 0  ;;  %v13210_v45 = vld [vmem:[#allocation26 + $0x268] sm:$0xf0] }
 0x7ec   :  { %v18131_v54 = vld [vmem:[#allocation26 + $0x1864] sm:$0xf0]  ;;  %10940 = vmatpush.bf16.msra.mxu0 %v15513_v42  ;;  %v13213_v56 = vor.u32 %v17419_v44, %v13210_v45  ;;  %v17659_v18 = vld [vmem:[#allocation26 + $0x9ac] sm:$0xf] }
 0x7ed   :  { %v16536_v27 = vld [vmem:[#allocation26 + $0x1c28] sm:$0xf]  ;;  %v16025_v11 = vor.u32 %v18131_v54, %v16024_v51  ;;  %v10670_v43 = vadd.f32 %v19758_v14, %v4684_v60  ;;  %10928 = vmatmul.bf16.vlgmr.msrb.gmra.mxu3 %v19560_v12  ;;  %v14810_v14 = vld [vmem:[#allocation26 + $0xee8] sm:$0xf0] }
 0x7ee   :  { %v18259_v2 = vld [vmem:[#allocation26 + $0x1c64] sm:$0xf0]  ;;  %10972 = vmatpush.bf16.msra.mxu3 %v13405_v35  ;;  %v14813_v31 = vor.u32 %v17819_v61, %v14810_v14  ;;  %v17675_v51 = vld [vmem:[#allocation26 + $0xa2c] sm:$0xf] }
 0x7ef   :  { %v16537_v46 = vor.u32 %v18259_v2, %v16536_v27  ;;  %10953 = vmatpush.bf16.msra.mxu1 %v16025_v11  ;;  %10941 = vmatmul.bf16.vlgmr.msra.gmra.mxu0 %v19562_v1  ;;  %v10683_v3 = vadd.f32 %v19754_v59, %v10670_v43  ;;  %v14234_v54 = vld [vmem:[#allocation26 + $0xa68] sm:$0xf0]  ;;  %v10734_v2 = vpop.f32.mrf.mxu0  ;;  %v10747_v59 = vpop.f32.mrf.mxu1 }
 0x7f0   :  { %10985 = vmatpush.bf16.msrb.mxu0 %v13917_v32  ;;  %v17803_v27 = vld [vmem:[#allocation26 + $0xe2c] sm:$0xf]  ;;  %v14237_v38 = vor.u32 %v17675_v51, %v14234_v54  ;;  %v13661_v32 = vor.u32 %v17531_v40, %v13658_v25 }
 0x7f1   :  { %10966 = vmatpush.bf16.msra.mxu2 %v16537_v46  ;;  %v10696_v41 = vadd.f32 %v19756_v5, %v10683_v3  ;;  %v14749_v42 = vor.u32 %v17803_v27, %v14746_v4  ;;  %v14170_v11 = vld [vmem:[#allocation26 + $0x9e8] sm:$0xf0]  ;;  %v13149_v5 = vor.u32 %v17403_v24, %v13146_v29  ;;  %v10762_v29 = vpop.f32.mrf.mxu2 }
 0x7f2   :  { %10954 = vmatmul.bf16.vlgmr.msra.gmra.mxu1 %v19564_v58  ;;  %10973 = vmatpush.bf16.msra.mxu3 %v13341_v36  ;;  %v17787_v46 = vld [vmem:[#allocation26 + $0xdac] sm:$0xf] }
 0x7f3   :  { %10998 = vmatpush.bf16.msrb.mxu1 %v14429_v39  ;;  %v14682_v60 = vld [vmem:[#allocation26 + $0xde8] sm:$0xf0]  ;;  %v10709_v35 = vadd.f32 %v19760_v62, %v10696_v41  ;;  %v14173_v39 = vor.u32 %v17659_v18, %v14170_v11 }
 0x7f4   :  { %10967 = vmatmul.bf16.vlgmr.msra.gmra.mxu2 %v19566_v20  ;;  %10986 = vmatpush.bf16.msrb.mxu0 %v13853_v37  ;;  %v17387_v0 = vld [vmem:[#allocation26 + $0x12c] sm:$0xf] }
 0x7f5   :  { %11011 = vmatpush.bf16.msrb.mxu2 %v14941_v7  ;;  %v13082_v34 = vld [vmem:[#allocation26 + $0x168] sm:$0xf0]  ;;  %v14685_v7 = vor.u32 %v17787_v46, %v14682_v60  ;;  %v10722_v15 = vadd.f32 %v10721_v48, %v10709_v35 }
 0x7f6   :  { %10974 = vmatpush.bf16.msra.mxu3 %v13277_v23  ;;  %v17515_v8 = vld [vmem:[#allocation26 + $0x52c] sm:$0xf] }
 0x7f7   :  { %10999 = vmatpush.bf16.msrb.mxu1 %v14365_v22  ;;  %v13594_v63 = vld [vmem:[#allocation26 + $0x568] sm:$0xf0]  ;;  %v10736_v62 = vpop.f32.mrf.mxu0  ;;  %v10735_v55 = vadd.f32 %v10734_v2, %v10722_v15  ;;  %v10749_v6 = vpop.f32.mrf.mxu1  ;;  %v13085_v22 = vor.u32 %v17387_v0, %v13082_v34 }
 0x7f8   :  { %10987 = vmatpush.bf16.msrb.mxu0 %v13789_v19  ;;  %v17643_v21 = vld [vmem:[#allocation26 + $0x92c] sm:$0xf] }
 0x7f9   :  { %11012 = vmatpush.bf16.msrb.mxu2 %v14877_v28  ;;  %v14106_v43 = vld [vmem:[#allocation26 + $0x968] sm:$0xf0]  ;;  %v13597_v28 = vor.u32 %v17515_v8, %v13594_v63  ;;  %v10748_v23 = vadd.f32 %v10747_v59, %v10735_v55 }
 0x7fa   :  { %10975 = vmatpush.bf16.msra.mxu3 %v13213_v56  ;;  %v17771_v36 = vld [vmem:[#allocation26 + $0xd2c] sm:$0xf]  ;;  %v14109_v30 = vor.u32 %v17643_v21, %v14106_v43  ;;  %v10723_v56 = vpop.f32.mrf.mxu3 }
 0x7fb   :  { %11000 = vmatpush.bf16.msrb.mxu1 %v14301_v47  ;;  %v14618_v37 = vld [vmem:[#allocation26 + $0xd68] sm:$0xf0]  ;;  %v10761_v50 = vadd.f32 %v10760_v17, %v10748_v23 }
 0x7fc   :  { %10988 = vmatpush.bf16.msrb.mxu0 %v13725_v33  ;;  %v17371_v49 = vld [vmem:[#allocation26 + $0xac] sm:$0xf]  ;;  %v14621_v16 = vor.u32 %v17771_v36, %v14618_v37 }
 0x7fd   :  { %11013 = vmatpush.bf16.msrb.mxu2 %v14813_v31  ;;  %v13018_v10 = vld [vmem:[#allocation26 + $0xe8] sm:$0xf0]  ;;  %11500 = vst [vmem:[#allocation29 + $0x40] sm:$0xff] %v10761_v50 }
 0x7fe   :  { %10976 = vmatpush.bf16.msra.mxu3 %v13149_v5  ;;  %v17499_v61 = vld [vmem:[#allocation26 + $0x4ac] sm:$0xf]  ;;  %v13021_v26 = vor.u32 %v17371_v49, %v13018_v10 }
 0x7ff   :  { %11001 = vmatpush.bf16.msrb.mxu1 %v14237_v38  ;;  %v13530_v14 = vld [vmem:[#allocation26 + $0x4e8] sm:$0xf0] }
 0x800   :  { %10989 = vmatpush.bf16.msrb.mxu0 %v13661_v32  ;;  %v17627_v3 = vld [vmem:[#allocation26 + $0x8ac] sm:$0xf]  ;;  %v13533_v51 = vor.u32 %v17499_v61, %v13530_v14 }
 0x801   :  { %11014 = vmatpush.bf16.msrb.mxu2 %v14749_v42  ;;  %v14042_v19 = vld [vmem:[#allocation26 + $0x8e8] sm:$0xf0] }
 0x802   :  { %v17755_v44 = vld [vmem:[#allocation26 + $0xcac] sm:$0xf]  ;;  %10977 = vmatpush.bf16.msra.mxu3 %v13085_v22  ;;  %v14045_v2 = vor.u32 %v17627_v3, %v14042_v19 }
 0x803   :  { %11002 = vmatpush.bf16.msrb.mxu1 %v14173_v39  ;;  %v14554_v45 = vld [vmem:[#allocation26 + $0xce8] sm:$0xf0] }
 0x804   :  { %v17355_v47 = vld [vmem:[#allocation26 + $0x2c] sm:$0xf]  ;;  %10990 = vmatpush.bf16.msrb.mxu0 %v13597_v28  ;;  %v14557_v41 = vor.u32 %v17755_v44, %v14554_v45 }
 0x805   :  { %11015 = vmatpush.bf16.msrb.mxu2 %v14685_v7  ;;  %v12954_v31 = vld [vmem:[#allocation26 + $0x68] sm:$0xf0] }
 0x806   :  { %v17483_v54 = vld [vmem:[#allocation26 + $0x42c] sm:$0xf]  ;;  %10978 = vmatpush.bf16.msra.mxu3 %v13021_v26  ;;  %v12957_v11 = vor.u32 %v17355_v47, %v12954_v31 }
 0x807   :  { %v13466_v27 = vld [vmem:[#allocation26 + $0x468] sm:$0xf0]  ;;  %11003 = vmatpush.bf16.msrb.mxu1 %v14109_v30 }
 0x808   :  { %v17611_v4 = vld [vmem:[#allocation26 + $0x82c] sm:$0xf]  ;;  %10991 = vmatpush.bf16.msrb.mxu0 %v13533_v51  ;;  %v13469_v46 = vor.u32 %v17483_v54, %v13466_v27 }
 0x809   :  { %11016 = vmatpush.bf16.msrb.mxu2 %v14621_v16  ;;  %v13978_v33 = vld [vmem:[#allocation26 + $0x868] sm:$0xf0] }
 0x80a   :  { %v17739_v59 = vld [vmem:[#allocation26 + $0xc2c] sm:$0xf]  ;;  %v13981_v32 = vor.u32 %v17611_v4, %v13978_v33  ;;  %10979 = vmatpush.bf16.msra.mxu3 %v12957_v11 }
 0x80b   :  { %v14490_v24 = vld [vmem:[#allocation26 + $0xc68] sm:$0xf0]  ;;  %11004 = vmatpush.bf16.msrb.mxu1 %v14045_v2  ;;  %v19777_v2 = vpop.f32.mrf.mxu0 }
 0x80c   :  { %v17979_v38 = vld [vmem:[#allocation26 + $0x13ac] sm:$0xf]  ;;  %v14493_v0 = vor.u32 %v17739_v59, %v14490_v24  ;;  %10992 = vmatpush.bf16.msrb.mxu0 %v13469_v46 }
 0x80d   :  { %v15450_v42 = vld [vmem:[#allocation26 + $0x13e8] sm:$0xf0]  ;;  %11017 = vmatpush.bf16.msrb.mxu2 %v14557_v41  ;;  %10980 = vmatmul.bf16.vlgmr.msra.gmra.mxu3 %v19534_v57  ;;  %v19779_v41 = vpop.f32.mrf.mxu1 }
 0x80e   :  { %v18107_v40 = vld [vmem:[#allocation26 + $0x17ac] sm:$0xf]  ;;  %v15453_v34 = vor.u32 %v17979_v38, %v15450_v42 }
 0x80f   :  { %v15962_v25 = vld [vmem:[#allocation26 + $0x17e8] sm:$0xf0]  ;;  %11005 = vmatpush.bf16.msrb.mxu1 %v13981_v32  ;;  %10993 = vmatmul.bf16.vlgmr.msrb.gmra.mxu0 %v19536_v52 }
 0x810   :  { %v18235_v18 = vld [vmem:[#allocation26 + $0x1bac] sm:$0xf]  ;;  %v15965_v39 = vor.u32 %v18107_v40, %v15962_v25  ;;  %11024 = vmatpush.bf16.msrb.mxu3 %v15453_v34 }
 0x811   :  { %v16474_v60 = vld [vmem:[#allocation26 + $0x1be8] sm:$0xf0]  ;;  %11018 = vmatpush.bf16.msrb.mxu2 %v14493_v0 }
 0x812   :  { %v18363_v35 = vld [vmem:[#allocation26 + $0x1fac] sm:$0xf]  ;;  %v16477_v8 = vor.u32 %v18235_v18, %v16474_v60  ;;  %11037 = vmatpush.bf16.msra.mxu0 %v15965_v39  ;;  %11006 = vmatmul.bf16.vlgmr.msrb.gmra.mxu1 %v19538_v13  ;;  %v19781_v39 = vpop.f32.mrf.mxu3 }
 0x813   :  { %v16986_v5 = vld [vmem:[#allocation26 + $0x1fe8] sm:$0xf0] }
 0x814   :  { %v17963_v7 = vld [vmem:[#allocation26 + $0x132c] sm:$0xf]  ;;  %v16989_v63 = vor.u32 %v18363_v35, %v16986_v5  ;;  %11050 = vmatpush.bf16.msra.mxu1 %v16477_v8  ;;  %11019 = vmatmul.bf16.vlgmr.msrb.gmra.mxu2 %v19540_v9 }
 0x815   :  { %v15386_v48 = vld [vmem:[#allocation26 + $0x1368] sm:$0xf0] }
 0x816   :  { %v18091_v21 = vld [vmem:[#allocation26 + $0x172c] sm:$0xf]  ;;  %v15389_v62 = vor.u32 %v17963_v7, %v15386_v48  ;;  %11063 = vmatpush.bf16.msra.mxu2 %v16989_v63  ;;  %v19783_v63 = vpop.f32.mrf.mxu2 }
 0x817   :  { %v15898_v15 = vld [vmem:[#allocation26 + $0x1768] sm:$0xf0] }
 0x818   :  { %v18219_v17 = vld [vmem:[#allocation26 + $0x1b2c] sm:$0xf]  ;;  %v15901_v55 = vor.u32 %v18091_v21, %v15898_v15  ;;  %11025 = vmatpush.bf16.msrb.mxu3 %v15389_v62 }
 0x819   :  { %v16410_v43 = vld [vmem:[#allocation26 + $0x1b68] sm:$0xf0] }
 0x81a   :  { %v18347_v36 = vld [vmem:[#allocation26 + $0x1f2c] sm:$0xf]  ;;  %v16413_v28 = vor.u32 %v18219_v17, %v16410_v43  ;;  %11038 = vmatpush.bf16.msra.mxu0 %v15901_v55  ;;  %v10788_v43 = vpop.f32.mrf.mxu0 }
 0x81b   :  { %v16922_v37 = vld [vmem:[#allocation26 + $0x1f68] sm:$0xf0]  ;;  %v14880_v43 = vld [vmem:[#allocation26 + $0xf30] sm:$0xf] }
 0x81c   :  { %v17947_v6 = vld [vmem:[#allocation26 + $0x12ac] sm:$0xf]  ;;  %v16925_v49 = vor.u32 %v18347_v36, %v16922_v37  ;;  %11051 = vmatpush.bf16.msra.mxu1 %v16413_v28  ;;  %v10801_v36 = vpop.f32.mrf.mxu1 }
 0x81d   :  { %v15322_v22 = vld [vmem:[#allocation26 + $0x12e8] sm:$0xf0]  ;;  %v17844_v36 = vld [vmem:[#allocation26 + $0xf6c] sm:$0xf0] }
 0x81e   :  { %v18075_v10 = vld [vmem:[#allocation26 + $0x16ac] sm:$0xf]  ;;  %v15325_v23 = vor.u32 %v17947_v6, %v15322_v22  ;;  %11064 = vmatpush.bf16.msra.mxu2 %v16925_v49 }
 0x81f   :  { %v15834_v30 = vld [vmem:[#allocation26 + $0x16e8] sm:$0xf0] }
 0x820   :  { %v18203_v16 = vld [vmem:[#allocation26 + $0x1aac] sm:$0xf]  ;;  %v15837_v19 = vor.u32 %v18075_v10, %v15834_v30  ;;  %11026 = vmatpush.bf16.msrb.mxu3 %v15325_v23 }
 0x821   :  { %v16346_v61 = vld [vmem:[#allocation26 + $0x1ae8] sm:$0xf0] }
 0x822   :  { %v18331_v14 = vld [vmem:[#allocation26 + $0x1eac] sm:$0xf]  ;;  %v16349_v47 = vor.u32 %v18203_v16, %v16346_v61  ;;  %11039 = vmatpush.bf16.msra.mxu0 %v15837_v19 }
 0x823   :  { %v16858_v3 = vld [vmem:[#allocation26 + $0x1ee8] sm:$0xf0] }
 0x824   :  { %v17931_v44 = vld [vmem:[#allocation26 + $0x122c] sm:$0xf]  ;;  %v16861_v31 = vor.u32 %v18331_v14, %v16858_v3  ;;  %11052 = vmatpush.bf16.msra.mxu1 %v16349_v47 }
 0x825   :  { %v15258_v45 = vld [vmem:[#allocation26 + $0x1268] sm:$0xf0] }
 0x826   :  { %v18059_v50 = vld [vmem:[#allocation26 + $0x162c] sm:$0xf]  ;;  %v15261_v56 = vor.u32 %v17931_v44, %v15258_v45  ;;  %11065 = vmatpush.bf16.msra.mxu2 %v16861_v31 }
 0x827   :  { %v15770_v26 = vld [vmem:[#allocation26 + $0x1668] sm:$0xf0] }
 0x828   :  { %v18187_v51 = vld [vmem:[#allocation26 + $0x1a2c] sm:$0xf]  ;;  %v15773_v33 = vor.u32 %v18059_v50, %v15770_v26  ;;  %11027 = vmatpush.bf16.msrb.mxu3 %v15261_v56  ;;  %v10775_v26 = vpop.f32.mrf.mxu3 }
 0x829   :  { %v16282_v54 = vld [vmem:[#allocation26 + $0x1a68] sm:$0xf0]  ;;  %v14240_v26 = vld [vmem:[#allocation26 + $0xa30] sm:$0xf] }
 0x82a   :  { %v18315_v27 = vld [vmem:[#allocation26 + $0x1e2c] sm:$0xf]  ;;  %v16285_v29 = vor.u32 %v18187_v51, %v16282_v54  ;;  %11040 = vmatpush.bf16.msra.mxu0 %v15773_v33  ;;  %v13408_v33 = vld [vmem:[#allocation26 + $0x3b0] sm:$0xf] }
 0x82b   :  { %v16794_v4 = vld [vmem:[#allocation26 + $0x1e68] sm:$0xf0] }
 0x82c   :  { %v17915_v59 = vld [vmem:[#allocation26 + $0x11ac] sm:$0xf]  ;;  %v16797_v38 = vor.u32 %v18315_v27, %v16794_v4  ;;  %11053 = vmatpush.bf16.msra.mxu1 %v16285_v29  ;;  %v10814_v4 = vpop.f32.mrf.mxu2  ;;  %v17604_v29 = vld [vmem:[#allocation26 + $0x7ec] sm:$0xf0] }
 0x82d   :  { %v15194_v24 = vld [vmem:[#allocation26 + $0x11e8] sm:$0xf0]  ;;  %v10838_v4 = vpop.f32.mrf.mxu0 }
 0x82e   :  { %v18043_v42 = vld [vmem:[#allocation26 + $0x15ac] sm:$0xf]  ;;  %v15197_v60 = vor.u32 %v17915_v59, %v15194_v24  ;;  %11066 = vmatpush.bf16.msra.mxu2 %v16797_v38  ;;  %v17476_v59 = vld [vmem:[#allocation26 + $0x3ec] sm:$0xf0] }
 0x82f   :  { %v15706_v40 = vld [vmem:[#allocation26 + $0x15e8] sm:$0xf0]  ;;  %v13920_v24 = vld [vmem:[#allocation26 + $0x7b0] sm:$0xf] }
 0x830   :  { %v18171_v25 = vld [vmem:[#allocation26 + $0x19ac] sm:$0xf]  ;;  %v15709_v35 = vor.u32 %v18043_v42, %v15706_v40  ;;  %11028 = vmatpush.bf16.msrb.mxu3 %v15197_v60  ;;  %v14432_v38 = vld [vmem:[#allocation26 + $0xbb0] sm:$0xf] }
 0x831   :  { %v16218_v18 = vld [vmem:[#allocation26 + $0x19e8] sm:$0xf0] }
 0x832   :  { %v18299_v11 = vld [vmem:[#allocation26 + $0x1dac] sm:$0xf]  ;;  %v16221_v0 = vor.u32 %v18171_v25, %v16218_v18  ;;  %11041 = vmatpush.bf16.msra.mxu0 %v15709_v35  ;;  %v17732_v25 = vld [vmem:[#allocation26 + $0xbec] sm:$0xf0]  ;;  %v4685_v35 = vperm.slane %v19762_v53, 1 }
 0x833   :  { %v16730_v46 = vld [vmem:[#allocation26 + $0x1de8] sm:$0xf0]  ;;  %v14944_v18 = vld [vmem:[#allocation26 + $0xfb0] sm:$0xf] }
 0x834   :  { %v17899_v5 = vld [vmem:[#allocation26 + $0x112c] sm:$0xf]  ;;  %v16733_v34 = vor.u32 %v18299_v11, %v16730_v46  ;;  %11054 = vmatpush.bf16.msra.mxu1 %v16221_v0  ;;  %v17860_v11 = vld [vmem:[#allocation26 + $0xfec] sm:$0xf0] }
 0x835   :  { %v15130_v32 = vld [vmem:[#allocation26 + $0x1168] sm:$0xf0]  ;;  %v13344_v0 = vld [vmem:[#allocation26 + $0x330] sm:$0xf] }
 0x836   :  { %v18027_v7 = vld [vmem:[#allocation26 + $0x152c] sm:$0xf]  ;;  %v15133_v37 = vor.u32 %v17899_v5, %v15130_v32  ;;  %11067 = vmatpush.bf16.msra.mxu2 %v16733_v34  ;;  %v13409_v5 = vor.u32 %v17476_v59, %v13408_v33  ;;  %v13921_v32 = vor.u32 %v17604_v29, %v13920_v24  ;;  %v17460_v34 = vld [vmem:[#allocation26 + $0x36c] sm:$0xf0] }
 0x837   :  { %v15642_v48 = vld [vmem:[#allocation26 + $0x1568] sm:$0xf0]  ;;  %v13345_v53 = vor.u32 %v17460_v34, %v13344_v0  ;;  %v13152_v24 = vld [vmem:[#allocation26 + $0x1b0] sm:$0xf] }
 0x838   :  { %v18155_v8 = vld [vmem:[#allocation26 + $0x192c] sm:$0xf]  ;;  %v15645_v62 = vor.u32 %v18027_v7, %v15642_v48  ;;  %11029 = vmatpush.bf16.msrb.mxu3 %v15133_v37  ;;  %v14433_v7 = vor.u32 %v17732_v25, %v14432_v38  ;;  %v14945_v48 = vor.u32 %v17860_v11, %v14944_v18  ;;  %v10774_v37 = vadd.f32 %v19781_v39, %v4685_v35  ;;  %v17828_v39 = vld [vmem:[#allocation26 + $0xeec] sm:$0xf0] }
 0x839   :  { %v16154_v21 = vld [vmem:[#allocation26 + $0x1968] sm:$0xf0]  ;;  %v17412_v29 = vld [vmem:[#allocation26 + $0x1ec] sm:$0xf0] }
 0x83a   :  { %v18283_v15 = vld [vmem:[#allocation26 + $0x1d2c] sm:$0xf]  ;;  %v16157_v22 = vor.u32 %v18155_v8, %v16154_v21  ;;  %11042 = vmatpush.bf16.msra.mxu0 %v15645_v62  ;;  %v13856_v8 = vld [vmem:[#allocation26 + $0x730] sm:$0xf] }
 0x83b   :  { %v16666_v17 = vld [vmem:[#allocation26 + $0x1d68] sm:$0xf0]  ;;  %v17588_v21 = vld [vmem:[#allocation26 + $0x76c] sm:$0xf0] }
 0x83c   :  { %v17883_v55 = vld [vmem:[#allocation26 + $0x10ac] sm:$0xf]  ;;  %v16669_v28 = vor.u32 %v18283_v15, %v16666_v17  ;;  %11055 = vmatpush.bf16.msra.mxu1 %v16157_v22  ;;  %v14368_v15 = vld [vmem:[#allocation26 + $0xb30] sm:$0xf]  ;;  %v13857_v62 = vor.u32 %v17588_v21, %v13856_v8 }
 0x83d   :  { %v15066_v6 = vld [vmem:[#allocation26 + $0x10e8] sm:$0xf0]  ;;  %v17716_v17 = vld [vmem:[#allocation26 + $0xb6c] sm:$0xf0] }
 0x83e   :  { %v18011_v49 = vld [vmem:[#allocation26 + $0x14ac] sm:$0xf]  ;;  %v15069_v23 = vor.u32 %v17883_v55, %v15066_v6  ;;  %11068 = vmatpush.bf16.msra.mxu2 %v16669_v28  ;;  %v13280_v55 = vld [vmem:[#allocation26 + $0x2b0] sm:$0xf]  ;;  %v14369_v22 = vor.u32 %v17716_v17, %v14368_v15  ;;  %v14881_v28 = vor.u32 %v17844_v36, %v14880_v43  ;;  %v10864_v43 = vpop.f32.mrf.mxu2 }
 0x83f   :  { %v15578_v10 = vld [vmem:[#allocation26 + $0x14e8] sm:$0xf0]  ;;  %v17444_v6 = vld [vmem:[#allocation26 + $0x2ec] sm:$0xf0] }
 0x840   :  { %v18139_v30 = vld [vmem:[#allocation26 + $0x18ac] sm:$0xf]  ;;  %v15581_v19 = vor.u32 %v18011_v49, %v15578_v10  ;;  %11030 = vmatpush.bf16.msrb.mxu3 %v15069_v23  ;;  %v13792_v49 = vld [vmem:[#allocation26 + $0x6b0] sm:$0xf] }
 0x841   :  { %v16090_v16 = vld [vmem:[#allocation26 + $0x18e8] sm:$0xf0]  ;;  %v17572_v10 = vld [vmem:[#allocation26 + $0x6ec] sm:$0xf0] }
 0x842   :  { %v18267_v61 = vld [vmem:[#allocation26 + $0x1cac] sm:$0xf]  ;;  %v16093_v31 = vor.u32 %v18139_v30, %v16090_v16  ;;  %11043 = vmatpush.bf16.msra.mxu0 %v15581_v19  ;;  %v14304_v30 = vld [vmem:[#allocation26 + $0xab0] sm:$0xf]  ;;  %v13793_v23 = vor.u32 %v17572_v10, %v13792_v49 }
 0x843   :  { %v16602_v14 = vld [vmem:[#allocation26 + $0x1ce8] sm:$0xf0]  ;;  %v17700_v16 = vld [vmem:[#allocation26 + $0xaec] sm:$0xf0] }
 0x844   :  { %v17867_v3 = vld [vmem:[#allocation26 + $0x102c] sm:$0xf]  ;;  %v16605_v50 = vor.u32 %v18267_v61, %v16602_v14  ;;  %11056 = vmatpush.bf16.msra.mxu1 %v16093_v31  ;;  %v14816_v61 = vld [vmem:[#allocation26 + $0xeb0] sm:$0xf]  ;;  %v10787_v14 = vadd.f32 %v19777_v2, %v10774_v37  ;;  %v10851_v2 = vpop.f32.mrf.mxu1 }
 0x845   :  { %v15002_v44 = vld [vmem:[#allocation26 + $0x1068] sm:$0xf0]  ;;  %v13216_v19 = vld [vmem:[#allocation26 + $0x230] sm:$0xf] }
 0x846   :  { %v17995_v45 = vld [vmem:[#allocation26 + $0x142c] sm:$0xf]  ;;  %v15005_v42 = vor.u32 %v17867_v3, %v15002_v44  ;;  %11069 = vmatpush.bf16.msra.mxu2 %v16605_v50  ;;  %v13281_v3 = vor.u32 %v17444_v6, %v13280_v55  ;;  %v17428_v44 = vld [vmem:[#allocation26 + $0x26c] sm:$0xf0] }
 0x847   :  { %v15514_v47 = vld [vmem:[#allocation26 + $0x1468] sm:$0xf0]  ;;  %v13728_v31 = vld [vmem:[#allocation26 + $0x630] sm:$0xf]  ;;  %v13217_v33 = vor.u32 %v17428_v44, %v13216_v19 }
 0x848   :  { %v18123_v51 = vld [vmem:[#allocation26 + $0x182c] sm:$0xf]  ;;  %v15517_v40 = vor.u32 %v17995_v45, %v15514_v47  ;;  %11031 = vmatpush.bf16.msrb.mxu3 %v15005_v42  ;;  %v14305_v45 = vor.u32 %v17700_v16, %v14304_v30  ;;  %v14817_v47 = vor.u32 %v17828_v39, %v14816_v61  ;;  %v17556_v50 = vld [vmem:[#allocation26 + $0x66c] sm:$0xf0] }
 0x849   :  { %v16026_v54 = vld [vmem:[#allocation26 + $0x1868] sm:$0xf0]  ;;  %v13729_v59 = vor.u32 %v17556_v50, %v13728_v31  ;;  %v17540_v25 = vld [vmem:[#allocation26 + $0x5ec] sm:$0xf0] }
 0x84a   :  { %v18251_v27 = vld [vmem:[#allocation26 + $0x1c2c] sm:$0xf]  ;;  %v16029_v46 = vor.u32 %v18123_v51, %v16026_v54  ;;  %11044 = vmatpush.bf16.msra.mxu0 %v15517_v40  ;;  %v17684_v51 = vld [vmem:[#allocation26 + $0xa6c] sm:$0xf0] }
 0x84b   :  { %v16538_v56 = vld [vmem:[#allocation26 + $0x1c68] sm:$0xf0]  ;;  %11032 = vmatmul.bf16.vlgmr.msrb.gmra.mxu3 %v19560_v12  ;;  %v14752_v54 = vld [vmem:[#allocation26 + $0xe30] sm:$0xf]  ;;  %v14241_v38 = vor.u32 %v17684_v51, %v14240_v26 }
 0x84c   :  { %v16541_v60 = vor.u32 %v18251_v27, %v16538_v56  ;;  %11057 = vmatpush.bf16.msra.mxu1 %v16029_v46  ;;  %11076 = vmatpush.bf16.msra.mxu3 %v13409_v5  ;;  %v17812_v27 = vld [vmem:[#allocation26 + $0xe6c] sm:$0xf0]  ;;  %v10800_v56 = vadd.f32 %v19779_v41, %v10787_v14  ;;  %v13153_v41 = vor.u32 %v17412_v29, %v13152_v24  ;;  %v10853_v55 = vpop.f32.mrf.mxu1  ;;  %v10866_v24 = vpop.f32.mrf.mxu2 }
 0x84d   :  { %11045 = vmatmul.bf16.vlgmr.msra.gmra.mxu0 %v19562_v1  ;;  %v14753_v42 = vor.u32 %v17812_v27, %v14752_v54  ;;  %v13664_v40 = vld [vmem:[#allocation26 + $0x5b0] sm:$0xf] }
 0x84e   :  { %11070 = vmatpush.bf16.msra.mxu2 %v16541_v60  ;;  %11089 = vmatpush.bf16.msrb.mxu0 %v13921_v32  ;;  %v14176_v18 = vld [vmem:[#allocation26 + $0x9b0] sm:$0xf]  ;;  %v10813_v35 = vadd.f32 %v19783_v63, %v10800_v56  ;;  %v13665_v5 = vor.u32 %v17540_v25, %v13664_v40  ;;  %v10840_v63 = vpop.f32.mrf.mxu0 }
 0x84f   :  { %11058 = vmatmul.bf16.vlgmr.msra.gmra.mxu1 %v19564_v58  ;;  %v17668_v11 = vld [vmem:[#allocation26 + $0x9ec] sm:$0xf0] }
 0x850   :  { %11102 = vmatpush.bf16.msrb.mxu1 %v14433_v7  ;;  %11077 = vmatpush.bf16.msra.mxu3 %v13345_v53  ;;  %v14688_v46 = vld [vmem:[#allocation26 + $0xdb0] sm:$0xf]  ;;  %v14177_v34 = vor.u32 %v17668_v11, %v14176_v18 }
 0x851   :  { %11071 = vmatmul.bf16.vlgmr.msra.gmra.mxu2 %v19566_v20  ;;  %v17796_v60 = vld [vmem:[#allocation26 + $0xdec] sm:$0xf0] }
 0x852   :  { %11115 = vmatpush.bf16.msrb.mxu2 %v14945_v48  ;;  %11090 = vmatpush.bf16.msrb.mxu0 %v13857_v62  ;;  %v13088_v32 = vld [vmem:[#allocation26 + $0x130] sm:$0xf]  ;;  %v14689_v7 = vor.u32 %v17796_v60, %v14688_v46  ;;  %v10825_v48 = vpop.f32.mrf.mxu3 }
 0x853   :  { %v17396_v0 = vld [vmem:[#allocation26 + $0x16c] sm:$0xf0]  ;;  %v10826_v17 = vadd.f32 %v10825_v48, %v10813_v35 }
 0x854   :  { %11103 = vmatpush.bf16.msrb.mxu1 %v14369_v22  ;;  %11078 = vmatpush.bf16.msra.mxu3 %v13281_v3  ;;  %v13600_v8 = vld [vmem:[#allocation26 + $0x530] sm:$0xf]  ;;  %v13089_v6 = vor.u32 %v17396_v0, %v13088_v32 }
 0x855   :  { %v17524_v21 = vld [vmem:[#allocation26 + $0x56c] sm:$0xf0]  ;;  %v10839_v62 = vadd.f32 %v10838_v4, %v10826_v17 }
 0x856   :  { %11116 = vmatpush.bf16.msrb.mxu2 %v14881_v28  ;;  %11091 = vmatpush.bf16.msrb.mxu0 %v13793_v23  ;;  %v14112_v15 = vld [vmem:[#allocation26 + $0x930] sm:$0xf]  ;;  %v13601_v22 = vor.u32 %v17524_v21, %v13600_v8 }
 0x857   :  { %v17652_v36 = vld [vmem:[#allocation26 + $0x96c] sm:$0xf0]  ;;  %v10852_v14 = vadd.f32 %v10851_v2, %v10839_v62 }
 0x858   :  { %11104 = vmatpush.bf16.msrb.mxu1 %v14305_v45  ;;  %11079 = vmatpush.bf16.msra.mxu3 %v13217_v33  ;;  %v14624_v37 = vld [vmem:[#allocation26 + $0xd30] sm:$0xf]  ;;  %v14113_v10 = vor.u32 %v17652_v36, %v14112_v15 }
 0x859   :  { %v17780_v53 = vld [vmem:[#allocation26 + $0xd6c] sm:$0xf0] }
 0x85a   :  { %11117 = vmatpush.bf16.msrb.mxu2 %v14817_v47  ;;  %11092 = vmatpush.bf16.msrb.mxu0 %v13729_v59  ;;  %v13024_v28 = vld [vmem:[#allocation26 + $0xb0] sm:$0xf]  ;;  %v14625_v30 = vor.u32 %v17780_v53, %v14624_v37  ;;  %v10865_v47 = vadd.f32 %v10864_v43, %v10852_v14  ;;  %v10827_v56 = vpop.f32.mrf.mxu3 }
 0x85b   :  { %v17380_v49 = vld [vmem:[#allocation26 + $0xec] sm:$0xf0] }
 0x85c   :  { %11105 = vmatpush.bf16.msrb.mxu1 %v14241_v38  ;;  %11080 = vmatpush.bf16.msra.mxu3 %v13153_v41  ;;  %v13536_v16 = vld [vmem:[#allocation26 + $0x4b0] sm:$0xf]  ;;  %v13025_v31 = vor.u32 %v17380_v49, %v13024_v28  ;;  %11501 = vst [vmem:[#allocation29 + $0x48] sm:$0xff] %v10865_v47 }
 0x85d   :  { %v17508_v61 = vld [vmem:[#allocation26 + $0x4ec] sm:$0xf0] }
 0x85e   :  { %11118 = vmatpush.bf16.msrb.mxu2 %v14753_v42  ;;  %11093 = vmatpush.bf16.msrb.mxu0 %v13665_v5  ;;  %v14048_v39 = vld [vmem:[#allocation26 + $0x8b0] sm:$0xf]  ;;  %v13537_v50 = vor.u32 %v17508_v61, %v13536_v16 }
 0x85f   :  { %v17636_v3 = vld [vmem:[#allocation26 + $0x8ec] sm:$0xf0] }
 0x860   :  { %11106 = vmatpush.bf16.msrb.mxu1 %v14177_v34  ;;  %v14560_v23 = vld [vmem:[#allocation26 + $0xcb0] sm:$0xf]  ;;  %11081 = vmatpush.bf16.msra.mxu3 %v13089_v6  ;;  %v14049_v27 = vor.u32 %v17636_v3, %v14048_v39 }
 0x861   :  { %v17764_v19 = vld [vmem:[#allocation26 + $0xcec] sm:$0xf0] }
 0x862   :  { %11119 = vmatpush.bf16.msrb.mxu2 %v14689_v7  ;;  %v12960_v44 = vld [vmem:[#allocation26 + $0x30] sm:$0xf]  ;;  %11094 = vmatpush.bf16.msrb.mxu0 %v13601_v22  ;;  %v14561_v4 = vor.u32 %v17764_v19, %v14560_v23 }
 0x863   :  { %v17364_v45 = vld [vmem:[#allocation26 + $0x6c] sm:$0xf0] }
 0x864   :  { %v13472_v26 = vld [vmem:[#allocation26 + $0x430] sm:$0xf]  ;;  %11107 = vmatpush.bf16.msrb.mxu1 %v14113_v10  ;;  %11082 = vmatpush.bf16.msra.mxu3 %v13025_v31  ;;  %v12961_v18 = vor.u32 %v17364_v45, %v12960_v44 }
 0x865   :  { %v17492_v51 = vld [vmem:[#allocation26 + $0x46c] sm:$0xf0] }
 0x866   :  { %v13984_v54 = vld [vmem:[#allocation26 + $0x830] sm:$0xf]  ;;  %11120 = vmatpush.bf16.msrb.mxu2 %v14625_v30  ;;  %11095 = vmatpush.bf16.msrb.mxu0 %v13537_v50  ;;  %v13473_v11 = vor.u32 %v17492_v51, %v13472_v26 }
 0x867   :  { %v17620_v33 = vld [vmem:[#allocation26 + $0x86c] sm:$0xf0] }
 0x868   :  { %v14496_v2 = vld [vmem:[#allocation26 + $0xc30] sm:$0xf]  ;;  %11108 = vmatpush.bf16.msrb.mxu1 %v14049_v27  ;;  %v13985_v41 = vor.u32 %v17620_v33, %v13984_v54  ;;  %11083 = vmatpush.bf16.msra.mxu3 %v12961_v18  ;;  %v19798_v54 = vpop.f32.mrf.mxu0  ;;  %v19800_v27 = vpop.f32.mrf.mxu1 }
 0x869   :  { %v17748_v59 = vld [vmem:[#allocation26 + $0xc6c] sm:$0xf0] }
 0x86a   :  { %v15456_v29 = vld [vmem:[#allocation26 + $0x13b0] sm:$0xf]  ;;  %11121 = vmatpush.bf16.msrb.mxu2 %v14561_v4  ;;  %v14497_v5 = vor.u32 %v17748_v59, %v14496_v2  ;;  %11096 = vmatpush.bf16.msrb.mxu0 %v13473_v11 }
 0x86b   :  { %v17988_v38 = vld [vmem:[#allocation26 + $0x13ec] sm:$0xf0]  ;;  %11084 = vmatmul.bf16.vlgmr.msra.gmra.mxu3 %v19534_v57 }
 0x86c   :  { %v15968_v42 = vld [vmem:[#allocation26 + $0x17b0] sm:$0xf]  ;;  %v15457_v32 = vor.u32 %v17988_v38, %v15456_v29  ;;  %11109 = vmatpush.bf16.msrb.mxu1 %v13985_v41 }
 0x86d   :  { %v18116_v40 = vld [vmem:[#allocation26 + $0x17ec] sm:$0xf0]  ;;  %11097 = vmatmul.bf16.vlgmr.msrb.gmra.mxu0 %v19536_v52 }
 0x86e   :  { %v16480_v25 = vld [vmem:[#allocation26 + $0x1bb0] sm:$0xf]  ;;  %v15969_v0 = vor.u32 %v18116_v40, %v15968_v42  ;;  %11122 = vmatpush.bf16.msrb.mxu2 %v14497_v5  ;;  %11128 = vmatpush.bf16.msrb.mxu3 %v15457_v32  ;;  %v19802_v32 = vpop.f32.mrf.mxu3 }
 0x86f   :  { %v18244_v46 = vld [vmem:[#allocation26 + $0x1bec] sm:$0xf0]  ;;  %11110 = vmatmul.bf16.vlgmr.msrb.gmra.mxu1 %v19538_v13 }
 0x870   :  { %v16992_v60 = vld [vmem:[#allocation26 + $0x1fb0] sm:$0xf]  ;;  %v16481_v48 = vor.u32 %v18244_v46, %v16480_v25  ;;  %11141 = vmatpush.bf16.msra.mxu0 %v15969_v0 }
 0x871   :  { %v18372_v35 = vld [vmem:[#allocation26 + $0x1fec] sm:$0xf0]  ;;  %11123 = vmatmul.bf16.vlgmr.msrb.gmra.mxu2 %v19540_v9 }
 0x872   :  { %v15392_v34 = vld [vmem:[#allocation26 + $0x1330] sm:$0xf]  ;;  %v16993_v8 = vor.u32 %v18372_v35, %v16992_v60  ;;  %11154 = vmatpush.bf16.msra.mxu1 %v16481_v48  ;;  %v19804_v48 = vpop.f32.mrf.mxu2 }
 0x873   :  { %v17972_v7 = vld [vmem:[#allocation26 + $0x136c] sm:$0xf0] }
 0x874   :  { %v15904_v21 = vld [vmem:[#allocation26 + $0x1730] sm:$0xf]  ;;  %v15393_v53 = vor.u32 %v17972_v7, %v15392_v34  ;;  %11167 = vmatpush.bf16.msra.mxu2 %v16993_v8 }
 0x875   :  { %v18100_v15 = vld [vmem:[#allocation26 + $0x176c] sm:$0xf0] }
 0x876   :  { %v16416_v17 = vld [vmem:[#allocation26 + $0x1b30] sm:$0xf]  ;;  %v15905_v63 = vor.u32 %v18100_v15, %v15904_v21  ;;  %11129 = vmatpush.bf16.msrb.mxu3 %v15393_v53 }
 0x877   :  { %v18228_v43 = vld [vmem:[#allocation26 + $0x1b6c] sm:$0xf0] }
 0x878   :  { %v16928_v36 = vld [vmem:[#allocation26 + $0x1f30] sm:$0xf]  ;;  %v16417_v6 = vor.u32 %v18228_v43, %v16416_v17  ;;  %11142 = vmatpush.bf16.msra.mxu0 %v15905_v63  ;;  %v10892_v17 = vpop.f32.mrf.mxu0  ;;  %v10905_v43 = vpop.f32.mrf.mxu1 }
 0x879   :  { %v18356_v37 = vld [vmem:[#allocation26 + $0x1f6c] sm:$0xf0]  ;;  %v17836_v17 = vld [vmem:[#allocation26 + $0xf34] sm:$0xf] }
 0x87a   :  { %v15328_v62 = vld [vmem:[#allocation26 + $0x12b0] sm:$0xf]  ;;  %v16929_v22 = vor.u32 %v18356_v37, %v16928_v36  ;;  %11155 = vmatpush.bf16.msra.mxu1 %v16417_v6  ;;  %v14882_v43 = vld [vmem:[#allocation26 + $0xf70] sm:$0xf0] }
 0x87b   :  { %v17956_v55 = vld [vmem:[#allocation26 + $0x12ec] sm:$0xf0] }
 0x87c   :  { %v15840_v28 = vld [vmem:[#allocation26 + $0x16b0] sm:$0xf]  ;;  %v15329_v39 = vor.u32 %v17956_v55, %v15328_v62  ;;  %11168 = vmatpush.bf16.msra.mxu2 %v16929_v22 }
 0x87d   :  { %v18084_v49 = vld [vmem:[#allocation26 + $0x16ec] sm:$0xf0] }
 0x87e   :  { %v16352_v10 = vld [vmem:[#allocation26 + $0x1ab0] sm:$0xf]  ;;  %v15841_v14 = vor.u32 %v18084_v49, %v15840_v28  ;;  %11130 = vmatpush.bf16.msrb.mxu3 %v15329_v39 }
 0x87f   :  { %v18212_v30 = vld [vmem:[#allocation26 + $0x1aec] sm:$0xf0] }
 0x880   :  { %v16864_v16 = vld [vmem:[#allocation26 + $0x1eb0] sm:$0xf]  ;;  %v16353_v19 = vor.u32 %v18212_v30, %v16352_v10  ;;  %11143 = vmatpush.bf16.msra.mxu0 %v15841_v14 }
 0x881   :  { %v18340_v61 = vld [vmem:[#allocation26 + $0x1eec] sm:$0xf0] }
 0x882   :  { %v15264_v3 = vld [vmem:[#allocation26 + $0x1230] sm:$0xf]  ;;  %v16865_v44 = vor.u32 %v18340_v61, %v16864_v16  ;;  %11156 = vmatpush.bf16.msra.mxu1 %v16353_v19 }
 0x883   :  { %v17940_v23 = vld [vmem:[#allocation26 + $0x126c] sm:$0xf0] }
 0x884   :  { %v15776_v45 = vld [vmem:[#allocation26 + $0x1630] sm:$0xf]  ;;  %v15265_v4 = vor.u32 %v17940_v23, %v15264_v3  ;;  %11169 = vmatpush.bf16.msra.mxu2 %v16865_v44 }
 0x885   :  { %v18068_v47 = vld [vmem:[#allocation26 + $0x166c] sm:$0xf0] }
 0x886   :  { %v16288_v31 = vld [vmem:[#allocation26 + $0x1a30] sm:$0xf]  ;;  %v15777_v56 = vor.u32 %v18068_v47, %v15776_v45  ;;  %11131 = vmatpush.bf16.msrb.mxu3 %v15265_v4  ;;  %v10879_v45 = vpop.f32.mrf.mxu3  ;;  %v17468_v4 = vld [vmem:[#allocation26 + $0x3b4] sm:$0xf] }
 0x887   :  { %v18196_v50 = vld [vmem:[#allocation26 + $0x1a6c] sm:$0xf0]  ;;  %v13730_v45 = vld [vmem:[#allocation26 + $0x670] sm:$0xf0] }
 0x888   :  { %v16800_v26 = vld [vmem:[#allocation26 + $0x1e30] sm:$0xf]  ;;  %v16289_v59 = vor.u32 %v18196_v50, %v16288_v31  ;;  %11144 = vmatpush.bf16.msra.mxu0 %v15777_v56  ;;  %v13410_v56 = vld [vmem:[#allocation26 + $0x3f0] sm:$0xf0] }
 0x889   :  { %v18324_v51 = vld [vmem:[#allocation26 + $0x1e6c] sm:$0xf0] }
 0x88a   :  { %v15200_v33 = vld [vmem:[#allocation26 + $0x11b0] sm:$0xf]  ;;  %v16801_v24 = vor.u32 %v18324_v51, %v16800_v26  ;;  %11157 = vmatpush.bf16.msra.mxu1 %v16289_v59  ;;  %v10918_v26 = vpop.f32.mrf.mxu2  ;;  %v17724_v59 = vld [vmem:[#allocation26 + $0xbb4] sm:$0xf] }
 0x88b   :  { %v17924_v2 = vld [vmem:[#allocation26 + $0x11ec] sm:$0xf0]  ;;  %v14754_v26 = vld [vmem:[#allocation26 + $0xe70] sm:$0xf0] }
 0x88c   :  { %v15712_v29 = vld [vmem:[#allocation26 + $0x15b0] sm:$0xf]  ;;  %v15201_v11 = vor.u32 %v17924_v2, %v15200_v33  ;;  %11170 = vmatpush.bf16.msra.mxu2 %v16801_v24  ;;  %v17596_v33 = vld [vmem:[#allocation26 + $0x7b4] sm:$0xf] }
 0x88d   :  { %v18052_v38 = vld [vmem:[#allocation26 + $0x15ec] sm:$0xf0]  ;;  %v13922_v2 = vld [vmem:[#allocation26 + $0x7f0] sm:$0xf0] }
 0x88e   :  { %v16224_v42 = vld [vmem:[#allocation26 + $0x19b0] sm:$0xf]  ;;  %v15713_v46 = vor.u32 %v18052_v38, %v15712_v29  ;;  %11132 = vmatpush.bf16.msrb.mxu3 %v15201_v11  ;;  %v14434_v38 = vld [vmem:[#allocation26 + $0xbf0] sm:$0xf0]  ;;  %v19806_v11 = vld [vmem:[#allocation28 + $0x8] sm:$0xff] }
 0x88f   :  { %v18180_v40 = vld [vmem:[#allocation26 + $0x19ec] sm:$0xf0] }
 0x890   :  { %v16736_v25 = vld [vmem:[#allocation26 + $0x1db0] sm:$0xf]  ;;  %v16225_v41 = vor.u32 %v18180_v40, %v16224_v42  ;;  %11145 = vmatpush.bf16.msra.mxu0 %v15713_v46  ;;  %v17852_v42 = vld [vmem:[#allocation26 + $0xfb4] sm:$0xf]  ;;  %v4686_v46 = vperm.slane %v19806_v11, 2 }
 0x891   :  { %v18308_v18 = vld [vmem:[#allocation26 + $0x1dec] sm:$0xf0]  ;;  %v14946_v40 = vld [vmem:[#allocation26 + $0xff0] sm:$0xf0] }
 0x892   :  { %v15136_v60 = vld [vmem:[#allocation26 + $0x1130] sm:$0xf]  ;;  %v16737_v5 = vor.u32 %v18308_v18, %v16736_v25  ;;  %11158 = vmatpush.bf16.msra.mxu1 %v16225_v41  ;;  %v17452_v41 = vld [vmem:[#allocation26 + $0x334] sm:$0xf] }
 0x893   :  { %v17908_v35 = vld [vmem:[#allocation26 + $0x116c] sm:$0xf0] }
 0x894   :  { %v15648_v0 = vld [vmem:[#allocation26 + $0x1530] sm:$0xf]  ;;  %v15137_v36 = vor.u32 %v17908_v35, %v15136_v60  ;;  %11171 = vmatpush.bf16.msra.mxu2 %v16737_v5  ;;  %v13413_v60 = vor.u32 %v17468_v4, %v13410_v56  ;;  %v13925_v35 = vor.u32 %v17596_v33, %v13922_v2  ;;  %v13346_v5 = vld [vmem:[#allocation26 + $0x370] sm:$0xf0] }
 0x895   :  { %v18036_v34 = vld [vmem:[#allocation26 + $0x156c] sm:$0xf0]  ;;  %v17404_v2 = vld [vmem:[#allocation26 + $0x1b4] sm:$0xf] }
 0x896   :  { %v16160_v7 = vld [vmem:[#allocation26 + $0x1930] sm:$0xf]  ;;  %v15649_v37 = vor.u32 %v18036_v34, %v15648_v0  ;;  %11133 = vmatpush.bf16.msrb.mxu3 %v15137_v36  ;;  %v14437_v0 = vor.u32 %v17724_v59, %v14434_v38  ;;  %v14949_v34 = vor.u32 %v17852_v42, %v14946_v40  ;;  %v10878_v36 = vadd.f32 %v19802_v32, %v4686_v46  ;;  %v14818_v32 = vld [vmem:[#allocation26 + $0xef0] sm:$0xf0] }
 0x897   :  { %v18164_v8 = vld [vmem:[#allocation26 + $0x196c] sm:$0xf0]  ;;  %v13154_v59 = vld [vmem:[#allocation26 + $0x1f0] sm:$0xf0] }
 0x898   :  { %v16672_v21 = vld [vmem:[#allocation26 + $0x1d30] sm:$0xf]  ;;  %v16161_v62 = vor.u32 %v18164_v8, %v16160_v7  ;;  %11146 = vmatpush.bf16.msra.mxu0 %v15649_v37  ;;  %v17580_v7 = vld [vmem:[#allocation26 + $0x734] sm:$0xf]  ;;  %v13349_v37 = vor.u32 %v17452_v41, %v13346_v5 }
 0x899   :  { %v18292_v15 = vld [vmem:[#allocation26 + $0x1d6c] sm:$0xf0]  ;;  %v13858_v8 = vld [vmem:[#allocation26 + $0x770] sm:$0xf0] }
 0x89a   :  { %v15072_v53 = vld [vmem:[#allocation26 + $0x10b0] sm:$0xf]  ;;  %v16673_v55 = vor.u32 %v18292_v15, %v16672_v21  ;;  %11159 = vmatpush.bf16.msra.mxu1 %v16161_v62  ;;  %v17708_v21 = vld [vmem:[#allocation26 + $0xb34] sm:$0xf] }
 0x89b   :  { %v17892_v63 = vld [vmem:[#allocation26 + $0x10ec] sm:$0xf0]  ;;  %v14370_v15 = vld [vmem:[#allocation26 + $0xb70] sm:$0xf0] }
 0x89c   :  { %v15584_v6 = vld [vmem:[#allocation26 + $0x14b0] sm:$0xf]  ;;  %v15073_v61 = vor.u32 %v17892_v63, %v15072_v53  ;;  %11172 = vmatpush.bf16.msra.mxu2 %v16673_v55  ;;  %v13861_v53 = vor.u32 %v17580_v7, %v13858_v8  ;;  %v17436_v63 = vld [vmem:[#allocation26 + $0x2b4] sm:$0xf]  ;;  %v14373_v55 = vor.u32 %v17708_v21, %v14370_v15  ;;  %v10929_v7 = vpop.f32.mrf.mxu3 }
 0x89d   :  { %v18020_v22 = vld [vmem:[#allocation26 + $0x14ec] sm:$0xf0]  ;;  %v13282_v62 = vld [vmem:[#allocation26 + $0x2f0] sm:$0xf0] }
 0x89e   :  { %v16096_v28 = vld [vmem:[#allocation26 + $0x18b0] sm:$0xf]  ;;  %v15585_v39 = vor.u32 %v18020_v22, %v15584_v6  ;;  %11134 = vmatpush.bf16.msrb.mxu3 %v15073_v61  ;;  %v14885_v6 = vor.u32 %v17836_v17, %v14882_v43  ;;  %v17564_v22 = vld [vmem:[#allocation26 + $0x6b4] sm:$0xf]  ;;  %v13285_v61 = vor.u32 %v17436_v63, %v13282_v62  ;;  %v10968_v43 = vpop.f32.mrf.mxu2 }
 0x89f   :  { %v18148_v49 = vld [vmem:[#allocation26 + $0x18ec] sm:$0xf0]  ;;  %v17532_v38 = vld [vmem:[#allocation26 + $0x5b4] sm:$0xf] }
 0x8a0   :  { %v16608_v10 = vld [vmem:[#allocation26 + $0x1cb0] sm:$0xf]  ;;  %v16097_v19 = vor.u32 %v18148_v49, %v16096_v28  ;;  %11147 = vmatpush.bf16.msra.mxu0 %v15585_v39  ;;  %v13794_v28 = vld [vmem:[#allocation26 + $0x6f0] sm:$0xf0] }
 0x8a1   :  { %v18276_v30 = vld [vmem:[#allocation26 + $0x1cec] sm:$0xf0]  ;;  %v17692_v49 = vld [vmem:[#allocation26 + $0xab4] sm:$0xf]  ;;  %v13797_v39 = vor.u32 %v17564_v22, %v13794_v28 }
 0x8a2   :  { %v15008_v16 = vld [vmem:[#allocation26 + $0x1030] sm:$0xf]  ;;  %v16609_v44 = vor.u32 %v18276_v30, %v16608_v10  ;;  %11160 = vmatpush.bf16.msra.mxu1 %v16097_v19  ;;  %v14306_v10 = vld [vmem:[#allocation26 + $0xaf0] sm:$0xf0] }
 0x8a3   :  { %v17876_v14 = vld [vmem:[#allocation26 + $0x106c] sm:$0xf0]  ;;  %v17820_v30 = vld [vmem:[#allocation26 + $0xeb4] sm:$0xf] }
 0x8a4   :  { %v15520_v3 = vld [vmem:[#allocation26 + $0x1430] sm:$0xf]  ;;  %v15009_v24 = vor.u32 %v17876_v14, %v15008_v16  ;;  %11173 = vmatpush.bf16.msra.mxu2 %v16609_v44  ;;  %v10891_v16 = vadd.f32 %v19798_v54, %v10878_v36  ;;  %v17420_v14 = vld [vmem:[#allocation26 + $0x234] sm:$0xf]  ;;  %v14821_v19 = vor.u32 %v17820_v30, %v14818_v32  ;;  %v10955_v54 = vpop.f32.mrf.mxu1 }
 0x8a5   :  { %v18004_v23 = vld [vmem:[#allocation26 + $0x146c] sm:$0xf0]  ;;  %v17548_v44 = vld [vmem:[#allocation26 + $0x634] sm:$0xf] }
 0x8a6   :  { %v16032_v47 = vld [vmem:[#allocation26 + $0x1830] sm:$0xf]  ;;  %v15521_v29 = vor.u32 %v18004_v23, %v15520_v3  ;;  %11135 = vmatpush.bf16.msrb.mxu3 %v15009_v24  ;;  %v13218_v3 = vld [vmem:[#allocation26 + $0x270] sm:$0xf0]  ;;  %v14309_v23 = vor.u32 %v17692_v49, %v14306_v10  ;;  %v10904_v4 = vadd.f32 %v19800_v27, %v10891_v16  ;;  %v13733_v33 = vor.u32 %v17548_v44, %v13730_v45 }
 0x8a7   :  { %v18132_v31 = vld [vmem:[#allocation26 + $0x186c] sm:$0xf0]  ;;  %v13221_v56 = vor.u32 %v17420_v14, %v13218_v3  ;;  %v13666_v42 = vld [vmem:[#allocation26 + $0x5f0] sm:$0xf0]  ;;  %v13157_v27 = vor.u32 %v17404_v2, %v13154_v59  ;;  %v10970_v59 = vpop.f32.mrf.mxu2 }
 0x8a8   :  { %v16544_v50 = vld [vmem:[#allocation26 + $0x1c30] sm:$0xf]  ;;  %v16033_v25 = vor.u32 %v18132_v31, %v16032_v47  ;;  %11148 = vmatpush.bf16.msra.mxu0 %v15521_v29  ;;  %v17676_v47 = vld [vmem:[#allocation26 + $0xa34] sm:$0xf] }
 0x8a9   :  { %v18260_v51 = vld [vmem:[#allocation26 + $0x1c6c] sm:$0xf0]  ;;  %11136 = vmatmul.bf16.vlgmr.msrb.gmra.mxu3 %v19560_v12  ;;  %v14242_v31 = vld [vmem:[#allocation26 + $0xa70] sm:$0xf0] }
 0x8aa   :  { %v16545_v18 = vor.u32 %v18260_v51, %v16544_v50  ;;  %11161 = vmatpush.bf16.msra.mxu1 %v16033_v25  ;;  %11180 = vmatpush.bf16.msra.mxu3 %v13413_v60  ;;  %v17804_v50 = vld [vmem:[#allocation26 + $0xe34] sm:$0xf]  ;;  %v10942_v51 = vpop.f32.mrf.mxu0  ;;  %v14245_v24 = vor.u32 %v17676_v47, %v14242_v31  ;;  %v10917_v60 = vadd.f32 %v19804_v48, %v10904_v4 }
 0x8ab   :  { %11149 = vmatmul.bf16.vlgmr.msra.gmra.mxu0 %v19562_v1  ;;  %v14757_v29 = vor.u32 %v17804_v50, %v14754_v26  ;;  %v17660_v40 = vld [vmem:[#allocation26 + $0x9b4] sm:$0xf] }
 0x8ac   :  { %11174 = vmatpush.bf16.msra.mxu2 %v16545_v18  ;;  %11193 = vmatpush.bf16.msrb.mxu0 %v13925_v35  ;;  %v14178_v25 = vld [vmem:[#allocation26 + $0x9f0] sm:$0xf0]  ;;  %v13669_v35 = vor.u32 %v17532_v38, %v13666_v42  ;;  %v10930_v17 = vadd.f32 %v10929_v7, %v10917_v60  ;;  %v10957_v62 = vpop.f32.mrf.mxu1 }
 0x8ad   :  { %11162 = vmatmul.bf16.vlgmr.msra.gmra.mxu1 %v19564_v58  ;;  %v17788_v18 = vld [vmem:[#allocation26 + $0xdb4] sm:$0xf] }
 0x8ae   :  { %11206 = vmatpush.bf16.msrb.mxu1 %v14437_v0  ;;  %11181 = vmatpush.bf16.msra.mxu3 %v13349_v37  ;;  %v14690_v46 = vld [vmem:[#allocation26 + $0xdf0] sm:$0xf0]  ;;  %v14181_v0 = vor.u32 %v17660_v40, %v14178_v25  ;;  %v10943_v63 = vadd.f32 %v10942_v51, %v10930_v17 }
 0x8af   :  { %11175 = vmatmul.bf16.vlgmr.msra.gmra.mxu2 %v19566_v20  ;;  %v17388_v41 = vld [vmem:[#allocation26 + $0x134] sm:$0xf] }
 0x8b0   :  { %11219 = vmatpush.bf16.msrb.mxu2 %v14949_v34  ;;  %11194 = vmatpush.bf16.msrb.mxu0 %v13861_v53  ;;  %v13090_v5 = vld [vmem:[#allocation26 + $0x170] sm:$0xf0]  ;;  %v14693_v34 = vor.u32 %v17788_v18, %v14690_v46 }
 0x8b1   :  { %v17516_v8 = vld [vmem:[#allocation26 + $0x534] sm:$0xf] }
 0x8b2   :  { %11207 = vmatpush.bf16.msrb.mxu1 %v14373_v55  ;;  %11182 = vmatpush.bf16.msra.mxu3 %v13285_v61  ;;  %v13602_v21 = vld [vmem:[#allocation26 + $0x570] sm:$0xf0]  ;;  %v10944_v48 = vpop.f32.mrf.mxu0  ;;  %v13093_v55 = vor.u32 %v17388_v41, %v13090_v5  ;;  %v10956_v61 = vadd.f32 %v10955_v54, %v10943_v63 }
 0x8b3   :  { %v17644_v15 = vld [vmem:[#allocation26 + $0x934] sm:$0xf] }
 0x8b4   :  { %11220 = vmatpush.bf16.msrb.mxu2 %v14885_v6  ;;  %11195 = vmatpush.bf16.msrb.mxu0 %v13797_v39  ;;  %v14114_v36 = vld [vmem:[#allocation26 + $0x970] sm:$0xf0]  ;;  %v13605_v6 = vor.u32 %v17516_v8, %v13602_v21  ;;  %v10969_v44 = vadd.f32 %v10968_v43, %v10956_v61 }
 0x8b5   :  { %v17772_v37 = vld [vmem:[#allocation26 + $0xd34] sm:$0xf]  ;;  %v14117_v49 = vor.u32 %v17644_v15, %v14114_v36 }
 0x8b6   :  { %11208 = vmatpush.bf16.msrb.mxu1 %v14309_v23  ;;  %11183 = vmatpush.bf16.msra.mxu3 %v13221_v56  ;;  %v14626_v53 = vld [vmem:[#allocation26 + $0xd70] sm:$0xf0]  ;;  %v10931_v56 = vpop.f32.mrf.mxu3  ;;  %11502 = vst [vmem:[#allocation29 + $0x50] sm:$0xff] %v10969_v44 }
 0x8b7   :  { %v17372_v22 = vld [vmem:[#allocation26 + $0xb4] sm:$0xf]  ;;  %v14629_v10 = vor.u32 %v17772_v37, %v14626_v53 }
 0x8b8   :  { %11221 = vmatpush.bf16.msrb.mxu2 %v14821_v19  ;;  %11196 = vmatpush.bf16.msrb.mxu0 %v13733_v33  ;;  %v13026_v28 = vld [vmem:[#allocation26 + $0xf0] sm:$0xf0] }
 0x8b9   :  { %v17500_v30 = vld [vmem:[#allocation26 + $0x4b4] sm:$0xf]  ;;  %v13029_v45 = vor.u32 %v17372_v22, %v13026_v28 }
 0x8ba   :  { %11209 = vmatpush.bf16.msrb.mxu1 %v14245_v24  ;;  %11184 = vmatpush.bf16.msra.mxu3 %v13157_v27  ;;  %v13538_v32 = vld [vmem:[#allocation26 + $0x4f0] sm:$0xf0] }
 0x8bb   :  { %v17628_v16 = vld [vmem:[#allocation26 + $0x8b4] sm:$0xf]  ;;  %v13541_v47 = vor.u32 %v17500_v30, %v13538_v32 }
 0x8bc   :  { %11222 = vmatpush.bf16.msrb.mxu2 %v14757_v29  ;;  %11197 = vmatpush.bf16.msrb.mxu0 %v13669_v35  ;;  %v14050_v39 = vld [vmem:[#allocation26 + $0x8f0] sm:$0xf0] }
 0x8bd   :  { %v17756_v14 = vld [vmem:[#allocation26 + $0xcb4] sm:$0xf]  ;;  %v14053_v51 = vor.u32 %v17628_v16, %v14050_v39 }
 0x8be   :  { %11210 = vmatpush.bf16.msrb.mxu1 %v14181_v0  ;;  %v14562_v3 = vld [vmem:[#allocation26 + $0xcf0] sm:$0xf0]  ;;  %11185 = vmatpush.bf16.msra.mxu3 %v13093_v55 }
 0x8bf   :  { %v17356_v23 = vld [vmem:[#allocation26 + $0x34] sm:$0xf]  ;;  %v14565_v4 = vor.u32 %v17756_v14, %v14562_v3 }
 0x8c0   :  { %11223 = vmatpush.bf16.msrb.mxu2 %v14693_v34  ;;  %v12962_v19 = vld [vmem:[#allocation26 + $0x70] sm:$0xf0]  ;;  %11198 = vmatpush.bf16.msrb.mxu0 %v13605_v6 }
 0x8c1   :  { %v17484_v31 = vld [vmem:[#allocation26 + $0x434] sm:$0xf]  ;;  %v12965_v25 = vor.u32 %v17356_v23, %v12962_v19 }
 0x8c2   :  { %v13474_v50 = vld [vmem:[#allocation26 + $0x470] sm:$0xf0]  ;;  %11211 = vmatpush.bf16.msrb.mxu1 %v14117_v49  ;;  %11186 = vmatpush.bf16.msra.mxu3 %v13029_v45 }
 0x8c3   :  { %v17612_v26 = vld [vmem:[#allocation26 + $0x834] sm:$0xf]  ;;  %v13477_v18 = vor.u32 %v17484_v31, %v13474_v50 }
 0x8c4   :  { %11224 = vmatpush.bf16.msrb.mxu2 %v14629_v10  ;;  %v13986_v33 = vld [vmem:[#allocation26 + $0x870] sm:$0xf0]  ;;  %11199 = vmatpush.bf16.msrb.mxu0 %v13541_v47 }
 0x8c5   :  { %v17740_v54 = vld [vmem:[#allocation26 + $0xc34] sm:$0xf]  ;;  %v13989_v35 = vor.u32 %v17612_v26, %v13986_v33 }
 0x8c6   :  { %v14498_v2 = vld [vmem:[#allocation26 + $0xc70] sm:$0xf0]  ;;  %11212 = vmatpush.bf16.msrb.mxu1 %v14053_v51  ;;  %11187 = vmatpush.bf16.msra.mxu3 %v12965_v25  ;;  %v19821_v51 = vpop.f32.mrf.mxu0 }
 0x8c7   :  { %v17980_v24 = vld [vmem:[#allocation26 + $0x13b4] sm:$0xf]  ;;  %v14501_v41 = vor.u32 %v17740_v54, %v14498_v2 }
 0x8c8   :  { %v15458_v29 = vld [vmem:[#allocation26 + $0x13f0] sm:$0xf0]  ;;  %11225 = vmatpush.bf16.msrb.mxu2 %v14565_v4  ;;  %11200 = vmatpush.bf16.msrb.mxu0 %v13477_v18  ;;  %v19823_v4 = vpop.f32.mrf.mxu1 }
 0x8c9   :  { %v18108_v38 = vld [vmem:[#allocation26 + $0x17b4] sm:$0xf]  ;;  %v15461_v5 = vor.u32 %v17980_v24, %v15458_v29  ;;  %11188 = vmatmul.bf16.vlgmr.msra.gmra.mxu3 %v19534_v57 }
 0x8ca   :  { %v15970_v42 = vld [vmem:[#allocation26 + $0x17f0] sm:$0xf0]  ;;  %11213 = vmatpush.bf16.msrb.mxu1 %v13989_v35 }
 0x8cb   :  { %v18236_v40 = vld [vmem:[#allocation26 + $0x1bb4] sm:$0xf]  ;;  %v15973_v0 = vor.u32 %v18108_v38, %v15970_v42  ;;  %11232 = vmatpush.bf16.msrb.mxu3 %v15461_v5  ;;  %11201 = vmatmul.bf16.vlgmr.msrb.gmra.mxu0 %v19536_v52 }
 0x8cc   :  { %v16482_v46 = vld [vmem:[#allocation26 + $0x1bf0] sm:$0xf0]  ;;  %11226 = vmatpush.bf16.msrb.mxu2 %v14501_v41 }
 0x8cd   :  { %v18364_v60 = vld [vmem:[#allocation26 + $0x1fb4] sm:$0xf]  ;;  %v16485_v8 = vor.u32 %v18236_v40, %v16482_v46  ;;  %11245 = vmatpush.bf16.msra.mxu0 %v15973_v0  ;;  %11214 = vmatmul.bf16.vlgmr.msrb.gmra.mxu1 %v19538_v13  ;;  %v19825_v0 = vpop.f32.mrf.mxu3 }
 0x8ce   :  { %v16994_v27 = vld [vmem:[#allocation26 + $0x1ff0] sm:$0xf0] }
 0x8cf   :  { %v17964_v34 = vld [vmem:[#allocation26 + $0x1334] sm:$0xf]  ;;  %v16997_v21 = vor.u32 %v18364_v60, %v16994_v27  ;;  %11258 = vmatpush.bf16.msra.mxu1 %v16485_v8  ;;  %11227 = vmatmul.bf16.vlgmr.msrb.gmra.mxu2 %v19540_v9 }
 0x8d0   :  { %v15394_v7 = vld [vmem:[#allocation26 + $0x1370] sm:$0xf0] }
 0x8d1   :  { %v18092_v15 = vld [vmem:[#allocation26 + $0x1734] sm:$0xf]  ;;  %v15397_v48 = vor.u32 %v17964_v34, %v15394_v7  ;;  %11271 = vmatpush.bf16.msra.mxu2 %v16997_v21  ;;  %v19827_v21 = vpop.f32.mrf.mxu2 }
 0x8d2   :  { %v15906_v17 = vld [vmem:[#allocation26 + $0x1770] sm:$0xf0] }
 0x8d3   :  { %v18220_v43 = vld [vmem:[#allocation26 + $0x1b34] sm:$0xf]  ;;  %v15909_v63 = vor.u32 %v18092_v15, %v15906_v17  ;;  %11233 = vmatpush.bf16.msrb.mxu3 %v15397_v48 }
 0x8d4   :  { %v16418_v36 = vld [vmem:[#allocation26 + $0x1b70] sm:$0xf0] }
 0x8d5   :  { %v18348_v37 = vld [vmem:[#allocation26 + $0x1f34] sm:$0xf]  ;;  %v16421_v6 = vor.u32 %v18220_v43, %v16418_v36  ;;  %11246 = vmatpush.bf16.msra.mxu0 %v15909_v63  ;;  %v10996_v36 = vpop.f32.mrf.mxu0 }
 0x8d6   :  { %v16930_v53 = vld [vmem:[#allocation26 + $0x1f70] sm:$0xf0]  ;;  %v14888_v36 = vld [vmem:[#allocation26 + $0xf38] sm:$0xf] }
 0x8d7   :  { %v17948_v62 = vld [vmem:[#allocation26 + $0x12b4] sm:$0xf]  ;;  %v16933_v22 = vor.u32 %v18348_v37, %v16930_v53  ;;  %11259 = vmatpush.bf16.msra.mxu1 %v16421_v6  ;;  %v11009_v37 = vpop.f32.mrf.mxu1 }
 0x8d8   :  { %v15330_v55 = vld [vmem:[#allocation26 + $0x12f0] sm:$0xf0]  ;;  %v17845_v37 = vld [vmem:[#allocation26 + $0xf74] sm:$0xf0] }
 0x8d9   :  { %v18076_v28 = vld [vmem:[#allocation26 + $0x16b4] sm:$0xf]  ;;  %v15333_v61 = vor.u32 %v17948_v62, %v15330_v55  ;;  %11272 = vmatpush.bf16.msra.mxu2 %v16933_v22 }
 0x8da   :  { %v15842_v49 = vld [vmem:[#allocation26 + $0x16f0] sm:$0xf0] }
 0x8db   :  { %v18204_v10 = vld [vmem:[#allocation26 + $0x1ab4] sm:$0xf]  ;;  %v15845_v39 = vor.u32 %v18076_v28, %v15842_v49  ;;  %11234 = vmatpush.bf16.msrb.mxu3 %v15333_v61 }
 0x8dc   :  { %v16354_v30 = vld [vmem:[#allocation26 + $0x1af0] sm:$0xf0] }
 0x8dd   :  { %v18332_v32 = vld [vmem:[#allocation26 + $0x1eb4] sm:$0xf]  ;;  %v16357_v23 = vor.u32 %v18204_v10, %v16354_v30  ;;  %11247 = vmatpush.bf16.msra.mxu0 %v15845_v39 }
 0x8de   :  { %v16866_v16 = vld [vmem:[#allocation26 + $0x1ef0] sm:$0xf0] }
 0x8df   :  { %v17932_v14 = vld [vmem:[#allocation26 + $0x1234] sm:$0xf]  ;;  %v16869_v19 = vor.u32 %v18332_v32, %v16866_v16  ;;  %11260 = vmatpush.bf16.msra.mxu1 %v16357_v23 }
 0x8e0   :  { %v15266_v3 = vld [vmem:[#allocation26 + $0x1270] sm:$0xf0] }
 0x8e1   :  { %v18060_v44 = vld [vmem:[#allocation26 + $0x1634] sm:$0xf]  ;;  %v15269_v56 = vor.u32 %v17932_v14, %v15266_v3  ;;  %11273 = vmatpush.bf16.msra.mxu2 %v16869_v19 }
 0x8e2   :  { %v15778_v45 = vld [vmem:[#allocation26 + $0x1670] sm:$0xf0] }
 0x8e3   :  { %v18188_v47 = vld [vmem:[#allocation26 + $0x1a34] sm:$0xf]  ;;  %v15781_v33 = vor.u32 %v18060_v44, %v15778_v45  ;;  %11235 = vmatpush.bf16.msrb.mxu3 %v15269_v56  ;;  %v10983_v45 = vpop.f32.mrf.mxu3 }
 0x8e4   :  { %v16290_v31 = vld [vmem:[#allocation26 + $0x1a70] sm:$0xf0]  ;;  %v14248_v45 = vld [vmem:[#allocation26 + $0xa38] sm:$0xf] }
 0x8e5   :  { %v18316_v50 = vld [vmem:[#allocation26 + $0x1e34] sm:$0xf]  ;;  %v16293_v59 = vor.u32 %v18188_v47, %v16290_v31  ;;  %11248 = vmatpush.bf16.msra.mxu0 %v15781_v33  ;;  %v13416_v33 = vld [vmem:[#allocation26 + $0x3b8] sm:$0xf] }
 0x8e6   :  { %v16802_v26 = vld [vmem:[#allocation26 + $0x1e70] sm:$0xf0] }
 0x8e7   :  { %v17916_v54 = vld [vmem:[#allocation26 + $0x11b4] sm:$0xf]  ;;  %v16805_v24 = vor.u32 %v18316_v50, %v16802_v26  ;;  %11261 = vmatpush.bf16.msra.mxu1 %v16293_v59  ;;  %v11022_v26 = vpop.f32.mrf.mxu2  ;;  %v17605_v59 = vld [vmem:[#allocation26 + $0x7f4] sm:$0xf0] }
 0x8e8   :  { %v15202_v2 = vld [vmem:[#allocation26 + $0x11f0] sm:$0xf0]  ;;  %v11046_v26 = vpop.f32.mrf.mxu0 }
 0x8e9   :  { %v18044_v29 = vld [vmem:[#allocation26 + $0x15b4] sm:$0xf]  ;;  %v15205_v46 = vor.u32 %v17916_v54, %v15202_v2  ;;  %11274 = vmatpush.bf16.msra.mxu2 %v16805_v24  ;;  %v17477_v54 = vld [vmem:[#allocation26 + $0x3f4] sm:$0xf0] }
 0x8ea   :  { %v15714_v38 = vld [vmem:[#allocation26 + $0x15f0] sm:$0xf0]  ;;  %v13928_v2 = vld [vmem:[#allocation26 + $0x7b8] sm:$0xf] }
 0x8eb   :  { %v18172_v42 = vld [vmem:[#allocation26 + $0x19b4] sm:$0xf]  ;;  %v15717_v60 = vor.u32 %v18044_v29, %v15714_v38  ;;  %11236 = vmatpush.bf16.msrb.mxu3 %v15205_v46  ;;  %v14440_v24 = vld [vmem:[#allocation26 + $0xbb8] sm:$0xf] }
 0x8ec   :  { %v16226_v40 = vld [vmem:[#allocation26 + $0x19f0] sm:$0xf0] }
 0x8ed   :  { %v18300_v25 = vld [vmem:[#allocation26 + $0x1db4] sm:$0xf]  ;;  %v16229_v41 = vor.u32 %v18172_v42, %v16226_v40  ;;  %11249 = vmatpush.bf16.msra.mxu0 %v15717_v60  ;;  %v17733_v42 = vld [vmem:[#allocation26 + $0xbf4] sm:$0xf0]  ;;  %v4687_v60 = vperm.slane %v19806_v11, 3 }
 0x8ee   :  { %v16738_v18 = vld [vmem:[#allocation26 + $0x1df0] sm:$0xf0]  ;;  %v14952_v40 = vld [vmem:[#allocation26 + $0xfb8] sm:$0xf] }
 0x8ef   :  { %v17900_v27 = vld [vmem:[#allocation26 + $0x1134] sm:$0xf]  ;;  %v16741_v5 = vor.u32 %v18300_v25, %v16738_v18  ;;  %11262 = vmatpush.bf16.msra.mxu1 %v16229_v41  ;;  %v17861_v25 = vld [vmem:[#allocation26 + $0xff4] sm:$0xf0] }
 0x8f0   :  { %v15138_v35 = vld [vmem:[#allocation26 + $0x1170] sm:$0xf0]  ;;  %v13352_v41 = vld [vmem:[#allocation26 + $0x338] sm:$0xf] }
 0x8f1   :  { %v18028_v34 = vld [vmem:[#allocation26 + $0x1534] sm:$0xf]  ;;  %v15141_v53 = vor.u32 %v17900_v27, %v15138_v35  ;;  %11275 = vmatpush.bf16.msra.mxu2 %v16741_v5  ;;  %v13417_v27 = vor.u32 %v17477_v54, %v13416_v33  ;;  %v13929_v35 = vor.u32 %v17605_v59, %v13928_v2  ;;  %v17461_v5 = vld [vmem:[#allocation26 + $0x374] sm:$0xf0] }
 0x8f2   :  { %v15650_v7 = vld [vmem:[#allocation26 + $0x1570] sm:$0xf0]  ;;  %v13353_v11 = vor.u32 %v17461_v5, %v13352_v41  ;;  %v13160_v2 = vld [vmem:[#allocation26 + $0x1b8] sm:$0xf] }
 0x8f3   :  { %v18156_v8 = vld [vmem:[#allocation26 + $0x1934] sm:$0xf]  ;;  %v15653_v48 = vor.u32 %v18028_v34, %v15650_v7  ;;  %11237 = vmatpush.bf16.msrb.mxu3 %v15141_v53  ;;  %v14441_v34 = vor.u32 %v17733_v42, %v14440_v24  ;;  %v14953_v7 = vor.u32 %v17861_v25, %v14952_v40  ;;  %v10982_v53 = vadd.f32 %v19825_v0, %v4687_v60  ;;  %v17829_v0 = vld [vmem:[#allocation26 + $0xef4] sm:$0xf0] }
 0x8f4   :  { %v16162_v15 = vld [vmem:[#allocation26 + $0x1970] sm:$0xf0]  ;;  %v17413_v59 = vld [vmem:[#allocation26 + $0x1f4] sm:$0xf0] }
 0x8f5   :  { %v18284_v17 = vld [vmem:[#allocation26 + $0x1d34] sm:$0xf]  ;;  %v16165_v55 = vor.u32 %v18156_v8, %v16162_v15  ;;  %11250 = vmatpush.bf16.msra.mxu0 %v15653_v48  ;;  %v13864_v8 = vld [vmem:[#allocation26 + $0x738] sm:$0xf] }
 0x8f6   :  { %v16674_v43 = vld [vmem:[#allocation26 + $0x1d70] sm:$0xf0]  ;;  %v17589_v15 = vld [vmem:[#allocation26 + $0x774] sm:$0xf0] }
 0x8f7   :  { %v17884_v63 = vld [vmem:[#allocation26 + $0x10b4] sm:$0xf]  ;;  %v16677_v6 = vor.u32 %v18284_v17, %v16674_v43  ;;  %11263 = vmatpush.bf16.msra.mxu1 %v16165_v55  ;;  %v14376_v17 = vld [vmem:[#allocation26 + $0xb38] sm:$0xf]  ;;  %v13865_v48 = vor.u32 %v17589_v15, %v13864_v8 }
 0x8f8   :  { %v15074_v62 = vld [vmem:[#allocation26 + $0x10f0] sm:$0xf0]  ;;  %v17717_v43 = vld [vmem:[#allocation26 + $0xb74] sm:$0xf0] }
 0x8f9   :  { %v18012_v22 = vld [vmem:[#allocation26 + $0x14b4] sm:$0xf]  ;;  %v15077_v61 = vor.u32 %v17884_v63, %v15074_v62  ;;  %11276 = vmatpush.bf16.msra.mxu2 %v16677_v6  ;;  %v13288_v63 = vld [vmem:[#allocation26 + $0x2b8] sm:$0xf]  ;;  %v14377_v55 = vor.u32 %v17717_v43, %v14376_v17  ;;  %v14889_v6 = vor.u32 %v17845_v37, %v14888_v36  ;;  %v11072_v36 = vpop.f32.mrf.mxu2 }
 0x8fa   :  { %v15586_v28 = vld [vmem:[#allocation26 + $0x14f0] sm:$0xf0]  ;;  %v17445_v62 = vld [vmem:[#allocation26 + $0x2f4] sm:$0xf0] }
 0x8fb   :  { %v18140_v49 = vld [vmem:[#allocation26 + $0x18b4] sm:$0xf]  ;;  %v15589_v39 = vor.u32 %v18012_v22, %v15586_v28  ;;  %11238 = vmatpush.bf16.msrb.mxu3 %v15077_v61  ;;  %v13800_v22 = vld [vmem:[#allocation26 + $0x6b8] sm:$0xf] }
 0x8fc   :  { %v16098_v10 = vld [vmem:[#allocation26 + $0x18f0] sm:$0xf0]  ;;  %v17573_v28 = vld [vmem:[#allocation26 + $0x6f4] sm:$0xf0] }
 0x8fd   :  { %v18268_v30 = vld [vmem:[#allocation26 + $0x1cb4] sm:$0xf]  ;;  %v16101_v19 = vor.u32 %v18140_v49, %v16098_v10  ;;  %11251 = vmatpush.bf16.msra.mxu0 %v15589_v39  ;;  %v14312_v49 = vld [vmem:[#allocation26 + $0xab8] sm:$0xf]  ;;  %v13801_v61 = vor.u32 %v17573_v28, %v13800_v22 }
 0x8fe   :  { %v16610_v32 = vld [vmem:[#allocation26 + $0x1cf0] sm:$0xf0]  ;;  %v17701_v10 = vld [vmem:[#allocation26 + $0xaf4] sm:$0xf0] }
 0x8ff   :  { %v17868_v16 = vld [vmem:[#allocation26 + $0x1034] sm:$0xf]  ;;  %v16613_v44 = vor.u32 %v18268_v30, %v16610_v32  ;;  %11264 = vmatpush.bf16.msra.mxu1 %v16101_v19  ;;  %v14824_v30 = vld [vmem:[#allocation26 + $0xeb8] sm:$0xf]  ;;  %v10995_v32 = vadd.f32 %v19821_v51, %v10982_v53  ;;  %v11059_v51 = vpop.f32.mrf.mxu1 }
 0x900   :  { %v15010_v14 = vld [vmem:[#allocation26 + $0x1070] sm:$0xf0]  ;;  %v13224_v39 = vld [vmem:[#allocation26 + $0x238] sm:$0xf] }
 0x901   :  { %v17996_v3 = vld [vmem:[#allocation26 + $0x1434] sm:$0xf]  ;;  %v15013_v29 = vor.u32 %v17868_v16, %v15010_v14  ;;  %11277 = vmatpush.bf16.msra.mxu2 %v16613_v44  ;;  %v13289_v16 = vor.u32 %v17445_v62, %v13288_v63  ;;  %v17429_v14 = vld [vmem:[#allocation26 + $0x274] sm:$0xf0] }
 0x902   :  { %v15522_v23 = vld [vmem:[#allocation26 + $0x1470] sm:$0xf0]  ;;  %v13736_v19 = vld [vmem:[#allocation26 + $0x638] sm:$0xf]  ;;  %v13225_v33 = vor.u32 %v17429_v14, %v13224_v39 }
 0x903   :  { %v18124_v47 = vld [vmem:[#allocation26 + $0x1834] sm:$0xf]  ;;  %v15525_v38 = vor.u32 %v17996_v3, %v15522_v23  ;;  %11239 = vmatpush.bf16.msrb.mxu3 %v15013_v29  ;;  %v14313_v3 = vor.u32 %v17701_v10, %v14312_v49  ;;  %v14825_v23 = vor.u32 %v17829_v0, %v14824_v30  ;;  %v17557_v44 = vld [vmem:[#allocation26 + $0x674] sm:$0xf0] }
 0x904   :  { %v16034_v31 = vld [vmem:[#allocation26 + $0x1870] sm:$0xf0]  ;;  %v13737_v54 = vor.u32 %v17557_v44, %v13736_v19  ;;  %v17541_v42 = vld [vmem:[#allocation26 + $0x5f4] sm:$0xf0] }
 0x905   :  { %v18252_v50 = vld [vmem:[#allocation26 + $0x1c34] sm:$0xf]  ;;  %v16037_v18 = vor.u32 %v18124_v47, %v16034_v31  ;;  %11252 = vmatpush.bf16.msra.mxu0 %v15525_v38  ;;  %v17685_v47 = vld [vmem:[#allocation26 + $0xa74] sm:$0xf0] }
 0x906   :  { %v16546_v56 = vld [vmem:[#allocation26 + $0x1c70] sm:$0xf0]  ;;  %11240 = vmatmul.bf16.vlgmr.msrb.gmra.mxu3 %v19560_v12  ;;  %v14760_v31 = vld [vmem:[#allocation26 + $0xe38] sm:$0xf]  ;;  %v14249_v24 = vor.u32 %v17685_v47, %v14248_v45 }
 0x907   :  { %v16549_v46 = vor.u32 %v18252_v50, %v16546_v56  ;;  %11265 = vmatpush.bf16.msra.mxu1 %v16037_v18  ;;  %11284 = vmatpush.bf16.msra.mxu3 %v13417_v27  ;;  %v17813_v50 = vld [vmem:[#allocation26 + $0xe74] sm:$0xf0]  ;;  %v11008_v56 = vadd.f32 %v19823_v4, %v10995_v32  ;;  %v13161_v4 = vor.u32 %v17413_v59, %v13160_v2  ;;  %v11061_v63 = vpop.f32.mrf.mxu1  ;;  %v11074_v2 = vpop.f32.mrf.mxu2 }
 0x908   :  { %11253 = vmatmul.bf16.vlgmr.msra.gmra.mxu0 %v19562_v1  ;;  %v14761_v29 = vor.u32 %v17813_v50, %v14760_v31  ;;  %v13672_v38 = vld [vmem:[#allocation26 + $0x5b8] sm:$0xf] }
 0x909   :  { %11278 = vmatpush.bf16.msra.mxu2 %v16549_v46  ;;  %11297 = vmatpush.bf16.msrb.mxu0 %v13929_v35  ;;  %v14184_v40 = vld [vmem:[#allocation26 + $0x9b8] sm:$0xf]  ;;  %v11021_v60 = vadd.f32 %v19827_v21, %v11008_v56  ;;  %v13673_v27 = vor.u32 %v17541_v42, %v13672_v38  ;;  %v11048_v21 = vpop.f32.mrf.mxu0 }
 0x90a   :  { %11266 = vmatmul.bf16.vlgmr.msra.gmra.mxu1 %v19564_v58  ;;  %v17669_v25 = vld [vmem:[#allocation26 + $0x9f4] sm:$0xf0] }
 0x90b   :  { %11310 = vmatpush.bf16.msrb.mxu1 %v14441_v34  ;;  %11285 = vmatpush.bf16.msra.mxu3 %v13353_v11  ;;  %v14696_v18 = vld [vmem:[#allocation26 + $0xdb8] sm:$0xf]  ;;  %v14185_v5 = vor.u32 %v17669_v25, %v14184_v40 }
 0x90c   :  { %11279 = vmatmul.bf16.vlgmr.msra.gmra.mxu2 %v19566_v20  ;;  %v17797_v46 = vld [vmem:[#allocation26 + $0xdf4] sm:$0xf0] }
 0x90d   :  { %11323 = vmatpush.bf16.msrb.mxu2 %v14953_v7  ;;  %11298 = vmatpush.bf16.msrb.mxu0 %v13865_v48  ;;  %v13096_v35 = vld [vmem:[#allocation26 + $0x138] sm:$0xf]  ;;  %v14697_v34 = vor.u32 %v17797_v46, %v14696_v18  ;;  %v11033_v7 = vpop.f32.mrf.mxu3 }
 0x90e   :  { %v17397_v41 = vld [vmem:[#allocation26 + $0x174] sm:$0xf0]  ;;  %v11034_v43 = vadd.f32 %v11033_v7, %v11021_v60 }
 0x90f   :  { %11311 = vmatpush.bf16.msrb.mxu1 %v14377_v55  ;;  %11286 = vmatpush.bf16.msra.mxu3 %v13289_v16  ;;  %v13608_v8 = vld [vmem:[#allocation26 + $0x538] sm:$0xf]  ;;  %v13097_v62 = vor.u32 %v17397_v41, %v13096_v35 }
 0x910   :  { %v17525_v15 = vld [vmem:[#allocation26 + $0x574] sm:$0xf0]  ;;  %v11047_v48 = vadd.f32 %v11046_v26, %v11034_v43 }
 0x911   :  { %11324 = vmatpush.bf16.msrb.mxu2 %v14889_v6  ;;  %11299 = vmatpush.bf16.msrb.mxu0 %v13801_v61  ;;  %v14120_v17 = vld [vmem:[#allocation26 + $0x938] sm:$0xf]  ;;  %v13609_v55 = vor.u32 %v17525_v15, %v13608_v8 }
 0x912   :  { %v17653_v37 = vld [vmem:[#allocation26 + $0x974] sm:$0xf0]  ;;  %v11060_v32 = vadd.f32 %v11059_v51, %v11047_v48 }
 0x913   :  { %11312 = vmatpush.bf16.msrb.mxu1 %v14313_v3  ;;  %11287 = vmatpush.bf16.msra.mxu3 %v13225_v33  ;;  %v14632_v53 = vld [vmem:[#allocation26 + $0xd38] sm:$0xf]  ;;  %v14121_v28 = vor.u32 %v17653_v37, %v14120_v17 }
 0x914   :  { %v17781_v11 = vld [vmem:[#allocation26 + $0xd74] sm:$0xf0] }
 0x915   :  { %11325 = vmatpush.bf16.msrb.mxu2 %v14825_v23  ;;  %11300 = vmatpush.bf16.msrb.mxu0 %v13737_v54  ;;  %v13032_v6 = vld [vmem:[#allocation26 + $0xb8] sm:$0xf]  ;;  %v14633_v49 = vor.u32 %v17781_v11, %v14632_v53  ;;  %v11073_v23 = vadd.f32 %v11072_v36, %v11060_v32  ;;  %v11035_v56 = vpop.f32.mrf.mxu3 }
 0x916   :  { %v17381_v22 = vld [vmem:[#allocation26 + $0xf4] sm:$0xf0] }
 0x917   :  { %11313 = vmatpush.bf16.msrb.mxu1 %v14249_v24  ;;  %11288 = vmatpush.bf16.msra.mxu3 %v13161_v4  ;;  %v13544_v10 = vld [vmem:[#allocation26 + $0x4b8] sm:$0xf]  ;;  %v13033_v19 = vor.u32 %v17381_v22, %v13032_v6  ;;  %11503 = vst [vmem:[#allocation29 + $0x58] sm:$0xff] %v11073_v23 }
 0x918   :  { %v17509_v30 = vld [vmem:[#allocation26 + $0x4f4] sm:$0xf0] }
 0x919   :  { %11326 = vmatpush.bf16.msrb.mxu2 %v14761_v29  ;;  %11301 = vmatpush.bf16.msrb.mxu0 %v13673_v27  ;;  %v14056_v0 = vld [vmem:[#allocation26 + $0x8b8] sm:$0xf]  ;;  %v13545_v44 = vor.u32 %v17509_v30, %v13544_v10 }
 0x91a   :  { %v17637_v16 = vld [vmem:[#allocation26 + $0x8f4] sm:$0xf0] }
 0x91b   :  { %11314 = vmatpush.bf16.msrb.mxu1 %v14185_v5  ;;  %v14568_v61 = vld [vmem:[#allocation26 + $0xcb8] sm:$0xf]  ;;  %11289 = vmatpush.bf16.msra.mxu3 %v13097_v62  ;;  %v14057_v50 = vor.u32 %v17637_v16, %v14056_v0 }
 0x91c   :  { %v17765_v39 = vld [vmem:[#allocation26 + $0xcf4] sm:$0xf0] }
 0x91d   :  { %11327 = vmatpush.bf16.msrb.mxu2 %v14697_v34  ;;  %v12968_v14 = vld [vmem:[#allocation26 + $0x38] sm:$0xf]  ;;  %11302 = vmatpush.bf16.msrb.mxu0 %v13609_v55  ;;  %v14569_v26 = vor.u32 %v17765_v39, %v14568_v61 }
 0x91e   :  { %v17365_v3 = vld [vmem:[#allocation26 + $0x74] sm:$0xf0] }
 0x91f   :  { %v13480_v45 = vld [vmem:[#allocation26 + $0x438] sm:$0xf]  ;;  %11315 = vmatpush.bf16.msrb.mxu1 %v14121_v28  ;;  %11290 = vmatpush.bf16.msra.mxu3 %v13033_v19  ;;  %v12969_v40 = vor.u32 %v17365_v3, %v12968_v14 }
 0x920   :  { %v17493_v47 = vld [vmem:[#allocation26 + $0x474] sm:$0xf0] }
 0x921   :  { %v13992_v31 = vld [vmem:[#allocation26 + $0x838] sm:$0xf]  ;;  %11328 = vmatpush.bf16.msrb.mxu2 %v14633_v49  ;;  %11303 = vmatpush.bf16.msrb.mxu0 %v13545_v44  ;;  %v13481_v25 = vor.u32 %v17493_v47, %v13480_v45 }
 0x922   :  { %v17621_v33 = vld [vmem:[#allocation26 + $0x874] sm:$0xf0] }
 0x923   :  { %v14504_v51 = vld [vmem:[#allocation26 + $0xc38] sm:$0xf]  ;;  %11316 = vmatpush.bf16.msrb.mxu1 %v14057_v50  ;;  %v13993_v4 = vor.u32 %v17621_v33, %v13992_v31  ;;  %11291 = vmatpush.bf16.msra.mxu3 %v12969_v40  ;;  %v19842_v31 = vpop.f32.mrf.mxu0  ;;  %v19844_v50 = vpop.f32.mrf.mxu1 }
 0x924   :  { %v17749_v54 = vld [vmem:[#allocation26 + $0xc74] sm:$0xf0] }
 0x925   :  { %v15464_v59 = vld [vmem:[#allocation26 + $0x13b8] sm:$0xf]  ;;  %11329 = vmatpush.bf16.msrb.mxu2 %v14569_v26  ;;  %v14505_v27 = vor.u32 %v17749_v54, %v14504_v51  ;;  %11304 = vmatpush.bf16.msrb.mxu0 %v13481_v25 }
 0x926   :  { %v17989_v24 = vld [vmem:[#allocation26 + $0x13f4] sm:$0xf0]  ;;  %11292 = vmatmul.bf16.vlgmr.msra.gmra.mxu3 %v19534_v57 }
 0x927   :  { %v15976_v29 = vld [vmem:[#allocation26 + $0x17b8] sm:$0xf]  ;;  %v15465_v35 = vor.u32 %v17989_v24, %v15464_v59  ;;  %11317 = vmatpush.bf16.msrb.mxu1 %v13993_v4 }
 0x928   :  { %v18117_v38 = vld [vmem:[#allocation26 + $0x17f4] sm:$0xf0]  ;;  %11305 = vmatmul.bf16.vlgmr.msrb.gmra.mxu0 %v19536_v52 }
 0x929   :  { %v16488_v42 = vld [vmem:[#allocation26 + $0x1bb8] sm:$0xf]  ;;  %v15977_v41 = vor.u32 %v18117_v38, %v15976_v29  ;;  %11330 = vmatpush.bf16.msrb.mxu2 %v14505_v27  ;;  %11336 = vmatpush.bf16.msrb.mxu3 %v15465_v35  ;;  %v19846_v35 = vpop.f32.mrf.mxu3 }
 0x92a   :  { %v18245_v18 = vld [vmem:[#allocation26 + $0x1bf4] sm:$0xf0]  ;;  %11318 = vmatmul.bf16.vlgmr.msrb.gmra.mxu1 %v19538_v13 }
 0x92b   :  { %v17000_v46 = vld [vmem:[#allocation26 + $0x1fb8] sm:$0xf]  ;;  %v16489_v7 = vor.u32 %v18245_v18, %v16488_v42  ;;  %11349 = vmatpush.bf16.msra.mxu0 %v15977_v41 }
 0x92c   :  { %v18373_v60 = vld [vmem:[#allocation26 + $0x1ff4] sm:$0xf0]  ;;  %11331 = vmatmul.bf16.vlgmr.msrb.gmra.mxu2 %v19540_v9 }
 0x92d   :  { %v15400_v5 = vld [vmem:[#allocation26 + $0x1338] sm:$0xf]  ;;  %v17001_v8 = vor.u32 %v18373_v60, %v17000_v46  ;;  %11362 = vmatpush.bf16.msra.mxu1 %v16489_v7  ;;  %v19848_v7 = vpop.f32.mrf.mxu2 }
 0x92e   :  { %v17973_v34 = vld [vmem:[#allocation26 + $0x1374] sm:$0xf0] }
 0x92f   :  { %v15912_v15 = vld [vmem:[#allocation26 + $0x1738] sm:$0xf]  ;;  %v15401_v11 = vor.u32 %v17973_v34, %v15400_v5  ;;  %11375 = vmatpush.bf16.msra.mxu2 %v17001_v8 }
 0x930   :  { %v18101_v17 = vld [vmem:[#allocation26 + $0x1774] sm:$0xf0] }
 0x931   :  { %v16424_v43 = vld [vmem:[#allocation26 + $0x1b38] sm:$0xf]  ;;  %v15913_v21 = vor.u32 %v18101_v17, %v15912_v15  ;;  %11337 = vmatpush.bf16.msrb.mxu3 %v15401_v11 }
 0x932   :  { %v18229_v36 = vld [vmem:[#allocation26 + $0x1b74] sm:$0xf0] }
 0x933   :  { %v16936_v37 = vld [vmem:[#allocation26 + $0x1f38] sm:$0xf]  ;;  %v16425_v62 = vor.u32 %v18229_v36, %v16424_v43  ;;  %11350 = vmatpush.bf16.msra.mxu0 %v15913_v21  ;;  %v11100_v43 = vpop.f32.mrf.mxu0  ;;  %v11113_v36 = vpop.f32.mrf.mxu1 }
 0x934   :  { %v18357_v53 = vld [vmem:[#allocation26 + $0x1f74] sm:$0xf0]  ;;  %v17837_v43 = vld [vmem:[#allocation26 + $0xf3c] sm:$0xf] }
 0x935   :  { %v15336_v48 = vld [vmem:[#allocation26 + $0x12b8] sm:$0xf]  ;;  %v16937_v55 = vor.u32 %v18357_v53, %v16936_v37  ;;  %11363 = vmatpush.bf16.msra.mxu1 %v16425_v62  ;;  %v14890_v36 = vld [vmem:[#allocation26 + $0xf78] sm:$0xf0] }
 0x936   :  { %v17957_v63 = vld [vmem:[#allocation26 + $0x12f4] sm:$0xf0] }
 0x937   :  { %v15848_v6 = vld [vmem:[#allocation26 + $0x16b8] sm:$0xf]  ;;  %v15337_v0 = vor.u32 %v17957_v63, %v15336_v48  ;;  %11376 = vmatpush.bf16.msra.mxu2 %v16937_v55 }
 0x938   :  { %v18085_v22 = vld [vmem:[#allocation26 + $0x16f4] sm:$0xf0] }
 0x939   :  { %v16360_v28 = vld [vmem:[#allocation26 + $0x1ab8] sm:$0xf]  ;;  %v15849_v32 = vor.u32 %v18085_v22, %v15848_v6  ;;  %11338 = vmatpush.bf16.msrb.mxu3 %v15337_v0 }
 0x93a   :  { %v18213_v49 = vld [vmem:[#allocation26 + $0x1af4] sm:$0xf0] }
 0x93b   :  { %v16872_v10 = vld [vmem:[#allocation26 + $0x1eb8] sm:$0xf]  ;;  %v16361_v39 = vor.u32 %v18213_v49, %v16360_v28  ;;  %11351 = vmatpush.bf16.msra.mxu0 %v15849_v32 }
 0x93c   :  { %v18341_v30 = vld [vmem:[#allocation26 + $0x1ef4] sm:$0xf0] }
 0x93d   :  { %v15272_v16 = vld [vmem:[#allocation26 + $0x1238] sm:$0xf]  ;;  %v16873_v14 = vor.u32 %v18341_v30, %v16872_v10  ;;  %11364 = vmatpush.bf16.msra.mxu1 %v16361_v39 }
 0x93e   :  { %v17941_v61 = vld [vmem:[#allocation26 + $0x1274] sm:$0xf0] }
 0x93f   :  { %v15784_v3 = vld [vmem:[#allocation26 + $0x1638] sm:$0xf]  ;;  %v15273_v26 = vor.u32 %v17941_v61, %v15272_v16  ;;  %11377 = vmatpush.bf16.msra.mxu2 %v16873_v14 }
 0x940   :  { %v18069_v23 = vld [vmem:[#allocation26 + $0x1674] sm:$0xf0] }
 0x941   :  { %v16296_v19 = vld [vmem:[#allocation26 + $0x1a38] sm:$0xf]  ;;  %v15785_v56 = vor.u32 %v18069_v23, %v15784_v3  ;;  %11339 = vmatpush.bf16.msrb.mxu3 %v15273_v26  ;;  %v11087_v3 = vpop.f32.mrf.mxu3  ;;  %v17469_v26 = vld [vmem:[#allocation26 + $0x3bc] sm:$0xf] }
 0x942   :  { %v18197_v44 = vld [vmem:[#allocation26 + $0x1a74] sm:$0xf0]  ;;  %v13738_v3 = vld [vmem:[#allocation26 + $0x678] sm:$0xf0] }
 0x943   :  { %v16808_v45 = vld [vmem:[#allocation26 + $0x1e38] sm:$0xf]  ;;  %v16297_v54 = vor.u32 %v18197_v44, %v16296_v19  ;;  %11352 = vmatpush.bf16.msra.mxu0 %v15785_v56  ;;  %v13418_v56 = vld [vmem:[#allocation26 + $0x3f8] sm:$0xf0] }
 0x944   :  { %v18325_v47 = vld [vmem:[#allocation26 + $0x1e74] sm:$0xf0] }
 0x945   :  { %v15208_v33 = vld [vmem:[#allocation26 + $0x11b8] sm:$0xf]  ;;  %v16809_v2 = vor.u32 %v18325_v47, %v16808_v45  ;;  %11365 = vmatpush.bf16.msra.mxu1 %v16297_v54  ;;  %v11126_v45 = vpop.f32.mrf.mxu2  ;;  %v17725_v54 = vld [vmem:[#allocation26 + $0xbbc] sm:$0xf] }
 0x946   :  { %v17925_v51 = vld [vmem:[#allocation26 + $0x11f4] sm:$0xf0]  ;;  %v14762_v45 = vld [vmem:[#allocation26 + $0xe78] sm:$0xf0] }
 0x947   :  { %v15720_v59 = vld [vmem:[#allocation26 + $0x15b8] sm:$0xf]  ;;  %v15209_v25 = vor.u32 %v17925_v51, %v15208_v33  ;;  %11378 = vmatpush.bf16.msra.mxu2 %v16809_v2  ;;  %v17597_v33 = vld [vmem:[#allocation26 + $0x7bc] sm:$0xf] }
 0x948   :  { %v18053_v24 = vld [vmem:[#allocation26 + $0x15f4] sm:$0xf0]  ;;  %v13930_v51 = vld [vmem:[#allocation26 + $0x7f8] sm:$0xf0] }
 0x949   :  { %v16232_v29 = vld [vmem:[#allocation26 + $0x19b8] sm:$0xf]  ;;  %v15721_v18 = vor.u32 %v18053_v24, %v15720_v59  ;;  %11340 = vmatpush.bf16.msrb.mxu3 %v15209_v25  ;;  %v14442_v24 = vld [vmem:[#allocation26 + $0xbf8] sm:$0xf0]  ;;  %v19850_v25 = vld [vmem:[#allocation28 + $0x8] sm:$0xff] }
 0x94a   :  { %v18181_v38 = vld [vmem:[#allocation26 + $0x19f4] sm:$0xf0] }
 0x94b   :  { %v16744_v42 = vld [vmem:[#allocation26 + $0x1db8] sm:$0xf]  ;;  %v16233_v4 = vor.u32 %v18181_v38, %v16232_v29  ;;  %11353 = vmatpush.bf16.msra.mxu0 %v15721_v18  ;;  %v17853_v29 = vld [vmem:[#allocation26 + $0xfbc] sm:$0xf]  ;;  %v4688_v18 = vperm.slane %v19850_v25, 4 }
 0x94c   :  { %v18309_v40 = vld [vmem:[#allocation26 + $0x1df4] sm:$0xf0]  ;;  %v14954_v38 = vld [vmem:[#allocation26 + $0xff8] sm:$0xf0] }
 0x94d   :  { %v15144_v46 = vld [vmem:[#allocation26 + $0x1138] sm:$0xf]  ;;  %v16745_v27 = vor.u32 %v18309_v40, %v16744_v42  ;;  %11366 = vmatpush.bf16.msra.mxu1 %v16233_v4  ;;  %v17453_v4 = vld [vmem:[#allocation26 + $0x33c] sm:$0xf] }
 0x94e   :  { %v17909_v60 = vld [vmem:[#allocation26 + $0x1174] sm:$0xf0] }
 0x94f   :  { %v15656_v41 = vld [vmem:[#allocation26 + $0x1538] sm:$0xf]  ;;  %v15145_v37 = vor.u32 %v17909_v60, %v15144_v46  ;;  %11379 = vmatpush.bf16.msra.mxu2 %v16745_v27  ;;  %v13421_v46 = vor.u32 %v17469_v26, %v13418_v56  ;;  %v13933_v60 = vor.u32 %v17597_v33, %v13930_v51  ;;  %v13354_v27 = vld [vmem:[#allocation26 + $0x378] sm:$0xf0] }
 0x950   :  { %v18037_v5 = vld [vmem:[#allocation26 + $0x1574] sm:$0xf0]  ;;  %v17405_v51 = vld [vmem:[#allocation26 + $0x1bc] sm:$0xf] }
 0x951   :  { %v16168_v34 = vld [vmem:[#allocation26 + $0x1938] sm:$0xf]  ;;  %v15657_v53 = vor.u32 %v18037_v5, %v15656_v41  ;;  %11341 = vmatpush.bf16.msrb.mxu3 %v15145_v37  ;;  %v14445_v41 = vor.u32 %v17725_v54, %v14442_v24  ;;  %v14957_v5 = vor.u32 %v17853_v29, %v14954_v38  ;;  %v11086_v37 = vadd.f32 %v19846_v35, %v4688_v18  ;;  %v14826_v35 = vld [vmem:[#allocation26 + $0xef8] sm:$0xf0] }
 0x952   :  { %v18165_v8 = vld [vmem:[#allocation26 + $0x1974] sm:$0xf0]  ;;  %v13162_v54 = vld [vmem:[#allocation26 + $0x1f8] sm:$0xf0] }
 0x953   :  { %v16680_v15 = vld [vmem:[#allocation26 + $0x1d38] sm:$0xf]  ;;  %v16169_v48 = vor.u32 %v18165_v8, %v16168_v34  ;;  %11354 = vmatpush.bf16.msra.mxu0 %v15657_v53  ;;  %v17581_v34 = vld [vmem:[#allocation26 + $0x73c] sm:$0xf]  ;;  %v13357_v53 = vor.u32 %v17453_v4, %v13354_v27 }
 0x954   :  { %v18293_v17 = vld [vmem:[#allocation26 + $0x1d74] sm:$0xf0]  ;;  %v13866_v8 = vld [vmem:[#allocation26 + $0x778] sm:$0xf0] }
 0x955   :  { %v15080_v11 = vld [vmem:[#allocation26 + $0x10b8] sm:$0xf]  ;;  %v16681_v63 = vor.u32 %v18293_v17, %v16680_v15  ;;  %11367 = vmatpush.bf16.msra.mxu1 %v16169_v48  ;;  %v17709_v15 = vld [vmem:[#allocation26 + $0xb3c] sm:$0xf] }
 0x956   :  { %v17893_v21 = vld [vmem:[#allocation26 + $0x10f4] sm:$0xf0]  ;;  %v14378_v17 = vld [vmem:[#allocation26 + $0xb78] sm:$0xf0] }
 0x957   :  { %v15592_v62 = vld [vmem:[#allocation26 + $0x14b8] sm:$0xf]  ;;  %v15081_v30 = vor.u32 %v17893_v21, %v15080_v11  ;;  %11380 = vmatpush.bf16.msra.mxu2 %v16681_v63  ;;  %v13869_v11 = vor.u32 %v17581_v34, %v13866_v8  ;;  %v17437_v21 = vld [vmem:[#allocation26 + $0x2bc] sm:$0xf]  ;;  %v14381_v63 = vor.u32 %v17709_v15, %v14378_v17  ;;  %v11137_v34 = vpop.f32.mrf.mxu3 }
 0x958   :  { %v18021_v55 = vld [vmem:[#allocation26 + $0x14f4] sm:$0xf0]  ;;  %v13290_v48 = vld [vmem:[#allocation26 + $0x2f8] sm:$0xf0] }
 0x959   :  { %v16104_v6 = vld [vmem:[#allocation26 + $0x18b8] sm:$0xf]  ;;  %v15593_v0 = vor.u32 %v18021_v55, %v15592_v62  ;;  %11342 = vmatpush.bf16.msrb.mxu3 %v15081_v30  ;;  %v14893_v62 = vor.u32 %v17837_v43, %v14890_v36  ;;  %v17565_v55 = vld [vmem:[#allocation26 + $0x6bc] sm:$0xf]  ;;  %v13293_v30 = vor.u32 %v17437_v21, %v13290_v48  ;;  %v11176_v36 = vpop.f32.mrf.mxu2 }
 0x95a   :  { %v18149_v22 = vld [vmem:[#allocation26 + $0x18f4] sm:$0xf0]  ;;  %v17533_v24 = vld [vmem:[#allocation26 + $0x5bc] sm:$0xf] }
 0x95b   :  { %v16616_v28 = vld [vmem:[#allocation26 + $0x1cb8] sm:$0xf]  ;;  %v16105_v39 = vor.u32 %v18149_v22, %v16104_v6  ;;  %11355 = vmatpush.bf16.msra.mxu0 %v15593_v0  ;;  %v13802_v6 = vld [vmem:[#allocation26 + $0x6f8] sm:$0xf0] }
 0x95c   :  { %v18277_v49 = vld [vmem:[#allocation26 + $0x1cf4] sm:$0xf0]  ;;  %v17693_v22 = vld [vmem:[#allocation26 + $0xabc] sm:$0xf]  ;;  %v13805_v0 = vor.u32 %v17565_v55, %v13802_v6 }
 0x95d   :  { %v15016_v10 = vld [vmem:[#allocation26 + $0x1038] sm:$0xf]  ;;  %v16617_v14 = vor.u32 %v18277_v49, %v16616_v28  ;;  %11368 = vmatpush.bf16.msra.mxu1 %v16105_v39  ;;  %v14314_v28 = vld [vmem:[#allocation26 + $0xaf8] sm:$0xf0] }
 0x95e   :  { %v17877_v32 = vld [vmem:[#allocation26 + $0x1074] sm:$0xf0]  ;;  %v17821_v49 = vld [vmem:[#allocation26 + $0xebc] sm:$0xf] }
 0x95f   :  { %v15528_v16 = vld [vmem:[#allocation26 + $0x1438] sm:$0xf]  ;;  %v15017_v2 = vor.u32 %v17877_v32, %v15016_v10  ;;  %11381 = vmatpush.bf16.msra.mxu2 %v16617_v14  ;;  %v11099_v10 = vadd.f32 %v19842_v31, %v11086_v37  ;;  %v17421_v32 = vld [vmem:[#allocation26 + $0x23c] sm:$0xf]  ;;  %v14829_v39 = vor.u32 %v17821_v49, %v14826_v35  ;;  %v11163_v31 = vpop.f32.mrf.mxu1 }
 0x960   :  { %v18005_v61 = vld [vmem:[#allocation26 + $0x1474] sm:$0xf0]  ;;  %v17549_v14 = vld [vmem:[#allocation26 + $0x63c] sm:$0xf] }
 0x961   :  { %v16040_v23 = vld [vmem:[#allocation26 + $0x1838] sm:$0xf]  ;;  %v15529_v59 = vor.u32 %v18005_v61, %v15528_v16  ;;  %11343 = vmatpush.bf16.msrb.mxu3 %v15017_v2  ;;  %v13226_v16 = vld [vmem:[#allocation26 + $0x278] sm:$0xf0]  ;;  %v14317_v61 = vor.u32 %v17693_v22, %v14314_v28  ;;  %v11112_v26 = vadd.f32 %v19844_v50, %v11099_v10  ;;  %v13741_v33 = vor.u32 %v17549_v14, %v13738_v3 }
 0x962   :  { %v18133_v19 = vld [vmem:[#allocation26 + $0x1874] sm:$0xf0]  ;;  %v13229_v56 = vor.u32 %v17421_v32, %v13226_v16  ;;  %v13674_v29 = vld [vmem:[#allocation26 + $0x5f8] sm:$0xf0]  ;;  %v13165_v50 = vor.u32 %v17405_v51, %v13162_v54  ;;  %v11178_v54 = vpop.f32.mrf.mxu2 }
 0x963   :  { %v16552_v44 = vld [vmem:[#allocation26 + $0x1c38] sm:$0xf]  ;;  %v16041_v42 = vor.u32 %v18133_v19, %v16040_v23  ;;  %11356 = vmatpush.bf16.msra.mxu0 %v15529_v59  ;;  %v17677_v23 = vld [vmem:[#allocation26 + $0xa3c] sm:$0xf] }
 0x964   :  { %v18261_v47 = vld [vmem:[#allocation26 + $0x1c74] sm:$0xf0]  ;;  %11344 = vmatmul.bf16.vlgmr.msrb.gmra.mxu3 %v19560_v12  ;;  %v14250_v19 = vld [vmem:[#allocation26 + $0xa78] sm:$0xf0] }
 0x965   :  { %v16553_v40 = vor.u32 %v18261_v47, %v16552_v44  ;;  %11369 = vmatpush.bf16.msra.mxu1 %v16041_v42  ;;  %11388 = vmatpush.bf16.msra.mxu3 %v13421_v46  ;;  %v17805_v44 = vld [vmem:[#allocation26 + $0xe3c] sm:$0xf]  ;;  %v11150_v47 = vpop.f32.mrf.mxu0  ;;  %v14253_v2 = vor.u32 %v17677_v23, %v14250_v19  ;;  %v11125_v46 = vadd.f32 %v19848_v7, %v11112_v26 }
 0x966   :  { %11357 = vmatmul.bf16.vlgmr.msra.gmra.mxu0 %v19562_v1  ;;  %v14765_v59 = vor.u32 %v17805_v44, %v14762_v45  ;;  %v17661_v38 = vld [vmem:[#allocation26 + $0x9bc] sm:$0xf] }
 0x967   :  { %11382 = vmatpush.bf16.msra.mxu2 %v16553_v40  ;;  %11401 = vmatpush.bf16.msrb.mxu0 %v13933_v60  ;;  %v14186_v42 = vld [vmem:[#allocation26 + $0x9f8] sm:$0xf0]  ;;  %v13677_v60 = vor.u32 %v17533_v24, %v13674_v29  ;;  %v11138_v43 = vadd.f32 %v11137_v34, %v11125_v46  ;;  %v11165_v48 = vpop.f32.mrf.mxu1 }
 0x968   :  { %11370 = vmatmul.bf16.vlgmr.msra.gmra.mxu1 %v19564_v58  ;;  %v17789_v40 = vld [vmem:[#allocation26 + $0xdbc] sm:$0xf] }
 0x969   :  { %11414 = vmatpush.bf16.msrb.mxu1 %v14445_v41  ;;  %11389 = vmatpush.bf16.msra.mxu3 %v13357_v53  ;;  %v14698_v18 = vld [vmem:[#allocation26 + $0xdf8] sm:$0xf0]  ;;  %v14189_v41 = vor.u32 %v17661_v38, %v14186_v42  ;;  %v11151_v21 = vadd.f32 %v11150_v47, %v11138_v43 }
 0x96a   :  { %11383 = vmatmul.bf16.vlgmr.msra.gmra.mxu2 %v19566_v20  ;;  %v17389_v4 = vld [vmem:[#allocation26 + $0x13c] sm:$0xf] }
 0x96b   :  { %11427 = vmatpush.bf16.msrb.mxu2 %v14957_v5  ;;  %11402 = vmatpush.bf16.msrb.mxu0 %v13869_v11  ;;  %v13098_v27 = vld [vmem:[#allocation26 + $0x178] sm:$0xf0]  ;;  %v14701_v5 = vor.u32 %v17789_v40, %v14698_v18 }
 0x96c   :  { %v17517_v8 = vld [vmem:[#allocation26 + $0x53c] sm:$0xf] }
 0x96d   :  { %11415 = vmatpush.bf16.msrb.mxu1 %v14381_v63  ;;  %11390 = vmatpush.bf16.msra.mxu3 %v13293_v30  ;;  %v13610_v15 = vld [vmem:[#allocation26 + $0x578] sm:$0xf0]  ;;  %v11152_v7 = vpop.f32.mrf.mxu0  ;;  %v13101_v63 = vor.u32 %v17389_v4, %v13098_v27  ;;  %v11164_v30 = vadd.f32 %v11163_v31, %v11151_v21 }
 0x96e   :  { %v17645_v17 = vld [vmem:[#allocation26 + $0x93c] sm:$0xf] }
 0x96f   :  { %11428 = vmatpush.bf16.msrb.mxu2 %v14893_v62  ;;  %11403 = vmatpush.bf16.msrb.mxu0 %v13805_v0  ;;  %v14122_v37 = vld [vmem:[#allocation26 + $0x978] sm:$0xf0]  ;;  %v13613_v62 = vor.u32 %v17517_v8, %v13610_v15  ;;  %v11177_v14 = vadd.f32 %v11176_v36, %v11164_v30 }
 0x970   :  { %v17773_v53 = vld [vmem:[#allocation26 + $0xd3c] sm:$0xf]  ;;  %v14125_v22 = vor.u32 %v17645_v17, %v14122_v37 }
 0x971   :  { %11416 = vmatpush.bf16.msrb.mxu1 %v14317_v61  ;;  %11391 = vmatpush.bf16.msra.mxu3 %v13229_v56  ;;  %v14634_v11 = vld [vmem:[#allocation26 + $0xd78] sm:$0xf0]  ;;  %v11139_v56 = vpop.f32.mrf.mxu3  ;;  %11504 = vst [vmem:[#allocation29 + $0x60] sm:$0xff] %v11177_v14 }
 0x972   :  { %v17373_v55 = vld [vmem:[#allocation26 + $0xbc] sm:$0xf]  ;;  %v14637_v28 = vor.u32 %v17773_v53, %v14634_v11 }
 0x973   :  { %11429 = vmatpush.bf16.msrb.mxu2 %v14829_v39  ;;  %11404 = vmatpush.bf16.msrb.mxu0 %v13741_v33  ;;  %v13034_v6 = vld [vmem:[#allocation26 + $0xf8] sm:$0xf0] }
 0x974   :  { %v17501_v49 = vld [vmem:[#allocation26 + $0x4bc] sm:$0xf]  ;;  %v13037_v3 = vor.u32 %v17373_v55, %v13034_v6 }
 0x975   :  { %11417 = vmatpush.bf16.msrb.mxu1 %v14253_v2  ;;  %11392 = vmatpush.bf16.msra.mxu3 %v13165_v50  ;;  %v13546_v35 = vld [vmem:[#allocation26 + $0x4f8] sm:$0xf0] }
 0x976   :  { %v17629_v10 = vld [vmem:[#allocation26 + $0x8bc] sm:$0xf]  ;;  %v13549_v23 = vor.u32 %v17501_v49, %v13546_v35 }
 0x977   :  { %11430 = vmatpush.bf16.msrb.mxu2 %v14765_v59  ;;  %11405 = vmatpush.bf16.msrb.mxu0 %v13677_v60  ;;  %v14058_v0 = vld [vmem:[#allocation26 + $0x8f8] sm:$0xf0] }
 0x978   :  { %v17757_v32 = vld [vmem:[#allocation26 + $0xcbc] sm:$0xf]  ;;  %v14061_v47 = vor.u32 %v17629_v10, %v14058_v0 }
 0x979   :  { %11418 = vmatpush.bf16.msrb.mxu1 %v14189_v41  ;;  %v14570_v16 = vld [vmem:[#allocation26 + $0xcf8] sm:$0xf0]  ;;  %11393 = vmatpush.bf16.msra.mxu3 %v13101_v63 }
 0x97a   :  { %v17357_v61 = vld [vmem:[#allocation26 + $0x3c] sm:$0xf]  ;;  %v14573_v26 = vor.u32 %v17757_v32, %v14570_v16 }
 0x97b   :  { %11431 = vmatpush.bf16.msrb.mxu2 %v14701_v5  ;;  %v12970_v39 = vld [vmem:[#allocation26 + $0x78] sm:$0xf0]  ;;  %11406 = vmatpush.bf16.msrb.mxu0 %v13613_v62 }
 0x97c   :  { %v17485_v19 = vld [vmem:[#allocation26 + $0x43c] sm:$0xf]  ;;  %v12973_v42 = vor.u32 %v17357_v61, %v12970_v39 }
 0x97d   :  { %v13482_v44 = vld [vmem:[#allocation26 + $0x478] sm:$0xf0]  ;;  %11419 = vmatpush.bf16.msrb.mxu1 %v14125_v22  ;;  %11394 = vmatpush.bf16.msra.mxu3 %v13037_v3 }
 0x97e   :  { %v17613_v45 = vld [vmem:[#allocation26 + $0x83c] sm:$0xf]  ;;  %v13485_v40 = vor.u32 %v17485_v19, %v13482_v44  ;;  %v19865_v44 = vpop.f32.mrf.mxu0 }
 0x97f   :  { %11432 = vmatpush.bf16.msrb.mxu2 %v14637_v28  ;;  %v13994_v33 = vld [vmem:[#allocation26 + $0x878] sm:$0xf0]  ;;  %11407 = vmatpush.bf16.msrb.mxu0 %v13549_v23 }
 0x980   :  { %v17741_v31 = vld [vmem:[#allocation26 + $0xc3c] sm:$0xf]  ;;  %v13997_v60 = vor.u32 %v17613_v45, %v13994_v33 }
 0x981   :  { %v14506_v51 = vld [vmem:[#allocation26 + $0xc78] sm:$0xf0]  ;;  %11420 = vmatpush.bf16.msrb.mxu1 %v14061_v47  ;;  %11395 = vmatpush.bf16.msra.mxu3 %v12973_v42 }
 0x982   :  { %v17981_v2 = vld [vmem:[#allocation26 + $0x13bc] sm:$0xf]  ;;  %v14509_v4 = vor.u32 %v17741_v31, %v14506_v51 }
 0x983   :  { %v15466_v59 = vld [vmem:[#allocation26 + $0x13f8] sm:$0xf0]  ;;  %11433 = vmatpush.bf16.msrb.mxu2 %v14573_v26  ;;  %11408 = vmatpush.bf16.msrb.mxu0 %v13485_v40 }
 0x984   :  { %v18109_v24 = vld [vmem:[#allocation26 + $0x17bc] sm:$0xf]  ;;  %v15469_v27 = vor.u32 %v17981_v2, %v15466_v59  ;;  %11396 = vmatmul.bf16.vlgmr.msra.gmra.mxu3 %v19534_v57 }
 0x985   :  { %v15978_v29 = vld [vmem:[#allocation26 + $0x17f8] sm:$0xf0]  ;;  %11421 = vmatpush.bf16.msrb.mxu1 %v13997_v60 }
 0x986   :  { %v18237_v38 = vld [vmem:[#allocation26 + $0x1bbc] sm:$0xf]  ;;  %v15981_v41 = vor.u32 %v18109_v24, %v15978_v29  ;;  %11440 = vmatpush.bf16.msrb.mxu3 %v15469_v27  ;;  %11409 = vmatmul.bf16.vlgmr.msrb.gmra.mxu0 %v19536_v52 }
 0x987   :  { %v16490_v18 = vld [vmem:[#allocation26 + $0x1bf8] sm:$0xf0]  ;;  %11434 = vmatpush.bf16.msrb.mxu2 %v14509_v4 }
 0x988   :  { %v18365_v46 = vld [vmem:[#allocation26 + $0x1fbc] sm:$0xf]  ;;  %v16493_v8 = vor.u32 %v18237_v38, %v16490_v18  ;;  %11453 = vmatpush.bf16.msra.mxu0 %v15981_v41  ;;  %11422 = vmatmul.bf16.vlgmr.msrb.gmra.mxu1 %v19538_v13  ;;  %v19867_v13 = vpop.f32.mrf.mxu1  ;;  %v11228_v41 = vpop.f32.mrf.mxu2 }
 0x989   :  { %v17002_v50 = vld [vmem:[#allocation26 + $0x1ff8] sm:$0xf0] }
 0x98a   :  { %v17965_v5 = vld [vmem:[#allocation26 + $0x133c] sm:$0xf]  ;;  %v17005_v15 = vor.u32 %v18365_v46, %v17002_v50  ;;  %11466 = vmatpush.bf16.msra.mxu1 %v16493_v8  ;;  %11435 = vmatmul.bf16.vlgmr.msrb.gmra.mxu2 %v19540_v9  ;;  %v11189_v50 = vpop.f32.mrf.mxu3 }
 0x98b   :  { %v15402_v34 = vld [vmem:[#allocation26 + $0x1378] sm:$0xf0] }
 0x98c   :  { %v18093_v17 = vld [vmem:[#allocation26 + $0x173c] sm:$0xf]  ;;  %v15405_v7 = vor.u32 %v17965_v5, %v15402_v34  ;;  %11479 = vmatpush.bf16.msra.mxu2 %v17005_v15  ;;  %v11204_v15 = vpop.f32.mrf.mxu0 }
 0x98d   :  { %v15914_v43 = vld [vmem:[#allocation26 + $0x1778] sm:$0xf0] }
 0x98e   :  { %v18221_v36 = vld [vmem:[#allocation26 + $0x1b3c] sm:$0xf]  ;;  %v15917_v21 = vor.u32 %v18093_v17, %v15914_v43  ;;  %11441 = vmatpush.bf16.msrb.mxu3 %v15405_v7 }
 0x98f   :  { %v16426_v37 = vld [vmem:[#allocation26 + $0x1b78] sm:$0xf0] }
 0x990   :  { %v18349_v53 = vld [vmem:[#allocation26 + $0x1f3c] sm:$0xf]  ;;  %v16429_v62 = vor.u32 %v18221_v36, %v16426_v37  ;;  %11454 = vmatpush.bf16.msra.mxu0 %v15917_v21  ;;  %v11217_v17 = vpop.f32.mrf.mxu1 }
 0x991   :  { %v16938_v11 = vld [vmem:[#allocation26 + $0x1f78] sm:$0xf0] }
 0x992   :  { %v17949_v48 = vld [vmem:[#allocation26 + $0x12bc] sm:$0xf]  ;;  %v16941_v55 = vor.u32 %v18349_v53, %v16938_v11  ;;  %11467 = vmatpush.bf16.msra.mxu1 %v16429_v62 }
 0x993   :  { %v15338_v63 = vld [vmem:[#allocation26 + $0x12f8] sm:$0xf0] }
 0x994   :  { %v18077_v6 = vld [vmem:[#allocation26 + $0x16bc] sm:$0xf]  ;;  %v15341_v30 = vor.u32 %v17949_v48, %v15338_v63  ;;  %11480 = vmatpush.bf16.msra.mxu2 %v16941_v55 }
 0x995   :  { %v15850_v22 = vld [vmem:[#allocation26 + $0x16f8] sm:$0xf0] }
 0x996   :  { %v18205_v28 = vld [vmem:[#allocation26 + $0x1abc] sm:$0xf]  ;;  %v15853_v0 = vor.u32 %v18077_v6, %v15850_v22  ;;  %11442 = vmatpush.bf16.msrb.mxu3 %v15341_v30 }
 0x997   :  { %v16362_v49 = vld [vmem:[#allocation26 + $0x1af8] sm:$0xf0] }
 0x998   :  { %v18333_v35 = vld [vmem:[#allocation26 + $0x1ebc] sm:$0xf]  ;;  %v16365_v61 = vor.u32 %v18205_v28, %v16362_v49  ;;  %11455 = vmatpush.bf16.msra.mxu0 %v15853_v0  ;;  %v11191_v0 = vpop.f32.mrf.mxu3 }
 0x999   :  { %v16874_v10 = vld [vmem:[#allocation26 + $0x1ef8] sm:$0xf0] }
 0x99a   :  { %v17933_v32 = vld [vmem:[#allocation26 + $0x123c] sm:$0xf]  ;;  %v16877_v39 = vor.u32 %v18333_v35, %v16874_v10  ;;  %11468 = vmatpush.bf16.msra.mxu1 %v16365_v61 }
 0x99b   :  { %v15274_v16 = vld [vmem:[#allocation26 + $0x1278] sm:$0xf0] }
 0x99c   :  { %v18061_v57 = vld [vmem:[#allocation26 + $0x163c] sm:$0xf]  ;;  %v15277_v9 = vor.u32 %v17933_v32, %v15274_v16  ;;  %11481 = vmatpush.bf16.msra.mxu2 %v16877_v39  ;;  %v11230_v39 = vpop.f32.mrf.mxu2 }
 0x99d   :  { %v15786_v14 = vld [vmem:[#allocation26 + $0x1678] sm:$0xf0] }
 0x99e   :  { %v18189_v52 = vld [vmem:[#allocation26 + $0x1a3c] sm:$0xf]  ;;  %v15789_v45 = vor.u32 %v18061_v57, %v15786_v14  ;;  %11443 = vmatpush.bf16.msrb.mxu3 %v15277_v9 }
 0x99f   :  { %v16298_v3 = vld [vmem:[#allocation26 + $0x1a78] sm:$0xf0] }
 0x9a0   :  { %v18317_v23 = vld [vmem:[#allocation26 + $0x1e3c] sm:$0xf]  ;;  %v16301_v56 = vor.u32 %v18189_v52, %v16298_v3  ;;  %11456 = vmatpush.bf16.msra.mxu0 %v15789_v45  ;;  %v4689_v45 = vperm.slane %v19850_v25, 5 }
 0x9a1   :  { %v16810_v19 = vld [vmem:[#allocation26 + $0x1e78] sm:$0xf0] }
 0x9a2   :  { %v17917_v47 = vld [vmem:[#allocation26 + $0x11bc] sm:$0xf]  ;;  %v16813_v33 = vor.u32 %v18317_v23, %v16810_v19  ;;  %11469 = vmatpush.bf16.msra.mxu1 %v16301_v56  ;;  %v11254_v56 = vpop.f32.mrf.mxu0 }
 0x9a3   :  { %v15210_v26 = vld [vmem:[#allocation26 + $0x11f8] sm:$0xf0] }
 0x9a4   :  { %v18045_v31 = vld [vmem:[#allocation26 + $0x15bc] sm:$0xf]  ;;  %v15213_v29 = vor.u32 %v17917_v47, %v15210_v26  ;;  %11482 = vmatpush.bf16.msra.mxu2 %v16813_v33  ;;  %v11190_v47 = vadd.f32 %v11189_v50, %v4689_v45 }
 0x9a5   :  { %v15722_v51 = vld [vmem:[#allocation26 + $0x15f8] sm:$0xf0] }
 0x9a6   :  { %v18173_v54 = vld [vmem:[#allocation26 + $0x19bc] sm:$0xf]  ;;  %v15725_v38 = vor.u32 %v18045_v31, %v15722_v51  ;;  %11444 = vmatpush.bf16.msrb.mxu3 %v15213_v29  ;;  %v11203_v26 = vadd.f32 %v19865_v44, %v11190_v47  ;;  %v11267_v31 = vpop.f32.mrf.mxu1 }
 0x9a7   :  { %v16234_v2 = vld [vmem:[#allocation26 + $0x19f8] sm:$0xf0] }
 0x9a8   :  { %v18301_v59 = vld [vmem:[#allocation26 + $0x1dbc] sm:$0xf]  ;;  %v16237_v18 = vor.u32 %v18173_v54, %v16234_v2  ;;  %11457 = vmatpush.bf16.msra.mxu0 %v15725_v38  ;;  %v11216_v33 = vadd.f32 %v19867_v13, %v11203_v26  ;;  %v11241_v54 = vpop.f32.mrf.mxu3 }
 0x9a9   :  { %v16746_v24 = vld [vmem:[#allocation26 + $0x1df8] sm:$0xf0] }
 0x9aa   :  { %v17901_v42 = vld [vmem:[#allocation26 + $0x113c] sm:$0xf]  ;;  %v16749_v46 = vor.u32 %v18301_v59, %v16746_v24  ;;  %11470 = vmatpush.bf16.msra.mxu1 %v16237_v18  ;;  %v11229_v51 = vadd.f32 %v11228_v41, %v11216_v33  ;;  %v11280_v59 = vpop.f32.mrf.mxu2  ;;  %v11256_v24 = vpop.f32.mrf.mxu0 }
 0x9ab   :  { %v15146_v40 = vld [vmem:[#allocation26 + $0x1178] sm:$0xf0] }
 0x9ac   :  { %v18029_v60 = vld [vmem:[#allocation26 + $0x153c] sm:$0xf]  ;;  %v15149_v43 = vor.u32 %v17901_v42, %v15146_v40  ;;  %11483 = vmatpush.bf16.msra.mxu2 %v16749_v46  ;;  %v11242_v2 = vadd.f32 %v11241_v54, %v11229_v51 }
 0x9ad   :  { %v15658_v4 = vld [vmem:[#allocation26 + $0x1578] sm:$0xf0] }
 0x9ae   :  { %v18157_v27 = vld [vmem:[#allocation26 + $0x193c] sm:$0xf]  ;;  %v15661_v36 = vor.u32 %v18029_v60, %v15658_v4  ;;  %11445 = vmatpush.bf16.msrb.mxu3 %v15149_v43  ;;  %v11255_v29 = vadd.f32 %v11254_v56, %v11242_v2  ;;  %v11269_v38 = vpop.f32.mrf.mxu1  ;;  %v4690_v4 = vperm.slane %v19850_v25, 6 }
 0x9af   :  { %v16170_v5 = vld [vmem:[#allocation26 + $0x1978] sm:$0xf0] }
 0x9b0   :  { %v18285_v34 = vld [vmem:[#allocation26 + $0x1d3c] sm:$0xf]  ;;  %v16173_v11 = vor.u32 %v18157_v27, %v16170_v5  ;;  %11458 = vmatpush.bf16.msra.mxu0 %v15661_v36 }
 0x9b1   :  { %v16682_v8 = vld [vmem:[#allocation26 + $0x1d78] sm:$0xf0] }
 0x9b2   :  { %v17885_v37 = vld [vmem:[#allocation26 + $0x10bc] sm:$0xf]  ;;  %v16685_v7 = vor.u32 %v18285_v34, %v16682_v8  ;;  %11471 = vmatpush.bf16.msra.mxu1 %v16173_v11  ;;  %v11306_v40 = vpop.f32.mrf.mxu0 }
 0x9b3   :  { %v15082_v53 = vld [vmem:[#allocation26 + $0x10f8] sm:$0xf0] }
 0x9b4   :  { %v18013_v21 = vld [vmem:[#allocation26 + $0x14bc] sm:$0xf]  ;;  %v15085_v22 = vor.u32 %v17885_v37, %v15082_v53  ;;  %11484 = vmatpush.bf16.msra.mxu2 %v16685_v7 }
 0x9b5   :  { %v15594_v48 = vld [vmem:[#allocation26 + $0x14f8] sm:$0xf0] }
 0x9b6   :  { %v18141_v63 = vld [vmem:[#allocation26 + $0x18bc] sm:$0xf]  ;;  %v15597_v28 = vor.u32 %v18013_v21, %v15594_v48  ;;  %11446 = vmatpush.bf16.msrb.mxu3 %v15085_v22 }
 0x9b7   :  { %v16106_v62 = vld [vmem:[#allocation26 + $0x18f8] sm:$0xf0] }
 0x9b8   :  { %v18269_v55 = vld [vmem:[#allocation26 + $0x1cbc] sm:$0xf]  ;;  %v16109_v10 = vor.u32 %v18141_v63, %v16106_v62  ;;  %11459 = vmatpush.bf16.msra.mxu0 %v15597_v28 }
 0x9b9   :  { %v16618_v6 = vld [vmem:[#allocation26 + $0x1cf8] sm:$0xf0] }
 0x9ba   :  { %v17869_v49 = vld [vmem:[#allocation26 + $0x103c] sm:$0xf]  ;;  %v16621_v30 = vor.u32 %v18269_v55, %v16618_v6  ;;  %11472 = vmatpush.bf16.msra.mxu1 %v16109_v10  ;;  %v11308_v46 = vpop.f32.mrf.mxu0 }
 0x9bb   :  { %v15018_v35 = vld [vmem:[#allocation26 + $0x1078] sm:$0xf0] }
 0x9bc   :  { %v17997_v32 = vld [vmem:[#allocation26 + $0x143c] sm:$0xf]  ;;  %v15021_v3 = vor.u32 %v17869_v49, %v15018_v35  ;;  %11485 = vmatpush.bf16.msra.mxu2 %v16621_v30  ;;  %v4691_v30 = vperm.slane %v19850_v25, 7 }
 0x9bd   :  { %v15530_v16 = vld [vmem:[#allocation26 + $0x1478] sm:$0xf0] }
 0x9be   :  { %v18125_v61 = vld [vmem:[#allocation26 + $0x183c] sm:$0xf]  ;;  %v15533_v23 = vor.u32 %v17997_v32, %v15530_v16  ;;  %11447 = vmatpush.bf16.msrb.mxu3 %v15021_v3 }
 0x9bf   :  { %v16042_v57 = vld [vmem:[#allocation26 + $0x1878] sm:$0xf0] }
 0x9c0   :  { %v18253_v14 = vld [vmem:[#allocation26 + $0x1c3c] sm:$0xf]  ;;  %v16045_v19 = vor.u32 %v18125_v61, %v16042_v57  ;;  %11460 = vmatpush.bf16.msra.mxu0 %v15533_v23 }
 0x9c1   :  { %v16554_v52 = vld [vmem:[#allocation26 + $0x1c78] sm:$0xf0]  ;;  %11448 = vmatmul.bf16.vlgmr.msrb.gmra.mxu3 %v19560_v12  ;;  %v11268_v12 = vadd.f32 %v11267_v31, %v11255_v29 }
 0x9c2   :  { %v16557_v9 = vor.u32 %v18253_v14, %v16554_v52  ;;  %11473 = vmatpush.bf16.msra.mxu1 %v16045_v19 }
 0x9c3   :  { %11461 = vmatmul.bf16.vlgmr.msra.gmra.mxu0 %v19562_v1  ;;  %v11281_v42 = vadd.f32 %v11280_v59, %v11268_v12  ;;  %v11243_v1 = vpop.f32.mrf.mxu3 }
 0x9c4   :  { %11486 = vmatpush.bf16.msra.mxu2 %v16557_v9 }
 0x9c5   :  { %11474 = vmatmul.bf16.vlgmr.msra.gmra.mxu1 %v19564_v58  ;;  %11505 = vst [vmem:[#allocation29 + $0x68] sm:$0xff] %v11281_v42  ;;  %v11282_v58 = vpop.f32.mrf.mxu2 }
 0x9c7   :  { %11487 = vmatmul.bf16.vlgmr.msra.gmra.mxu2 %v19566_v20  ;;  %v11319_v20 = vpop.f32.mrf.mxu1 }
 0x9cb   :  { %v11293_v18 = vpop.f32.mrf.mxu3 }
 0x9cc   :  { %v11294_v27 = vadd.f32 %v11293_v18, %v4690_v4 }
 0x9cd   :  { %v11332_v44 = vpop.f32.mrf.mxu2 }
 0x9ce   :  { %v11307_v41 = vadd.f32 %v11306_v40, %v11294_v27 }
 0x9cf   :  { %v11321_v50 = vpop.f32.mrf.mxu1 }
 0x9d0   :  { %v11320_v34 = vadd.f32 %v11319_v20, %v11307_v41 }
 0x9d2   :  { %v11333_v15 = vadd.f32 %v11332_v44, %v11320_v34 }
 0x9d3   :  { %v11295_v13 = vpop.f32.mrf.mxu3 }
 0x9d5   :  { %v11334_v60 = vpop.f32.mrf.mxu2 }
 0x9e3   :  { %v11358_v5 = vpop.f32.mrf.mxu0 }
 0x9e5   :  { %v11371_v8 = vpop.f32.mrf.mxu1 }
 0x9e7   :  { %v11345_v17 = vpop.f32.mrf.mxu3 }
 0x9e8   :  { %v11346_v43 = vadd.f32 %v11345_v17, %v11333_v15 }
 0x9ea   :  { %v11359_v53 = vadd.f32 %v11358_v5, %v11346_v43 }
 0x9eb   :  { %v11360_v37 = vpop.f32.mrf.mxu0 }
 0x9ec   :  { %v11372_v7 = vadd.f32 %v11371_v8, %v11359_v53 }
 0x9ed   :  { %v11384_v36 = vpop.f32.mrf.mxu2  ;;  %v11373_v11 = vpop.f32.mrf.mxu1 }
 0x9ee   :  { %v11385_v21 = vadd.f32 %v11384_v36, %v11372_v7 }
 0x9ef   :  { %v11347_v48 = vpop.f32.mrf.mxu3 }
 0x9f0   :  { %11506 = vst [vmem:[#allocation29 + $0x70] sm:$0xff] %v11385_v21 }
 0x9f5   :  { %v11386_v63 = vpop.f32.mrf.mxu2 }
 0xa03   :  { %v11410_v62 = vpop.f32.mrf.mxu0 }
 0xa05   :  { %v11423_v55 = vpop.f32.mrf.mxu1 }
 0xa07   :  { %v11397_v6 = vpop.f32.mrf.mxu3 }
 0xa08   :  { %v11398_v0 = vadd.f32 %v11397_v6, %v4691_v30 }
 0xa0a   :  { %v11411_v32 = vadd.f32 %v11410_v62, %v11398_v0 }
 0xa0b   :  { %v11412_v28 = vpop.f32.mrf.mxu0 }
 0xa0c   :  { %v11424_v61 = vadd.f32 %v11423_v55, %v11411_v32 }
 0xa0d   :  { %v11436_v22 = vpop.f32.mrf.mxu2  ;;  %v11425_v49 = vpop.f32.mrf.mxu1 }
 0xa0e   :  { %v11437_v57 = vadd.f32 %v11436_v22, %v11424_v61 }
 0xa0f   :  { %v11399_v35 = vpop.f32.mrf.mxu3 }
 0xa15   :  { %v11438_v10 = vpop.f32.mrf.mxu2 }
 0xa40   :  { %v11462_v16 = vpop.f32.mrf.mxu0 }
 0xa42   :  { %v11475_v39 = vpop.f32.mrf.mxu1 }
 0xa44   :  { %v11449_v14 = vpop.f32.mrf.mxu3 }
 0xa45   :  { %v11450_v52 = vadd.f32 %v11449_v14, %v11437_v57 }
 0xa47   :  { %v11463_v19 = vadd.f32 %v11462_v16, %v11450_v52 }
 0xa48   :  { %v11464_v23 = vpop.f32.mrf.mxu0 }
 0xa49   :  { %v11476_v45 = vadd.f32 %v11475_v39, %v11463_v19 }
 0xa4a   :  { %v11488_v3 = vpop.f32.mrf.mxu2  ;;  %v11477_v9 = vpop.f32.mrf.mxu1 }
 0xa4b   :  { %v11489_v25 = vadd.f32 %v11488_v3, %v11476_v45 }
 0xa4c   :  { %v11451_v47 = vpop.f32.mrf.mxu3 }
 0xa4d   :  { %11507 = vst [vmem:[#allocation29 + $0x78] sm:$0xff] %v11489_v25 }
 0xa4e   :  { %11518 = dma.vmem_to_hbm [thread:$0]  %s11514_s16, 2048, %s11516_s11, [#allocation4]  }
 0xa52   :  { %v11490_v26 = vpop.f32.mrf.mxu2 }
 0xa53   :  { %18887 = dma.done.wait [#allocation4], 2048  }
 0xa54   :  { %18888 = vsyncadd [#allocation4], 4294965248 }
 0xa55   :  { %11523 = vsyncpa [#allocation3], 1 }
 0xa56   :  { %11524 = vsyncpa [#allocation6], 1 }
 0xa57   :  { %11525 = vsyncpa [#allocation9], 1 }
 0xa58   :  { %11526 = vsyncpa [#allocation12], 1 }
 0xa59   :  { %11527 = vsyncpa [#allocation15], 1 }
 0xa5a   :  { %11528 = vsyncpa [#allocation18], 1 }
 0xa5b   :  { %11529 = vsyncpa [#allocation21], 1 }
 0xa5c   :  { %11530 = vsyncpa [#allocation24], 1 }
 0xa5d   :  { %11531 = vsyncpa [#allocation27], 1 }
 0xa5e   :  { %11532 = vsyncpa [#allocation4], 1 }

</bundles_post_ra>
